<compile_context>
chip_gen: v6e
topology: v6e:2x2x1
jax: 0.10.0
libtpu: 0.0.40
codegen_flags: <defaults>
</compile_context>

<pallas_src>
import functools

import jax
import jax.numpy as jnp
from jax.experimental import pallas as pl
from jax.experimental.pallas import tpu as pltpu


def _round_up(x, m):
    return (x + m - 1) // m * m


# ------------------------- in-kernel helpers -------------------------

def _build_padded_rows_s1(x_ref, xf_ref, H, W):
    """Zero-pad (pad=1) one (H, W, Cin) image into a row-flattened scratch.

    xf_ref row index = padded_row * (W + 2) + padded_col (border stays zero).
    """
    Wp = W + 2
    xf_ref[...] = jnp.zeros_like(xf_ref)
    for r in range(H):
        base = (r + 1) * Wp + 1
        xf_ref[base:base + W, :] = x_ref[0, r]


def _build_padded_rows_s2(x_ref, xe_ref, xo_ref, H, W):
    """Pad + split one image by padded-row parity into two flattened scratches.

    The HBM input is pre-viewed as (1, H, W/2, 2*Cin): lanes [0:Cin] hold the
    even image column of each pair, [Cin:2Cin] the odd one.  With a left pad
    of two columns the padded pair grid is [zero pair, input pairs], so the
    three column taps become lane-aligned channel slices.
      xe_ref: even padded rows 0,2,..,H    (row e = padded row 2e)
      xo_ref: odd  padded rows 1,3,..,H-1  (row o = padded row 2o+1)
    flattened as row * Php + pair, Php = W//2 + 1.
    """
    Ho, Wh = H // 2, W // 2
    Php = Wh + 1
    xe_ref[...] = jnp.zeros_like(xe_ref)
    xo_ref[...] = jnp.zeros_like(xo_ref)
    for a in range(Ho):
        # original row 2a   -> padded row 2a+1 (odd)  -> xo row a
        xo_ref[a * Php + 1:a * Php + 1 + Wh, :] = x_ref[0, 2 * a]
        # original row 2a+1 -> padded row 2a+2 (even) -> xe row a+1
        xe_ref[(a + 1) * Php + 1:(a + 1) * Php + 1 + Wh, :] = x_ref[0, 2 * a + 1]


def _conv_taps_s1(xf_ref, w_ref, H, W, Cout):
    """9 accumulating taps, stride 1.  Returns (acc (H*Wp, Cout) f32, Wp)."""
    Wp = W + 2
    Q = H * Wp                       # cols W..W+1 of each row are discarded halo
    acc = jnp.zeros((Q, Cout), jnp.float32)
    for ky in range(3):
        for kx in range(3):
            off = ky * Wp + kx
            acc = acc + jnp.dot(xf_ref[off:off + Q, :], w_ref[ky * 3 + kx],
                                preferred_element_type=jnp.float32)
    return acc, Wp


def _conv_taps_s2(xe_ref, xo_ref, w_ref, H, W, Cin, Cout):
    """9 accumulating taps, stride 2.  Returns (acc (Ho*Php, Cout) f32, Php)."""
    Ho, Wo = H // 2, W // 2
    Php = Wo + 1
    Q = Ho * Php                     # pair column Wo of each row is discarded halo
    acc = jnp.zeros((Q, Cout), jnp.float32)
    # padded col 2*wo + kx + 1 -> (pair offset, parity lane group)
    col_sel = ((0, 1), (1, 0), (1, 1))
    for ky in range(3):
        # padded row 2*ho + ky -> even scratch (ky=0,2) / odd scratch (ky=1)
        src = xo_ref if ky == 1 else xe_ref
        row_off = Php if ky == 2 else 0
        for kx in range(3):
            ca, cp = col_sel[kx]
            off = row_off + ca
            lhs = src[off:off + Q, cp * Cin:(cp + 1) * Cin]
            acc = acc + jnp.dot(lhs, w_ref[ky * 3 + kx],
                                preferred_element_type=jnp.float32)
    return acc, Php


# ------------------------- Pallas kernels -------------------------

def _conv_bn_relu_kernel(x_ref, w_ref, s_ref, b_ref, o_ref, *scratch,
                         stride, H, W, Cin, Cout):
    """3x3 conv (pad=1) + folded BatchNorm + ReLU for one image."""
    if stride == 1:
        (xf_ref,) = scratch
        _build_padded_rows_s1(x_ref, xf_ref, H, W)
        acc, pitch = _conv_taps_s1(xf_ref, w_ref, H, W, Cout)
        Ho, Wo = H, W
    else:
        xe_ref, xo_ref = scratch
        _build_padded_rows_s2(x_ref, xe_ref, xo_ref, H, W)
        acc, pitch = _conv_taps_s2(xe_ref, xo_ref, w_ref, H, W, Cin, Cout)
        Ho, Wo = H // 2, W // 2

    y = jnp.maximum(acc * s_ref[...] + b_ref[...], 0.0).astype(o_ref.dtype)
    for ho in range(Ho):                      # drop the halo columns per row
        o_ref[0, ho] = y[ho * pitch:ho * pitch + Wo, :]


def _conv_bn_relu_head_kernel(x_ref, w_ref, s_ref, b_ref,
                              w1_ref, b1_ref, w2_ref, b2_ref,
                              o_ref, xe_ref, xo_ref, *, H, W, Cin, Cout):
    """Last conv (stride 2) fused with GlobalAvgPool2d + FC(512,10) + FC(10,4)."""
    _build_padded_rows_s2(x_ref, xe_ref, xo_ref, H, W)
    acc, pitch = _conv_taps_s2(xe_ref, xo_ref, w_ref, H, W, Cin, Cout)
    Ho, Wo = H // 2, W // 2

    y = jnp.maximum(acc * s_ref[...] + b_ref[...], 0.0)          # (Q, Cout) f32
    # GlobalAvgPool2d over the real (non-halo) output positions only.
    feat = jnp.zeros((1, Cout), jnp.float32)
    for ho in range(Ho):
        feat = feat + jnp.sum(y[ho * pitch:ho * pitch + Wo, :],
                              axis=0, keepdims=True)
    feat = feat * (1.0 / (Ho * Wo))                               # (1, Cout)

    # TODO(synk): FullyConnectLayer assumed to be a plain nn.Linear (no act/BN).
    h = jnp.dot(feat.astype(jnp.bfloat16), w1_ref[...],
                preferred_element_type=jnp.float32) + b1_ref[...]
    logits = jnp.dot(h.astype(jnp.bfloat16), w2_ref[...],
                     preferred_element_type=jnp.float32) + b2_ref[...]
    o_ref[0] = jnp.broadcast_to(logits, (8, 128))   # lane/sublane-dense store


# ------------------------- wrappers -------------------------

_COMPILER_PARAMS = pltpu.CompilerParams(
    dimension_semantics=("parallel",),          # batch axis -> both v7x TCs
    vmem_limit_bytes=32 * 1024 * 1024,
)


def conv2d_bn_relu(x, conv_p, stride):
    """x: (B, H, W, Cin) bf16 -> (B, Ho, Wo, Cout) bf16."""
    B, H, W, Cin = x.shape
    Cout = conv_p["w"].shape[-1]
    assert Cin % 128 == 0
    if stride == 1:
        Ho, Wo = H, W
        x_in = x
        in_block = (1, H, W, Cin)
        scratch = [pltpu.VMEM((_round_up((H + 2) * (W + 2) + 2, 8), Cin),
                              jnp.bfloat16)]
    else:
        assert stride == 2 and H % 2 == 0 and W % 2 == 0
        Ho, Wo = H // 2, W // 2
        Php = Wo + 1
        x_in = x.reshape(B, H, W // 2, 2 * Cin)   # free, contiguous view in HBM
        in_block = (1, H, W // 2, 2 * Cin)
        scratch = [
            pltpu.VMEM((_round_up((Ho + 1) * Php + 2, 8), 2 * Cin), jnp.bfloat16),
            pltpu.VMEM((_round_up(Ho * Php + 2, 8), 2 * Cin), jnp.bfloat16),
        ]

    kernel = functools.partial(_conv_bn_relu_kernel, stride=stride,
                               H=H, W=W, Cin=Cin, Cout=Cout)
    return pl.pallas_call(
        kernel,
        out_shape=jax.ShapeDtypeStruct((B, Ho, Wo, Cout), jnp.bfloat16),
        grid=(B,),
        in_specs=[
            pl.BlockSpec(in_block, lambda b: (b, 0, 0, 0)),
            pl.BlockSpec((9, Cin, Cout), lambda b: (0, 0, 0)),   # pinned in VMEM
            pl.BlockSpec((1, Cout), lambda b: (0, 0)),
            pl.BlockSpec((1, Cout), lambda b: (0, 0)),
        ],
        out_specs=pl.BlockSpec((1, Ho, Wo, Cout), lambda b: (b, 0, 0, 0)),
        scratch_shapes=scratch,
        compiler_params=_COMPILER_PARAMS,
    )(x_in, conv_p["w"], conv_p["scale"], conv_p["bias"])


def conv2d_bn_relu_head(x, conv_p, fc_p):
    """Last conv (stride 2) + GAP + FC + FC -> (B, 8, 128) f32 padded logits."""
    B, H, W, Cin = x.shape
    Cout = conv_p["w"].shape[-1]
    assert Cin % 128 == 0 and H % 2 == 0 and W % 2 == 0
    Ho, Wo = H // 2, W // 2
    Php = Wo + 1
    x_in = x.reshape(B, H, W // 2, 2 * Cin)

    kernel = functools.partial(_conv_bn_relu_head_kernel,
                               H=H, W=W, Cin=Cin, Cout=Cout)
    return pl.pallas_call(
        kernel,
        out_shape=jax.ShapeDtypeStruct((B, 8, 128), jnp.float32),
        grid=(B,),
        in_specs=[
            pl.BlockSpec((1, H, W // 2, 2 * Cin), lambda b: (b, 0, 0, 0)),
            pl.BlockSpec((9, Cin, Cout), lambda b: (0, 0, 0)),   # pinned
            pl.BlockSpec((1, Cout), lambda b: (0, 0)),
            pl.BlockSpec((1, Cout), lambda b: (0, 0)),
            pl.BlockSpec((Cout, 128), lambda b: (0, 0)),         # FC1 W (bf16)
            pl.BlockSpec((1, 128), lambda b: (0, 0)),            # FC1 b
            pl.BlockSpec((128, 128), lambda b: (0, 0)),          # FC2 W (bf16)
            pl.BlockSpec((1, 128), lambda b: (0, 0)),            # FC2 b
        ],
        out_specs=pl.BlockSpec((1, 8, 128), lambda b: (b, 0, 0)),
        scratch_shapes=[
            pltpu.VMEM((_round_up((Ho + 1) * Php + 2, 8), 2 * Cin), jnp.bfloat16),
            pltpu.VMEM((_round_up(Ho * Php + 2, 8), 2 * Cin), jnp.bfloat16),
        ],
        compiler_params=_COMPILER_PARAMS,
    )(x_in, conv_p["w"], conv_p["scale"], conv_p["bias"],
      fc_p["w1"], fc_p["b1"], fc_p["w2"], fc_p["b2"])


# ------------------------- params & forward -------------------------

def init_params(key):
    ks = jax.random.split(key, 7)
    eps = 1e-5

    def conv_block(kk, cin, cout):
        kw, kg, kb, km, kv = jax.random.split(kk, 5)
        w = jax.random.normal(kw, (cout, cin, 3, 3), jnp.float32) * 0.02
        gamma = jax.random.uniform(kg, (cout,), jnp.float32, 0.5, 1.5)
        beta = jax.random.normal(kb, (cout,), jnp.float32) * 0.1
        mean = jax.random.normal(km, (cout,), jnp.float32) * 0.1
        var = jax.random.uniform(kv, (cout,), jnp.float32, 0.5, 1.5)
        # Fold OIHW -> per-tap (9, Cin, Cout) and BN (eval) -> scale/bias once.
        w_taps = jnp.transpose(w, (2, 3, 1, 0)).reshape(9, cin, cout)
        scale = gamma / jnp.sqrt(var + eps)
        bias = beta - mean * scale
        return dict(w=w_taps.astype(jnp.bfloat16),
                    scale=scale.reshape(1, cout).astype(jnp.float32),
                    bias=bias.reshape(1, cout).astype(jnp.float32))

    # FullyConnectLayer assumed to be a plain nn.Linear: y = x @ W.T + b.
    w1 = jax.random.normal(ks[3], (10, 512), jnp.float32) * 0.02
    b1 = jax.random.normal(ks[4], (10,), jnp.float32) * 0.01
    w2 = jax.random.normal(ks[5], (4, 10), jnp.float32) * 0.02
    b2 = jax.random.normal(ks[6], (4,), jnp.float32) * 0.01
    # Pre-transpose + zero-pad to 128 lanes; bf16 weights feed the MXU, f32 bias.
    w1p = jnp.zeros((512, 128), jnp.float32).at[:, :10].set(w1.T).astype(jnp.bfloat16)
    b1p = jnp.zeros((1, 128), jnp.float32).at[0, :10].set(b1)
    w2p = jnp.zeros((128, 128), jnp.float32).at[:10, :4].set(w2.T).astype(jnp.bfloat16)
    b2p = jnp.zeros((1, 128), jnp.float32).at[0, :4].set(b2)

    return dict(
        conv0=conv_block(ks[0], 128, 128),
        conv1=conv_block(ks[1], 128, 256),
        conv2=conv_block(ks[2], 256, 512),
        fc=dict(w1=w1p, b1=b1p, w2=w2p, b2=b2p),
    )


def face_bone_forward(params, x_nchw):
    # PyTorch NCHW -> NHWC; bf16 activations feed the MXU, f32 epilogues.
    x = jnp.transpose(x_nchw, (0, 2, 3, 1)).astype(jnp.bfloat16)

    x = conv2d_bn_relu(x, params["conv0"], stride=1)       # (B, H,   W,   128)
    x = conv2d_bn_relu(x, params["conv1"], stride=2)       # (B, H/2, W/2, 256)
    out = conv2d_bn_relu_head(x, params["conv2"], params["fc"])  # (B, 8, 128)
    return out[:, 0, :4]                                   # FullyConnectLayer(10,4)


if __name__ == "__main__":
    key = jax.random.PRNGKey(0)
    k_x, k_p = jax.random.split(key)

    # conv0 requires 128 input channels, two stride-2 convs want spatial % 4 == 0.
    x = jax.random.normal(k_x, (2, 128, 16, 16), jnp.float32)  # NCHW, like PyTorch
    params = init_params(k_p)

    out = jax.jit(face_bone_forward)(params, x)
    out = jax.block_until_ready(out)
    assert out.shape == (2, 4), out.shape
    print("KERNEL_OK")
</pallas_src>

<mosaic_0001>
module attributes {stable_mosaic.version = 11 : i64} {
  func.func @_conv_bn_relu_kernel(%arg0: i32, %arg1: memref<1x16x16x128xbf16, #tpu.memory_space<vmem>>, %arg2: memref<9x128x128xbf16, #tpu.memory_space<vmem>>, %arg3: memref<1x128xf32, #tpu.memory_space<vmem>>, %arg4: memref<1x128xf32, #tpu.memory_space<vmem>>, %arg5: memref<1x16x16x128xbf16, #tpu.memory_space<vmem>>, %arg6: memref<328x128xbf16, #tpu.memory_space<vmem>>) attributes {dimension_semantics = [#tpu.dimension_semantics<parallel>], iteration_bounds = array<i64: 2>, scalar_prefetch = 0 : i64, scratch_operands = 1 : i64, tpu.core_type = #tpu.core_type<tc>, window_params = [{transform_indices = @transform_0, window_bounds = array<i64: 1, 16, 16, 128>}, {pipeline_mode = #tpu.pipeline_mode<synchronous>, transform_indices = @transform_1, window_bounds = array<i64: 9, 128, 128>}, {pipeline_mode = #tpu.pipeline_mode<synchronous>, transform_indices = @transform_2, window_bounds = array<i64: 1, 128>}, {pipeline_mode = #tpu.pipeline_mode<synchronous>, transform_indices = @transform_3, window_bounds = array<i64: 1, 128>}, {transform_indices = @transform_4, window_bounds = array<i64: 1, 16, 16, 128>}]} {
    %cst = arith.constant 0.000000e+00 : bf16
    %0 = vector.broadcast %cst : bf16 to vector<328x128xbf16>
    %c0 = arith.constant 0 : index
    %c0_0 = arith.constant 0 : index
    %1 = vector.load %arg6[%c0, %c0_0] : memref<328x128xbf16, #tpu.memory_space<vmem>>, vector<328x128xbf16>
    tpu.vector_store %arg6[%c0, %c0_0], %0 {strides = array<i32>} : memref<328x128xbf16, #tpu.memory_space<vmem>>, vector<328x128xbf16>,
    %c0_1 = arith.constant 0 : index
    %c0_2 = arith.constant 0 : index
    %c0_3 = arith.constant 0 : index
    %c0_4 = arith.constant 0 : index
    %2 = vector.load %arg1[%c0_1, %c0_2, %c0_3, %c0_4] : memref<1x16x16x128xbf16, #tpu.memory_space<vmem>>, vector<1x1x16x128xbf16>
    %3 = vector.shape_cast %2 : vector<1x1x16x128xbf16> to vector<16x128xbf16>
    %c19 = arith.constant 19 : index
    %c0_5 = arith.constant 0 : index
    %4 = vector.load %arg6[%c19, %c0_5] : memref<328x128xbf16, #tpu.memory_space<vmem>>, vector<16x128xbf16>
    tpu.vector_store %arg6[%c19, %c0_5], %3 {strides = array<i32>} : memref<328x128xbf16, #tpu.memory_space<vmem>>, vector<16x128xbf16>,
    %c0_6 = arith.constant 0 : index
    %c1 = arith.constant 1 : index
    %c0_7 = arith.constant 0 : index
    %c0_8 = arith.constant 0 : index
    %5 = vector.load %arg1[%c0_6, %c1, %c0_7, %c0_8] : memref<1x16x16x128xbf16, #tpu.memory_space<vmem>>, vector<1x1x16x128xbf16>
    %6 = vector.shape_cast %5 : vector<1x1x16x128xbf16> to vector<16x128xbf16>
    %c37 = arith.constant 37 : index
    %c0_9 = arith.constant 0 : index
    %7 = vector.load %arg6[%c37, %c0_9] : memref<328x128xbf16, #tpu.memory_space<vmem>>, vector<16x128xbf16>
    tpu.vector_store %arg6[%c37, %c0_9], %6 {strides = array<i32>} : memref<328x128xbf16, #tpu.memory_space<vmem>>, vector<16x128xbf16>,
    %c0_10 = arith.constant 0 : index
    %c2 = arith.constant 2 : index
    %c0_11 = arith.constant 0 : index
    %c0_12 = arith.constant 0 : index
    %8 = vector.load %arg1[%c0_10, %c2, %c0_11, %c0_12] : memref<1x16x16x128xbf16, #tpu.memory_space<vmem>>, vector<1x1x16x128xbf16>
    %9 = vector.shape_cast %8 : vector<1x1x16x128xbf16> to vector<16x128xbf16>
    %c55 = arith.constant 55 : index
    %c0_13 = arith.constant 0 : index
    %10 = vector.load %arg6[%c55, %c0_13] : memref<328x128xbf16, #tpu.memory_space<vmem>>, vector<16x128xbf16>
    tpu.vector_store %arg6[%c55, %c0_13], %9 {strides = array<i32>} : memref<328x128xbf16, #tpu.memory_space<vmem>>, vector<16x128xbf16>,
    %c0_14 = arith.constant 0 : index
    %c3 = arith.constant 3 : index
    %c0_15 = arith.constant 0 : index
    %c0_16 = arith.constant 0 : index
    %11 = vector.load %arg1[%c0_14, %c3, %c0_15, %c0_16] : memref<1x16x16x128xbf16, #tpu.memory_space<vmem>>, vector<1x1x16x128xbf16>
    %12 = vector.shape_cast %11 : vector<1x1x16x128xbf16> to vector<16x128xbf16>
    %c73 = arith.constant 73 : index
    %c0_17 = arith.constant 0 : index
    %13 = vector.load %arg6[%c73, %c0_17] : memref<328x128xbf16, #tpu.memory_space<vmem>>, vector<16x128xbf16>
    tpu.vector_store %arg6[%c73, %c0_17], %12 {strides = array<i32>} : memref<328x128xbf16, #tpu.memory_space<vmem>>, vector<16x128xbf16>,
    %c0_18 = arith.constant 0 : index
    %c4 = arith.constant 4 : index
    %c0_19 = arith.constant 0 : index
    %c0_20 = arith.constant 0 : index
    %14 = vector.load %arg1[%c0_18, %c4, %c0_19, %c0_20] : memref<1x16x16x128xbf16, #tpu.memory_space<vmem>>, vector<1x1x16x128xbf16>
    %15 = vector.shape_cast %14 : vector<1x1x16x128xbf16> to vector<16x128xbf16>
    %c91 = arith.constant 91 : index
    %c0_21 = arith.constant 0 : index
    %16 = vector.load %arg6[%c91, %c0_21] : memref<328x128xbf16, #tpu.memory_space<vmem>>, vector<16x128xbf16>
    tpu.vector_store %arg6[%c91, %c0_21], %15 {strides = array<i32>} : memref<328x128xbf16, #tpu.memory_space<vmem>>, vector<16x128xbf16>,
    %c0_22 = arith.constant 0 : index
    %c5 = arith.constant 5 : index
    %c0_23 = arith.constant 0 : index
    %c0_24 = arith.constant 0 : index
    %17 = vector.load %arg1[%c0_22, %c5, %c0_23, %c0_24] : memref<1x16x16x128xbf16, #tpu.memory_space<vmem>>, vector<1x1x16x128xbf16>
    %18 = vector.shape_cast %17 : vector<1x1x16x128xbf16> to vector<16x128xbf16>
    %c109 = arith.constant 109 : index
    %c0_25 = arith.constant 0 : index
    %19 = vector.load %arg6[%c109, %c0_25] : memref<328x128xbf16, #tpu.memory_space<vmem>>, vector<16x128xbf16>
    tpu.vector_store %arg6[%c109, %c0_25], %18 {strides = array<i32>} : memref<328x128xbf16, #tpu.memory_space<vmem>>, vector<16x128xbf16>,
    %c0_26 = arith.constant 0 : index
    %c6 = arith.constant 6 : index
    %c0_27 = arith.constant 0 : index
    %c0_28 = arith.constant 0 : index
    %20 = vector.load %arg1[%c0_26, %c6, %c0_27, %c0_28] : memref<1x16x16x128xbf16, #tpu.memory_space<vmem>>, vector<1x1x16x128xbf16>
    %21 = vector.shape_cast %20 : vector<1x1x16x128xbf16> to vector<16x128xbf16>
    %c127 = arith.constant 127 : index
    %c0_29 = arith.constant 0 : index
    %22 = vector.load %arg6[%c127, %c0_29] : memref<328x128xbf16, #tpu.memory_space<vmem>>, vector<16x128xbf16>
    tpu.vector_store %arg6[%c127, %c0_29], %21 {strides = array<i32>} : memref<328x128xbf16, #tpu.memory_space<vmem>>, vector<16x128xbf16>,
    %c0_30 = arith.constant 0 : index
    %c7 = arith.constant 7 : index
    %c0_31 = arith.constant 0 : index
    %c0_32 = arith.constant 0 : index
    %23 = vector.load %arg1[%c0_30, %c7, %c0_31, %c0_32] : memref<1x16x16x128xbf16, #tpu.memory_space<vmem>>, vector<1x1x16x128xbf16>
    %24 = vector.shape_cast %23 : vector<1x1x16x128xbf16> to vector<16x128xbf16>
    %c145 = arith.constant 145 : index
    %c0_33 = arith.constant 0 : index
    %25 = vector.load %arg6[%c145, %c0_33] : memref<328x128xbf16, #tpu.memory_space<vmem>>, vector<16x128xbf16>
    tpu.vector_store %arg6[%c145, %c0_33], %24 {strides = array<i32>} : memref<328x128xbf16, #tpu.memory_space<vmem>>, vector<16x128xbf16>,
    %c0_34 = arith.constant 0 : index
    %c8 = arith.constant 8 : index
    %c0_35 = arith.constant 0 : index
    %c0_36 = arith.constant 0 : index
    %26 = vector.load %arg1[%c0_34, %c8, %c0_35, %c0_36] : memref<1x16x16x128xbf16, #tpu.memory_space<vmem>>, vector<1x1x16x128xbf16>
    %27 = vector.shape_cast %26 : vector<1x1x16x128xbf16> to vector<16x128xbf16>
    %c163 = arith.constant 163 : index
    %c0_37 = arith.constant 0 : index
    %28 = vector.load %arg6[%c163, %c0_37] : memref<328x128xbf16, #tpu.memory_space<vmem>>, vector<16x128xbf16>
    tpu.vector_store %arg6[%c163, %c0_37], %27 {strides = array<i32>} : memref<328x128xbf16, #tpu.memory_space<vmem>>, vector<16x128xbf16>,
    %c0_38 = arith.constant 0 : index
    %c9 = arith.constant 9 : index
    %c0_39 = arith.constant 0 : index
    %c0_40 = arith.constant 0 : index
    %29 = vector.load %arg1[%c0_38, %c9, %c0_39, %c0_40] : memref<1x16x16x128xbf16, #tpu.memory_space<vmem>>, vector<1x1x16x128xbf16>
    %30 = vector.shape_cast %29 : vector<1x1x16x128xbf16> to vector<16x128xbf16>
    %c181 = arith.constant 181 : index
    %c0_41 = arith.constant 0 : index
    %31 = vector.load %arg6[%c181, %c0_41] : memref<328x128xbf16, #tpu.memory_space<vmem>>, vector<16x128xbf16>
    tpu.vector_store %arg6[%c181, %c0_41], %30 {strides = array<i32>} : memref<328x128xbf16, #tpu.memory_space<vmem>>, vector<16x128xbf16>,
    %c0_42 = arith.constant 0 : index
    %c10 = arith.constant 10 : index
    %c0_43 = arith.constant 0 : index
    %c0_44 = arith.constant 0 : index
    %32 = vector.load %arg1[%c0_42, %c10, %c0_43, %c0_44] : memref<1x16x16x128xbf16, #tpu.memory_space<vmem>>, vector<1x1x16x128xbf16>
    %33 = vector.shape_cast %32 : vector<1x1x16x128xbf16> to vector<16x128xbf16>
    %c199 = arith.constant 199 : index
    %c0_45 = arith.constant 0 : index
    %34 = vector.load %arg6[%c199, %c0_45] : memref<328x128xbf16, #tpu.memory_space<vmem>>, vector<16x128xbf16>
    tpu.vector_store %arg6[%c199, %c0_45], %33 {strides = array<i32>} : memref<328x128xbf16, #tpu.memory_space<vmem>>, vector<16x128xbf16>,
    %c0_46 = arith.constant 0 : index
    %c11 = arith.constant 11 : index
    %c0_47 = arith.constant 0 : index
    %c0_48 = arith.constant 0 : index
    %35 = vector.load %arg1[%c0_46, %c11, %c0_47, %c0_48] : memref<1x16x16x128xbf16, #tpu.memory_space<vmem>>, vector<1x1x16x128xbf16>
    %36 = vector.shape_cast %35 : vector<1x1x16x128xbf16> to vector<16x128xbf16>
    %c217 = arith.constant 217 : index
    %c0_49 = arith.constant 0 : index
    %37 = vector.load %arg6[%c217, %c0_49] : memref<328x128xbf16, #tpu.memory_space<vmem>>, vector<16x128xbf16>
    tpu.vector_store %arg6[%c217, %c0_49], %36 {strides = array<i32>} : memref<328x128xbf16, #tpu.memory_space<vmem>>, vector<16x128xbf16>,
    %c0_50 = arith.constant 0 : index
    %c12 = arith.constant 12 : index
    %c0_51 = arith.constant 0 : index
    %c0_52 = arith.constant 0 : index
    %38 = vector.load %arg1[%c0_50, %c12, %c0_51, %c0_52] : memref<1x16x16x128xbf16, #tpu.memory_space<vmem>>, vector<1x1x16x128xbf16>
    %39 = vector.shape_cast %38 : vector<1x1x16x128xbf16> to vector<16x128xbf16>
    %c235 = arith.constant 235 : index
    %c0_53 = arith.constant 0 : index
    %40 = vector.load %arg6[%c235, %c0_53] : memref<328x128xbf16, #tpu.memory_space<vmem>>, vector<16x128xbf16>
    tpu.vector_store %arg6[%c235, %c0_53], %39 {strides = array<i32>} : memref<328x128xbf16, #tpu.memory_space<vmem>>, vector<16x128xbf16>,
    %c0_54 = arith.constant 0 : index
    %c13 = arith.constant 13 : index
    %c0_55 = arith.constant 0 : index
    %c0_56 = arith.constant 0 : index
    %41 = vector.load %arg1[%c0_54, %c13, %c0_55, %c0_56] : memref<1x16x16x128xbf16, #tpu.memory_space<vmem>>, vector<1x1x16x128xbf16>
    %42 = vector.shape_cast %41 : vector<1x1x16x128xbf16> to vector<16x128xbf16>
    %c253 = arith.constant 253 : index
    %c0_57 = arith.constant 0 : index
    %43 = vector.load %arg6[%c253, %c0_57] : memref<328x128xbf16, #tpu.memory_space<vmem>>, vector<16x128xbf16>
    tpu.vector_store %arg6[%c253, %c0_57], %42 {strides = array<i32>} : memref<328x128xbf16, #tpu.memory_space<vmem>>, vector<16x128xbf16>,
    %c0_58 = arith.constant 0 : index
    %c14 = arith.constant 14 : index
    %c0_59 = arith.constant 0 : index
    %c0_60 = arith.constant 0 : index
    %44 = vector.load %arg1[%c0_58, %c14, %c0_59, %c0_60] : memref<1x16x16x128xbf16, #tpu.memory_space<vmem>>, vector<1x1x16x128xbf16>
    %45 = vector.shape_cast %44 : vector<1x1x16x128xbf16> to vector<16x128xbf16>
    %c271 = arith.constant 271 : index
    %c0_61 = arith.constant 0 : index
    %46 = vector.load %arg6[%c271, %c0_61] : memref<328x128xbf16, #tpu.memory_space<vmem>>, vector<16x128xbf16>
    tpu.vector_store %arg6[%c271, %c0_61], %45 {strides = array<i32>} : memref<328x128xbf16, #tpu.memory_space<vmem>>, vector<16x128xbf16>,
    %c0_62 = arith.constant 0 : index
    %c15 = arith.constant 15 : index
    %c0_63 = arith.constant 0 : index
    %c0_64 = arith.constant 0 : index
    %47 = vector.load %arg1[%c0_62, %c15, %c0_63, %c0_64] : memref<1x16x16x128xbf16, #tpu.memory_space<vmem>>, vector<1x1x16x128xbf16>
    %48 = vector.shape_cast %47 : vector<1x1x16x128xbf16> to vector<16x128xbf16>
    %c289 = arith.constant 289 : index
    %c0_65 = arith.constant 0 : index
    %49 = vector.load %arg6[%c289, %c0_65] : memref<328x128xbf16, #tpu.memory_space<vmem>>, vector<16x128xbf16>
    tpu.vector_store %arg6[%c289, %c0_65], %48 {strides = array<i32>} : memref<328x128xbf16, #tpu.memory_space<vmem>>, vector<16x128xbf16>,
    %cst_66 = arith.constant 0.000000e+00 : f32
    %50 = vector.broadcast %cst_66 : f32 to vector<288x128xf32>
    %c0_67 = arith.constant 0 : index
    %c0_68 = arith.constant 0 : index
    %51 = vector.load %arg6[%c0_67, %c0_68] : memref<328x128xbf16, #tpu.memory_space<vmem>>, vector<288x128xbf16>
    %c0_69 = arith.constant 0 : index
    %c0_70 = arith.constant 0 : index
    %c0_71 = arith.constant 0 : index
    %52 = vector.load %arg2[%c0_69, %c0_70, %c0_71] : memref<9x128x128xbf16, #tpu.memory_space<vmem>>, vector<1x128x128xbf16>
    %53 = vector.shape_cast %52 : vector<1x128x128xbf16> to vector<128x128xbf16>
    %cst_72 = arith.constant dense<0.000000e+00> : vector<288x128xf32>
    %54 = tpu.matmul %51, %53, %cst_72 {dimension_numbers = #tpu.dot_dimension_numbers<[1], [0], [0], [1], [0, 0, 1, 1], [], []>} : vector<288x128xbf16>, vector<128x128xbf16>, vector<288x128xf32> -> vector<288x128xf32>
    %55 = arith.addf %50, %54 : vector<288x128xf32>
    %c1_73 = arith.constant 1 : index
    %c0_74 = arith.constant 0 : index
    %56 = vector.load %arg6[%c1_73, %c0_74] : memref<328x128xbf16, #tpu.memory_space<vmem>>, vector<288x128xbf16>
    %c1_75 = arith.constant 1 : index
    %c0_76 = arith.constant 0 : index
    %c0_77 = arith.constant 0 : index
    %57 = vector.load %arg2[%c1_75, %c0_76, %c0_77] : memref<9x128x128xbf16, #tpu.memory_space<vmem>>, vector<1x128x128xbf16>
    %58 = vector.shape_cast %57 : vector<1x128x128xbf16> to vector<128x128xbf16>
    %cst_78 = arith.constant dense<0.000000e+00> : vector<288x128xf32>
    %59 = tpu.matmul %56, %58, %cst_78 {dimension_numbers = #tpu.dot_dimension_numbers<[1], [0], [0], [1], [0, 0, 1, 1], [], []>} : vector<288x128xbf16>, vector<128x128xbf16>, vector<288x128xf32> -> vector<288x128xf32>
    %60 = arith.addf %55, %59 : vector<288x128xf32>
    %c2_79 = arith.constant 2 : index
    %c0_80 = arith.constant 0 : index
    %61 = vector.load %arg6[%c2_79, %c0_80] : memref<328x128xbf16, #tpu.memory_space<vmem>>, vector<288x128xbf16>
    %c2_81 = arith.constant 2 : index
    %c0_82 = arith.constant 0 : index
    %c0_83 = arith.constant 0 : index
    %62 = vector.load %arg2[%c2_81, %c0_82, %c0_83] : memref<9x128x128xbf16, #tpu.memory_space<vmem>>, vector<1x128x128xbf16>
    %63 = vector.shape_cast %62 : vector<1x128x128xbf16> to vector<128x128xbf16>
    %cst_84 = arith.constant dense<0.000000e+00> : vector<288x128xf32>
    %64 = tpu.matmul %61, %63, %cst_84 {dimension_numbers = #tpu.dot_dimension_numbers<[1], [0], [0], [1], [0, 0, 1, 1], [], []>} : vector<288x128xbf16>, vector<128x128xbf16>, vector<288x128xf32> -> vector<288x128xf32>
    %65 = arith.addf %60, %64 : vector<288x128xf32>
    %c18 = arith.constant 18 : index
    %c0_85 = arith.constant 0 : index
    %66 = vector.load %arg6[%c18, %c0_85] : memref<328x128xbf16, #tpu.memory_space<vmem>>, vector<288x128xbf16>
    %c3_86 = arith.constant 3 : index
    %c0_87 = arith.constant 0 : index
    %c0_88 = arith.constant 0 : index
    %67 = vector.load %arg2[%c3_86, %c0_87, %c0_88] : memref<9x128x128xbf16, #tpu.memory_space<vmem>>, vector<1x128x128xbf16>
    %68 = vector.shape_cast %67 : vector<1x128x128xbf16> to vector<128x128xbf16>
    %cst_89 = arith.constant dense<0.000000e+00> : vector<288x128xf32>
    %69 = tpu.matmul %66, %68, %cst_89 {dimension_numbers = #tpu.dot_dimension_numbers<[1], [0], [0], [1], [0, 0, 1, 1], [], []>} : vector<288x128xbf16>, vector<128x128xbf16>, vector<288x128xf32> -> vector<288x128xf32>
    %70 = arith.addf %65, %69 : vector<288x128xf32>
    %c19_90 = arith.constant 19 : index
    %c0_91 = arith.constant 0 : index
    %71 = vector.load %arg6[%c19_90, %c0_91] : memref<328x128xbf16, #tpu.memory_space<vmem>>, vector<288x128xbf16>
    %c4_92 = arith.constant 4 : index
    %c0_93 = arith.constant 0 : index
    %c0_94 = arith.constant 0 : index
    %72 = vector.load %arg2[%c4_92, %c0_93, %c0_94] : memref<9x128x128xbf16, #tpu.memory_space<vmem>>, vector<1x128x128xbf16>
    %73 = vector.shape_cast %72 : vector<1x128x128xbf16> to vector<128x128xbf16>
    %cst_95 = arith.constant dense<0.000000e+00> : vector<288x128xf32>
    %74 = tpu.matmul %71, %73, %cst_95 {dimension_numbers = #tpu.dot_dimension_numbers<[1], [0], [0], [1], [0, 0, 1, 1], [], []>} : vector<288x128xbf16>, vector<128x128xbf16>, vector<288x128xf32> -> vector<288x128xf32>
    %75 = arith.addf %70, %74 : vector<288x128xf32>
    %c20 = arith.constant 20 : index
    %c0_96 = arith.constant 0 : index
    %76 = vector.load %arg6[%c20, %c0_96] : memref<328x128xbf16, #tpu.memory_space<vmem>>, vector<288x128xbf16>
    %c5_97 = arith.constant 5 : index
    %c0_98 = arith.constant 0 : index
    %c0_99 = arith.constant 0 : index
    %77 = vector.load %arg2[%c5_97, %c0_98, %c0_99] : memref<9x128x128xbf16, #tpu.memory_space<vmem>>, vector<1x128x128xbf16>
    %78 = vector.shape_cast %77 : vector<1x128x128xbf16> to vector<128x128xbf16>
    %cst_100 = arith.constant dense<0.000000e+00> : vector<288x128xf32>
    %79 = tpu.matmul %76, %78, %cst_100 {dimension_numbers = #tpu.dot_dimension_numbers<[1], [0], [0], [1], [0, 0, 1, 1], [], []>} : vector<288x128xbf16>, vector<128x128xbf16>, vector<288x128xf32> -> vector<288x128xf32>
    %80 = arith.addf %75, %79 : vector<288x128xf32>
    %c36 = arith.constant 36 : index
    %c0_101 = arith.constant 0 : index
    %81 = vector.load %arg6[%c36, %c0_101] : memref<328x128xbf16, #tpu.memory_space<vmem>>, vector<288x128xbf16>
    %c6_102 = arith.constant 6 : index
    %c0_103 = arith.constant 0 : index
    %c0_104 = arith.constant 0 : index
    %82 = vector.load %arg2[%c6_102, %c0_103, %c0_104] : memref<9x128x128xbf16, #tpu.memory_space<vmem>>, vector<1x128x128xbf16>
    %83 = vector.shape_cast %82 : vector<1x128x128xbf16> to vector<128x128xbf16>
    %cst_105 = arith.constant dense<0.000000e+00> : vector<288x128xf32>
    %84 = tpu.matmul %81, %83, %cst_105 {dimension_numbers = #tpu.dot_dimension_numbers<[1], [0], [0], [1], [0, 0, 1, 1], [], []>} : vector<288x128xbf16>, vector<128x128xbf16>, vector<288x128xf32> -> vector<288x128xf32>
    %85 = arith.addf %80, %84 : vector<288x128xf32>
    %c37_106 = arith.constant 37 : index
    %c0_107 = arith.constant 0 : index
    %86 = vector.load %arg6[%c37_106, %c0_107] : memref<328x128xbf16, #tpu.memory_space<vmem>>, vector<288x128xbf16>
    %c7_108 = arith.constant 7 : index
    %c0_109 = arith.constant 0 : index
    %c0_110 = arith.constant 0 : index
    %87 = vector.load %arg2[%c7_108, %c0_109, %c0_110] : memref<9x128x128xbf16, #tpu.memory_space<vmem>>, vector<1x128x128xbf16>
    %88 = vector.shape_cast %87 : vector<1x128x128xbf16> to vector<128x128xbf16>
    %cst_111 = arith.constant dense<0.000000e+00> : vector<288x128xf32>
    %89 = tpu.matmul %86, %88, %cst_111 {dimension_numbers = #tpu.dot_dimension_numbers<[1], [0], [0], [1], [0, 0, 1, 1], [], []>} : vector<288x128xbf16>, vector<128x128xbf16>, vector<288x128xf32> -> vector<288x128xf32>
    %90 = arith.addf %85, %89 : vector<288x128xf32>
    %c38 = arith.constant 38 : index
    %c0_112 = arith.constant 0 : index
    %91 = vector.load %arg6[%c38, %c0_112] : memref<328x128xbf16, #tpu.memory_space<vmem>>, vector<288x128xbf16>
    %c8_113 = arith.constant 8 : index
    %c0_114 = arith.constant 0 : index
    %c0_115 = arith.constant 0 : index
    %92 = vector.load %arg2[%c8_113, %c0_114, %c0_115] : memref<9x128x128xbf16, #tpu.memory_space<vmem>>, vector<1x128x128xbf16>
    %93 = vector.shape_cast %92 : vector<1x128x128xbf16> to vector<128x128xbf16>
    %cst_116 = arith.constant dense<0.000000e+00> : vector<288x128xf32>
    %94 = tpu.matmul %91, %93, %cst_116 {dimension_numbers = #tpu.dot_dimension_numbers<[1], [0], [0], [1], [0, 0, 1, 1], [], []>} : vector<288x128xbf16>, vector<128x128xbf16>, vector<288x128xf32> -> vector<288x128xf32>
    %95 = arith.addf %90, %94 : vector<288x128xf32>
    %c0_117 = arith.constant 0 : index
    %c0_118 = arith.constant 0 : index
    %96 = vector.load %arg3[%c0_117, %c0_118] : memref<1x128xf32, #tpu.memory_space<vmem>>, vector<1x128xf32>
    %97 = vector.broadcast %96 : vector<1x128xf32> to vector<288x128xf32>
    %98 = arith.mulf %95, %97 : vector<288x128xf32>
    %c0_119 = arith.constant 0 : index
    %c0_120 = arith.constant 0 : index
    %99 = vector.load %arg4[%c0_119, %c0_120] : memref<1x128xf32, #tpu.memory_space<vmem>>, vector<1x128xf32>
    %100 = vector.broadcast %99 : vector<1x128xf32> to vector<288x128xf32>
    %101 = arith.addf %98, %100 : vector<288x128xf32>
    %cst_121 = arith.constant 0.000000e+00 : f32
    %102 = vector.broadcast %cst_121 : f32 to vector<288x128xf32>
    %103 = arith.maximumf %101, %102 : vector<288x128xf32>
    %104 = arith.truncf %103 : vector<288x128xf32> to vector<288x128xbf16>
    %105 = vector.extract_strided_slice %104 {offsets = [0, 0], sizes = [16, 128], strides = [1, 1]} : vector<288x128xbf16> to vector<16x128xbf16>
    %c0_122 = arith.constant 0 : index
    %c0_123 = arith.constant 0 : index
    %c0_124 = arith.constant 0 : index
    %c0_125 = arith.constant 0 : index
    %106 = vector.load %arg5[%c0_122, %c0_123, %c0_124, %c0_125] : memref<1x16x16x128xbf16, #tpu.memory_space<vmem>>, vector<1x1x16x128xbf16>
    %107 = vector.shape_cast %106 : vector<1x1x16x128xbf16> to vector<16x128xbf16>
    %108 = vector.shape_cast %105 : vector<16x128xbf16> to vector<1x1x16x128xbf16>
    tpu.vector_store %arg5[%c0_122, %c0_123, %c0_124, %c0_125], %108 {strides = array<i32>} : memref<1x16x16x128xbf16, #tpu.memory_space<vmem>>, vector<1x1x16x128xbf16>,
    %109 = vector.extract_strided_slice %104 {offsets = [18, 0], sizes = [16, 128], strides = [1, 1]} : vector<288x128xbf16> to vector<16x128xbf16>
    %c0_126 = arith.constant 0 : index
    %c1_127 = arith.constant 1 : index
    %c0_128 = arith.constant 0 : index
    %c0_129 = arith.constant 0 : index
    %110 = vector.load %arg5[%c0_126, %c1_127, %c0_128, %c0_129] : memref<1x16x16x128xbf16, #tpu.memory_space<vmem>>, vector<1x1x16x128xbf16>
    %111 = vector.shape_cast %110 : vector<1x1x16x128xbf16> to vector<16x128xbf16>
    %112 = vector.shape_cast %109 : vector<16x128xbf16> to vector<1x1x16x128xbf16>
    tpu.vector_store %arg5[%c0_126, %c1_127, %c0_128, %c0_129], %112 {strides = array<i32>} : memref<1x16x16x128xbf16, #tpu.memory_space<vmem>>, vector<1x1x16x128xbf16>,
    %113 = vector.extract_strided_slice %104 {offsets = [36, 0], sizes = [16, 128], strides = [1, 1]} : vector<288x128xbf16> to vector<16x128xbf16>
    %c0_130 = arith.constant 0 : index
    %c2_131 = arith.constant 2 : index
    %c0_132 = arith.constant 0 : index
    %c0_133 = arith.constant 0 : index
    %114 = vector.load %arg5[%c0_130, %c2_131, %c0_132, %c0_133] : memref<1x16x16x128xbf16, #tpu.memory_space<vmem>>, vector<1x1x16x128xbf16>
    %115 = vector.shape_cast %114 : vector<1x1x16x128xbf16> to vector<16x128xbf16>
    %116 = vector.shape_cast %113 : vector<16x128xbf16> to vector<1x1x16x128xbf16>
    tpu.vector_store %arg5[%c0_130, %c2_131, %c0_132, %c0_133], %116 {strides = array<i32>} : memref<1x16x16x128xbf16, #tpu.memory_space<vmem>>, vector<1x1x16x128xbf16>,
    %117 = vector.extract_strided_slice %104 {offsets = [54, 0], sizes = [16, 128], strides = [1, 1]} : vector<288x128xbf16> to vector<16x128xbf16>
    %c0_134 = arith.constant 0 : index
    %c3_135 = arith.constant 3 : index
    %c0_136 = arith.constant 0 : index
    %c0_137 = arith.constant 0 : index
    %118 = vector.load %arg5[%c0_134, %c3_135, %c0_136, %c0_137] : memref<1x16x16x128xbf16, #tpu.memory_space<vmem>>, vector<1x1x16x128xbf16>
    %119 = vector.shape_cast %118 : vector<1x1x16x128xbf16> to vector<16x128xbf16>
    %120 = vector.shape_cast %117 : vector<16x128xbf16> to vector<1x1x16x128xbf16>
    tpu.vector_store %arg5[%c0_134, %c3_135, %c0_136, %c0_137], %120 {strides = array<i32>} : memref<1x16x16x128xbf16, #tpu.memory_space<vmem>>, vector<1x1x16x128xbf16>,
    %121 = vector.extract_strided_slice %104 {offsets = [72, 0], sizes = [16, 128], strides = [1, 1]} : vector<288x128xbf16> to vector<16x128xbf16>
    %c0_138 = arith.constant 0 : index
    %c4_139 = arith.constant 4 : index
    %c0_140 = arith.constant 0 : index
    %c0_141 = arith.constant 0 : index
    %122 = vector.load %arg5[%c0_138, %c4_139, %c0_140, %c0_141] : memref<1x16x16x128xbf16, #tpu.memory_space<vmem>>, vector<1x1x16x128xbf16>
    %123 = vector.shape_cast %122 : vector<1x1x16x128xbf16> to vector<16x128xbf16>
    %124 = vector.shape_cast %121 : vector<16x128xbf16> to vector<1x1x16x128xbf16>
    tpu.vector_store %arg5[%c0_138, %c4_139, %c0_140, %c0_141], %124 {strides = array<i32>} : memref<1x16x16x128xbf16, #tpu.memory_space<vmem>>, vector<1x1x16x128xbf16>,
    %125 = vector.extract_strided_slice %104 {offsets = [90, 0], sizes = [16, 128], strides = [1, 1]} : vector<288x128xbf16> to vector<16x128xbf16>
    %c0_142 = arith.constant 0 : index
    %c5_143 = arith.constant 5 : index
    %c0_144 = arith.constant 0 : index
    %c0_145 = arith.constant 0 : index
    %126 = vector.load %arg5[%c0_142, %c5_143, %c0_144, %c0_145] : memref<1x16x16x128xbf16, #tpu.memory_space<vmem>>, vector<1x1x16x128xbf16>
    %127 = vector.shape_cast %126 : vector<1x1x16x128xbf16> to vector<16x128xbf16>
    %128 = vector.shape_cast %125 : vector<16x128xbf16> to vector<1x1x16x128xbf16>
    tpu.vector_store %arg5[%c0_142, %c5_143, %c0_144, %c0_145], %128 {strides = array<i32>} : memref<1x16x16x128xbf16, #tpu.memory_space<vmem>>, vector<1x1x16x128xbf16>,
    %129 = vector.extract_strided_slice %104 {offsets = [108, 0], sizes = [16, 128], strides = [1, 1]} : vector<288x128xbf16> to vector<16x128xbf16>
    %c0_146 = arith.constant 0 : index
    %c6_147 = arith.constant 6 : index
    %c0_148 = arith.constant 0 : index
    %c0_149 = arith.constant 0 : index
    %130 = vector.load %arg5[%c0_146, %c6_147, %c0_148, %c0_149] : memref<1x16x16x128xbf16, #tpu.memory_space<vmem>>, vector<1x1x16x128xbf16>
    %131 = vector.shape_cast %130 : vector<1x1x16x128xbf16> to vector<16x128xbf16>
    %132 = vector.shape_cast %129 : vector<16x128xbf16> to vector<1x1x16x128xbf16>
    tpu.vector_store %arg5[%c0_146, %c6_147, %c0_148, %c0_149], %132 {strides = array<i32>} : memref<1x16x16x128xbf16, #tpu.memory_space<vmem>>, vector<1x1x16x128xbf16>,
    %133 = vector.extract_strided_slice %104 {offsets = [126, 0], sizes = [16, 128], strides = [1, 1]} : vector<288x128xbf16> to vector<16x128xbf16>
    %c0_150 = arith.constant 0 : index
    %c7_151 = arith.constant 7 : index
    %c0_152 = arith.constant 0 : index
    %c0_153 = arith.constant 0 : index
    %134 = vector.load %arg5[%c0_150, %c7_151, %c0_152, %c0_153] : memref<1x16x16x128xbf16, #tpu.memory_space<vmem>>, vector<1x1x16x128xbf16>
    %135 = vector.shape_cast %134 : vector<1x1x16x128xbf16> to vector<16x128xbf16>
    %136 = vector.shape_cast %133 : vector<16x128xbf16> to vector<1x1x16x128xbf16>
    tpu.vector_store %arg5[%c0_150, %c7_151, %c0_152, %c0_153], %136 {strides = array<i32>} : memref<1x16x16x128xbf16, #tpu.memory_space<vmem>>, vector<1x1x16x128xbf16>,
    %137 = vector.extract_strided_slice %104 {offsets = [144, 0], sizes = [16, 128], strides = [1, 1]} : vector<288x128xbf16> to vector<16x128xbf16>
    %c0_154 = arith.constant 0 : index
    %c8_155 = arith.constant 8 : index
    %c0_156 = arith.constant 0 : index
    %c0_157 = arith.constant 0 : index
    %138 = vector.load %arg5[%c0_154, %c8_155, %c0_156, %c0_157] : memref<1x16x16x128xbf16, #tpu.memory_space<vmem>>, vector<1x1x16x128xbf16>
    %139 = vector.shape_cast %138 : vector<1x1x16x128xbf16> to vector<16x128xbf16>
    %140 = vector.shape_cast %137 : vector<16x128xbf16> to vector<1x1x16x128xbf16>
    tpu.vector_store %arg5[%c0_154, %c8_155, %c0_156, %c0_157], %140 {strides = array<i32>} : memref<1x16x16x128xbf16, #tpu.memory_space<vmem>>, vector<1x1x16x128xbf16>,
    %141 = vector.extract_strided_slice %104 {offsets = [162, 0], sizes = [16, 128], strides = [1, 1]} : vector<288x128xbf16> to vector<16x128xbf16>
    %c0_158 = arith.constant 0 : index
    %c9_159 = arith.constant 9 : index
    %c0_160 = arith.constant 0 : index
    %c0_161 = arith.constant 0 : index
    %142 = vector.load %arg5[%c0_158, %c9_159, %c0_160, %c0_161] : memref<1x16x16x128xbf16, #tpu.memory_space<vmem>>, vector<1x1x16x128xbf16>
    %143 = vector.shape_cast %142 : vector<1x1x16x128xbf16> to vector<16x128xbf16>
    %144 = vector.shape_cast %141 : vector<16x128xbf16> to vector<1x1x16x128xbf16>
    tpu.vector_store %arg5[%c0_158, %c9_159, %c0_160, %c0_161], %144 {strides = array<i32>} : memref<1x16x16x128xbf16, #tpu.memory_space<vmem>>, vector<1x1x16x128xbf16>,
    %145 = vector.extract_strided_slice %104 {offsets = [180, 0], sizes = [16, 128], strides = [1, 1]} : vector<288x128xbf16> to vector<16x128xbf16>
    %c0_162 = arith.constant 0 : index
    %c10_163 = arith.constant 10 : index
    %c0_164 = arith.constant 0 : index
    %c0_165 = arith.constant 0 : index
    %146 = vector.load %arg5[%c0_162, %c10_163, %c0_164, %c0_165] : memref<1x16x16x128xbf16, #tpu.memory_space<vmem>>, vector<1x1x16x128xbf16>
    %147 = vector.shape_cast %146 : vector<1x1x16x128xbf16> to vector<16x128xbf16>
    %148 = vector.shape_cast %145 : vector<16x128xbf16> to vector<1x1x16x128xbf16>
    tpu.vector_store %arg5[%c0_162, %c10_163, %c0_164, %c0_165], %148 {strides = array<i32>} : memref<1x16x16x128xbf16, #tpu.memory_space<vmem>>, vector<1x1x16x128xbf16>,
    %149 = vector.extract_strided_slice %104 {offsets = [198, 0], sizes = [16, 128], strides = [1, 1]} : vector<288x128xbf16> to vector<16x128xbf16>
    %c0_166 = arith.constant 0 : index
    %c11_167 = arith.constant 11 : index
    %c0_168 = arith.constant 0 : index
    %c0_169 = arith.constant 0 : index
    %150 = vector.load %arg5[%c0_166, %c11_167, %c0_168, %c0_169] : memref<1x16x16x128xbf16, #tpu.memory_space<vmem>>, vector<1x1x16x128xbf16>
    %151 = vector.shape_cast %150 : vector<1x1x16x128xbf16> to vector<16x128xbf16>
    %152 = vector.shape_cast %149 : vector<16x128xbf16> to vector<1x1x16x128xbf16>
    tpu.vector_store %arg5[%c0_166, %c11_167, %c0_168, %c0_169], %152 {strides = array<i32>} : memref<1x16x16x128xbf16, #tpu.memory_space<vmem>>, vector<1x1x16x128xbf16>,
    %153 = vector.extract_strided_slice %104 {offsets = [216, 0], sizes = [16, 128], strides = [1, 1]} : vector<288x128xbf16> to vector<16x128xbf16>
    %c0_170 = arith.constant 0 : index
    %c12_171 = arith.constant 12 : index
    %c0_172 = arith.constant 0 : index
    %c0_173 = arith.constant 0 : index
    %154 = vector.load %arg5[%c0_170, %c12_171, %c0_172, %c0_173] : memref<1x16x16x128xbf16, #tpu.memory_space<vmem>>, vector<1x1x16x128xbf16>
    %155 = vector.shape_cast %154 : vector<1x1x16x128xbf16> to vector<16x128xbf16>
    %156 = vector.shape_cast %153 : vector<16x128xbf16> to vector<1x1x16x128xbf16>
    tpu.vector_store %arg5[%c0_170, %c12_171, %c0_172, %c0_173], %156 {strides = array<i32>} : memref<1x16x16x128xbf16, #tpu.memory_space<vmem>>, vector<1x1x16x128xbf16>,
    %157 = vector.extract_strided_slice %104 {offsets = [234, 0], sizes = [16, 128], strides = [1, 1]} : vector<288x128xbf16> to vector<16x128xbf16>
    %c0_174 = arith.constant 0 : index
    %c13_175 = arith.constant 13 : index
    %c0_176 = arith.constant 0 : index
    %c0_177 = arith.constant 0 : index
    %158 = vector.load %arg5[%c0_174, %c13_175, %c0_176, %c0_177] : memref<1x16x16x128xbf16, #tpu.memory_space<vmem>>, vector<1x1x16x128xbf16>
    %159 = vector.shape_cast %158 : vector<1x1x16x128xbf16> to vector<16x128xbf16>
    %160 = vector.shape_cast %157 : vector<16x128xbf16> to vector<1x1x16x128xbf16>
    tpu.vector_store %arg5[%c0_174, %c13_175, %c0_176, %c0_177], %160 {strides = array<i32>} : memref<1x16x16x128xbf16, #tpu.memory_space<vmem>>, vector<1x1x16x128xbf16>,
    %161 = vector.extract_strided_slice %104 {offsets = [252, 0], sizes = [16, 128], strides = [1, 1]} : vector<288x128xbf16> to vector<16x128xbf16>
    %c0_178 = arith.constant 0 : index
    %c14_179 = arith.constant 14 : index
    %c0_180 = arith.constant 0 : index
    %c0_181 = arith.constant 0 : index
    %162 = vector.load %arg5[%c0_178, %c14_179, %c0_180, %c0_181] : memref<1x16x16x128xbf16, #tpu.memory_space<vmem>>, vector<1x1x16x128xbf16>
    %163 = vector.shape_cast %162 : vector<1x1x16x128xbf16> to vector<16x128xbf16>
    %164 = vector.shape_cast %161 : vector<16x128xbf16> to vector<1x1x16x128xbf16>
    tpu.vector_store %arg5[%c0_178, %c14_179, %c0_180, %c0_181], %164 {strides = array<i32>} : memref<1x16x16x128xbf16, #tpu.memory_space<vmem>>, vector<1x1x16x128xbf16>,
    %165 = vector.extract_strided_slice %104 {offsets = [270, 0], sizes = [16, 128], strides = [1, 1]} : vector<288x128xbf16> to vector<16x128xbf16>
    %c0_182 = arith.constant 0 : index
    %c15_183 = arith.constant 15 : index
    %c0_184 = arith.constant 0 : index
    %c0_185 = arith.constant 0 : index
    %166 = vector.load %arg5[%c0_182, %c15_183, %c0_184, %c0_185] : memref<1x16x16x128xbf16, #tpu.memory_space<vmem>>, vector<1x1x16x128xbf16>
    %167 = vector.shape_cast %166 : vector<1x1x16x128xbf16> to vector<16x128xbf16>
    %168 = vector.shape_cast %165 : vector<16x128xbf16> to vector<1x1x16x128xbf16>
    tpu.vector_store %arg5[%c0_182, %c15_183, %c0_184, %c0_185], %168 {strides = array<i32>} : memref<1x16x16x128xbf16, #tpu.memory_space<vmem>>, vector<1x1x16x128xbf16>,
    return
  }
  func.func @transform_0(%arg0: i32) -> (i32, i32, i32, i32) {
    %c0_i32 = arith.constant 0 : i32
    %c0_i32_0 = arith.constant 0 : i32
    %c0_i32_1 = arith.constant 0 : i32
    %c0_i32_2 = arith.constant 0 : i32
    return %arg0, %c0_i32, %c0_i32_0, %c0_i32_1 : i32, i32, i32, i32
  }
  func.func @transform_1(%arg0: i32) -> (i32, i32, i32) {
    %c0_i32 = arith.constant 0 : i32
    %c0_i32_0 = arith.constant 0 : i32
    %c0_i32_1 = arith.constant 0 : i32
    %c0_i32_2 = arith.constant 0 : i32
    return %c0_i32, %c0_i32_0, %c0_i32_1 : i32, i32, i32
  }
  func.func @transform_2(%arg0: i32) -> (i32, i32) {
    %c0_i32 = arith.constant 0 : i32
    %c0_i32_0 = arith.constant 0 : i32
    %c0_i32_1 = arith.constant 0 : i32
    return %c0_i32, %c0_i32_0 : i32, i32
  }
  func.func @transform_3(%arg0: i32) -> (i32, i32) {
    %c0_i32 = arith.constant 0 : i32
    %c0_i32_0 = arith.constant 0 : i32
    %c0_i32_1 = arith.constant 0 : i32
    return %c0_i32, %c0_i32_0 : i32, i32
  }
  func.func @transform_4(%arg0: i32) -> (i32, i32, i32, i32) {
    %c0_i32 = arith.constant 0 : i32
    %c0_i32_0 = arith.constant 0 : i32
    %c0_i32_1 = arith.constant 0 : i32
    %c0_i32_2 = arith.constant 0 : i32
    return %arg0, %c0_i32, %c0_i32_0, %c0_i32_1 : i32, i32, i32, i32
  }
}

module attributes {stable_mosaic.version = 11 : i64} {
  func.func @_conv_bn_relu_kernel(%arg0: i32, %arg1: memref<1x16x8x256xbf16, #tpu.memory_space<vmem>>, %arg2: memref<9x128x256xbf16, #tpu.memory_space<vmem>>, %arg3: memref<1x256xf32, #tpu.memory_space<vmem>>, %arg4: memref<1x256xf32, #tpu.memory_space<vmem>>, %arg5: memref<1x8x8x256xbf16, #tpu.memory_space<vmem>>, %arg6: memref<88x256xbf16, #tpu.memory_space<vmem>>, %arg7: memref<80x256xbf16, #tpu.memory_space<vmem>>) attributes {dimension_semantics = [#tpu.dimension_semantics<parallel>], iteration_bounds = array<i64: 2>, scalar_prefetch = 0 : i64, scratch_operands = 2 : i64, tpu.core_type = #tpu.core_type<tc>, window_params = [{transform_indices = @transform_0, window_bounds = array<i64: 1, 16, 8, 256>}, {pipeline_mode = #tpu.pipeline_mode<synchronous>, transform_indices = @transform_1, window_bounds = array<i64: 9, 128, 256>}, {pipeline_mode = #tpu.pipeline_mode<synchronous>, transform_indices = @transform_2, window_bounds = array<i64: 1, 256>}, {pipeline_mode = #tpu.pipeline_mode<synchronous>, transform_indices = @transform_3, window_bounds = array<i64: 1, 256>}, {transform_indices = @transform_4, window_bounds = array<i64: 1, 8, 8, 256>}]} {
    %cst = arith.constant 0.000000e+00 : bf16
    %0 = vector.broadcast %cst : bf16 to vector<88x256xbf16>
    %c0 = arith.constant 0 : index
    %c0_0 = arith.constant 0 : index
    %1 = vector.load %arg6[%c0, %c0_0] : memref<88x256xbf16, #tpu.memory_space<vmem>>, vector<88x256xbf16>
    tpu.vector_store %arg6[%c0, %c0_0], %0 {strides = array<i32>} : memref<88x256xbf16, #tpu.memory_space<vmem>>, vector<88x256xbf16>,
    %cst_1 = arith.constant 0.000000e+00 : bf16
    %2 = vector.broadcast %cst_1 : bf16 to vector<80x256xbf16>
    %c0_2 = arith.constant 0 : index
    %c0_3 = arith.constant 0 : index
    %3 = vector.load %arg7[%c0_2, %c0_3] : memref<80x256xbf16, #tpu.memory_space<vmem>>, vector<80x256xbf16>
    tpu.vector_store %arg7[%c0_2, %c0_3], %2 {strides = array<i32>} : memref<80x256xbf16, #tpu.memory_space<vmem>>, vector<80x256xbf16>,
    %c0_4 = arith.constant 0 : index
    %c0_5 = arith.constant 0 : index
    %c0_6 = arith.constant 0 : index
    %c0_7 = arith.constant 0 : index
    %4 = vector.load %arg1[%c0_4, %c0_5, %c0_6, %c0_7] : memref<1x16x8x256xbf16, #tpu.memory_space<vmem>>, vector<1x1x8x256xbf16>
    %5 = vector.shape_cast %4 : vector<1x1x8x256xbf16> to vector<8x256xbf16>
    %c1 = arith.constant 1 : index
    %c0_8 = arith.constant 0 : index
    %6 = vector.load %arg7[%c1, %c0_8] : memref<80x256xbf16, #tpu.memory_space<vmem>>, vector<8x256xbf16>
    tpu.vector_store %arg7[%c1, %c0_8], %5 {strides = array<i32>} : memref<80x256xbf16, #tpu.memory_space<vmem>>, vector<8x256xbf16>,
    %c0_9 = arith.constant 0 : index
    %c1_10 = arith.constant 1 : index
    %c0_11 = arith.constant 0 : index
    %c0_12 = arith.constant 0 : index
    %7 = vector.load %arg1[%c0_9, %c1_10, %c0_11, %c0_12] : memref<1x16x8x256xbf16, #tpu.memory_space<vmem>>, vector<1x1x8x256xbf16>
    %8 = vector.shape_cast %7 : vector<1x1x8x256xbf16> to vector<8x256xbf16>
    %c10 = arith.constant 10 : index
    %c0_13 = arith.constant 0 : index
    %9 = vector.load %arg6[%c10, %c0_13] : memref<88x256xbf16, #tpu.memory_space<vmem>>, vector<8x256xbf16>
    tpu.vector_store %arg6[%c10, %c0_13], %8 {strides = array<i32>} : memref<88x256xbf16, #tpu.memory_space<vmem>>, vector<8x256xbf16>,
    %c0_14 = arith.constant 0 : index
    %c2 = arith.constant 2 : index
    %c0_15 = arith.constant 0 : index
    %c0_16 = arith.constant 0 : index
    %10 = vector.load %arg1[%c0_14, %c2, %c0_15, %c0_16] : memref<1x16x8x256xbf16, #tpu.memory_space<vmem>>, vector<1x1x8x256xbf16>
    %11 = vector.shape_cast %10 : vector<1x1x8x256xbf16> to vector<8x256xbf16>
    %c10_17 = arith.constant 10 : index
    %c0_18 = arith.constant 0 : index
    %12 = vector.load %arg7[%c10_17, %c0_18] : memref<80x256xbf16, #tpu.memory_space<vmem>>, vector<8x256xbf16>
    tpu.vector_store %arg7[%c10_17, %c0_18], %11 {strides = array<i32>} : memref<80x256xbf16, #tpu.memory_space<vmem>>, vector<8x256xbf16>,
    %c0_19 = arith.constant 0 : index
    %c3 = arith.constant 3 : index
    %c0_20 = arith.constant 0 : index
    %c0_21 = arith.constant 0 : index
    %13 = vector.load %arg1[%c0_19, %c3, %c0_20, %c0_21] : memref<1x16x8x256xbf16, #tpu.memory_space<vmem>>, vector<1x1x8x256xbf16>
    %14 = vector.shape_cast %13 : vector<1x1x8x256xbf16> to vector<8x256xbf16>
    %c19 = arith.constant 19 : index
    %c0_22 = arith.constant 0 : index
    %15 = vector.load %arg6[%c19, %c0_22] : memref<88x256xbf16, #tpu.memory_space<vmem>>, vector<8x256xbf16>
    tpu.vector_store %arg6[%c19, %c0_22], %14 {strides = array<i32>} : memref<88x256xbf16, #tpu.memory_space<vmem>>, vector<8x256xbf16>,
    %c0_23 = arith.constant 0 : index
    %c4 = arith.constant 4 : index
    %c0_24 = arith.constant 0 : index
    %c0_25 = arith.constant 0 : index
    %16 = vector.load %arg1[%c0_23, %c4, %c0_24, %c0_25] : memref<1x16x8x256xbf16, #tpu.memory_space<vmem>>, vector<1x1x8x256xbf16>
    %17 = vector.shape_cast %16 : vector<1x1x8x256xbf16> to vector<8x256xbf16>
    %c19_26 = arith.constant 19 : index
    %c0_27 = arith.constant 0 : index
    %18 = vector.load %arg7[%c19_26, %c0_27] : memref<80x256xbf16, #tpu.memory_space<vmem>>, vector<8x256xbf16>
    tpu.vector_store %arg7[%c19_26, %c0_27], %17 {strides = array<i32>} : memref<80x256xbf16, #tpu.memory_space<vmem>>, vector<8x256xbf16>,
    %c0_28 = arith.constant 0 : index
    %c5 = arith.constant 5 : index
    %c0_29 = arith.constant 0 : index
    %c0_30 = arith.constant 0 : index
    %19 = vector.load %arg1[%c0_28, %c5, %c0_29, %c0_30] : memref<1x16x8x256xbf16, #tpu.memory_space<vmem>>, vector<1x1x8x256xbf16>
    %20 = vector.shape_cast %19 : vector<1x1x8x256xbf16> to vector<8x256xbf16>
    %c28 = arith.constant 28 : index
    %c0_31 = arith.constant 0 : index
    %21 = vector.load %arg6[%c28, %c0_31] : memref<88x256xbf16, #tpu.memory_space<vmem>>, vector<8x256xbf16>
    tpu.vector_store %arg6[%c28, %c0_31], %20 {strides = array<i32>} : memref<88x256xbf16, #tpu.memory_space<vmem>>, vector<8x256xbf16>,
    %c0_32 = arith.constant 0 : index
    %c6 = arith.constant 6 : index
    %c0_33 = arith.constant 0 : index
    %c0_34 = arith.constant 0 : index
    %22 = vector.load %arg1[%c0_32, %c6, %c0_33, %c0_34] : memref<1x16x8x256xbf16, #tpu.memory_space<vmem>>, vector<1x1x8x256xbf16>
    %23 = vector.shape_cast %22 : vector<1x1x8x256xbf16> to vector<8x256xbf16>
    %c28_35 = arith.constant 28 : index
    %c0_36 = arith.constant 0 : index
    %24 = vector.load %arg7[%c28_35, %c0_36] : memref<80x256xbf16, #tpu.memory_space<vmem>>, vector<8x256xbf16>
    tpu.vector_store %arg7[%c28_35, %c0_36], %23 {strides = array<i32>} : memref<80x256xbf16, #tpu.memory_space<vmem>>, vector<8x256xbf16>,
    %c0_37 = arith.constant 0 : index
    %c7 = arith.constant 7 : index
    %c0_38 = arith.constant 0 : index
    %c0_39 = arith.constant 0 : index
    %25 = vector.load %arg1[%c0_37, %c7, %c0_38, %c0_39] : memref<1x16x8x256xbf16, #tpu.memory_space<vmem>>, vector<1x1x8x256xbf16>
    %26 = vector.shape_cast %25 : vector<1x1x8x256xbf16> to vector<8x256xbf16>
    %c37 = arith.constant 37 : index
    %c0_40 = arith.constant 0 : index
    %27 = vector.load %arg6[%c37, %c0_40] : memref<88x256xbf16, #tpu.memory_space<vmem>>, vector<8x256xbf16>
    tpu.vector_store %arg6[%c37, %c0_40], %26 {strides = array<i32>} : memref<88x256xbf16, #tpu.memory_space<vmem>>, vector<8x256xbf16>,
    %c0_41 = arith.constant 0 : index
    %c8 = arith.constant 8 : index
    %c0_42 = arith.constant 0 : index
    %c0_43 = arith.constant 0 : index
    %28 = vector.load %arg1[%c0_41, %c8, %c0_42, %c0_43] : memref<1x16x8x256xbf16, #tpu.memory_space<vmem>>, vector<1x1x8x256xbf16>
    %29 = vector.shape_cast %28 : vector<1x1x8x256xbf16> to vector<8x256xbf16>
    %c37_44 = arith.constant 37 : index
    %c0_45 = arith.constant 0 : index
    %30 = vector.load %arg7[%c37_44, %c0_45] : memref<80x256xbf16, #tpu.memory_space<vmem>>, vector<8x256xbf16>
    tpu.vector_store %arg7[%c37_44, %c0_45], %29 {strides = array<i32>} : memref<80x256xbf16, #tpu.memory_space<vmem>>, vector<8x256xbf16>,
    %c0_46 = arith.constant 0 : index
    %c9 = arith.constant 9 : index
    %c0_47 = arith.constant 0 : index
    %c0_48 = arith.constant 0 : index
    %31 = vector.load %arg1[%c0_46, %c9, %c0_47, %c0_48] : memref<1x16x8x256xbf16, #tpu.memory_space<vmem>>, vector<1x1x8x256xbf16>
    %32 = vector.shape_cast %31 : vector<1x1x8x256xbf16> to vector<8x256xbf16>
    %c46 = arith.constant 46 : index
    %c0_49 = arith.constant 0 : index
    %33 = vector.load %arg6[%c46, %c0_49] : memref<88x256xbf16, #tpu.memory_space<vmem>>, vector<8x256xbf16>
    tpu.vector_store %arg6[%c46, %c0_49], %32 {strides = array<i32>} : memref<88x256xbf16, #tpu.memory_space<vmem>>, vector<8x256xbf16>,
    %c0_50 = arith.constant 0 : index
    %c10_51 = arith.constant 10 : index
    %c0_52 = arith.constant 0 : index
    %c0_53 = arith.constant 0 : index
    %34 = vector.load %arg1[%c0_50, %c10_51, %c0_52, %c0_53] : memref<1x16x8x256xbf16, #tpu.memory_space<vmem>>, vector<1x1x8x256xbf16>
    %35 = vector.shape_cast %34 : vector<1x1x8x256xbf16> to vector<8x256xbf16>
    %c46_54 = arith.constant 46 : index
    %c0_55 = arith.constant 0 : index
    %36 = vector.load %arg7[%c46_54, %c0_55] : memref<80x256xbf16, #tpu.memory_space<vmem>>, vector<8x256xbf16>
    tpu.vector_store %arg7[%c46_54, %c0_55], %35 {strides = array<i32>} : memref<80x256xbf16, #tpu.memory_space<vmem>>, vector<8x256xbf16>,
    %c0_56 = arith.constant 0 : index
    %c11 = arith.constant 11 : index
    %c0_57 = arith.constant 0 : index
    %c0_58 = arith.constant 0 : index
    %37 = vector.load %arg1[%c0_56, %c11, %c0_57, %c0_58] : memref<1x16x8x256xbf16, #tpu.memory_space<vmem>>, vector<1x1x8x256xbf16>
    %38 = vector.shape_cast %37 : vector<1x1x8x256xbf16> to vector<8x256xbf16>
    %c55 = arith.constant 55 : index
    %c0_59 = arith.constant 0 : index
    %39 = vector.load %arg6[%c55, %c0_59] : memref<88x256xbf16, #tpu.memory_space<vmem>>, vector<8x256xbf16>
    tpu.vector_store %arg6[%c55, %c0_59], %38 {strides = array<i32>} : memref<88x256xbf16, #tpu.memory_space<vmem>>, vector<8x256xbf16>,
    %c0_60 = arith.constant 0 : index
    %c12 = arith.constant 12 : index
    %c0_61 = arith.constant 0 : index
    %c0_62 = arith.constant 0 : index
    %40 = vector.load %arg1[%c0_60, %c12, %c0_61, %c0_62] : memref<1x16x8x256xbf16, #tpu.memory_space<vmem>>, vector<1x1x8x256xbf16>
    %41 = vector.shape_cast %40 : vector<1x1x8x256xbf16> to vector<8x256xbf16>
    %c55_63 = arith.constant 55 : index
    %c0_64 = arith.constant 0 : index
    %42 = vector.load %arg7[%c55_63, %c0_64] : memref<80x256xbf16, #tpu.memory_space<vmem>>, vector<8x256xbf16>
    tpu.vector_store %arg7[%c55_63, %c0_64], %41 {strides = array<i32>} : memref<80x256xbf16, #tpu.memory_space<vmem>>, vector<8x256xbf16>,
    %c0_65 = arith.constant 0 : index
    %c13 = arith.constant 13 : index
    %c0_66 = arith.constant 0 : index
    %c0_67 = arith.constant 0 : index
    %43 = vector.load %arg1[%c0_65, %c13, %c0_66, %c0_67] : memref<1x16x8x256xbf16, #tpu.memory_space<vmem>>, vector<1x1x8x256xbf16>
    %44 = vector.shape_cast %43 : vector<1x1x8x256xbf16> to vector<8x256xbf16>
    %c64 = arith.constant 64 : index
    %c0_68 = arith.constant 0 : index
    %45 = vector.load %arg6[%c64, %c0_68] : memref<88x256xbf16, #tpu.memory_space<vmem>>, vector<8x256xbf16>
    tpu.vector_store %arg6[%c64, %c0_68], %44 {strides = array<i32>} : memref<88x256xbf16, #tpu.memory_space<vmem>>, vector<8x256xbf16>,
    %c0_69 = arith.constant 0 : index
    %c14 = arith.constant 14 : index
    %c0_70 = arith.constant 0 : index
    %c0_71 = arith.constant 0 : index
    %46 = vector.load %arg1[%c0_69, %c14, %c0_70, %c0_71] : memref<1x16x8x256xbf16, #tpu.memory_space<vmem>>, vector<1x1x8x256xbf16>
    %47 = vector.shape_cast %46 : vector<1x1x8x256xbf16> to vector<8x256xbf16>
    %c64_72 = arith.constant 64 : index
    %c0_73 = arith.constant 0 : index
    %48 = vector.load %arg7[%c64_72, %c0_73] : memref<80x256xbf16, #tpu.memory_space<vmem>>, vector<8x256xbf16>
    tpu.vector_store %arg7[%c64_72, %c0_73], %47 {strides = array<i32>} : memref<80x256xbf16, #tpu.memory_space<vmem>>, vector<8x256xbf16>,
    %c0_74 = arith.constant 0 : index
    %c15 = arith.constant 15 : index
    %c0_75 = arith.constant 0 : index
    %c0_76 = arith.constant 0 : index
    %49 = vector.load %arg1[%c0_74, %c15, %c0_75, %c0_76] : memref<1x16x8x256xbf16, #tpu.memory_space<vmem>>, vector<1x1x8x256xbf16>
    %50 = vector.shape_cast %49 : vector<1x1x8x256xbf16> to vector<8x256xbf16>
    %c73 = arith.constant 73 : index
    %c0_77 = arith.constant 0 : index
    %51 = vector.load %arg6[%c73, %c0_77] : memref<88x256xbf16, #tpu.memory_space<vmem>>, vector<8x256xbf16>
    tpu.vector_store %arg6[%c73, %c0_77], %50 {strides = array<i32>} : memref<88x256xbf16, #tpu.memory_space<vmem>>, vector<8x256xbf16>,
    %cst_78 = arith.constant 0.000000e+00 : f32
    %52 = vector.broadcast %cst_78 : f32 to vector<72x256xf32>
    %c0_79 = arith.constant 0 : index
    %c128 = arith.constant 128 : index
    %53 = vector.load %arg6[%c0_79, %c128] : memref<88x256xbf16, #tpu.memory_space<vmem>>, vector<72x128xbf16>
    %c0_80 = arith.constant 0 : index
    %c0_81 = arith.constant 0 : index
    %c0_82 = arith.constant 0 : index
    %54 = vector.load %arg2[%c0_80, %c0_81, %c0_82] : memref<9x128x256xbf16, #tpu.memory_space<vmem>>, vector<1x128x256xbf16>
    %55 = vector.shape_cast %54 : vector<1x128x256xbf16> to vector<128x256xbf16>
    %cst_83 = arith.constant dense<0.000000e+00> : vector<72x256xf32>
    %56 = tpu.matmul %53, %55, %cst_83 {dimension_numbers = #tpu.dot_dimension_numbers<[1], [0], [0], [1], [0, 0, 1, 1], [], []>} : vector<72x128xbf16>, vector<128x256xbf16>, vector<72x256xf32> -> vector<72x256xf32>
    %57 = arith.addf %52, %56 : vector<72x256xf32>
    %c1_84 = arith.constant 1 : index
    %c0_85 = arith.constant 0 : index
    %58 = vector.load %arg6[%c1_84, %c0_85] : memref<88x256xbf16, #tpu.memory_space<vmem>>, vector<72x128xbf16>
    %c1_86 = arith.constant 1 : index
    %c0_87 = arith.constant 0 : index
    %c0_88 = arith.constant 0 : index
    %59 = vector.load %arg2[%c1_86, %c0_87, %c0_88] : memref<9x128x256xbf16, #tpu.memory_space<vmem>>, vector<1x128x256xbf16>
    %60 = vector.shape_cast %59 : vector<1x128x256xbf16> to vector<128x256xbf16>
    %cst_89 = arith.constant dense<0.000000e+00> : vector<72x256xf32>
    %61 = tpu.matmul %58, %60, %cst_89 {dimension_numbers = #tpu.dot_dimension_numbers<[1], [0], [0], [1], [0, 0, 1, 1], [], []>} : vector<72x128xbf16>, vector<128x256xbf16>, vector<72x256xf32> -> vector<72x256xf32>
    %62 = arith.addf %57, %61 : vector<72x256xf32>
    %c1_90 = arith.constant 1 : index
    %c128_91 = arith.constant 128 : index
    %63 = vector.load %arg6[%c1_90, %c128_91] : memref<88x256xbf16, #tpu.memory_space<vmem>>, vector<72x128xbf16>
    %c2_92 = arith.constant 2 : index
    %c0_93 = arith.constant 0 : index
    %c0_94 = arith.constant 0 : index
    %64 = vector.load %arg2[%c2_92, %c0_93, %c0_94] : memref<9x128x256xbf16, #tpu.memory_space<vmem>>, vector<1x128x256xbf16>
    %65 = vector.shape_cast %64 : vector<1x128x256xbf16> to vector<128x256xbf16>
    %cst_95 = arith.constant dense<0.000000e+00> : vector<72x256xf32>
    %66 = tpu.matmul %63, %65, %cst_95 {dimension_numbers = #tpu.dot_dimension_numbers<[1], [0], [0], [1], [0, 0, 1, 1], [], []>} : vector<72x128xbf16>, vector<128x256xbf16>, vector<72x256xf32> -> vector<72x256xf32>
    %67 = arith.addf %62, %66 : vector<72x256xf32>
    %c0_96 = arith.constant 0 : index
    %c128_97 = arith.constant 128 : index
    %68 = vector.load %arg7[%c0_96, %c128_97] : memref<80x256xbf16, #tpu.memory_space<vmem>>, vector<72x128xbf16>
    %c3_98 = arith.constant 3 : index
    %c0_99 = arith.constant 0 : index
    %c0_100 = arith.constant 0 : index
    %69 = vector.load %arg2[%c3_98, %c0_99, %c0_100] : memref<9x128x256xbf16, #tpu.memory_space<vmem>>, vector<1x128x256xbf16>
    %70 = vector.shape_cast %69 : vector<1x128x256xbf16> to vector<128x256xbf16>
    %cst_101 = arith.constant dense<0.000000e+00> : vector<72x256xf32>
    %71 = tpu.matmul %68, %70, %cst_101 {dimension_numbers = #tpu.dot_dimension_numbers<[1], [0], [0], [1], [0, 0, 1, 1], [], []>} : vector<72x128xbf16>, vector<128x256xbf16>, vector<72x256xf32> -> vector<72x256xf32>
    %72 = arith.addf %67, %71 : vector<72x256xf32>
    %c1_102 = arith.constant 1 : index
    %c0_103 = arith.constant 0 : index
    %73 = vector.load %arg7[%c1_102, %c0_103] : memref<80x256xbf16, #tpu.memory_space<vmem>>, vector<72x128xbf16>
    %c4_104 = arith.constant 4 : index
    %c0_105 = arith.constant 0 : index
    %c0_106 = arith.constant 0 : index
    %74 = vector.load %arg2[%c4_104, %c0_105, %c0_106] : memref<9x128x256xbf16, #tpu.memory_space<vmem>>, vector<1x128x256xbf16>
    %75 = vector.shape_cast %74 : vector<1x128x256xbf16> to vector<128x256xbf16>
    %cst_107 = arith.constant dense<0.000000e+00> : vector<72x256xf32>
    %76 = tpu.matmul %73, %75, %cst_107 {dimension_numbers = #tpu.dot_dimension_numbers<[1], [0], [0], [1], [0, 0, 1, 1], [], []>} : vector<72x128xbf16>, vector<128x256xbf16>, vector<72x256xf32> -> vector<72x256xf32>
    %77 = arith.addf %72, %76 : vector<72x256xf32>
    %c1_108 = arith.constant 1 : index
    %c128_109 = arith.constant 128 : index
    %78 = vector.load %arg7[%c1_108, %c128_109] : memref<80x256xbf16, #tpu.memory_space<vmem>>, vector<72x128xbf16>
    %c5_110 = arith.constant 5 : index
    %c0_111 = arith.constant 0 : index
    %c0_112 = arith.constant 0 : index
    %79 = vector.load %arg2[%c5_110, %c0_111, %c0_112] : memref<9x128x256xbf16, #tpu.memory_space<vmem>>, vector<1x128x256xbf16>
    %80 = vector.shape_cast %79 : vector<1x128x256xbf16> to vector<128x256xbf16>
    %cst_113 = arith.constant dense<0.000000e+00> : vector<72x256xf32>
    %81 = tpu.matmul %78, %80, %cst_113 {dimension_numbers = #tpu.dot_dimension_numbers<[1], [0], [0], [1], [0, 0, 1, 1], [], []>} : vector<72x128xbf16>, vector<128x256xbf16>, vector<72x256xf32> -> vector<72x256xf32>
    %82 = arith.addf %77, %81 : vector<72x256xf32>
    %c9_114 = arith.constant 9 : index
    %c128_115 = arith.constant 128 : index
    %83 = vector.load %arg6[%c9_114, %c128_115] : memref<88x256xbf16, #tpu.memory_space<vmem>>, vector<72x128xbf16>
    %c6_116 = arith.constant 6 : index
    %c0_117 = arith.constant 0 : index
    %c0_118 = arith.constant 0 : index
    %84 = vector.load %arg2[%c6_116, %c0_117, %c0_118] : memref<9x128x256xbf16, #tpu.memory_space<vmem>>, vector<1x128x256xbf16>
    %85 = vector.shape_cast %84 : vector<1x128x256xbf16> to vector<128x256xbf16>
    %cst_119 = arith.constant dense<0.000000e+00> : vector<72x256xf32>
    %86 = tpu.matmul %83, %85, %cst_119 {dimension_numbers = #tpu.dot_dimension_numbers<[1], [0], [0], [1], [0, 0, 1, 1], [], []>} : vector<72x128xbf16>, vector<128x256xbf16>, vector<72x256xf32> -> vector<72x256xf32>
    %87 = arith.addf %82, %86 : vector<72x256xf32>
    %c10_120 = arith.constant 10 : index
    %c0_121 = arith.constant 0 : index
    %88 = vector.load %arg6[%c10_120, %c0_121] : memref<88x256xbf16, #tpu.memory_space<vmem>>, vector<72x128xbf16>
    %c7_122 = arith.constant 7 : index
    %c0_123 = arith.constant 0 : index
    %c0_124 = arith.constant 0 : index
    %89 = vector.load %arg2[%c7_122, %c0_123, %c0_124] : memref<9x128x256xbf16, #tpu.memory_space<vmem>>, vector<1x128x256xbf16>
    %90 = vector.shape_cast %89 : vector<1x128x256xbf16> to vector<128x256xbf16>
    %cst_125 = arith.constant dense<0.000000e+00> : vector<72x256xf32>
    %91 = tpu.matmul %88, %90, %cst_125 {dimension_numbers = #tpu.dot_dimension_numbers<[1], [0], [0], [1], [0, 0, 1, 1], [], []>} : vector<72x128xbf16>, vector<128x256xbf16>, vector<72x256xf32> -> vector<72x256xf32>
    %92 = arith.addf %87, %91 : vector<72x256xf32>
    %c10_126 = arith.constant 10 : index
    %c128_127 = arith.constant 128 : index
    %93 = vector.load %arg6[%c10_126, %c128_127] : memref<88x256xbf16, #tpu.memory_space<vmem>>, vector<72x128xbf16>
    %c8_128 = arith.constant 8 : index
    %c0_129 = arith.constant 0 : index
    %c0_130 = arith.constant 0 : index
    %94 = vector.load %arg2[%c8_128, %c0_129, %c0_130] : memref<9x128x256xbf16, #tpu.memory_space<vmem>>, vector<1x128x256xbf16>
    %95 = vector.shape_cast %94 : vector<1x128x256xbf16> to vector<128x256xbf16>
    %cst_131 = arith.constant dense<0.000000e+00> : vector<72x256xf32>
    %96 = tpu.matmul %93, %95, %cst_131 {dimension_numbers = #tpu.dot_dimension_numbers<[1], [0], [0], [1], [0, 0, 1, 1], [], []>} : vector<72x128xbf16>, vector<128x256xbf16>, vector<72x256xf32> -> vector<72x256xf32>
    %97 = arith.addf %92, %96 : vector<72x256xf32>
    %c0_132 = arith.constant 0 : index
    %c0_133 = arith.constant 0 : index
    %98 = vector.load %arg3[%c0_132, %c0_133] : memref<1x256xf32, #tpu.memory_space<vmem>>, vector<1x256xf32>
    %99 = vector.broadcast %98 : vector<1x256xf32> to vector<72x256xf32>
    %100 = arith.mulf %97, %99 : vector<72x256xf32>
    %c0_134 = arith.constant 0 : index
    %c0_135 = arith.constant 0 : index
    %101 = vector.load %arg4[%c0_134, %c0_135] : memref<1x256xf32, #tpu.memory_space<vmem>>, vector<1x256xf32>
    %102 = vector.broadcast %101 : vector<1x256xf32> to vector<72x256xf32>
    %103 = arith.addf %100, %102 : vector<72x256xf32>
    %cst_136 = arith.constant 0.000000e+00 : f32
    %104 = vector.broadcast %cst_136 : f32 to vector<72x256xf32>
    %105 = arith.maximumf %103, %104 : vector<72x256xf32>
    %106 = arith.truncf %105 : vector<72x256xf32> to vector<72x256xbf16>
    %107 = vector.extract_strided_slice %106 {offsets = [0, 0], sizes = [8, 256], strides = [1, 1]} : vector<72x256xbf16> to vector<8x256xbf16>
    %c0_137 = arith.constant 0 : index
    %c0_138 = arith.constant 0 : index
    %c0_139 = arith.constant 0 : index
    %c0_140 = arith.constant 0 : index
    %108 = vector.load %arg5[%c0_137, %c0_138, %c0_139, %c0_140] : memref<1x8x8x256xbf16, #tpu.memory_space<vmem>>, vector<1x1x8x256xbf16>
    %109 = vector.shape_cast %108 : vector<1x1x8x256xbf16> to vector<8x256xbf16>
    %110 = vector.shape_cast %107 : vector<8x256xbf16> to vector<1x1x8x256xbf16>
    tpu.vector_store %arg5[%c0_137, %c0_138, %c0_139, %c0_140], %110 {strides = array<i32>} : memref<1x8x8x256xbf16, #tpu.memory_space<vmem>>, vector<1x1x8x256xbf16>,
    %111 = vector.extract_strided_slice %106 {offsets = [9, 0], sizes = [8, 256], strides = [1, 1]} : vector<72x256xbf16> to vector<8x256xbf16>
    %c0_141 = arith.constant 0 : index
    %c1_142 = arith.constant 1 : index
    %c0_143 = arith.constant 0 : index
    %c0_144 = arith.constant 0 : index
    %112 = vector.load %arg5[%c0_141, %c1_142, %c0_143, %c0_144] : memref<1x8x8x256xbf16, #tpu.memory_space<vmem>>, vector<1x1x8x256xbf16>
    %113 = vector.shape_cast %112 : vector<1x1x8x256xbf16> to vector<8x256xbf16>
    %114 = vector.shape_cast %111 : vector<8x256xbf16> to vector<1x1x8x256xbf16>
    tpu.vector_store %arg5[%c0_141, %c1_142, %c0_143, %c0_144], %114 {strides = array<i32>} : memref<1x8x8x256xbf16, #tpu.memory_space<vmem>>, vector<1x1x8x256xbf16>,
    %115 = vector.extract_strided_slice %106 {offsets = [18, 0], sizes = [8, 256], strides = [1, 1]} : vector<72x256xbf16> to vector<8x256xbf16>
    %c0_145 = arith.constant 0 : index
    %c2_146 = arith.constant 2 : index
    %c0_147 = arith.constant 0 : index
    %c0_148 = arith.constant 0 : index
    %116 = vector.load %arg5[%c0_145, %c2_146, %c0_147, %c0_148] : memref<1x8x8x256xbf16, #tpu.memory_space<vmem>>, vector<1x1x8x256xbf16>
    %117 = vector.shape_cast %116 : vector<1x1x8x256xbf16> to vector<8x256xbf16>
    %118 = vector.shape_cast %115 : vector<8x256xbf16> to vector<1x1x8x256xbf16>
    tpu.vector_store %arg5[%c0_145, %c2_146, %c0_147, %c0_148], %118 {strides = array<i32>} : memref<1x8x8x256xbf16, #tpu.memory_space<vmem>>, vector<1x1x8x256xbf16>,
    %119 = vector.extract_strided_slice %106 {offsets = [27, 0], sizes = [8, 256], strides = [1, 1]} : vector<72x256xbf16> to vector<8x256xbf16>
    %c0_149 = arith.constant 0 : index
    %c3_150 = arith.constant 3 : index
    %c0_151 = arith.constant 0 : index
    %c0_152 = arith.constant 0 : index
    %120 = vector.load %arg5[%c0_149, %c3_150, %c0_151, %c0_152] : memref<1x8x8x256xbf16, #tpu.memory_space<vmem>>, vector<1x1x8x256xbf16>
    %121 = vector.shape_cast %120 : vector<1x1x8x256xbf16> to vector<8x256xbf16>
    %122 = vector.shape_cast %119 : vector<8x256xbf16> to vector<1x1x8x256xbf16>
    tpu.vector_store %arg5[%c0_149, %c3_150, %c0_151, %c0_152], %122 {strides = array<i32>} : memref<1x8x8x256xbf16, #tpu.memory_space<vmem>>, vector<1x1x8x256xbf16>,
    %123 = vector.extract_strided_slice %106 {offsets = [36, 0], sizes = [8, 256], strides = [1, 1]} : vector<72x256xbf16> to vector<8x256xbf16>
    %c0_153 = arith.constant 0 : index
    %c4_154 = arith.constant 4 : index
    %c0_155 = arith.constant 0 : index
    %c0_156 = arith.constant 0 : index
    %124 = vector.load %arg5[%c0_153, %c4_154, %c0_155, %c0_156] : memref<1x8x8x256xbf16, #tpu.memory_space<vmem>>, vector<1x1x8x256xbf16>
    %125 = vector.shape_cast %124 : vector<1x1x8x256xbf16> to vector<8x256xbf16>
    %126 = vector.shape_cast %123 : vector<8x256xbf16> to vector<1x1x8x256xbf16>
    tpu.vector_store %arg5[%c0_153, %c4_154, %c0_155, %c0_156], %126 {strides = array<i32>} : memref<1x8x8x256xbf16, #tpu.memory_space<vmem>>, vector<1x1x8x256xbf16>,
    %127 = vector.extract_strided_slice %106 {offsets = [45, 0], sizes = [8, 256], strides = [1, 1]} : vector<72x256xbf16> to vector<8x256xbf16>
    %c0_157 = arith.constant 0 : index
    %c5_158 = arith.constant 5 : index
    %c0_159 = arith.constant 0 : index
    %c0_160 = arith.constant 0 : index
    %128 = vector.load %arg5[%c0_157, %c5_158, %c0_159, %c0_160] : memref<1x8x8x256xbf16, #tpu.memory_space<vmem>>, vector<1x1x8x256xbf16>
    %129 = vector.shape_cast %128 : vector<1x1x8x256xbf16> to vector<8x256xbf16>
    %130 = vector.shape_cast %127 : vector<8x256xbf16> to vector<1x1x8x256xbf16>
    tpu.vector_store %arg5[%c0_157, %c5_158, %c0_159, %c0_160], %130 {strides = array<i32>} : memref<1x8x8x256xbf16, #tpu.memory_space<vmem>>, vector<1x1x8x256xbf16>,
    %131 = vector.extract_strided_slice %106 {offsets = [54, 0], sizes = [8, 256], strides = [1, 1]} : vector<72x256xbf16> to vector<8x256xbf16>
    %c0_161 = arith.constant 0 : index
    %c6_162 = arith.constant 6 : index
    %c0_163 = arith.constant 0 : index
    %c0_164 = arith.constant 0 : index
    %132 = vector.load %arg5[%c0_161, %c6_162, %c0_163, %c0_164] : memref<1x8x8x256xbf16, #tpu.memory_space<vmem>>, vector<1x1x8x256xbf16>
    %133 = vector.shape_cast %132 : vector<1x1x8x256xbf16> to vector<8x256xbf16>
    %134 = vector.shape_cast %131 : vector<8x256xbf16> to vector<1x1x8x256xbf16>
    tpu.vector_store %arg5[%c0_161, %c6_162, %c0_163, %c0_164], %134 {strides = array<i32>} : memref<1x8x8x256xbf16, #tpu.memory_space<vmem>>, vector<1x1x8x256xbf16>,
    %135 = vector.extract_strided_slice %106 {offsets = [63, 0], sizes = [8, 256], strides = [1, 1]} : vector<72x256xbf16> to vector<8x256xbf16>
    %c0_165 = arith.constant 0 : index
    %c7_166 = arith.constant 7 : index
    %c0_167 = arith.constant 0 : index
    %c0_168 = arith.constant 0 : index
    %136 = vector.load %arg5[%c0_165, %c7_166, %c0_167, %c0_168] : memref<1x8x8x256xbf16, #tpu.memory_space<vmem>>, vector<1x1x8x256xbf16>
    %137 = vector.shape_cast %136 : vector<1x1x8x256xbf16> to vector<8x256xbf16>
    %138 = vector.shape_cast %135 : vector<8x256xbf16> to vector<1x1x8x256xbf16>
    tpu.vector_store %arg5[%c0_165, %c7_166, %c0_167, %c0_168], %138 {strides = array<i32>} : memref<1x8x8x256xbf16, #tpu.memory_space<vmem>>, vector<1x1x8x256xbf16>,
    return
  }
  func.func @transform_0(%arg0: i32) -> (i32, i32, i32, i32) {
    %c0_i32 = arith.constant 0 : i32
    %c0_i32_0 = arith.constant 0 : i32
    %c0_i32_1 = arith.constant 0 : i32
    %c0_i32_2 = arith.constant 0 : i32
    return %arg0, %c0_i32, %c0_i32_0, %c0_i32_1 : i32, i32, i32, i32
  }
  func.func @transform_1(%arg0: i32) -> (i32, i32, i32) {
    %c0_i32 = arith.constant 0 : i32
    %c0_i32_0 = arith.constant 0 : i32
    %c0_i32_1 = arith.constant 0 : i32
    %c0_i32_2 = arith.constant 0 : i32
    return %c0_i32, %c0_i32_0, %c0_i32_1 : i32, i32, i32
  }
  func.func @transform_2(%arg0: i32) -> (i32, i32) {
    %c0_i32 = arith.constant 0 : i32
    %c0_i32_0 = arith.constant 0 : i32
    %c0_i32_1 = arith.constant 0 : i32
    return %c0_i32, %c0_i32_0 : i32, i32
  }
  func.func @transform_3(%arg0: i32) -> (i32, i32) {
    %c0_i32 = arith.constant 0 : i32
    %c0_i32_0 = arith.constant 0 : i32
    %c0_i32_1 = arith.constant 0 : i32
    return %c0_i32, %c0_i32_0 : i32, i32
  }
  func.func @transform_4(%arg0: i32) -> (i32, i32, i32, i32) {
    %c0_i32 = arith.constant 0 : i32
    %c0_i32_0 = arith.constant 0 : i32
    %c0_i32_1 = arith.constant 0 : i32
    %c0_i32_2 = arith.constant 0 : i32
    return %arg0, %c0_i32, %c0_i32_0, %c0_i32_1 : i32, i32, i32, i32
  }
}

module attributes {stable_mosaic.version = 11 : i64} {
  func.func @_conv_bn_relu_head_kernel(%arg0: i32, %arg1: memref<1x8x4x512xbf16, #tpu.memory_space<vmem>>, %arg2: memref<9x256x512xbf16, #tpu.memory_space<vmem>>, %arg3: memref<1x512xf32, #tpu.memory_space<vmem>>, %arg4: memref<1x512xf32, #tpu.memory_space<vmem>>, %arg5: memref<512x128xbf16, #tpu.memory_space<vmem>>, %arg6: memref<1x128xf32, #tpu.memory_space<vmem>>, %arg7: memref<128x128xbf16, #tpu.memory_space<vmem>>, %arg8: memref<1x128xf32, #tpu.memory_space<vmem>>, %arg9: memref<1x8x128xf32, #tpu.memory_space<vmem>>, %arg10: memref<32x512xbf16, #tpu.memory_space<vmem>>, %arg11: memref<24x512xbf16, #tpu.memory_space<vmem>>) attributes {dimension_semantics = [#tpu.dimension_semantics<parallel>], iteration_bounds = array<i64: 2>, scalar_prefetch = 0 : i64, scratch_operands = 2 : i64, tpu.core_type = #tpu.core_type<tc>, window_params = [{transform_indices = @transform_0, window_bounds = array<i64: 1, 8, 4, 512>}, {pipeline_mode = #tpu.pipeline_mode<synchronous>, transform_indices = @transform_1, window_bounds = array<i64: 9, 256, 512>}, {pipeline_mode = #tpu.pipeline_mode<synchronous>, transform_indices = @transform_2, window_bounds = array<i64: 1, 512>}, {pipeline_mode = #tpu.pipeline_mode<synchronous>, transform_indices = @transform_3, window_bounds = array<i64: 1, 512>}, {pipeline_mode = #tpu.pipeline_mode<synchronous>, transform_indices = @transform_4, window_bounds = array<i64: 512, 128>}, {pipeline_mode = #tpu.pipeline_mode<synchronous>, transform_indices = @transform_5, window_bounds = array<i64: 1, 128>}, {pipeline_mode = #tpu.pipeline_mode<synchronous>, transform_indices = @transform_6, window_bounds = array<i64: 128, 128>}, {pipeline_mode = #tpu.pipeline_mode<synchronous>, transform_indices = @transform_7, window_bounds = array<i64: 1, 128>}, {transform_indices = @transform_8, window_bounds = array<i64: 1, 8, 128>}]} {
    %cst = arith.constant 0.000000e+00 : bf16
    %0 = vector.broadcast %cst : bf16 to vector<32x512xbf16>
    %c0 = arith.constant 0 : index
    %c0_0 = arith.constant 0 : index
    %1 = vector.load %arg10[%c0, %c0_0] : memref<32x512xbf16, #tpu.memory_space<vmem>>, vector<32x512xbf16>
    tpu.vector_store %arg10[%c0, %c0_0], %0 {strides = array<i32>} : memref<32x512xbf16, #tpu.memory_space<vmem>>, vector<32x512xbf16>,
    %cst_1 = arith.constant 0.000000e+00 : bf16
    %2 = vector.broadcast %cst_1 : bf16 to vector<24x512xbf16>
    %c0_2 = arith.constant 0 : index
    %c0_3 = arith.constant 0 : index
    %3 = vector.load %arg11[%c0_2, %c0_3] : memref<24x512xbf16, #tpu.memory_space<vmem>>, vector<24x512xbf16>
    tpu.vector_store %arg11[%c0_2, %c0_3], %2 {strides = array<i32>} : memref<24x512xbf16, #tpu.memory_space<vmem>>, vector<24x512xbf16>,
    %c0_4 = arith.constant 0 : index
    %c0_5 = arith.constant 0 : index
    %c0_6 = arith.constant 0 : index
    %c0_7 = arith.constant 0 : index
    %4 = vector.load %arg1[%c0_4, %c0_5, %c0_6, %c0_7] : memref<1x8x4x512xbf16, #tpu.memory_space<vmem>>, vector<1x1x4x512xbf16>
    %5 = vector.shape_cast %4 : vector<1x1x4x512xbf16> to vector<4x512xbf16>
    %c1 = arith.constant 1 : index
    %c0_8 = arith.constant 0 : index
    %6 = vector.load %arg11[%c1, %c0_8] : memref<24x512xbf16, #tpu.memory_space<vmem>>, vector<4x512xbf16>
    tpu.vector_store %arg11[%c1, %c0_8], %5 {strides = array<i32>} : memref<24x512xbf16, #tpu.memory_space<vmem>>, vector<4x512xbf16>,
    %c0_9 = arith.constant 0 : index
    %c1_10 = arith.constant 1 : index
    %c0_11 = arith.constant 0 : index
    %c0_12 = arith.constant 0 : index
    %7 = vector.load %arg1[%c0_9, %c1_10, %c0_11, %c0_12] : memref<1x8x4x512xbf16, #tpu.memory_space<vmem>>, vector<1x1x4x512xbf16>
    %8 = vector.shape_cast %7 : vector<1x1x4x512xbf16> to vector<4x512xbf16>
    %c6 = arith.constant 6 : index
    %c0_13 = arith.constant 0 : index
    %9 = vector.load %arg10[%c6, %c0_13] : memref<32x512xbf16, #tpu.memory_space<vmem>>, vector<4x512xbf16>
    tpu.vector_store %arg10[%c6, %c0_13], %8 {strides = array<i32>} : memref<32x512xbf16, #tpu.memory_space<vmem>>, vector<4x512xbf16>,
    %c0_14 = arith.constant 0 : index
    %c2 = arith.constant 2 : index
    %c0_15 = arith.constant 0 : index
    %c0_16 = arith.constant 0 : index
    %10 = vector.load %arg1[%c0_14, %c2, %c0_15, %c0_16] : memref<1x8x4x512xbf16, #tpu.memory_space<vmem>>, vector<1x1x4x512xbf16>
    %11 = vector.shape_cast %10 : vector<1x1x4x512xbf16> to vector<4x512xbf16>
    %c6_17 = arith.constant 6 : index
    %c0_18 = arith.constant 0 : index
    %12 = vector.load %arg11[%c6_17, %c0_18] : memref<24x512xbf16, #tpu.memory_space<vmem>>, vector<4x512xbf16>
    tpu.vector_store %arg11[%c6_17, %c0_18], %11 {strides = array<i32>} : memref<24x512xbf16, #tpu.memory_space<vmem>>, vector<4x512xbf16>,
    %c0_19 = arith.constant 0 : index
    %c3 = arith.constant 3 : index
    %c0_20 = arith.constant 0 : index
    %c0_21 = arith.constant 0 : index
    %13 = vector.load %arg1[%c0_19, %c3, %c0_20, %c0_21] : memref<1x8x4x512xbf16, #tpu.memory_space<vmem>>, vector<1x1x4x512xbf16>
    %14 = vector.shape_cast %13 : vector<1x1x4x512xbf16> to vector<4x512xbf16>
    %c11 = arith.constant 11 : index
    %c0_22 = arith.constant 0 : index
    %15 = vector.load %arg10[%c11, %c0_22] : memref<32x512xbf16, #tpu.memory_space<vmem>>, vector<4x512xbf16>
    tpu.vector_store %arg10[%c11, %c0_22], %14 {strides = array<i32>} : memref<32x512xbf16, #tpu.memory_space<vmem>>, vector<4x512xbf16>,
    %c0_23 = arith.constant 0 : index
    %c4 = arith.constant 4 : index
    %c0_24 = arith.constant 0 : index
    %c0_25 = arith.constant 0 : index
    %16 = vector.load %arg1[%c0_23, %c4, %c0_24, %c0_25] : memref<1x8x4x512xbf16, #tpu.memory_space<vmem>>, vector<1x1x4x512xbf16>
    %17 = vector.shape_cast %16 : vector<1x1x4x512xbf16> to vector<4x512xbf16>
    %c11_26 = arith.constant 11 : index
    %c0_27 = arith.constant 0 : index
    %18 = vector.load %arg11[%c11_26, %c0_27] : memref<24x512xbf16, #tpu.memory_space<vmem>>, vector<4x512xbf16>
    tpu.vector_store %arg11[%c11_26, %c0_27], %17 {strides = array<i32>} : memref<24x512xbf16, #tpu.memory_space<vmem>>, vector<4x512xbf16>,
    %c0_28 = arith.constant 0 : index
    %c5 = arith.constant 5 : index
    %c0_29 = arith.constant 0 : index
    %c0_30 = arith.constant 0 : index
    %19 = vector.load %arg1[%c0_28, %c5, %c0_29, %c0_30] : memref<1x8x4x512xbf16, #tpu.memory_space<vmem>>, vector<1x1x4x512xbf16>
    %20 = vector.shape_cast %19 : vector<1x1x4x512xbf16> to vector<4x512xbf16>
    %c16 = arith.constant 16 : index
    %c0_31 = arith.constant 0 : index
    %21 = vector.load %arg10[%c16, %c0_31] : memref<32x512xbf16, #tpu.memory_space<vmem>>, vector<4x512xbf16>
    tpu.vector_store %arg10[%c16, %c0_31], %20 {strides = array<i32>} : memref<32x512xbf16, #tpu.memory_space<vmem>>, vector<4x512xbf16>,
    %c0_32 = arith.constant 0 : index
    %c6_33 = arith.constant 6 : index
    %c0_34 = arith.constant 0 : index
    %c0_35 = arith.constant 0 : index
    %22 = vector.load %arg1[%c0_32, %c6_33, %c0_34, %c0_35] : memref<1x8x4x512xbf16, #tpu.memory_space<vmem>>, vector<1x1x4x512xbf16>
    %23 = vector.shape_cast %22 : vector<1x1x4x512xbf16> to vector<4x512xbf16>
    %c16_36 = arith.constant 16 : index
    %c0_37 = arith.constant 0 : index
    %24 = vector.load %arg11[%c16_36, %c0_37] : memref<24x512xbf16, #tpu.memory_space<vmem>>, vector<4x512xbf16>
    tpu.vector_store %arg11[%c16_36, %c0_37], %23 {strides = array<i32>} : memref<24x512xbf16, #tpu.memory_space<vmem>>, vector<4x512xbf16>,
    %c0_38 = arith.constant 0 : index
    %c7 = arith.constant 7 : index
    %c0_39 = arith.constant 0 : index
    %c0_40 = arith.constant 0 : index
    %25 = vector.load %arg1[%c0_38, %c7, %c0_39, %c0_40] : memref<1x8x4x512xbf16, #tpu.memory_space<vmem>>, vector<1x1x4x512xbf16>
    %26 = vector.shape_cast %25 : vector<1x1x4x512xbf16> to vector<4x512xbf16>
    %c21 = arith.constant 21 : index
    %c0_41 = arith.constant 0 : index
    %27 = vector.load %arg10[%c21, %c0_41] : memref<32x512xbf16, #tpu.memory_space<vmem>>, vector<4x512xbf16>
    tpu.vector_store %arg10[%c21, %c0_41], %26 {strides = array<i32>} : memref<32x512xbf16, #tpu.memory_space<vmem>>, vector<4x512xbf16>,
    %cst_42 = arith.constant 0.000000e+00 : f32
    %28 = vector.broadcast %cst_42 : f32 to vector<20x512xf32>
    %c0_43 = arith.constant 0 : index
    %c256 = arith.constant 256 : index
    %29 = vector.load %arg10[%c0_43, %c256] : memref<32x512xbf16, #tpu.memory_space<vmem>>, vector<20x256xbf16>
    %c0_44 = arith.constant 0 : index
    %c0_45 = arith.constant 0 : index
    %c0_46 = arith.constant 0 : index
    %30 = vector.load %arg2[%c0_44, %c0_45, %c0_46] : memref<9x256x512xbf16, #tpu.memory_space<vmem>>, vector<1x256x512xbf16>
    %31 = vector.shape_cast %30 : vector<1x256x512xbf16> to vector<256x512xbf16>
    %cst_47 = arith.constant dense<0.000000e+00> : vector<20x512xf32>
    %32 = tpu.matmul %29, %31, %cst_47 {dimension_numbers = #tpu.dot_dimension_numbers<[1], [0], [0], [1], [0, 0, 1, 1], [], []>} : vector<20x256xbf16>, vector<256x512xbf16>, vector<20x512xf32> -> vector<20x512xf32>
    %33 = arith.addf %28, %32 : vector<20x512xf32>
    %c1_48 = arith.constant 1 : index
    %c0_49 = arith.constant 0 : index
    %34 = vector.load %arg10[%c1_48, %c0_49] : memref<32x512xbf16, #tpu.memory_space<vmem>>, vector<20x256xbf16>
    %c1_50 = arith.constant 1 : index
    %c0_51 = arith.constant 0 : index
    %c0_52 = arith.constant 0 : index
    %35 = vector.load %arg2[%c1_50, %c0_51, %c0_52] : memref<9x256x512xbf16, #tpu.memory_space<vmem>>, vector<1x256x512xbf16>
    %36 = vector.shape_cast %35 : vector<1x256x512xbf16> to vector<256x512xbf16>
    %cst_53 = arith.constant dense<0.000000e+00> : vector<20x512xf32>
    %37 = tpu.matmul %34, %36, %cst_53 {dimension_numbers = #tpu.dot_dimension_numbers<[1], [0], [0], [1], [0, 0, 1, 1], [], []>} : vector<20x256xbf16>, vector<256x512xbf16>, vector<20x512xf32> -> vector<20x512xf32>
    %38 = arith.addf %33, %37 : vector<20x512xf32>
    %c1_54 = arith.constant 1 : index
    %c256_55 = arith.constant 256 : index
    %39 = vector.load %arg10[%c1_54, %c256_55] : memref<32x512xbf16, #tpu.memory_space<vmem>>, vector<20x256xbf16>
    %c2_56 = arith.constant 2 : index
    %c0_57 = arith.constant 0 : index
    %c0_58 = arith.constant 0 : index
    %40 = vector.load %arg2[%c2_56, %c0_57, %c0_58] : memref<9x256x512xbf16, #tpu.memory_space<vmem>>, vector<1x256x512xbf16>
    %41 = vector.shape_cast %40 : vector<1x256x512xbf16> to vector<256x512xbf16>
    %cst_59 = arith.constant dense<0.000000e+00> : vector<20x512xf32>
    %42 = tpu.matmul %39, %41, %cst_59 {dimension_numbers = #tpu.dot_dimension_numbers<[1], [0], [0], [1], [0, 0, 1, 1], [], []>} : vector<20x256xbf16>, vector<256x512xbf16>, vector<20x512xf32> -> vector<20x512xf32>
    %43 = arith.addf %38, %42 : vector<20x512xf32>
    %c0_60 = arith.constant 0 : index
    %c256_61 = arith.constant 256 : index
    %44 = vector.load %arg11[%c0_60, %c256_61] : memref<24x512xbf16, #tpu.memory_space<vmem>>, vector<20x256xbf16>
    %c3_62 = arith.constant 3 : index
    %c0_63 = arith.constant 0 : index
    %c0_64 = arith.constant 0 : index
    %45 = vector.load %arg2[%c3_62, %c0_63, %c0_64] : memref<9x256x512xbf16, #tpu.memory_space<vmem>>, vector<1x256x512xbf16>
    %46 = vector.shape_cast %45 : vector<1x256x512xbf16> to vector<256x512xbf16>
    %cst_65 = arith.constant dense<0.000000e+00> : vector<20x512xf32>
    %47 = tpu.matmul %44, %46, %cst_65 {dimension_numbers = #tpu.dot_dimension_numbers<[1], [0], [0], [1], [0, 0, 1, 1], [], []>} : vector<20x256xbf16>, vector<256x512xbf16>, vector<20x512xf32> -> vector<20x512xf32>
    %48 = arith.addf %43, %47 : vector<20x512xf32>
    %c1_66 = arith.constant 1 : index
    %c0_67 = arith.constant 0 : index
    %49 = vector.load %arg11[%c1_66, %c0_67] : memref<24x512xbf16, #tpu.memory_space<vmem>>, vector<20x256xbf16>
    %c4_68 = arith.constant 4 : index
    %c0_69 = arith.constant 0 : index
    %c0_70 = arith.constant 0 : index
    %50 = vector.load %arg2[%c4_68, %c0_69, %c0_70] : memref<9x256x512xbf16, #tpu.memory_space<vmem>>, vector<1x256x512xbf16>
    %51 = vector.shape_cast %50 : vector<1x256x512xbf16> to vector<256x512xbf16>
    %cst_71 = arith.constant dense<0.000000e+00> : vector<20x512xf32>
    %52 = tpu.matmul %49, %51, %cst_71 {dimension_numbers = #tpu.dot_dimension_numbers<[1], [0], [0], [1], [0, 0, 1, 1], [], []>} : vector<20x256xbf16>, vector<256x512xbf16>, vector<20x512xf32> -> vector<20x512xf32>
    %53 = arith.addf %48, %52 : vector<20x512xf32>
    %c1_72 = arith.constant 1 : index
    %c256_73 = arith.constant 256 : index
    %54 = vector.load %arg11[%c1_72, %c256_73] : memref<24x512xbf16, #tpu.memory_space<vmem>>, vector<20x256xbf16>
    %c5_74 = arith.constant 5 : index
    %c0_75 = arith.constant 0 : index
    %c0_76 = arith.constant 0 : index
    %55 = vector.load %arg2[%c5_74, %c0_75, %c0_76] : memref<9x256x512xbf16, #tpu.memory_space<vmem>>, vector<1x256x512xbf16>
    %56 = vector.shape_cast %55 : vector<1x256x512xbf16> to vector<256x512xbf16>
    %cst_77 = arith.constant dense<0.000000e+00> : vector<20x512xf32>
    %57 = tpu.matmul %54, %56, %cst_77 {dimension_numbers = #tpu.dot_dimension_numbers<[1], [0], [0], [1], [0, 0, 1, 1], [], []>} : vector<20x256xbf16>, vector<256x512xbf16>, vector<20x512xf32> -> vector<20x512xf32>
    %58 = arith.addf %53, %57 : vector<20x512xf32>
    %c5_78 = arith.constant 5 : index
    %c256_79 = arith.constant 256 : index
    %59 = vector.load %arg10[%c5_78, %c256_79] : memref<32x512xbf16, #tpu.memory_space<vmem>>, vector<20x256xbf16>
    %c6_80 = arith.constant 6 : index
    %c0_81 = arith.constant 0 : index
    %c0_82 = arith.constant 0 : index
    %60 = vector.load %arg2[%c6_80, %c0_81, %c0_82] : memref<9x256x512xbf16, #tpu.memory_space<vmem>>, vector<1x256x512xbf16>
    %61 = vector.shape_cast %60 : vector<1x256x512xbf16> to vector<256x512xbf16>
    %cst_83 = arith.constant dense<0.000000e+00> : vector<20x512xf32>
    %62 = tpu.matmul %59, %61, %cst_83 {dimension_numbers = #tpu.dot_dimension_numbers<[1], [0], [0], [1], [0, 0, 1, 1], [], []>} : vector<20x256xbf16>, vector<256x512xbf16>, vector<20x512xf32> -> vector<20x512xf32>
    %63 = arith.addf %58, %62 : vector<20x512xf32>
    %c6_84 = arith.constant 6 : index
    %c0_85 = arith.constant 0 : index
    %64 = vector.load %arg10[%c6_84, %c0_85] : memref<32x512xbf16, #tpu.memory_space<vmem>>, vector<20x256xbf16>
    %c7_86 = arith.constant 7 : index
    %c0_87 = arith.constant 0 : index
    %c0_88 = arith.constant 0 : index
    %65 = vector.load %arg2[%c7_86, %c0_87, %c0_88] : memref<9x256x512xbf16, #tpu.memory_space<vmem>>, vector<1x256x512xbf16>
    %66 = vector.shape_cast %65 : vector<1x256x512xbf16> to vector<256x512xbf16>
    %cst_89 = arith.constant dense<0.000000e+00> : vector<20x512xf32>
    %67 = tpu.matmul %64, %66, %cst_89 {dimension_numbers = #tpu.dot_dimension_numbers<[1], [0], [0], [1], [0, 0, 1, 1], [], []>} : vector<20x256xbf16>, vector<256x512xbf16>, vector<20x512xf32> -> vector<20x512xf32>
    %68 = arith.addf %63, %67 : vector<20x512xf32>
    %c6_90 = arith.constant 6 : index
    %c256_91 = arith.constant 256 : index
    %69 = vector.load %arg10[%c6_90, %c256_91] : memref<32x512xbf16, #tpu.memory_space<vmem>>, vector<20x256xbf16>
    %c8 = arith.constant 8 : index
    %c0_92 = arith.constant 0 : index
    %c0_93 = arith.constant 0 : index
    %70 = vector.load %arg2[%c8, %c0_92, %c0_93] : memref<9x256x512xbf16, #tpu.memory_space<vmem>>, vector<1x256x512xbf16>
    %71 = vector.shape_cast %70 : vector<1x256x512xbf16> to vector<256x512xbf16>
    %cst_94 = arith.constant dense<0.000000e+00> : vector<20x512xf32>
    %72 = tpu.matmul %69, %71, %cst_94 {dimension_numbers = #tpu.dot_dimension_numbers<[1], [0], [0], [1], [0, 0, 1, 1], [], []>} : vector<20x256xbf16>, vector<256x512xbf16>, vector<20x512xf32> -> vector<20x512xf32>
    %73 = arith.addf %68, %72 : vector<20x512xf32>
    %c0_95 = arith.constant 0 : index
    %c0_96 = arith.constant 0 : index
    %74 = vector.load %arg3[%c0_95, %c0_96] : memref<1x512xf32, #tpu.memory_space<vmem>>, vector<1x512xf32>
    %75 = vector.broadcast %74 : vector<1x512xf32> to vector<20x512xf32>
    %76 = arith.mulf %73, %75 : vector<20x512xf32>
    %c0_97 = arith.constant 0 : index
    %c0_98 = arith.constant 0 : index
    %77 = vector.load %arg4[%c0_97, %c0_98] : memref<1x512xf32, #tpu.memory_space<vmem>>, vector<1x512xf32>
    %78 = vector.broadcast %77 : vector<1x512xf32> to vector<20x512xf32>
    %79 = arith.addf %76, %78 : vector<20x512xf32>
    %cst_99 = arith.constant 0.000000e+00 : f32
    %80 = vector.broadcast %cst_99 : f32 to vector<20x512xf32>
    %81 = arith.maximumf %79, %80 : vector<20x512xf32>
    %cst_100 = arith.constant 0.000000e+00 : f32
    %82 = vector.broadcast %cst_100 : f32 to vector<1x512xf32>
    %83 = vector.extract_strided_slice %81 {offsets = [0, 0], sizes = [4, 512], strides = [1, 1]} : vector<20x512xf32> to vector<4x512xf32>
    %cst_101 = arith.constant dense<0.000000e+00> : vector<512xf32>
    %84 = vector.multi_reduction <add>, %83, %cst_101 [0] : vector<4x512xf32> to vector<512xf32>
    %85 = vector.shape_cast %84 : vector<512xf32> to vector<1x512xf32>
    %86 = arith.addf %82, %85 : vector<1x512xf32>
    %87 = vector.extract_strided_slice %81 {offsets = [5, 0], sizes = [4, 512], strides = [1, 1]} : vector<20x512xf32> to vector<4x512xf32>
    %cst_102 = arith.constant dense<0.000000e+00> : vector<512xf32>
    %88 = vector.multi_reduction <add>, %87, %cst_102 [0] : vector<4x512xf32> to vector<512xf32>
    %89 = vector.shape_cast %88 : vector<512xf32> to vector<1x512xf32>
    %90 = arith.addf %86, %89 : vector<1x512xf32>
    %91 = vector.extract_strided_slice %81 {offsets = [10, 0], sizes = [4, 512], strides = [1, 1]} : vector<20x512xf32> to vector<4x512xf32>
    %cst_103 = arith.constant dense<0.000000e+00> : vector<512xf32>
    %92 = vector.multi_reduction <add>, %91, %cst_103 [0] : vector<4x512xf32> to vector<512xf32>
    %93 = vector.shape_cast %92 : vector<512xf32> to vector<1x512xf32>
    %94 = arith.addf %90, %93 : vector<1x512xf32>
    %95 = vector.extract_strided_slice %81 {offsets = [15, 0], sizes = [4, 512], strides = [1, 1]} : vector<20x512xf32> to vector<4x512xf32>
    %cst_104 = arith.constant dense<0.000000e+00> : vector<512xf32>
    %96 = vector.multi_reduction <add>, %95, %cst_104 [0] : vector<4x512xf32> to vector<512xf32>
    %97 = vector.shape_cast %96 : vector<512xf32> to vector<1x512xf32>
    %98 = arith.addf %94, %97 : vector<1x512xf32>
    %cst_105 = arith.constant 6.250000e-02 : f32
    %99 = vector.broadcast %cst_105 : f32 to vector<1x512xf32>
    %100 = arith.mulf %98, %99 : vector<1x512xf32>
    %101 = arith.truncf %100 : vector<1x512xf32> to vector<1x512xbf16>
    %c0_106 = arith.constant 0 : index
    %c0_107 = arith.constant 0 : index
    %102 = vector.load %arg5[%c0_106, %c0_107] : memref<512x128xbf16, #tpu.memory_space<vmem>>, vector<512x128xbf16>
    %cst_108 = arith.constant dense<0.000000e+00> : vector<1x128xf32>
    %103 = tpu.matmul %101, %102, %cst_108 {dimension_numbers = #tpu.dot_dimension_numbers<[1], [0], [0], [1], [0, 0, 1, 1], [], []>} : vector<1x512xbf16>, vector<512x128xbf16>, vector<1x128xf32> -> vector<1x128xf32>
    %c0_109 = arith.constant 0 : index
    %c0_110 = arith.constant 0 : index
    %104 = vector.load %arg6[%c0_109, %c0_110] : memref<1x128xf32, #tpu.memory_space<vmem>>, vector<1x128xf32>
    %105 = arith.addf %103, %104 : vector<1x128xf32>
    %106 = arith.truncf %105 : vector<1x128xf32> to vector<1x128xbf16>
    %c0_111 = arith.constant 0 : index
    %c0_112 = arith.constant 0 : index
    %107 = vector.load %arg7[%c0_111, %c0_112] : memref<128x128xbf16, #tpu.memory_space<vmem>>, vector<128x128xbf16>
    %cst_113 = arith.constant dense<0.000000e+00> : vector<1x128xf32>
    %108 = tpu.matmul %106, %107, %cst_113 {dimension_numbers = #tpu.dot_dimension_numbers<[1], [0], [0], [1], [0, 0, 1, 1], [], []>} : vector<1x128xbf16>, vector<128x128xbf16>, vector<1x128xf32> -> vector<1x128xf32>
    %c0_114 = arith.constant 0 : index
    %c0_115 = arith.constant 0 : index
    %109 = vector.load %arg8[%c0_114, %c0_115] : memref<1x128xf32, #tpu.memory_space<vmem>>, vector<1x128xf32>
    %110 = arith.addf %108, %109 : vector<1x128xf32>
    %111 = vector.shape_cast %110 : vector<1x128xf32> to vector<1x128xf32>
    %112 = vector.broadcast %111 : vector<1x128xf32> to vector<8x128xf32>
    %c0_116 = arith.constant 0 : index
    %c0_117 = arith.constant 0 : index
    %c0_118 = arith.constant 0 : index
    %113 = vector.load %arg9[%c0_116, %c0_117, %c0_118] : memref<1x8x128xf32, #tpu.memory_space<vmem>>, vector<1x8x128xf32>
    %114 = vector.shape_cast %113 : vector<1x8x128xf32> to vector<8x128xf32>
    %115 = vector.shape_cast %112 : vector<8x128xf32> to vector<1x8x128xf32>
    tpu.vector_store %arg9[%c0_116, %c0_117, %c0_118], %115 {strides = array<i32>} : memref<1x8x128xf32, #tpu.memory_space<vmem>>, vector<1x8x128xf32>,
    return
  }
  func.func @transform_0(%arg0: i32) -> (i32, i32, i32, i32) {
    %c0_i32 = arith.constant 0 : i32
    %c0_i32_0 = arith.constant 0 : i32
    %c0_i32_1 = arith.constant 0 : i32
    %c0_i32_2 = arith.constant 0 : i32
    return %arg0, %c0_i32, %c0_i32_0, %c0_i32_1 : i32, i32, i32, i32
  }
  func.func @transform_1(%arg0: i32) -> (i32, i32, i32) {
    %c0_i32 = arith.constant 0 : i32
    %c0_i32_0 = arith.constant 0 : i32
    %c0_i32_1 = arith.constant 0 : i32
    %c0_i32_2 = arith.constant 0 : i32
    return %c0_i32, %c0_i32_0, %c0_i32_1 : i32, i32, i32
  }
  func.func @transform_2(%arg0: i32) -> (i32, i32) {
    %c0_i32 = arith.constant 0 : i32
    %c0_i32_0 = arith.constant 0 : i32
    %c0_i32_1 = arith.constant 0 : i32
    return %c0_i32, %c0_i32_0 : i32, i32
  }
  func.func @transform_3(%arg0: i32) -> (i32, i32) {
    %c0_i32 = arith.constant 0 : i32
    %c0_i32_0 = arith.constant 0 : i32
    %c0_i32_1 = arith.constant 0 : i32
    return %c0_i32, %c0_i32_0 : i32, i32
  }
  func.func @transform_4(%arg0: i32) -> (i32, i32) {
    %c0_i32 = arith.constant 0 : i32
    %c0_i32_0 = arith.constant 0 : i32
    %c0_i32_1 = arith.constant 0 : i32
    return %c0_i32, %c0_i32_0 : i32, i32
  }
  func.func @transform_5(%arg0: i32) -> (i32, i32) {
    %c0_i32 = arith.constant 0 : i32
    %c0_i32_0 = arith.constant 0 : i32
    %c0_i32_1 = arith.constant 0 : i32
    return %c0_i32, %c0_i32_0 : i32, i32
  }
  func.func @transform_6(%arg0: i32) -> (i32, i32) {
    %c0_i32 = arith.constant 0 : i32
    %c0_i32_0 = arith.constant 0 : i32
    %c0_i32_1 = arith.constant 0 : i32
    return %c0_i32, %c0_i32_0 : i32, i32
  }
  func.func @transform_7(%arg0: i32) -> (i32, i32) {
    %c0_i32 = arith.constant 0 : i32
    %c0_i32_0 = arith.constant 0 : i32
    %c0_i32_1 = arith.constant 0 : i32
    return %c0_i32, %c0_i32_0 : i32, i32
  }
  func.func @transform_8(%arg0: i32) -> (i32, i32, i32) {
    %c0_i32 = arith.constant 0 : i32
    %c0_i32_0 = arith.constant 0 : i32
    %c0_i32_1 = arith.constant 0 : i32
    return %arg0, %c0_i32, %c0_i32_0 : i32, i32, i32
  }
}

</mosaic_0001>

<bundles_post_ra>
// kernel: face_bone_forward.4
= control target key start
LH: loop header
LB: loop body
LE: loop exit
PB: predicated region body
PF: predicated region fallthrough
CT: control target
= control target key end

     0   :  { %9 = vsyncpa [#allocation5], 0  ;;  %s4523_s0 = inlined_call_operand.vmem [shape: bf16[2,16,8,256], index: 0, kind: input, shape index: {}]   ;;  %s4524_s1 = inlined_call_operand.hbm [shape: bf16[9,128,256], index: 1, kind: input, shape index: {}]   ;;  %s4525_s2 = inlined_call_operand.hbm [shape: f32[1,256], index: 2, kind: input, shape index: {}]   ;;  %s4526_s3 = inlined_call_operand.hbm [shape: f32[1,256], index: 3, kind: input, shape index: {}]   ;;  %s4527_s4 = inlined_call_operand.vmem [shape: bf16[2,8,8,256], index: 4, kind: output, shape index: {}]  }
   0x1   :  { %10 = vsyncpa [#allocation7], 0  ;;  %s3796_s15 = smov 0  }
   0x2 LB: > { %s3765_s16 = smov [#allocation6]   ;;  %s3802_s18 = sadd.s32 4294967295, %s3763_s15   ;;  %s3763_s15 = sphi %s3796_s15, %s16_s15  }
   0x3   : > { %s162_s17 = sshll.u32 %s3765_s16, 4  ;;  %p3109_p0 = scmp.ge.s32.totalorder %s3763_s15, 1  ;;  %s163_s17 = int_to_ptr.vmem [resolvable:$true] %s162_s17 }
   0x4   : > { %p136_p1 = scmp.lt.s32.totalorder %s3763_s15, 3  ;;  %p4528_p2 = scmp.eq.s32.totalorder %s3802_s18, 0 }
   0x5   : > { %s3766_s20 = smov [#allocation4]   ;;  %s3767_s23 = smov [#allocation8]  }
   0x6   : > { %p3807_p3 = pnand %p3109_p0, %p136_p1  ;;  %s148_s21 = sshll.u32 %s3766_s20, 4  ;;  %s149_s21 = int_to_ptr.vmem [resolvable:$true] %s148_s21 }
   0x7   : > { %s173_s24 = sshll.u32 %s3767_s23, 4  ;;  %s3682_s25 = scalar_lea.vmem %s163_s17, 32  ;;  %s3819_s24 = int_to_ptr.vmem [resolvable:$true] %s173_s24 }
   0x8   : > { %s4551_s19 = scalar_select %p3807_p3, 1, 0 }
   0x9   : > { %p3383_p4 = pneg %p3807_p3  ;;  %p3683_p7 = scmp.ne.s32.totalorder %s163_s17, %s3682_s25 }
   0xa   : > { %p3690_p10 = scmp.lt.s32.totalorder %s163_s17, %s163_s17  ;;  %p3691_p11 = scmp.lt.s32.totalorder %s3682_s25, %s3682_s25 }
   0xb   : > { %p3815_p5 = pnand %p4528_p2, %p3383_p4 }
   0xc   : > { %p3692_p12 = por %p3691_p11, %p3690_p10 }
   0xd   : > { %p3673_p6 = pneg %p3815_p5 }
   0xf   : > { %p3685_p8 = pnand %p3683_p7, %p3673_p6 }
  0x11   : > { %p3686_p9 = pneg %p3685_p8 }
  0x13   : > { %p3693_p13 = pnand %p3692_p12, %p3686_p9 }
  0x15   : > { %3696 = shalt.err (!%p3693_p13)
}
  0x16   : > { %3389 = dma.hbm_to_vmem [thread:$0]  (!%p3815_p5), %s4525_s2, 32, %s163_s17, [#allocation7]  }
  0x17   : > { %s3708_s28 = scalar_lea.vmem %s149_s21, 18432  ;;  %p3716_p7 = scmp.lt.s32.totalorder %s149_s21, %s149_s21 }
  0x18   : > { %p3709_p0 = scmp.ne.s32.totalorder %s149_s21, %s3708_s28  ;;  %p3717_p8 = scmp.lt.s32.totalorder %s3708_s28, %s3708_s28 }
  0x1a   : > { %p3711_p1 = pnand %p3709_p0, %p3673_p6  ;;  %p3718_p2 = por %p3717_p8, %p3716_p7 }
  0x1c   : > { %p3712_p4 = pneg %p3711_p1 }
  0x1e   : > { %p3719_p3 = pnand %p3718_p2, %p3712_p4 }
  0x20   : > { %3722 = shalt.err (!%p3719_p3)
}
  0x21   : > { %s3768_s29 = smov 128   ;;  %s3769_s30 = smov 8  }
  0x22   : > { %3386 = dma.hbm_to_vmem [thread:$0]  (!%p3815_p5), %s4524_s1, 18432, %s149_s21, [#allocation5], %s3768_s29, %s3768_s29, %s3769_s30  }
  0x23   : > { %s3734_s7 = scalar_lea.vmem %s3819_s24, 32  ;;  %p3742_p2 = scmp.lt.s32.totalorder %s3819_s24, %s3819_s24 }
  0x24   : > { %p3735_p9 = scmp.ne.s32.totalorder %s3819_s24, %s3734_s7  ;;  %p3743_p3 = scmp.lt.s32.totalorder %s3734_s7, %s3734_s7 }
  0x26   : > { %p3737_p10 = pnand %p3735_p9, %p3673_p6  ;;  %p3744_p12 = por %p3743_p3, %p3742_p2 }
  0x28   : > { %p3738_p11 = pneg %p3737_p10 }
  0x2a   : > { %p3745_p13 = pnand %p3744_p12, %p3738_p11 }
  0x2c   : > { %3748 = shalt.err (!%p3745_p13)
}
  0x2d   : > { %3392 = dma.hbm_to_vmem [thread:$0]  (!%p3815_p5), %s4526_s3, 32, %s3819_s24, [#allocation7]  }
  0x2e   : > { %p4553_p0 = scmp.ne.s32.totalorder %s4551_s19, 0 }
  0x30   : > { %194 = sbr.rel (%p4553_p0) target bundleno = 496 (0x1f0), region = 36 }
  0x35   : > { %p4554_p1 = scmp.eq.s32.totalorder %s3802_s18, 0 }
  0x37   : > { %3754 = dma.done.wait (%p4554_p1), [#allocation5], 18432   ;;  %p4555_p6 = pmov %p4554_p1 }
  0x38   : > { %p4556_p4 = pmov %p4554_p1 }
  0x39   : > { %3756 = vsyncadd (%p4555_p6), [#allocation5], 4294948864 }
  0x3a   : > { %3758 = dma.done.wait (%p4556_p4), [#allocation7], 64   ;;  %p4557_p7 = pmov %p4554_p1 }
  0x3b   : > { %v3770_v0 = vmov 0   ;;  %v3413_v1 = vld [vmem:[#allocation4 + $0xf4] ss:$8 sps:$4 sm:$0xff]   ;;  %v3417_v3 = vld [vmem:[#allocation4 + $0xf0] ss:$8 sps:$4 sm:$0xff]   ;;  %p228_p5 = scmp.lt.s32.totalorder %s3802_s18, 1 }
  0x3c   : > { %3760 = vsyncadd (%p4557_p7), [#allocation7], 4294967232  ;;  %756 = vmatprep.mubr.bf16.mxu0 %v3770_v0  ;;  %239 = vst [vmem:[#allocation2] sm:$0xff] %v3770_v0  ;;  %945 = vmatprep.mubr.bf16.mxu1 %v3770_v0  ;;  %v3415_v2 = vld [vmem:[#allocation4 + $0x74] ss:$8 sps:$4 sm:$0xff]   ;;  %vm322_vm2 = vcmask 1043457  }
  0x3d   : > { %240 = vst [vmem:[#allocation2 + $0x8] sm:$0xff] %v3770_v0  ;;  %241 = vst [vmem:[#allocation2 + $0x10] sm:$0xff] %v3770_v0  ;;  %724 = vmatprep.subr.bf16.mxu0 %v3413_v1  ;;  %v3418_v4 = vld [vmem:[#allocation4 + $0x70] ss:$8 sps:$4 sm:$0xff]   ;;  %913 = vmatprep.subr.bf16.mxu1 %v3415_v2  ;;  %v3419_v5 = vld [vmem:[#allocation4 + $0xe4] ss:$8 sps:$4 sm:$0xff]  }
  0x3e   : > { %242 = vst [vmem:[#allocation2 + $0x18] sm:$0xff] %v3770_v0  ;;  %243 = vst [vmem:[#allocation2 + $0x20] sm:$0xff] %v3770_v0  ;;  %725 = vmatpush1.bf16.msra.mxu0 %v3417_v3  ;;  %914 = vmatpush1.bf16.msra.mxu1 %v3418_v4  ;;  %v3421_v6 = vld [vmem:[#allocation4 + $0x64] ss:$8 sps:$4 sm:$0xff]   ;;  %v3423_v7 = vld [vmem:[#allocation4 + $0xe0] ss:$8 sps:$4 sm:$0xff]  }
  0x3f   : > { %244 = vst [vmem:[#allocation2 + $0x28] sm:$0xff] %v3770_v0  ;;  %245 = vst [vmem:[#allocation2 + $0x30] sm:$0xff] %v3770_v0  ;;  %726 = vmatprep.subr.bf16.mxu0 %v3419_v5  ;;  %v3424_v8 = vld [vmem:[#allocation4 + $0x60] ss:$8 sps:$4 sm:$0xff]   ;;  %915 = vmatprep.subr.bf16.mxu1 %v3421_v6  ;;  %v3425_v9 = vld [vmem:[#allocation4 + $0xd4] ss:$8 sps:$4 sm:$0xff]  }
  0x40   : > { %249 = vst [vmem:[#allocation2 + $0x50] sm:$0xff] %v3770_v0  ;;  %251 = vst [vmem:[#allocation3 + $0x8] sm:$0xff] %v3770_v0  ;;  %v3427_v10 = vld [vmem:[#allocation4 + $0x54] ss:$8 sps:$4 sm:$0xff]   ;;  %v3429_v11 = vld [vmem:[#allocation4 + $0xd0] ss:$8 sps:$4 sm:$0xff]  }
  0x41   : > { %252 = vst [vmem:[#allocation3 + $0x10] sm:$0xff] %v3770_v0  ;;  %253 = vst [vmem:[#allocation3 + $0x18] sm:$0xff] %v3770_v0  ;;  %v3430_v12 = vld [vmem:[#allocation4 + $0x50] ss:$8 sps:$4 sm:$0xff]   ;;  %v3431_v13 = vld [vmem:[#allocation4 + $0xc4] ss:$8 sps:$4 sm:$0xff]  }
  0x42   : > { %254 = vst [vmem:[#allocation3 + $0x20] sm:$0xff] %v3770_v0  ;;  %255 = vst [vmem:[#allocation3 + $0x28] sm:$0xff] %v3770_v0  ;;  %727 = vmatpush1.bf16.msra.mxu0 %v3423_v7  ;;  %916 = vmatpush1.bf16.msra.mxu1 %v3424_v8  ;;  %v3433_v14 = vld [vmem:[#allocation4 + $0x44] ss:$8 sps:$4 sm:$0xff]   ;;  %vm323_vm0 = vsmask.f32 7942 }
  0x43   : > { %256 = vst [vmem:[#allocation3 + $0x30] sm:$0xff] %v3770_v0  ;;  %259 = vst [vmem:[#allocation3 + $0x48] sm:$0xff] %v3770_v0  ;;  %728 = vmatprep.subr.bf16.mxu0 %v3425_v9  ;;  %917 = vmatprep.subr.bf16.mxu1 %v3427_v10  ;;  %vm326_vm1 = vsmask.f32 7958  ;;  %v3435_v15 = vld [vmem:[#allocation4 + $0xc0] ss:$8 sps:$4 sm:$0xff]  }
  0x44   : > { %s4662_s18 = smov (!%p228_p5, %s3802_s18), 1  ;;  %v3436_v16 = vld [vmem:[#allocation4 + $0x40] ss:$8 sps:$4 sm:$0xff]   ;;  %v3437_v17 = vld [vmem:[#allocation4 + $0xb4] ss:$8 sps:$4 sm:$0xff]   ;;  %vm325_vm3 = vcmask 1047557   ;;  %vm3883_vm4 = vmand %vm322_vm2, %vm323_vm0 }
  0x45   : > { %v3439_v18 = vld [vmem:[#allocation4 + $0x34] ss:$8 sps:$4 sm:$0xff]   ;;  %vm4530_vm5 = vsmask.f32 1280  ;;  %v3441_v20 = vld [vmem:[#allocation4 + $0xb0] ss:$8 sps:$4 sm:$0xff]   ;;  %vm3889_vm6 = vmand %vm325_vm3, %vm326_vm1 }
  0x46   : > { %729 = vmatpush1.bf16.msra.mxu0 %v3429_v11  ;;  %918 = vmatpush1.bf16.msra.mxu1 %v3430_v12  ;;  %v3442_v21 = vld [vmem:[#allocation4 + $0x30] ss:$8 sps:$4 sm:$0xff]   ;;  %s3344_s10 = sshll.u32 %s4662_s18, 7  ;;  %vm4531_vm7 = vcmask 1041408   ;;  %v3443_v23 = vld [vmem:[#allocation4 + $0xa4] ss:$8 sps:$4 sm:$0xff]   ;;  %vm4538_vm0 = vmor %vm3889_vm6, %vm3883_vm4 }
  0x47   : > { %730 = vmatprep.subr.bf16.mxu0 %v3431_v13  ;;  %919 = vmatprep.subr.bf16.mxu1 %v3433_v14  ;;  %v3445_v24 = vld [vmem:[#allocation4 + $0x24] ss:$8 sps:$4 sm:$0xff]   ;;  %s3896_s13 = scalar_lea.vmem %s4523_s0, %s3344_s10  ;;  %vm3900_vm8 = vmand %vm4531_vm7, %vm4530_vm5  ;;  %vm4532_vm9 = vcmask 1045508   ;;  %vm336_vm10 = vsmask.f32 5376  ;;  %vm392_vm11 = vcmask 1043458  }
  0x48   : > { %v3447_v26 = vld [vmem:[#allocation4 + $0xa0] ss:$8 sps:$4 sm:$0xff]   ;;  %vm393_vm12 = vsmask.f32 7946  ;;  %v3449_v28 = vld [vmem:[#allocation4 + $0x94] ss:$8 sps:$4 sm:$0xff]   ;;  %vm3908_vm15 = vmand %vm4532_vm9, %vm336_vm10 }
  0x49   : > { %v3448_v27 = vld [vmem:[#allocation4 + $0x20] ss:$8 sps:$4 sm:$0xff]   ;;  %vm395_vm13 = vcmask 1047558   ;;  %v3451_v29 = vld [vmem:[#allocation4 + $0x14] ss:$8 sps:$4 sm:$0xff]   ;;  %vm3919_vm1 = vmand %vm392_vm11, %vm393_vm12  ;;  %vm4534_vm3 = vcmask 1042432  }
  0x4a   : > { %731 = vmatpush1.bf16.msra.mxu0 %v3435_v15  ;;  %920 = vmatpush1.bf16.msra.mxu1 %v3436_v16  ;;  %v3122_v30 = vld [vmem:[%s3896_s13 + $0x8] sm:$0xff]  ;;  %v3124_v31 = vld [vmem:[%s3896_s13 + $0x18] sm:$0xff]  ;;  %vm396_vm14 = vsmask.f32 7962  ;;  %v329_v45 = vld [vmem:[#allocation2 + $0x10] sm:$0xee] }
  0x4b   : > { %732 = vmatprep.subr.bf16.mxu0 %v3437_v17  ;;  %921 = vmatprep.subr.bf16.mxu1 %v3439_v18  ;;  %v3453_v32 = vld [vmem:[#allocation4 + $0x90] ss:$8 sps:$4 sm:$0xff]   ;;  %v294_v34 = vrot.slane %v3122_v30, 7  ;;  %v312_v35 = vshrl.u32 %v3124_v31, 16  ;;  %v315_v36 = vshll.u32 %v3124_v31, 16  ;;  %v3126_v38 = vld [vmem:[%s3896_s13 + $0x28] sm:$0xff]  ;;  %vm4536_vm2 = vmor %vm3908_vm15, %vm3900_vm8 }
  0x4c   : > { %v3454_v33 = vld [vmem:[#allocation4 + $0x10] ss:$8 sps:$4 sm:$0xff]   ;;  %v3455_v39 = vld [vmem:[#allocation4 + $0x84] ss:$8 sps:$4 sm:$0xff]   ;;  %v364_v41 = vrot.slane %v3126_v38, 6  ;;  %vm3930_vm11 = vmand %vm395_vm13, %vm396_vm14  ;;  %vm4535_vm12 = vcmask 1046532  }
  0x4d   : > { %v3457_v40 = vld [vmem:[#allocation4 + $0x4] ss:$8 sps:$4 sm:$0xff]   ;;  %v295_v42 = vrot.slane %v294_v34, 4  ;;  %298 = vst [vmem:[#allocation2 + $0x8] sm:$0xee] %v294_v34  ;;  %v314_v43 = vrot.slane %v312_v35, 6  ;;  %vm4537_vm13 = vmor %vm3930_vm11, %vm3919_vm1 }
  0x4e   : > { %733 = vmatpush1.bf16.msra.mxu0 %v3441_v20  ;;  %922 = vmatpush1.bf16.msra.mxu1 %v3442_v21  ;;  %v317_v44 = vrot.slane %v315_v36, 7  ;;  %368 = vst [vmem:[#allocation2 + $0x18] sm:$0xcc] %v364_v41  ;;  %v365_v46 = vrot.slane %v364_v41, 4  ;;  %v3459_v48 = vld [vmem:[#allocation4 + $0x80] ss:$8 sps:$4 sm:$0xff]  }
  0x4f   : > { %734 = vmatprep.subr.bf16.mxu0 %v3443_v23  ;;  %923 = vmatprep.subr.bf16.mxu1 %v3445_v24  ;;  %v3460_v49 = vld [vmem:[#allocation4] ss:$8 sps:$4 sm:$0xff]   ;;  %299 = vst [vmem:[#allocation2 + $0x10] sm:$0x11] %v295_v42  ;;  %vm4533_vm10 = vsmask.f32 2304 }
  0x50   : > { %v318_v50 = vor.u32 %v317_v44, %v314_v43  ;;  %v339_v51 = vld [vmem:[#allocation2 + $0x18] sm:$0x33]  ;;  %369 = vst [vmem:[#allocation2 + $0x20] sm:$0x33] %v365_v46  ;;  %vm406_vm5 = vsmask.f32 6400  ;;  %vm3946_vm14 = vmand %vm4534_vm3, %vm4533_vm10 }
  0x51   : > { %v3128_v52 = vld [vmem:[%s3896_s13 + $0x38] sm:$0xff]  ;;  %v3130_v59 = vld [vmem:[%s3896_s13 + $0x48] sm:$0xff]  ;;  %v4570_v60 = vmov 0  ;;  %v399_v2 = vld [vmem:[#allocation2 + $0x20] sm:$0xcc]  ;;  %v4572_v3 = vmov 0 }
  0x52   : > { %735 = vmatpush1.bf16.msra.mxu0 %v3447_v26  ;;  %924 = vmatpush1.bf16.msra.mxu1 %v3448_v27  ;;  %v319_v54 = vrot.slane %v318_v50, 4  ;;  %v330_v55 = vsel %vm4538_vm0, %v318_v50, %v329_v45  ;;  %v3466_v56 = vld [vmem:[#allocation4 + $0x174] ss:$8 sps:$4 sm:$0xff]   ;;  %v382_v57 = vshrl.u32 %v3128_v52, 16  ;;  %v385_v58 = vshll.u32 %v3128_v52, 16  ;;  %vm3957_vm7 = vmand %vm4535_vm12, %vm406_vm5  ;;  %s3345_s14 = sshll.u32 %s4662_s18, 6 }
  0x53   : > { %736 = vmatprep.subr.bf16.mxu0 %v3449_v28  ;;  %925 = vmatprep.subr.bf16.mxu1 %v3451_v29  ;;  %331 = vst [vmem:[#allocation2 + $0x10] sm:$0xee] %v330_v55  ;;  %v4571_v60 = vsel %vm3946_vm14, 4294967295, %v4570_v60  ;;  %v434_v61 = vrot.slane %v3130_v59, 5  ;;  %v4573_v3 = vsel %vm3957_vm7, 4294967295, %v4572_v3  ;;  %vm4540_vm5 = vmor %vm3957_vm7, %vm3946_vm14  ;;  %vm462_vm3 = vcmask 1043459   ;;  %s4458_s18 = scalar_lea.vmem %s4527_s4, %s3345_s14 }
  0x54   : > { %v340_v62 = vsel %vm4536_vm2, %v319_v54, %v339_v51  ;;  %v384_v63 = vrot.slane %v382_v57, 5  ;;  %v387_v1 = vrot.slane %v385_v58, 6  ;;  %v3474_v4 = vld [vmem:[#allocation4 + $0x1f4] ss:$8 sps:$4 sm:$0xff]   ;;  %v3461_v5 = vld [vmem:[#allocation2] ss:$8 sps:$4 sm:$0xff]  }
  0x55   : > { %341 = vst [vmem:[#allocation2 + $0x18] sm:$0x33] %v340_v62  ;;  %v409_v6 = vld [vmem:[#allocation2 + $0x28] sm:$0x77]  ;;  %438 = vst [vmem:[#allocation2 + $0x28] sm:$0x88] %v434_v61 }
  0x56   : > { %737 = vmatpush1.bf16.msra.mxu0 %v3453_v32  ;;  %926 = vmatpush1.bf16.msra.mxu1 %v3454_v33  ;;  %v3463_v7 = vld [vmem:[#allocation2 + $0x4] ss:$8 sps:$4 sm:$0xff]   ;;  %v388_v8 = vor.u32 %v387_v1, %v384_v63  ;;  %v3472_v9 = vld [vmem:[#allocation4 + $0x1f0] ss:$8 sps:$4 sm:$0xff]   ;;  %v435_v10 = vrot.slane %v434_v61, 4  ;;  %v603_v11 = vshll.u32 %v3461_v5, 16 }
  0x57   : > { %738 = vmatprep.subr.bf16.mxu0 %v3455_v39  ;;  %927 = vmatprep.subr.bf16.mxu1 %v3457_v40  ;;  %vm463_vm10 = vsmask.f32 7950  ;;  %v3478_v14 = vld [vmem:[#allocation4 + $0x1e0] ss:$8 sps:$4 sm:$0xff]   ;;  %v3480_v15 = vld [vmem:[#allocation4 + $0x1e4] ss:$8 sps:$4 sm:$0xff]  }
  0x58   : > { %v389_v12 = vrot.slane %v388_v8, 4  ;;  %v400_v13 = vsel %vm4537_vm13, %v388_v8, %v399_v2  ;;  %439 = vst [vmem:[#allocation2 + $0x30] sm:$0x77] %v435_v10  ;;  %vm466_vm2 = vsmask.f32 7966  ;;  %v601_v16 = vshrl.u32 %v3461_v5, 16  ;;  %vm3979_vm9 = vmand %vm462_vm3, %vm463_vm10 }
  0x59   : > { %401 = vst [vmem:[#allocation2 + $0x20] sm:$0xcc] %v400_v13  ;;  %v605_v17 = vrot.slane %v603_v11, 1  ;;  %vm4542_vm13 = vcmask 1043456   ;;  %vm274_vm0 = vcmask 1047556   ;;  %v3132_v20 = vld [vmem:[%s3896_s13 + $0x58] sm:$0xff] }
  0x5a   : > { %739 = vmatpush1.bf16.msra.mxu0 %v3459_v48  ;;  %928 = vmatpush1.bf16.msra.mxu1 %v3460_v49  ;;  %v410_v18 = vsel %vm4540_vm5, %v389_v12, %v409_v6  ;;  %v4574_v21 = vmov 0  ;;  %vm4541_vm12 = vsmask.f32 3328  ;;  %v452_v26 = vshll.u32 %v3132_v20, 16  ;;  %v469_v29 = vld [vmem:[#allocation2 + $0x30] sm:$0x88] }
  0x5b   : > { %1170 = vmatprep.subr.bf16.mxu0 %v3466_v56  ;;  %1403 = vmatprep.subr.bf16.mxu1 %v3474_v4  ;;  %411 = vst [vmem:[#allocation2 + $0x28] sm:$0x77] %v410_v18  ;;  %v4575_v21 = vsel %vm3979_vm9, 4294967295, %v4574_v21  ;;  %v455_v27 = vshrl.u32 %v3132_v20, 16  ;;  %vm4576_vm14 = vcmask 1047559   ;;  %v606_v30 = vor.u32 %v605_v17, %v601_v16  ;;  %vm3995_vm10 = vmand %vm4542_vm13, %vm4541_vm12  ;;  %v3134_v63 = vld [vmem:[%s3896_s13 + $0x68] sm:$0xff] }
  0x5c   : > { %v3462_v23 = vld [vmem:[#allocation2 + $0x10] ss:$8 sps:$4 sm:$0xff]   ;;  %v3471_v24 = vld [vmem:[#allocation2 + $0x14] ss:$8 sps:$4 sm:$0xff]   ;;  %vm3985_vm5 = vmand %vm4576_vm14, %vm466_vm2  ;;  %v454_v34 = vrot.slane %v452_v26, 5  ;;  %v4579_v36 = vmov 0 }
  0x5d   : > { %946 = vmatmul.mubr.bf16.vlgmr.msra.gmra.mxu1 %v3463_v7  ;;  %v608_v31 = vshll.u32 %v3462_v23, 16  ;;  %v3464_v32 = vld [vmem:[#allocation4 + $0x170] ss:$8 sps:$4 sm:$0xff]   ;;  %vm4544_vm3 = vmor %vm3985_vm5, %vm3979_vm9  ;;  %v3469_v33 = vld [vmem:[#allocation4 + $0x164] ss:$8 sps:$4 sm:$0xff]   ;;  %v457_v35 = vrot.slane %v455_v27, 4 }
  0x5e   : > { %955 = vmatprep.mubr.bf16.mxu1 %v3770_v0  ;;  %1404 = vmatpush1.bf16.msra.mxu1 %v3472_v9  ;;  %v4580_v36 = vsel %vm3995_vm10, 4294967295, %v4579_v36  ;;  %v3486_v38 = vld [vmem:[#allocation4 + $0x1d0] ss:$8 sps:$4 sm:$0xff]   ;;  %v3488_v39 = vld [vmem:[#allocation4 + $0x1d4] ss:$8 sps:$4 sm:$0xff]   ;;  %v612_v41 = vshrl.u32 %v3462_v23, 16  ;;  %v470_v44 = vsel %vm4544_vm3, %v454_v34, %v469_v29 }
  0x5f   : > { %1405 = vmatprep.subr.bf16.mxu1 %v3480_v15  ;;  %v610_v40 = vrot.slane %v608_v31, 1  ;;  %vm4581_vm2 = vsmask.f32 7424  ;;  %v458_v43 = vor.u32 %v457_v35, %v454_v34  ;;  %vm272_vm13 = vsmask.f32 7938  ;;  %v3136_v1 = vld [vmem:[%s3896_s13 + $0x78] sm:$0xff] }
  0x60   : > { %vm4001_vm14 = vmand %vm274_vm0, %vm4581_vm2  ;;  %471 = vst [vmem:[#allocation2 + $0x30] sm:$0x88] %v470_v44  ;;  %v3467_v48 = vld [vmem:[#allocation4 + $0x160] ss:$8 sps:$4 sm:$0xff]   ;;  %v3477_v52 = vld [vmem:[#allocation4 + $0x154] ss:$8 sps:$4 sm:$0xff]  }
  0x61   : > { %vm4546_vm12 = vmor %vm4001_vm14, %vm3995_vm10  ;;  %v459_v49 = vrot.slane %v458_v43, 4  ;;  %v614_v50 = vor.u32 %v612_v41, %v610_v40  ;;  %v3492_v56 = vld [vmem:[#allocation4 + $0x1c0] ss:$8 sps:$4 sm:$0xff]   ;;  %v3494_v57 = vld [vmem:[#allocation4 + $0x1c4] ss:$8 sps:$4 sm:$0xff]   ;;  %501 = vst [vmem:[#allocation2 + $0x40] sm:$0xff] %v3134_v63 }
  0x62   : > { %1406 = vmatpush1.bf16.msra.mxu1 %v3478_v14  ;;  %vm4584_vm7 = vmmov %vm4581_vm2  ;;  %v3470_v46 = vld [vmem:[#allocation2 + $0x20] ss:$8 sps:$4 sm:$0xff]   ;;  %vm275_vm2 = vsmask.f32 7954  ;;  %v3485_v54 = vld [vmem:[#allocation2 + $0x24] ss:$8 sps:$4 sm:$0xff]  }
  0x63   : > { %1407 = vmatprep.subr.bf16.mxu1 %v3488_v39  ;;  %v611_v45 = vsel %vm4584_vm7, %v606_v30, %v610_v40  ;;  %v616_v51 = vshll.u32 %v3470_v46, 16  ;;  %v478_v55 = vsel %vm4546_vm12, %v459_v49, 0  ;;  %vm4585_vm7 = vcmask 1043456   ;;  %v3475_v61 = vld [vmem:[#allocation4 + $0x150] ss:$8 sps:$4 sm:$0xff]   ;;  %vm4030_vm9 = vmand %vm274_vm0, %vm275_vm2 }
  0x64   : > { %757 = vmatmul.mubr.bf16.vlgmr.msra.gmra.mxu0 %v611_v45  ;;  %vm4024_vm3 = vmand %vm4585_vm7, %vm272_vm13  ;;  %479 = vst [vmem:[#allocation2 + $0x38] sm:$0xff] %v478_v55  ;;  %v3483_v2 = vld [vmem:[#allocation4 + $0x144] ss:$8 sps:$4 sm:$0xff]   ;;  %v508_v4 = vshrl.u32 %v3136_v1, 16  ;;  %v511_v5 = vshll.u32 %v3136_v1, 16  ;;  %v620_v11 = vshrl.u32 %v3470_v46, 16 }
  0x65   : > { %956 = vmatmul.mubr.bf16.gmra.mxu1 %v3471_v24  ;;  %1171 = vmatpush1.bf16.msra.mxu0 %v3464_v32  ;;  %v618_v59 = vrot.slane %v616_v51, 1  ;;  %v3497_v6 = vld [vmem:[#allocation4 + $0x1b0] ss:$8 sps:$4 sm:$0xff]   ;;  %vm4590_vm13 = vsmask.f32 7424  ;;  %vm4547_vm0 = vmor %vm4030_vm9, %vm4024_vm3  ;;  %vm4550_vm7 = vcmask 1040384  }
  0x66   : > { %965 = vmatprep.mubr.bf16.mxu1 %v3770_v0  ;;  %1408 = vmatpush1.bf16.msra.mxu1 %v3486_v38  ;;  %v3499_v8 = vld [vmem:[#allocation4 + $0x1b4] ss:$8 sps:$4 sm:$0xff]   ;;  %v4037_v9 = vrot.slane %v508_v4, 7  ;;  %v3481_v10 = vld [vmem:[#allocation4 + $0x140] ss:$8 sps:$4 sm:$0xff]   ;;  %vm284_vm12 = vcmask 1044484  }
  0x67   : > { %766 = vmatprep.mubr.bf16.mxu0 %v3770_v0  ;;  %1172 = vmatprep.subr.bf16.mxu0 %v3469_v33  ;;  %v619_v7 = vsel %vm4590_vm13, %v614_v50, %v618_v59  ;;  %v3505_v13 = vld [vmem:[#allocation4 + $0x1a4] ss:$8 sps:$4 sm:$0xff]   ;;  %v3491_v14 = vld [vmem:[#allocation4 + $0x134] ss:$8 sps:$4 sm:$0xff]   ;;  %v3503_v15 = vld [vmem:[#allocation4 + $0x1a0] ss:$8 sps:$4 sm:$0xff]   ;;  %v622_v20 = vor.u32 %v620_v11, %v618_v59 }
  0x68   : > { %1409 = vmatprep.subr.bf16.mxu1 %v3494_v57  ;;  %v513_v12 = vor.u32 %v511_v5, %v4037_v9  ;;  %vm4549_vm2 = vsmask.f32 256  ;;  %v3512_v24 = vld [vmem:[#allocation4 + $0x194] ss:$8 sps:$4 sm:$0xff]   ;;  %vm285_vm13 = vsmask.f32 4352 }
  0x69   : > { %1173 = vmatpush1.bf16.msra.mxu0 %v3467_v48  ;;  %v3489_v27 = vld [vmem:[#allocation4 + $0x130] ss:$8 sps:$4 sm:$0xff]   ;;  %v3502_v29 = vld [vmem:[#allocation4 + $0x124] ss:$8 sps:$4 sm:$0xff]   ;;  %v3500_v33 = vld [vmem:[#allocation4 + $0x120] ss:$8 sps:$4 sm:$0xff]  }
  0x6a   : > { %1410 = vmatpush1.bf16.msra.mxu1 %v3492_v56  ;;  %1174 = vmatprep.subr.bf16.mxu0 %v3477_v52  ;;  %v518_v17 = vsel %vm4547_vm0, %v513_v12, 0  ;;  %v3510_v31 = vld [vmem:[#allocation4 + $0x190] ss:$8 sps:$4 sm:$0xff]   ;;  %vm4591_vm0 = vsmask.f32 7424  ;;  %vm4063_vm10 = vmand %vm284_vm12, %vm285_vm13  ;;  %v3123_v51 = vld [vmem:[%s3896_s13 + $0x10] sm:$0xff] }
  0x6b   : > { %1411 = vmatprep.subr.bf16.mxu1 %v3499_v8  ;;  %v3484_v16 = vld [vmem:[#allocation2 + $0x30] ss:$8 sps:$4 sm:$0xff]   ;;  %519 = vst [vmem:[#allocation2 + $0x48] sm:$0xff] %v518_v17  ;;  %v3496_v18 = vld [vmem:[#allocation2 + $0x34] ss:$8 sps:$4 sm:$0xff]   ;;  %v260_v39 = vld [vmem:[%s3896_s13] sm:$0xff] }
  0x6c   : > { %767 = vmatmul.mubr.bf16.gmra.mxu0 %v619_v7  ;;  %v624_v23 = vshll.u32 %v3484_v16, 16  ;;  %v628_v30 = vshrl.u32 %v3484_v16, 16  ;;  %v3518_v34 = vld [vmem:[#allocation4 + $0x184] ss:$8 sps:$4 sm:$0xff]   ;;  %v3509_v35 = vld [vmem:[#allocation2 + $0x44] ss:$0 sps:$4 sm:$0xff]  }
  0x6d   : > { %966 = vmatmul.mubr.bf16.gmra.mxu1 %v3485_v54  ;;  %1175 = vmatpush1.bf16.msra.mxu0 %v3475_v61  ;;  %v3508_v40 = vld [vmem:[#allocation4 + $0x114] ss:$8 sps:$4 sm:$0xff]   ;;  %v3516_v41 = vld [vmem:[#allocation4 + $0x180] ss:$8 sps:$4 sm:$0xff]   ;;  %v262_v43 = vshrl.u32 %v260_v39, 16  ;;  %v265_v44 = vshll.u32 %v260_v39, 16 }
  0x6e   : > { %975 = vmatprep.mubr.bf16.mxu1 %v3770_v0  ;;  %776 = vmatprep.mubr.bf16.mxu0 %v3770_v0  ;;  %v626_v26 = vrot.slane %v624_v23, 1  ;;  %v3506_v49 = vld [vmem:[#allocation4 + $0x110] ss:$8 sps:$4 sm:$0xff]   ;;  %v3519_v52 = vld [vmem:[#allocation2 + $0x4] ss:$8 sps:$4 sm:$0xff]   ;;  %v303_v55 = vrot.slane %v3123_v51, 7 }
  0x6f   : > { %1176 = vmatprep.subr.bf16.mxu0 %v3483_v2  ;;  %1412 = vmatpush1.bf16.msra.mxu1 %v3497_v6  ;;  %v264_v54 = vrot.slane %v262_v43, 7  ;;  %v288_v57 = vld [vmem:[#allocation3 + $0x8] sm:$0x11]  ;;  %v3515_v59 = vld [vmem:[#allocation4 + $0x104] ss:$8 sps:$4 sm:$0xff]   ;;  %v1049_v6 = vshll.u32 %v3519_v52, 16 }
  0x70   : > { %1413 = vmatprep.subr.bf16.mxu1 %v3505_v13  ;;  %v627_v32 = vsel %vm4591_vm0, %v622_v20, %v626_v26  ;;  %vm4057_vm0 = vmand %vm4550_vm7, %vm4549_vm2  ;;  %v630_v46 = vor.u32 %v628_v30, %v626_v26  ;;  %307 = vst [vmem:[#allocation3 + $0x8] sm:$0xee] %v303_v55  ;;  %v3125_v1 = vld [vmem:[%s3896_s13 + $0x20] sm:$0xff]  ;;  %vm4596_vm13 = vsmask.f32 7424  ;;  %v304_v12 = vrot.slane %v303_v55, 4 }
  0x71   : > { %1177 = vmatpush1.bf16.msra.mxu0 %v3481_v10  ;;  %vm287_vm2 = vmor %vm4063_vm10, %vm4057_vm0  ;;  %v267_v61 = vor.u32 %v265_v44, %v264_v54  ;;  %v268_v63 = vrot.slane %v264_v54, 4  ;;  %v4075_v5 = vld [vmem:[#allocation2 + $0x14] ss:$8 sps:$4 sm:$0xff]   ;;  %v3513_v11 = vld [vmem:[#allocation4 + $0x100] ss:$8 sps:$4 sm:$0xff]   ;;  %v345_v13 = vshrl.u32 %v3125_v1, 16 }
  0x72   : > { %1178 = vmatprep.subr.bf16.mxu0 %v3491_v14  ;;  %v3495_v38 = vld [vmem:[#allocation2 + $0x40] ss:$8 sps:$4 sm:$0x1f]   ;;  %vm4597_vm7 = vmor %vm4030_vm9, %vm4024_vm3  ;;  %v3127_v10 = vld [vmem:[%s3896_s13 + $0x30] sm:$0xff]  ;;  %v348_v62 = vshll.u32 %v3125_v1, 16  ;;  %v1047_v20 = vshrl.u32 %v3519_v52, 16 }
  0x73   : > { %1414 = vmatpush1.bf16.msra.mxu1 %v3503_v15  ;;  %v632_v48 = vshll.u32 %v3495_v38, 16  ;;  %v636_v4 = vshrl.u32 %v3495_v38, 16  ;;  %v279_v7 = vsel %vm4597_vm7, %v267_v61, 0  ;;  %v289_v8 = vsel %vm287_vm2, %v268_v63, %v288_v57  ;;  %v3524_v58 = vld [vmem:[#allocation4 + $0x274] ss:$8 sps:$4 sm:$0xff]   ;;  %vm4598_vm9 = vmor %vm3889_vm6, %vm3883_vm4 }
  0x74   : > { %1415 = vmatprep.subr.bf16.mxu1 %v3512_v24  ;;  %777 = vmatmul.mubr.bf16.gmra.mxu0 %v627_v32  ;;  %280 = vst [vmem:[#allocation3] sm:$0xff] %v279_v7  ;;  %290 = vst [vmem:[#allocation3 + $0x8] sm:$0x11] %v289_v8  ;;  %v373_v14 = vrot.slane %v3127_v10, 6  ;;  %v347_v15 = vrot.slane %v345_v13, 6  ;;  %v350_v16 = vrot.slane %v348_v62, 7 }
  0x75   : > { %976 = vmatmul.mubr.bf16.gmra.mxu1 %v3496_v18  ;;  %1179 = vmatpush1.bf16.msra.mxu0 %v3489_v27  ;;  %v634_v56 = vrot.slane %v632_v48, 1  ;;  %308 = vst [vmem:[#allocation3 + $0x10] sm:$0x11] %v304_v12  ;;  %v3532_v17 = vld [vmem:[#allocation4 + $0x2f4] ss:$8 sps:$4 sm:$0xff]   ;;  %v1051_v23 = vrot.slane %v1049_v6, 1  ;;  %vm4599_vm3 = vmor %vm3908_vm15, %vm3900_vm8  ;;  %vm4602_vm8 = vnez %v4573_v3  ;;  %vm4603_vm15 = vnez %v4571_v60 }
  0x76   : > { %985 = vmatprep.mubr.bf16.mxu1 %v3770_v0  ;;  %786 = vmatprep.mubr.bf16.mxu0 %v3770_v0  ;;  %377 = vst [vmem:[#allocation3 + $0x18] sm:$0xcc] %v373_v14  ;;  %v1054_v24 = vshll.u32 %v4075_v5, 16  ;;  %v355_v26 = vld [vmem:[#allocation3 + $0x10] sm:$0xee]  ;;  %v3129_v38 = vld [vmem:[%s3896_s13 + $0x40] sm:$0xff]  ;;  %vm4600_vm4 = vmmov %vm4596_vm13 }
  0x77   : > { %1180 = vmatprep.subr.bf16.mxu0 %v3502_v29  ;;  %1416 = vmatpush1.bf16.msra.mxu1 %v3510_v31  ;;  %v635_v2 = vsel %vm4596_vm13, %v630_v46, %v634_v56  ;;  %v638_v18 = vor.u32 %v636_v4, %v634_v56  ;;  %v4090_v27 = vld [vmem:[#allocation2 + $0x24] ss:$8 sps:$4 sm:$0xff]   ;;  %v351_v29 = vor.u32 %v350_v16, %v347_v15  ;;  %v358_v30 = vld [vmem:[#allocation3 + $0x18] sm:$0x33]  ;;  %v374_v31 = vrot.slane %v373_v14, 4  ;;  %vm4601_vm6 = vmor %vm3930_vm11, %vm3919_vm1 }
  0x78   : > { %1417 = vmatprep.subr.bf16.mxu1 %v3518_v34  ;;  %v3530_v32 = vld [vmem:[#allocation4 + $0x2f0] ss:$8 sps:$4 sm:$0xff]   ;;  %v1052_v39 = vor.u32 %v1051_v23, %v1047_v20  ;;  %v415_v19 = vshrl.u32 %v3129_v38, 16  ;;  %v418_v43 = vshll.u32 %v3129_v38, 16  ;;  %v1062_v44 = vshll.u32 %v4090_v27, 16  ;;  %v3131_v48 = vld [vmem:[%s3896_s13 + $0x50] sm:$0xff]  ;;  %vm4604_vm1 = vmor %vm4602_vm8, %vm4603_vm15 }
  0x79   : > { %1181 = vmatpush1.bf16.msra.mxu0 %v3500_v33  ;;  %v352_v33 = vrot.slane %v351_v29, 4  ;;  %v356_v34 = vsel %vm4598_vm9, %v351_v29, %v355_v26  ;;  %378 = vst [vmem:[#allocation3 + $0x20] sm:$0x33] %v374_v31  ;;  %v3536_v46 = vld [vmem:[#allocation4 + $0x2e0] ss:$8 sps:$4 sm:$0xff]   ;;  %v443_v54 = vrot.slane %v3131_v48, 5  ;;  %vm4605_vm11 = vnez %v4575_v21  ;;  %vm4607_vm13 = vmmov %vm4600_vm4 }
  0x7a   : > { %1182 = vmatprep.subr.bf16.mxu0 %v3508_v40  ;;  %357 = vst [vmem:[#allocation3 + $0x10] sm:$0xee] %v356_v34  ;;  %v417_v51 = vrot.slane %v415_v19, 5  ;;  %v420_v52 = vrot.slane %v418_v43, 6  ;;  %v425_v37 = vld [vmem:[#allocation3 + $0x20] sm:$0xcc]  ;;  %vm4606_vm7 = vmor %vm3985_vm5, %vm4605_vm11  ;;  %vm4608_vm5 = vnez %v4580_v36 }
  0x7b   : > { %1418 = vmatpush1.bf16.msra.mxu1 %v3516_v41  ;;  %v3521_v40 = vld [vmem:[#allocation3 + $0x4] ss:$8 sps:$4 sm:$0xff]   ;;  %v1056_v41 = vrot.slane %v1054_v24, 1  ;;  %v359_v22 = vsel %vm4599_vm3, %v352_v33, %v358_v30  ;;  %v3527_v56 = vld [vmem:[#allocation4 + $0x264] ss:$8 sps:$4 sm:$0xff]   ;;  %v1058_v57 = vshrl.u32 %v4075_v5, 16  ;;  %vm4609_vm9 = vmor %vm4001_vm14, %vm4608_vm5 }
  0x7c   : > { %787 = vmatmul.mubr.bf16.gmra.mxu0 %v635_v2  ;;  %1953 = vmatprep.subr.bf16.mxu1 %v3532_v17  ;;  %360 = vst [vmem:[#allocation3 + $0x18] sm:$0x33] %v359_v22  ;;  %v3546_v25 = vld [vmem:[#allocation4 + $0x2d4] ss:$8 sps:$4 sm:$0xff]   ;;  %447 = vst [vmem:[#allocation3 + $0x28] sm:$0x88] %v443_v54 }
  0x7d   : > { %986 = vmatmul.mubr.bf16.gmra.mxu1 %v3509_v35  ;;  %796 = vmatprep.mubr.bf16.mxu0 %v3770_v0  ;;  %v3538_v35 = vld [vmem:[#allocation4 + $0x2e4] ss:$8 sps:$4 sm:$0xff]   ;;  %v1057_v55 = vsel %vm4600_vm4, %v1052_v39, %v1056_v41  ;;  %v428_v61 = vld [vmem:[#allocation3 + $0x28] sm:$0x77]  ;;  %v1064_v63 = vrot.slane %v1062_v44, 1  ;;  %v444_v2 = vrot.slane %v443_v54, 4  ;;  %v1060_v13 = vor.u32 %v1058_v57, %v1056_v41  ;;  %vm4610_vm14 = vmmov %vm4600_vm4 }
  0x7e   : > { %1435 = vmatprep.mubr.bf16.mxu1 %v3770_v0  ;;  %1183 = vmatpush1.bf16.msra.mxu0 %v3506_v49  ;;  %v3522_v49 = vld [vmem:[#allocation4 + $0x270] ss:$8 sps:$4 sm:$0xff]   ;;  %v4109_v4 = vld [vmem:[#allocation2 + $0x34] ss:$8 sps:$4 sm:$0xff]   ;;  %v493_v53 = vld [vmem:[#allocation3 + $0x30] sm:$0x88] }
  0x7f   : > { %1184 = vmatprep.subr.bf16.mxu0 %v3515_v59  ;;  %v421_v59 = vor.u32 %v420_v52, %v417_v51  ;;  %v3544_v1 = vld [vmem:[#allocation4 + $0x2d0] ss:$8 sps:$4 sm:$0xff]   ;;  %v3552_v8 = vld [vmem:[#allocation4 + $0x2c4] ss:$8 sps:$4 sm:$0xff]   ;;  %448 = vst [vmem:[#allocation3 + $0x30] sm:$0x77] %v444_v2  ;;  %v1065_v3 = vsel %vm4607_vm13, %v1060_v13, %v1064_v63  ;;  %vm4611_vm3 = vmmov %vm4600_vm4 }
  0x80   : > { %v3133_v10 = vld [vmem:[%s3896_s13 + $0x60] sm:$0xff]  ;;  %v3550_v16 = vld [vmem:[#allocation4 + $0x2c0] ss:$8 sps:$4 sm:$0xff]   ;;  %v1066_v20 = vshrl.u32 %v4090_v27, 16  ;;  %v1070_v23 = vshll.u32 %v4109_v4, 16  ;;  %v1074_v36 = vshrl.u32 %v4109_v4, 16  ;;  %vm4612_vm4 = vmmov %vm4611_vm3 }
  0x81   : > { %v422_v6 = vrot.slane %v421_v59, 4  ;;  %v426_v7 = vsel %vm4601_vm6, %v421_v59, %v425_v37  ;;  %v483_v5 = vshll.u32 %v3133_v10, 16  ;;  %v4117_v12 = vld [vmem:[#allocation2] sm:$0xff]  ;;  %v3541_v24 = vld [vmem:[#allocation4 + $0x244] ss:$8 sps:$4 sm:$0xff]   ;;  %vm4613_vm6 = vmmov %vm4611_vm3  ;;  %vm2379_vm5 = vcmask 1046528  }
  0x82   : > { %1185 = vmatpush1.bf16.msra.mxu0 %v3513_v11  ;;  %427 = vst [vmem:[#allocation3 + $0x20] sm:$0xcc] %v426_v7  ;;  %v486_v11 = vshrl.u32 %v3133_v10, 16  ;;  %v3535_v14 = vld [vmem:[#allocation4 + $0x254] ss:$8 sps:$4 sm:$0xff]   ;;  %v1068_v33 = vor.u32 %v1066_v20, %v1064_v63  ;;  %v1072_v34 = vrot.slane %v1070_v23, 1  ;;  %vm4614_vm8 = vmmov %vm4611_vm3 }
  0x83   : > { %1678 = vmatprep.subr.bf16.mxu0 %v3524_v58  ;;  %v3529_v62 = vld [vmem:[#allocation3 + $0x14] ss:$8 sps:$4 sm:$0xff]   ;;  %v429_v47 = vsel %vm4604_vm1, %v422_v6, %v428_v61  ;;  %v485_v58 = vrot.slane %v483_v5, 5  ;;  %v3557_v29 = vld [vmem:[#allocation4 + $0x2b4] ss:$8 sps:$4 sm:$0xff]   ;;  %vm4615_vm15 = vmmov %vm4611_vm3 }
  0x84   : > { %797 = vmatmul.mubr.bf16.gmra.mxu0 %v638_v18  ;;  %430 = vst [vmem:[#allocation3 + $0x28] sm:$0x77] %v429_v47  ;;  %v488_v15 = vrot.slane %v486_v11, 4  ;;  %v3533_v18 = vld [vmem:[#allocation4 + $0x250] ss:$8 sps:$4 sm:$0xff]   ;;  %v1076_v48 = vor.u32 %v1074_v36, %v1072_v34  ;;  %vm4616_vm1 = vmmov %vm4611_vm3 }
  0x85   : > { %1202 = vmatprep.mubr.bf16.mxu0 %v3770_v0  ;;  %1436 = vmatmul.mubr.bf16.vlgmr.msra.gmra.mxu1 %v3521_v40  ;;  %v494_v60 = vsel %vm4606_vm7, %v485_v58, %v493_v53  ;;  %v3539_v28 = vld [vmem:[#allocation4 + $0x240] ss:$8 sps:$4 sm:$0xff]   ;;  %v4134_v30 = vld [vmem:[#allocation2 + $0x44] ss:$8 sps:$4 sm:$0x1f]   ;;  %v1073_v40 = vsel %vm4610_vm14, %v1068_v33, %v1072_v34  ;;  %vm4617_vm11 = vmmov %vm4616_vm1  ;;  %vm4645_vm14 = vcmask 1040384  }
  0x86   : > { %1445 = vmatprep.mubr.bf16.mxu1 %v3770_v0  ;;  %1954 = vmatpush1.bf16.msra.mxu1 %v3530_v32  ;;  %v3525_v0 = vld [vmem:[#allocation4 + $0x260] ss:$8 sps:$4 sm:$0xff]   ;;  %v489_v17 = vor.u32 %v488_v15, %v485_v58  ;;  %495 = vst [vmem:[#allocation3 + $0x30] sm:$0x88] %v494_v60  ;;  %v3555_v27 = vld [vmem:[#allocation4 + $0x2b0] ss:$8 sps:$4 sm:$0xff]   ;;  %vm4618_vm7 = vmmov %vm4616_vm1 }
  0x87   : > { %1955 = vmatprep.subr.bf16.mxu1 %v3538_v35  ;;  %v3563_v31 = vld [vmem:[#allocation4 + $0x2a4] ss:$8 sps:$4 sm:$0xff]   ;;  %v3549_v38 = vld [vmem:[#allocation4 + $0x234] ss:$8 sps:$4 sm:$0xff]   ;;  %v3547_v42 = vld [vmem:[#allocation4 + $0x230] ss:$8 sps:$4 sm:$0xff]  }
  0x88   : > { %v490_v26 = vrot.slane %v489_v17, 4  ;;  %v3135_v32 = vld [vmem:[%s3896_s13 + $0x70] sm:$0xff]  ;;  %v1078_v41 = vshll.u32 %v4134_v30, 16  ;;  %v3570_v19 = vld [vmem:[#allocation4 + $0x294] ss:$8 sps:$4 sm:$0xff]   ;;  %vm4619_vm13 = vmmov %vm4616_vm1 }
  0x89   : > { %504 = vst [vmem:[#allocation3 + $0x40] sm:$0xff] %v3135_v32  ;;  %v3561_v39 = vld [vmem:[#allocation4 + $0x2a0] ss:$8 sps:$4 sm:$0xff]   ;;  %v3560_v22 = vld [vmem:[#allocation4 + $0x224] ss:$8 sps:$4 sm:$0xff]   ;;  %vm4620_vm10 = vmmov %vm4616_vm1 }
  0x8a   : > { %1956 = vmatpush1.bf16.msra.mxu1 %v3536_v46  ;;  %v497_v21 = vsel %vm4609_vm9, %v490_v26, %v4117_v12  ;;  %v3558_v43 = vld [vmem:[#allocation4 + $0x220] ss:$8 sps:$4 sm:$0xff]   ;;  %v3568_v44 = vld [vmem:[#allocation4 + $0x290] ss:$8 sps:$4 sm:$0xff]   ;;  %v3566_v51 = vld [vmem:[#allocation4 + $0x214] ss:$8 sps:$4 sm:$0xff]  }
  0x8b   : > { %1957 = vmatprep.subr.bf16.mxu1 %v3546_v25  ;;  %v3543_v35 = vld [vmem:[#allocation3 + $0x24] ss:$8 sps:$4 sm:$0xff]   ;;  %498 = vst [vmem:[#allocation3 + $0x38] sm:$0xff] %v497_v21  ;;  %v3576_v52 = vld [vmem:[#allocation4 + $0x284] ss:$8 sps:$4 sm:$0xff]   ;;  %vm4622_vm0 = vmmov %vm4616_vm1 }
  0x8c   : > { %1203 = vmatmul.mubr.bf16.vlgmr.msra.gmra.mxu0 %v1057_v55  ;;  %v3564_v54 = vld [vmem:[#allocation4 + $0x210] ss:$8 sps:$4 sm:$0xff]   ;;  %v3579_v37 = vld [vmem:[#allocation3 + $0x4] ss:$8 sps:$4 sm:$0xff]   ;;  %v3574_v25 = vld [vmem:[#allocation4 + $0x280] ss:$8 sps:$4 sm:$0xff]  }
  0x8d   : > { %1679 = vmatpush1.bf16.msra.mxu0 %v3522_v49  ;;  %1212 = vmatprep.mubr.bf16.mxu0 %v4117_v12  ;;  %v1080_v49 = vrot.slane %v1078_v41, 1  ;;  %v3580_v55 = vld [vmem:[#allocation3 + $0x14] ss:$8 sps:$4 sm:$0xff]   ;;  %v3577_v57 = vld [vmem:[#allocation3] ss:$8 sps:$4 sm:$0xff]   ;;  %v1832_v59 = vshll.u32 %v3579_v37, 16  ;;  %vm4623_vm9 = vmmov %vm4622_vm0 }
  0x8e   : > { %1680 = vmatprep.subr.bf16.mxu0 %v3527_v56  ;;  %1446 = vmatmul.mubr.bf16.gmra.mxu1 %v3529_v62  ;;  %v3573_v63 = vld [vmem:[#allocation4 + $0x204] ss:$8 sps:$4 sm:$0xff]   ;;  %v3571_v2 = vld [vmem:[#allocation4 + $0x200] ss:$8 sps:$4 sm:$0xff]   ;;  %v1830_v4 = vshrl.u32 %v3579_v37, 16  ;;  %v1837_v7 = vshll.u32 %v3580_v55, 16 }
  0x8f   : > { %1455 = vmatprep.mubr.bf16.mxu1 %v4117_v12  ;;  %1958 = vmatpush1.bf16.msra.mxu1 %v3544_v1  ;;  %v1081_v56 = vsel %vm4611_vm3, %v1076_v48, %v1080_v49  ;;  %v1082_v1 = vshrl.u32 %v4134_v30, 16  ;;  %v1834_v6 = vrot.slane %v1832_v59, 1  ;;  %v3583_v10 = vld [vmem:[#allocation4 + $0x374] ss:$8 sps:$4 sm:$0xff]   ;;  %v1555_v53 = vshrl.u32 %v3577_v57, 16  ;;  %vm2990_vm3 = vmor %vm4645_vm14, %vm284_vm12 }
  0x90   : > { %1959 = vmatprep.subr.bf16.mxu1 %v3552_v8  ;;  %v3567_v61 = vld [vmem:[#allocation3 + $0x44] ss:$0 sps:$4 sm:$0xff]   ;;  %v1557_v8 = vshll.u32 %v3577_v57, 16  ;;  %v1839_v62 = vrot.slane %v1837_v7, 1  ;;  %v3589_v60 = vld [vmem:[#allocation4 + $0x3f0] ss:$8 sps:$4 sm:$0xff]  }
  0x91   : > { %1681 = vmatpush1.bf16.msra.mxu0 %v3525_v0  ;;  %v3578_v0 = vld [vmem:[#allocation3 + $0x10] ss:$8 sps:$4 sm:$0xff]   ;;  %v3591_v5 = vld [vmem:[#allocation4 + $0x3f4] ss:$8 sps:$4 sm:$0xff]   ;;  %v1084_v11 = vor.u32 %v1082_v1, %v1080_v49  ;;  %v1835_v13 = vor.u32 %v1834_v6, %v1830_v4  ;;  %v3587_v20 = vld [vmem:[#allocation3 + $0x20] ss:$8 sps:$4 sm:$0xff]  }
  0x92   : > { %1682 = vmatprep.subr.bf16.mxu0 %v3535_v14  ;;  %v3554_v46 = vld [vmem:[#allocation3 + $0x34] ss:$8 sps:$4 sm:$0xff]   ;;  %v3588_v47 = vld [vmem:[#allocation3 + $0x24] ss:$8 sps:$4 sm:$0xff]   ;;  %v1559_v14 = vrot.slane %v1557_v8, 1  ;;  %v1562_v58 = vshll.u32 %v3578_v0, 16 }
  0x93   : > { %1960 = vmatpush1.bf16.msra.mxu1 %v3550_v16  ;;  %v1840_v15 = vsel %vm4612_vm4, %v1835_v13, %v1839_v62  ;;  %v1841_v16 = vshrl.u32 %v3580_v55, 16  ;;  %v1845_v17 = vshll.u32 %v3588_v47, 16  ;;  %v3597_v23 = vld [vmem:[#allocation4 + $0x3e4] ss:$8 sps:$4 sm:$0xff]   ;;  %v3595_v26 = vld [vmem:[#allocation4 + $0x3e0] ss:$8 sps:$4 sm:$0xff]  }
  0x94   : > { %1213 = vmatmul.mubr.bf16.gmra.mxu0 %v1065_v3  ;;  %1961 = vmatprep.subr.bf16.mxu1 %v3557_v29  ;;  %v1560_v3 = vor.u32 %v1559_v14, %v1555_v53  ;;  %v3586_v29 = vld [vmem:[#allocation4 + $0x364] ss:$8 sps:$4 sm:$0xff]   ;;  %v1570_v32 = vshll.u32 %v3587_v20, 16  ;;  %v3605_v33 = vld [vmem:[#allocation4 + $0x3d4] ss:$8 sps:$4 sm:$0xff]   ;;  %v1574_v37 = vshrl.u32 %v3587_v20, 16 }
  0x95   : > { %1683 = vmatpush1.bf16.msra.mxu0 %v3533_v18  ;;  %1222 = vmatprep.mubr.bf16.mxu0 %v4117_v12  ;;  %v1564_v18 = vrot.slane %v1562_v58, 1  ;;  %v1843_v30 = vor.u32 %v1841_v16, %v1839_v62  ;;  %v1847_v21 = vrot.slane %v1845_v17, 1  ;;  %v4158_v34 = vld [vmem:[#allocation3 + $0x30] ss:$8 sps:$4 sm:$0xff]   ;;  %v3603_v36 = vld [vmem:[#allocation4 + $0x3d0] ss:$8 sps:$4 sm:$0xff]  }
  0x96   : > { %1684 = vmatprep.subr.bf16.mxu0 %v3541_v24  ;;  %1456 = vmatmul.mubr.bf16.gmra.mxu1 %v3543_v35  ;;  %v3581_v24 = vld [vmem:[#allocation4 + $0x370] ss:$8 sps:$4 sm:$0xff]   ;;  %v1572_v41 = vrot.slane %v1570_v32, 1  ;;  %v4164_v49 = vld [vmem:[#allocation3 + $0x44] ss:$8 sps:$4 sm:$0x1f]  }
  0x97   : > { %1465 = vmatprep.mubr.bf16.mxu1 %v4117_v12  ;;  %1962 = vmatpush1.bf16.msra.mxu1 %v3555_v27  ;;  %v3602_v27 = vld [vmem:[#allocation3 + $0x34] ss:$8 sps:$4 sm:$0xff]   ;;  %v1848_v35 = vsel %vm4614_vm8, %v1843_v30, %v1847_v21  ;;  %v3598_v55 = vld [vmem:[#allocation4 + $0x340] ss:$8 sps:$4 sm:$0xff]   ;;  %v3614_v1 = vld [vmem:[#allocation4 + $0x3b0] ss:$8 sps:$4 sm:$0xff]  }
  0x98   : > { %1963 = vmatprep.subr.bf16.mxu1 %v3563_v31  ;;  %v1565_v31 = vsel %vm4613_vm6, %v1560_v3, %v1564_v18  ;;  %v3608_v4 = vld [vmem:[#allocation4 + $0x334] ss:$8 sps:$4 sm:$0xff]   ;;  %v1582_v13 = vshrl.u32 %v4158_v34, 16  ;;  %v3619_v62 = vld [vmem:[#allocation4 + $0x324] ss:$8 sps:$4 sm:$0xff]   ;;  %v1865_v20 = vshrl.u32 %v4164_v49, 16 }
  0x99   : > { %1685 = vmatpush1.bf16.msra.mxu0 %v3539_v28  ;;  %v1566_v28 = vshrl.u32 %v3578_v0, 16  ;;  %v3622_v0 = vld [vmem:[#allocation4 + $0x3a4] ss:$8 sps:$4 sm:$0xff]   ;;  %v3617_v14 = vld [vmem:[#allocation4 + $0x320] ss:$8 sps:$4 sm:$0xff]  }
  0x9a   : > { %1686 = vmatprep.subr.bf16.mxu0 %v3549_v38  ;;  %v1849_v38 = vshrl.u32 %v3588_v47, 16  ;;  %v3628_v47 = vld [vmem:[#allocation4 + $0x394] ss:$8 sps:$4 sm:$0xff]   ;;  %v3626_v58 = vld [vmem:[#allocation4 + $0x390] ss:$8 sps:$4 sm:$0xff]  }
  0x9b   : > { %1964 = vmatpush1.bf16.msra.mxu1 %v3561_v39  ;;  %v3584_v39 = vld [vmem:[#allocation4 + $0x360] ss:$8 sps:$4 sm:$0xff]   ;;  %v3625_v16 = vld [vmem:[#allocation4 + $0x314] ss:$8 sps:$4 sm:$0xff]   ;;  %v3634_v17 = vld [vmem:[#allocation4 + $0x384] ss:$8 sps:$4 sm:$0xff]  }
  0x9c   : > { %1223 = vmatmul.mubr.bf16.gmra.mxu0 %v1073_v40  ;;  %1965 = vmatprep.subr.bf16.mxu1 %v3570_v19  ;;  %v1568_v40 = vor.u32 %v1566_v28, %v1564_v18  ;;  %v3594_v19 = vld [vmem:[#allocation4 + $0x354] ss:$8 sps:$4 sm:$0xff]   ;;  %v2052_v3 = vld [vmem:[#allocation2 + $0xc] sm:$0xf]  ;;  %v4178_v18 = vld [vmem:[#allocation2 + $0x14] sm:$0xf] }
  0x9d   : > { %1687 = vmatpush1.bf16.msra.mxu0 %v3547_v42  ;;  %1232 = vmatprep.mubr.bf16.mxu0 %v4117_v12  ;;  %v1853_v42 = vshll.u32 %v3602_v27, 16  ;;  %v3631_v30 = vld [vmem:[#allocation4 + $0x304] ss:$8 sps:$4 sm:$0xff]   ;;  %v3629_v32 = vld [vmem:[#allocation4 + $0x300] ss:$8 sps:$4 sm:$0xff]  }
  0x9e   : > { %1688 = vmatprep.subr.bf16.mxu0 %v3560_v22  ;;  %1466 = vmatmul.mubr.bf16.gmra.mxu1 %v3554_v46  ;;  %v3611_v22 = vld [vmem:[#allocation4 + $0x3c4] ss:$8 sps:$4 sm:$0xff]   ;;  %v1851_v46 = vor.u32 %v1849_v38, %v1847_v21  ;;  %v3263_v21 = vcombine.low %v2052_v3, %v4178_v18  ;;  %v3665_v3 = vld [vmem:[#allocation4 + $0x414] ss:$8 sps:$4 sm:$0xff]   ;;  %vm2890_vm4 = vsmask.f32 7440 }
  0x9f   : > { %1475 = vmatprep.mubr.bf16.mxu1 %v4117_v12  ;;  %1966 = vmatpush1.bf16.msra.mxu1 %v3568_v44  ;;  %v1578_v44 = vshll.u32 %v4158_v34, 16  ;;  %v1855_v48 = vrot.slane %v1853_v42, 1  ;;  %v3638_v34 = vld [vmem:[#allocation2 + $0x18] ss:$8 sps:$4 sm:$0xff]   ;;  %vm3003_vm12 = vsmask.f32 4368 }
  0xa0   : > { %1967 = vmatprep.subr.bf16.mxu1 %v3576_v52  ;;  %v3592_v52 = vld [vmem:[#allocation4 + $0x350] ss:$8 sps:$4 sm:$0xff]   ;;  %v2107_v38 = vshll.u32 %v3263_v21, 16  ;;  %vm4649_vm6 = vsmask.f32 3328 }
  0xa1   : > { %1689 = vmatpush1.bf16.msra.mxu0 %v3558_v43  ;;  %v3609_v43 = vld [vmem:[#allocation4 + $0x3c0] ss:$8 sps:$4 sm:$0xff]   ;;  %v1580_v57 = vrot.slane %v1578_v44, 1  ;;  %v1856_v59 = vsel %vm4616_vm1, %v1851_v46, %v1855_v48  ;;  %vm4487_vm8 = vmor %vm4649_vm6, %vm2890_vm4  ;;  %vm4660_vm4 = vsmask.f32 1280 }
  0xa2   : > { %1690 = vmatprep.subr.bf16.mxu0 %v3566_v51  ;;  %v1573_v51 = vsel %vm4615_vm15, %v1568_v40, %v1572_v41  ;;  %v3646_v44 = vld [vmem:[#allocation2 + $0x28] ss:$8 sps:$4 sm:$0xff]   ;;  %vm4652_vm15 = vcmask 1046532  }
  0xa3   : > { %1968 = vmatpush1.bf16.msra.mxu1 %v3574_v25  ;;  %v3616_v25 = vld [vmem:[#allocation4 + $0x3b4] ss:$8 sps:$4 sm:$0xff]  }
  0xa4   : > { %1233 = vmatmul.mubr.bf16.gmra.mxu0 %v1081_v56  ;;  %2474 = vmatprep.subr.bf16.mxu1 %v3591_v5  ;;  %v4167_v56 = vld [vmem:[#allocation3 + $0x40] ss:$8 sps:$4 sm:$0x1f]  }
  0xa5   : > { %1242 = vmatprep.mubr.bf16.mxu0 %v4117_v12  ;;  %1691 = vmatpush1.bf16.msra.mxu0 %v3564_v54  ;;  %v3600_v54 = vld [vmem:[#allocation4 + $0x344] ss:$8 sps:$4 sm:$0xff]   ;;  %v1586_v6 = vshll.u32 %v4167_v56, 16 }
  0xa6   : > { %1692 = vmatprep.subr.bf16.mxu0 %v3573_v63  ;;  %1476 = vmatmul.mubr.bf16.gmra.mxu1 %v3567_v61  ;;  %v1857_v61 = vshrl.u32 %v3602_v27, 16  ;;  %v1861_v63 = vshll.u32 %v4164_v49, 16  ;;  %v3641_v27 = vld [vmem:[#allocation4 + $0x474] ss:$8 sps:$4 sm:$0xff]   ;;  %v4198_v49 = vld [vmem:[#allocation2 + $0x2c] ss:$8 sps:$4 sm:$0xff]  }
  0xa7   : > { %1985 = vmatprep.mubr.bf16.mxu1 %v4117_v12  ;;  %v1588_v53 = vrot.slane %v1586_v6, 1 }
  0xa8   : > { %v1859_v7 = vor.u32 %v1857_v61, %v1855_v48  ;;  %v1863_v8 = vrot.slane %v1861_v63, 1  ;;  %v3644_v48 = vld [vmem:[#allocation4 + $0x464] ss:$8 sps:$4 sm:$0xff]  }
  0xa9   : > { %1693 = vmatpush1.bf16.msra.mxu0 %v3571_v2  ;;  %v1576_v2 = vor.u32 %v1574_v37, %v1572_v41  ;;  %v2381_v41 = vrot.slane %v3638_v34, 1 }
  0xaa   : > { %2228 = vmatprep.subr.bf16.mxu0 %v3583_v10  ;;  %v3620_v10 = vld [vmem:[#allocation4 + $0x3a0] ss:$8 sps:$4 sm:$0xff]  }
  0xab   : > { %v1581_v5 = vsel %vm4617_vm11, %v1576_v2, %v1580_v57  ;;  %v4206_v2 = vld [vmem:[#allocation2 + $0x3c] ss:$8 sps:$4 sm:$0xff]  }
  0xac   : > { %1243 = vmatmul.mubr.bf16.gmra.mxu0 %v1084_v11  ;;  %v3606_v11 = vld [vmem:[#allocation4 + $0x330] ss:$8 sps:$4 sm:$0xff]  }
  0xad   : > { %1710 = vmatprep.mubr.bf16.mxu0 %v4117_v12 }
  0xae   : > { %1986 = vmatmul.mubr.bf16.vlgmr.msra.gmra.mxu1 %v1840_v15  ;;  %v1864_v15 = vsel %vm4618_vm7, %v1859_v7, %v1863_v8  ;;  %v2124_v7 = vshrl.u32 %v4198_v49, 16  ;;  %vm4654_vm7 = vsmask.f32 256 }
  0xaf   : > { %1995 = vmatprep.mubr.bf16.mxu1 %v4117_v12  ;;  %2475 = vmatpush1.bf16.msra.mxu1 %v3589_v60  ;;  %v1584_v60 = vor.u32 %v1582_v13, %v1580_v57  ;;  %v3647_v57 = vld [vmem:[#allocation4 + $0x450] ss:$8 sps:$4 sm:$0xff]  }
  0xb0   : > { %2476 = vmatprep.subr.bf16.mxu1 %v3597_v23  ;;  %v514_v23 = vrot.slane %v4037_v9, 4  ;;  %v3637_v9 = vld [vmem:[#allocation2 + $0x8] ss:$8 sps:$4 sm:$0xfe]  }
  0xb1   : > { %v1589_v28 = vsel %vm4619_vm13, %v1584_v60, %v1588_v53  ;;  %v2380_v40 = vrot.slane %v3637_v9, 1  ;;  %vm4497_vm13 = vmor %vm4654_vm7, %vm3003_vm12 }
  0xb3   : > { %2477 = vmatpush1.bf16.msra.mxu1 %v3595_v26  ;;  %v1590_v26 = vshrl.u32 %v4167_v56, 16  ;;  %v2382_v50 = vsel %vm2379_vm5, %v2380_v40, %v2381_v41 }
  0xb4   : > { %1711 = vmatmul.mubr.bf16.vlgmr.msra.gmra.mxu0 %v1565_v31  ;;  %2478 = vmatprep.subr.bf16.mxu1 %v3605_v33  ;;  %v1867_v31 = vor.u32 %v1865_v20, %v1863_v8  ;;  %v4186_v33 = vld [vmem:[#allocation2 + $0x1c] ss:$8 sps:$4 sm:$0xff]   ;;  %v2128_v8 = vshll.u32 %v4206_v2, 16 }
  0xb5   : > { %2229 = vmatpush1.bf16.msra.mxu0 %v3581_v24  ;;  %1720 = vmatprep.mubr.bf16.mxu0 %v4117_v12  ;;  %v3623_v24 = vld [vmem:[#allocation4 + $0x310] ss:$8 sps:$4 sm:$0xff]   ;;  %v2116_v37 = vshrl.u32 %v4186_v33, 16 }
  0xb6   : > { %2230 = vmatprep.subr.bf16.mxu0 %v3586_v29  ;;  %1996 = vmatmul.mubr.bf16.gmra.mxu1 %v1848_v35  ;;  %v3632_v29 = vld [vmem:[#allocation4 + $0x380] ss:$8 sps:$4 sm:$0xff]  }
  0xb7   : > { %2005 = vmatprep.mubr.bf16.mxu1 %v4117_v12  ;;  %2479 = vmatpush1.bf16.msra.mxu1 %v3603_v36  ;;  %v520_v35 = vld [vmem:[#allocation2 + $0x50] sm:$0x11]  ;;  %v1592_v36 = vor.u32 %v1590_v26, %v1588_v53 }
  0xb8   : > { %2480 = vmatprep.subr.bf16.mxu1 %v3611_v22  ;;  %v521_v42 = vsel %vm287_vm2, %v514_v23, %v520_v35  ;;  %v2105_v22 = vshrl.u32 %v3263_v21, 16  ;;  %vm4621_vm2 = vmmov %vm4616_vm1  ;;  %v3663_v23 = vld [vmem:[#allocation4 + $0x410] ss:$8 sps:$4 sm:$0xff]   ;;  %vm4653_vm1 = vcmask 1042432  }
  0xb9   : > { %2231 = vmatpush1.bf16.msra.mxu0 %v3584_v39  ;;  %522 = vst [vmem:[#allocation2 + $0x50] sm:$0x11] %v521_v42  ;;  %v2112_v39 = vshll.u32 %v4186_v33, 16  ;;  %v2595_v42 = vrot.slane %v4186_v33, 1  ;;  %vm2912_vm11 = vmor %vm4653_vm1, %vm4652_vm15 }
  0xba   : > { %2232 = vmatprep.subr.bf16.mxu0 %v3594_v19  ;;  %v2109_v19 = vrot.slane %v2107_v38, 1 }
  0xbb   : > { %2481 = vmatpush1.bf16.msra.mxu1 %v3609_v43  ;;  %v2114_v45 = vrot.slane %v2112_v39, 1  ;;  %v3639_v43 = vld [vmem:[#allocation4 + $0x470] ss:$8 sps:$4 sm:$0xff]   ;;  %v2597_v39 = vrot.slane %v4198_v49, 1 }
  0xbc   : > { %1721 = vmatmul.mubr.bf16.gmra.mxu0 %v1573_v51  ;;  %2482 = vmatprep.subr.bf16.mxu1 %v3616_v25  ;;  %v2110_v46 = vor.u32 %v2109_v19, %v2105_v22  ;;  %v3642_v51 = vld [vmem:[#allocation4 + $0x460] ss:$8 sps:$4 sm:$0xff]   ;;  %v2120_v25 = vshll.u32 %v4198_v49, 16 }
  0xbd   : > { %2233 = vmatpush1.bf16.msra.mxu0 %v3592_v52  ;;  %1730 = vmatprep.mubr.bf16.mxu0 %v4117_v12  ;;  %v2383_v52 = vrot.slane %v3646_v44, 1  ;;  %v2118_v61 = vor.u32 %v2116_v37, %v2114_v45 }
  0xbe   : > { %2234 = vmatprep.subr.bf16.mxu0 %v3600_v54  ;;  %2006 = vmatmul.mubr.bf16.gmra.mxu1 %v1856_v59  ;;  %v2115_v54 = vsel %vm4620_vm10, %v2110_v46, %v2114_v45  ;;  %v3654_v59 = vld [vmem:[#allocation2 + $0x38] ss:$8 sps:$4 sm:$0xff]   ;;  %v2122_v63 = vrot.slane %v2120_v25, 1  ;;  %vm4657_vm10 = vsmask.f32 2304 }
  0xbf   : > { %2015 = vmatprep.mubr.bf16.mxu1 %v4117_v12  ;;  %2483 = vmatpush1.bf16.msra.mxu1 %v3614_v1  ;;  %v2384_v56 = vsel %vm2379_vm5, %v2381_v41, %v2383_v52  ;;  %v3652_v1 = vld [vmem:[#allocation4 + $0x444] ss:$8 sps:$4 sm:$0xff]  }
  0xc0   : > { %2484 = vmatprep.subr.bf16.mxu1 %v3622_v0  ;;  %v3650_v0 = vld [vmem:[#allocation4 + $0x440] ss:$8 sps:$4 sm:$0xff]   ;;  %v2123_v6 = vsel %vm4621_vm2, %v2118_v61, %v2122_v63  ;;  %v3658_v53 = vld [vmem:[#allocation2 + $0x4c] ss:$8 sps:$4 sm:$0x1f]  }
  0xc1   : > { %2235 = vmatpush1.bf16.msra.mxu0 %v3598_v55  ;;  %v3649_v55 = vld [vmem:[#allocation4 + $0x454] ss:$8 sps:$4 sm:$0xff]   ;;  %v3659_v13 = vld [vmem:[#allocation2 + $0x48] ss:$8 sps:$4 sm:$0x1f]   ;;  %v2136_v60 = vshll.u32 %v3658_v53, 16 }
  0xc2   : > { %2236 = vmatprep.subr.bf16.mxu0 %v3608_v4  ;;  %v2385_v4 = vrot.slane %v3654_v59, 1  ;;  %v2140_v21 = vshrl.u32 %v3658_v53, 16  ;;  %v2601_v9 = vrot.slane %v3658_v53, 1 }
  0xc3   : > { %2485 = vmatpush1.bf16.msra.mxu1 %v3620_v10  ;;  %v3657_v10 = vld [vmem:[#allocation4 + $0x434] ss:$8 sps:$4 sm:$0xff]   ;;  %v2138_v26 = vrot.slane %v2136_v60, 1 }
  0xc4   : > { %1731 = vmatmul.mubr.bf16.gmra.mxu0 %v1581_v5  ;;  %2486 = vmatprep.subr.bf16.mxu1 %v3628_v47  ;;  %v2386_v5 = vsel %vm2379_vm5, %v2383_v52, %v2385_v4  ;;  %v2130_v47 = vrot.slane %v2128_v8, 1 }
  0xc5   : > { %2237 = vmatpush1.bf16.msra.mxu0 %v3606_v11  ;;  %1740 = vmatprep.mubr.bf16.mxu0 %v4117_v12  ;;  %v3655_v11 = vld [vmem:[#allocation4 + $0x430] ss:$8 sps:$4 sm:$0xff]  }
  0xc6   : > { %2238 = vmatprep.subr.bf16.mxu0 %v3619_v62  ;;  %2016 = vmatmul.mubr.bf16.gmra.mxu1 %v1864_v15  ;;  %v2126_v62 = vor.u32 %v2124_v7, %v2122_v63  ;;  %v3660_v15 = vld [vmem:[#allocation4 + $0x420] ss:$8 sps:$4 sm:$0xff]  }
  0xc7   : > { %2025 = vmatprep.mubr.bf16.mxu1 %v4117_v12  ;;  %2487 = vmatpush1.bf16.msra.mxu1 %v3626_v58  ;;  %v2387_v58 = vrot.slane %v3659_v13, 1 }
  0xc8   : > { %2488 = vmatprep.subr.bf16.mxu1 %v3634_v17  ;;  %v2132_v17 = vshrl.u32 %v4206_v2, 16 }
  0xc9   : > { %2239 = vmatpush1.bf16.msra.mxu0 %v3617_v14  ;;  %v3662_v14 = vld [vmem:[#allocation4 + $0x424] ss:$8 sps:$4 sm:$0xff]   ;;  %v2388_v20 = vsel %vm2379_vm5, %v2385_v4, %v2387_v58 }
  0xca   : > { %2240 = vmatprep.subr.bf16.mxu0 %v3625_v16  ;;  %v2131_v16 = vsel %vm4622_vm0, %v2126_v62, %v2130_v47  ;;  %vm4658_vm0 = vcmask 1045508  }
  0xcb   : > { %2489 = vmatpush1.bf16.msra.mxu1 %v3632_v29  ;;  %v3668_v29 = vld [vmem:[#allocation4 + $0x404] ss:$8 sps:$4 sm:$0xff]  }
  0xcc   : > { %1741 = vmatmul.mubr.bf16.gmra.mxu0 %v1589_v28  ;;  %3355 = vmatprep.subr.bf16.mxu1 %v3641_v27  ;;  %v3666_v28 = vld [vmem:[#allocation4 + $0x400] ss:$8 sps:$4 sm:$0xff]  }
  0xcd   : > { %1750 = vmatprep.mubr.bf16.mxu0 %v4117_v12  ;;  %2241 = vmatpush1.bf16.msra.mxu0 %v3623_v24  ;;  %v2134_v24 = vor.u32 %v2132_v17, %v2130_v47 }
  0xce   : > { %2242 = vmatprep.subr.bf16.mxu0 %v3631_v30  ;;  %2026 = vmatmul.mubr.bf16.gmra.mxu1 %v1867_v31  ;;  %v2142_v31 = vor.u32 %v2140_v21, %v2138_v26 }
  0xcf   : > { %2506 = vmatprep.mubr.bf16.mxu1 %v4117_v12  ;;  %v2139_v30 = vsel %vm4623_vm9, %v2134_v24, %v2138_v26  ;;  %vm4659_vm9 = vcmask 1041408  }
  0xd0   : > { %vm2951_vm14 = vmor %vm4659_vm9, %vm4658_vm0 }
  0xd1   : > { %2243 = vmatpush1.bf16.msra.mxu0 %v3629_v32  ;;  %v2599_v32 = vrot.slane %v4206_v2, 1 }
  0xd2   : > { %2688 = vmatprep.subr.bf16.mxu0 %v3641_v27  ;;  %v2573_v27 = vld [vmem:[#allocation2 + $0xc] sm:$0xe] }
  0xd3   : > { %v3305_v34 = vcombine.low %v2573_v27, %v4178_v18  ;;  %v2602_v35 = vsel %vm2379_vm5, %v2599_v32, %v2601_v9  ;;  %v2598_v18 = vsel %vm2379_vm5, %v2595_v42, %v2597_v39  ;;  %v2600_v40 = vsel %vm2379_vm5, %v2597_v39, %v2599_v32 }
  0xd4   : > { %1751 = vmatmul.mubr.bf16.gmra.mxu0 %v1592_v36 }
  0xd5   : > { %2260 = vmatprep.mubr.bf16.mxu0 %v4117_v12  ;;  %v2594_v38 = vrot.slane %v3305_v34, 1 }
  0xd6   : > { %2507 = vmatmul.mubr.bf16.vlgmr.msra.gmra.mxu1 %v2382_v50 }
  0xd7   : > { %2516 = vmatprep.mubr.bf16.mxu1 %v4117_v12  ;;  %3363 = vmatpush1.bf16.msra.mxu1 %v3639_v43  ;;  %v2596_v36 = vsel %vm2379_vm5, %v2594_v38, %v2595_v42  ;;  %vm2925_vm5 = vsmask.f32 6416 }
  0xd8   : > { %3356 = vmatprep.subr.bf16.mxu1 %v3644_v48  ;;  %vm2926_vm2 = vmor %vm4657_vm10, %vm2925_vm5 }
  0xdb   : > { %3364 = vmatpush1.bf16.msra.mxu1 %v3642_v51 }
  0xdc   : > { %2261 = vmatmul.mubr.bf16.vlgmr.msra.gmra.mxu0 %v2115_v54  ;;  %3357 = vmatprep.subr.bf16.mxu1 %v3649_v55 }
  0xdd   : > { %2689 = vmatpush1.bf16.msra.mxu0 %v3639_v43  ;;  %2270 = vmatprep.mubr.bf16.mxu0 %v4117_v12 }
  0xde   : > { %2690 = vmatprep.subr.bf16.mxu0 %v3644_v48  ;;  %2517 = vmatmul.mubr.bf16.gmra.mxu1 %v2384_v56 }
  0xdf   : > { %2526 = vmatprep.mubr.bf16.mxu1 %v4117_v12  ;;  %3365 = vmatpush1.bf16.msra.mxu1 %v3647_v57 }
  0xe0   : > { %3358 = vmatprep.subr.bf16.mxu1 %v3652_v1 }
  0xe1   : > { %2691 = vmatpush1.bf16.msra.mxu0 %v3642_v51 }
  0xe2   : > { %2692 = vmatprep.subr.bf16.mxu0 %v3649_v55 }
  0xe3   : > { %3366 = vmatpush1.bf16.msra.mxu1 %v3650_v0 }
  0xe4   : > { %2271 = vmatmul.mubr.bf16.gmra.mxu0 %v2123_v6  ;;  %3359 = vmatprep.subr.bf16.mxu1 %v3657_v10 }
  0xe5   : > { %2693 = vmatpush1.bf16.msra.mxu0 %v3647_v57  ;;  %2280 = vmatprep.mubr.bf16.mxu0 %v4117_v12 }
  0xe6   : > { %2694 = vmatprep.subr.bf16.mxu0 %v3652_v1  ;;  %2527 = vmatmul.mubr.bf16.gmra.mxu1 %v2386_v5 }
  0xe7   : > { %2536 = vmatprep.mubr.bf16.mxu1 %v4117_v12  ;;  %3367 = vmatpush1.bf16.msra.mxu1 %v3655_v11 }
  0xe8   : > { %3360 = vmatprep.subr.bf16.mxu1 %v3662_v14 }
  0xe9   : > { %2695 = vmatpush1.bf16.msra.mxu0 %v3650_v0 }
  0xea   : > { %2696 = vmatprep.subr.bf16.mxu0 %v3657_v10 }
  0xeb   : > { %3368 = vmatpush1.bf16.msra.mxu1 %v3660_v15 }
  0xec   : > { %2281 = vmatmul.mubr.bf16.gmra.mxu0 %v2131_v16  ;;  %3361 = vmatprep.subr.bf16.mxu1 %v3665_v3 }
  0xed   : > { %2697 = vmatpush1.bf16.msra.mxu0 %v3655_v11  ;;  %2290 = vmatprep.mubr.bf16.mxu0 %v4117_v12 }
  0xee   : > { %2698 = vmatprep.subr.bf16.mxu0 %v3662_v14  ;;  %2537 = vmatmul.mubr.bf16.gmra.mxu1 %v2388_v20 }
  0xef   : > { %2546 = vmatprep.mubr.bf16.mxu1 %v4117_v12  ;;  %3369 = vmatpush1.bf16.msra.mxu1 %v3663_v23 }
  0xf0   : > { %3362 = vmatprep.subr.bf16.mxu1 %v3668_v29 }
  0xf1   : > { %2699 = vmatpush1.bf16.msra.mxu0 %v3660_v15 }
  0xf2   : > { %2700 = vmatprep.subr.bf16.mxu0 %v3665_v3 }
  0xf3   : > { %3370 = vmatpush1.bf16.msra.mxu1 %v3666_v28 }
  0xf4   : > { %2291 = vmatmul.mubr.bf16.gmra.mxu0 %v2139_v30 }
  0xf5   : > { %2300 = vmatprep.mubr.bf16.mxu0 %v4117_v12  ;;  %2701 = vmatpush1.bf16.msra.mxu0 %v3663_v23 }
  0xf6   : > { %2702 = vmatprep.subr.bf16.mxu0 %v3668_v29  ;;  %2547 = vmatmul.mubr.bf16.gmra.mxu1 %v2387_v58 }
  0xf7   : > { %2750 = vmatprep.mubr.bf16.mxu1 %v4117_v12 }
  0xf9   : > { %2703 = vmatpush1.bf16.msra.mxu0 %v3666_v28 }
  0xfc   : > { %2301 = vmatmul.mubr.bf16.gmra.mxu0 %v2142_v31 }
  0xfd   : > { %2720 = vmatprep.mubr.bf16.mxu0 %v4117_v12 }
  0xfe   : > { %2751 = vmatmul.mubr.bf16.vlgmr.msra.gmra.mxu1 %v2602_v35 }
  0xff   : > { %2760 = vmatprep.mubr.bf16.mxu1 %v4117_v12 }
 0x104   : > { %2721 = vmatmul.mubr.bf16.vlgmr.msra.gmra.mxu0 %v2596_v36 }
 0x105   : > { %2730 = vmatprep.mubr.bf16.mxu0 %v4117_v12 }
 0x106   : > { %2761 = vmatmul.mubr.bf16.gmra.mxu1 %v2601_v9 }
 0x10c   : > { %2731 = vmatmul.mubr.bf16.gmra.mxu0 %v2598_v18 }
 0x10d   : > { %2740 = vmatprep.mubr.bf16.mxu0 %v4117_v12 }
 0x114   : > { %2741 = vmatmul.mubr.bf16.gmra.mxu0 %v2600_v40 }
 0x11d   : > { %v947_v33 = vpop.f32.mrf.mxu1 }
 0x11f   : > { %v949_v41 = vpop.f32.mrf.mxu1 }
 0x121   : > { %v951_v22 = vpop.f32.mrf.mxu1 }
 0x123   : > { %v953_v19 = vpop.f32.mrf.mxu1 }
 0x124   : > { %v758_v50 = vpop.f32.mrf.mxu0 }
 0x125   : > { %v957_v45 = vpop.f32.mrf.mxu1  ;;  %v948_v44 = vadd.f32 %v947_v33, %v758_v50 }
 0x126   : > { %v760_v46 = vpop.f32.mrf.mxu0 }
 0x127   : > { %v959_v43 = vpop.f32.mrf.mxu1  ;;  %v950_v49 = vadd.f32 %v949_v41, %v760_v46 }
 0x128   : > { %v762_v51 = vpop.f32.mrf.mxu0 }
 0x129   : > { %v961_v48 = vpop.f32.mrf.mxu1  ;;  %v952_v54 = vadd.f32 %v951_v22, %v762_v51 }
 0x12a   : > { %v764_v37 = vpop.f32.mrf.mxu0 }
 0x12b   : > { %v963_v52 = vpop.f32.mrf.mxu1  ;;  %v954_v12 = vadd.f32 %v953_v19, %v764_v37 }
 0x12c   : > { %v768_v55 = vpop.f32.mrf.mxu0 }
 0x12d   : > { %v967_v25 = vpop.f32.mrf.mxu1  ;;  %v958_v57 = vadd.f32 %v957_v45, %v768_v55 }
 0x12e   : > { %v770_v59 = vpop.f32.mrf.mxu0 }
 0x12f   : > { %v969_v56 = vpop.f32.mrf.mxu1  ;;  %v960_v63 = vadd.f32 %v959_v43, %v770_v59 }
 0x130   : > { %v772_v1 = vpop.f32.mrf.mxu0 }
 0x131   : > { %v971_v61 = vpop.f32.mrf.mxu1  ;;  %v962_v0 = vadd.f32 %v961_v48, %v772_v1 }
 0x132   : > { %v774_v4 = vpop.f32.mrf.mxu0 }
 0x133   : > { %v973_v2 = vpop.f32.mrf.mxu1  ;;  %v964_v7 = vadd.f32 %v963_v52, %v774_v4 }
 0x134   : > { %v778_v10 = vpop.f32.mrf.mxu0 }
 0x135   : > { %v977_v6 = vpop.f32.mrf.mxu1  ;;  %v4235_v5 = vadd.f32 %v967_v25, %v778_v10 }
 0x136   : > { %v780_v13 = vpop.f32.mrf.mxu0 }
 0x137   : > { %v979_v8 = vpop.f32.mrf.mxu1  ;;  %v4237_v62 = vadd.f32 %v969_v56, %v780_v13 }
 0x138   : > { %v782_v53 = vpop.f32.mrf.mxu0 }
 0x139   : > { %v981_v11 = vpop.f32.mrf.mxu1  ;;  %v4239_v14 = vadd.f32 %v971_v61, %v782_v53 }
 0x13a   : > { %v784_v15 = vpop.f32.mrf.mxu0 }
 0x13b   : > { %v983_v47 = vpop.f32.mrf.mxu1  ;;  %v4241_v16 = vadd.f32 %v973_v2, %v784_v15 }
 0x13c   : > { %v788_v60 = vpop.f32.mrf.mxu0 }
 0x13d   : > { %v987_v58 = vpop.f32.mrf.mxu1  ;;  %v4243_v3 = vadd.f32 %v977_v6, %v788_v60 }
 0x13e   : > { %v790_v23 = vpop.f32.mrf.mxu0 }
 0x13f   : > { %v989_v17 = vpop.f32.mrf.mxu1  ;;  %v4245_v24 = vadd.f32 %v979_v8, %v790_v23 }
 0x140   : > { %v792_v29 = vpop.f32.mrf.mxu0 }
 0x141   : > { %v991_v20 = vpop.f32.mrf.mxu1  ;;  %v4247_v28 = vadd.f32 %v981_v11, %v792_v29 }
 0x142   : > { %v794_v30 = vpop.f32.mrf.mxu0 }
 0x143   : > { %v992_v26 = vpop.f32.mrf.mxu1  ;;  %v4249_v21 = vadd.f32 %v983_v47, %v794_v30 }
 0x144   : > { %v798_v27 = vpop.f32.mrf.mxu0 }
 0x145   : > { %v4251_v31 = vadd.f32 %v987_v58, %v798_v27  ;;  %v1437_v9 = vpop.f32.mrf.mxu1 }
 0x146   : > { %v800_v32 = vpop.f32.mrf.mxu0 }
 0x147   : > { %v4253_v34 = vadd.f32 %v989_v17, %v800_v32  ;;  %v1439_v38 = vpop.f32.mrf.mxu1 }
 0x148   : > { %v802_v35 = vpop.f32.mrf.mxu0 }
 0x149   : > { %v1441_v36 = vpop.f32.mrf.mxu1 }
 0x14a   : > { %v803_v42 = vpop.f32.mrf.mxu0 }
 0x14b   : > { %v1443_v18 = vpop.f32.mrf.mxu1 }
 0x14c   : > { %v1204_v39 = vpop.f32.mrf.mxu0 }
 0x14d   : > { %v1251_v40 = vadd.f32 %v1204_v39, %v948_v44 }
 0x14e   : > { %v1206_v33 = vpop.f32.mrf.mxu0  ;;  %v1447_v19 = vpop.f32.mrf.mxu1 }
 0x14f   : > { %v4255_v41 = vadd.f32 %v1437_v9, %v1251_v40  ;;  %v1252_v22 = vadd.f32 %v1206_v33, %v950_v49 }
 0x150   : > { %v1208_v45 = vpop.f32.mrf.mxu0  ;;  %v1449_v46 = vpop.f32.mrf.mxu1 }
 0x151   : > { %v4257_v50 = vadd.f32 %v1439_v38, %v1252_v22  ;;  %v1253_v43 = vadd.f32 %v1208_v45, %v952_v54 }
 0x152   : > { %v1210_v48 = vpop.f32.mrf.mxu0  ;;  %v1451_v37 = vpop.f32.mrf.mxu1 }
 0x153   : > { %v4259_v51 = vadd.f32 %v1441_v36, %v1253_v43  ;;  %v1254_v52 = vadd.f32 %v1210_v48, %v954_v12 }
 0x154   : > { %v1214_v25 = vpop.f32.mrf.mxu0  ;;  %v1453_v44 = vpop.f32.mrf.mxu1 }
 0x155   : > { %v4261_v55 = vadd.f32 %v1443_v18, %v1254_v52  ;;  %v1255_v56 = vadd.f32 %v1214_v25, %v958_v57 }
 0x156   : > { %v1216_v59 = vpop.f32.mrf.mxu0  ;;  %v1457_v1 = vpop.f32.mrf.mxu1 }
 0x157   : > { %v4263_v61 = vadd.f32 %v1447_v19, %v1255_v56  ;;  %v1256_v49 = vadd.f32 %v1216_v59, %v960_v63 }
 0x158   : > { %v1218_v2 = vpop.f32.mrf.mxu0  ;;  %v1459_v6 = vpop.f32.mrf.mxu1 }
 0x159   : > { %v4265_v4 = vadd.f32 %v1449_v46, %v1256_v49  ;;  %v1257_v54 = vadd.f32 %v1218_v2, %v962_v0 }
 0x15a   : > { %v1220_v8 = vpop.f32.mrf.mxu0  ;;  %v1461_v11 = vpop.f32.mrf.mxu1 }
 0x15b   : > { %v4267_v10 = vadd.f32 %v1451_v37, %v1257_v54  ;;  %v1258_v12 = vadd.f32 %v1220_v8, %v964_v7 }
 0x15c   : > { %v1224_v13 = vpop.f32.mrf.mxu0  ;;  %v1463_v53 = vpop.f32.mrf.mxu1 }
 0x15d   : > { %v4269_v47 = vadd.f32 %v1453_v44, %v1258_v12  ;;  %v1259_v57 = vadd.f32 %v1224_v13, %v4235_v5 }
 0x15e   : > { %v1226_v58 = vpop.f32.mrf.mxu0  ;;  %v1467_v17 = vpop.f32.mrf.mxu1 }
 0x15f   : > { %v4272_v15 = vadd.f32 %v1457_v1, %v1259_v57  ;;  %v1260_v63 = vadd.f32 %v1226_v58, %v4237_v62 }
 0x160   : > { %v1228_v60 = vpop.f32.mrf.mxu0  ;;  %v1469_v23 = vpop.f32.mrf.mxu1 }
 0x161   : > { %v4275_v0 = vadd.f32 %v1459_v6, %v1260_v63  ;;  %v1261_v20 = vadd.f32 %v1228_v60, %v4239_v14 }
 0x162   : > { %v1230_v7 = vpop.f32.mrf.mxu0  ;;  %v1471_v30 = vpop.f32.mrf.mxu1 }
 0x163   : > { %v4278_v26 = vadd.f32 %v1461_v11, %v1261_v20  ;;  %v1262_v29 = vadd.f32 %v1230_v7, %v4241_v16 }
 0x164   : > { %v1234_v5 = vpop.f32.mrf.mxu0  ;;  %v1473_v9 = vpop.f32.mrf.mxu1 }
 0x165   : > { %v4281_v27 = vadd.f32 %v1463_v53, %v1262_v29  ;;  %v1263_v32 = vadd.f32 %v1234_v5, %v4243_v3 }
 0x166   : > { %v1236_v62 = vpop.f32.mrf.mxu0  ;;  %v1477_v42 = vpop.f32.mrf.mxu1 }
 0x167   : > { %v4284_v35 = vadd.f32 %v1467_v17, %v1263_v32  ;;  %v1264_v38 = vadd.f32 %v1236_v62, %v4245_v24 }
 0x168   : > { %v1238_v14 = vpop.f32.mrf.mxu0  ;;  %v1479_v18 = vpop.f32.mrf.mxu1 }
 0x169   : > { %v4287_v36 = vadd.f32 %v1469_v23, %v1264_v38  ;;  %v1265_v39 = vadd.f32 %v1238_v14, %v4247_v28 }
 0x16a   : > { %v1240_v16 = vpop.f32.mrf.mxu0  ;;  %v1481_v22 = vpop.f32.mrf.mxu1 }
 0x16b   : > { %v4290_v40 = vadd.f32 %v1471_v30, %v1265_v39  ;;  %v1266_v33 = vadd.f32 %v1240_v16, %v4249_v21 }
 0x16c   : > { %v1244_v3 = vpop.f32.mrf.mxu0  ;;  %v1482_v43 = vpop.f32.mrf.mxu1 }
 0x16d   : > { %v4293_v19 = vadd.f32 %v1473_v9, %v1266_v33  ;;  %v1267_v45 = vadd.f32 %v1244_v3, %v4251_v31 }
 0x16e   : > { %v1246_v24 = vpop.f32.mrf.mxu0  ;;  %v1987_v52 = vpop.f32.mrf.mxu1 }
 0x16f   : > { %v4296_v46 = vadd.f32 %v1477_v42, %v1267_v45  ;;  %v1268_v48 = vadd.f32 %v1246_v24, %v4253_v34 }
 0x170   : > { %v1248_v28 = vpop.f32.mrf.mxu0  ;;  %v1989_v25 = vpop.f32.mrf.mxu1 }
 0x171   : > { %v4299_v37 = vadd.f32 %v1479_v18, %v1268_v48 }
 0x172   : > { %v1249_v56 = vpop.f32.mrf.mxu0  ;;  %v1991_v44 = vpop.f32.mrf.mxu1 }
 0x174   : > { %v1712_v21 = vpop.f32.mrf.mxu0  ;;  %v1993_v49 = vpop.f32.mrf.mxu1 }
 0x175   : > { %v1759_v59 = vadd.f32 %v1712_v21, %v4255_v41 }
 0x176   : > { %v1714_v1 = vpop.f32.mrf.mxu0  ;;  %v1997_v54 = vpop.f32.mrf.mxu1 }
 0x177   : > { %v4302_v2 = vadd.f32 %v1987_v52, %v1759_v59  ;;  %v1760_v31 = vadd.f32 %v1714_v1, %v4257_v50 }
 0x178   : > { %v1716_v6 = vpop.f32.mrf.mxu0  ;;  %v1999_v12 = vpop.f32.mrf.mxu1 }
 0x179   : > { %v4305_v8 = vadd.f32 %v1989_v25, %v1760_v31  ;;  %v1761_v34 = vadd.f32 %v1716_v6, %v4259_v51 }
 0x17a   : > { %v1718_v11 = vpop.f32.mrf.mxu0  ;;  %v2001_v53 = vpop.f32.mrf.mxu1 }
 0x17b   : > { %v4308_v13 = vadd.f32 %v1991_v44, %v1761_v34  ;;  %v1762_v57 = vadd.f32 %v1718_v11, %v4261_v55 }
 0x17c   : > { %v1722_v41 = vpop.f32.mrf.mxu0  ;;  %v2003_v17 = vpop.f32.mrf.mxu1 }
 0x17d   : > { %v4311_v58 = vadd.f32 %v1993_v49, %v1762_v57  ;;  %v1763_v63 = vadd.f32 %v1722_v41, %v4263_v61 }
 0x17e   : > { %v1724_v50 = vpop.f32.mrf.mxu0  ;;  %v2007_v23 = vpop.f32.mrf.mxu1 }
 0x17f   : > { %v4314_v60 = vadd.f32 %v1997_v54, %v1763_v63  ;;  %v1764_v20 = vadd.f32 %v1724_v50, %v4265_v4 }
 0x180   : > { %v1726_v51 = vpop.f32.mrf.mxu0  ;;  %v2009_v30 = vpop.f32.mrf.mxu1 }
 0x181   : > { %v4317_v7 = vadd.f32 %v1999_v12, %v1764_v20  ;;  %v1765_v29 = vadd.f32 %v1726_v51, %v4267_v10 }
 0x182   : > { %v1728_v55 = vpop.f32.mrf.mxu0  ;;  %v2011_v9 = vpop.f32.mrf.mxu1 }
 0x183   : > { %v4320_v5 = vadd.f32 %v2001_v53, %v1765_v29  ;;  %v1766_v32 = vadd.f32 %v1728_v55, %v4269_v47 }
 0x184   : > { %v1732_v61 = vpop.f32.mrf.mxu0  ;;  %v2013_v42 = vpop.f32.mrf.mxu1 }
 0x185   : > { %v4323_v62 = vadd.f32 %v2003_v17, %v1766_v32  ;;  %v1767_v38 = vadd.f32 %v1732_v61, %v4272_v15 }
 0x186   : > { %v1734_v4 = vpop.f32.mrf.mxu0  ;;  %v2017_v18 = vpop.f32.mrf.mxu1 }
 0x187   : > { %v4326_v14 = vadd.f32 %v2007_v23, %v1767_v38  ;;  %v1768_v39 = vadd.f32 %v1734_v4, %v4275_v0 }
 0x188   : > { %v1736_v10 = vpop.f32.mrf.mxu0  ;;  %v2019_v22 = vpop.f32.mrf.mxu1 }
 0x189   : > { %v4329_v16 = vadd.f32 %v2009_v30, %v1768_v39  ;;  %v1769_v33 = vadd.f32 %v1736_v10, %v4278_v26  ;;  %v2789_v39 = vlaneseq }
 0x18a   : > { %v1738_v47 = vpop.f32.mrf.mxu0  ;;  %v4335_v43 = vpop.f32.mrf.mxu1 }
 0x18b   : > { %4624 = vst [vmem:[#allocation11_spill] sm:$0xff] %v4329_v16  ;;  %v4332_v3 = vadd.f32 %v2011_v9, %v1769_v33  ;;  %v1770_v45 = vadd.f32 %v1738_v47, %v4281_v27  ;;  %v2817_v16 = vld [vmem:[#allocation8] sm:$0x3] }
 0x18c   : > { %v1742_v15 = vpop.f32.mrf.mxu0  ;;  %v4339_v48 = vpop.f32.mrf.mxu1 }
 0x18d   : > { %4625 = vst [vmem:[#allocation12_spill] sm:$0xff] %v4332_v3  ;;  %v4337_v24 = vadd.f32 %v2013_v42, %v1770_v45  ;;  %v1771_v47 = vadd.f32 %v1742_v15, %v4284_v35  ;;  %v2787_v15 = vld [vmem:[#allocation6] sm:$0x3] }
 0x18e   : > { %v1744_v0 = vpop.f32.mrf.mxu0  ;;  %v4341_v52 = vpop.f32.mrf.mxu1 }
 0x18f   : > { %4626 = vst [vmem:[#allocation13_spill] sm:$0xff] %v4337_v24 }
 0x190   : > { %v1746_v28 = vpop.f32.mrf.mxu0  ;;  %v4343_v25 = vpop.f32.mrf.mxu1 }
 0x192   : > { %v1748_v26 = vpop.f32.mrf.mxu0  ;;  %v2031_v56 = vpop.f32.mrf.mxu1 }
 0x194   : > { %v1752_v44 = vpop.f32.mrf.mxu0  ;;  %v2032_v21 = vpop.f32.mrf.mxu1 }
 0x195   : > { %v2790_v21 = vshrl.u32 %v2789_v39, 7 }
 0x196   : > { %v1754_v59 = vpop.f32.mrf.mxu0  ;;  %v4345_v49 = vpop.f32.mrf.mxu1 }
 0x197   : > { %v2791_v3 = vsub.s32 0, %v2790_v21  ;;  %v2795_v39 = vsub.s32 1, %v2790_v21 }
 0x198   : > { %v1756_v27 = vpop.f32.mrf.mxu0  ;;  %v4347_v1 = vpop.f32.mrf.mxu1 }
 0x199   : > { %v1772_v27 = vadd.f32 %v1744_v0, %v4287_v36  ;;  %v1775_v0 = vadd.f32 %v1752_v44, %v4296_v46  ;;  %v4400_v21 = vrot.slane %v2787_v15, %v2795_v39 }
 0x19a   : > { %v1757_v31 = vpop.f32.mrf.mxu0  ;;  %v4349_v54 = vpop.f32.mrf.mxu1 }
 0x19c   : > { %v2262_v6 = vpop.f32.mrf.mxu0  ;;  %v4351_v34 = vpop.f32.mrf.mxu1 }
 0x19e   : > { %v2264_v12 = vpop.f32.mrf.mxu0  ;;  %v4353_v11 = vpop.f32.mrf.mxu1 }
 0x19f   : > { %v2310_v46 = vadd.f32 %v2264_v12, %v4305_v8 }
 0x1a0   : > { %v2266_v57 = vpop.f32.mrf.mxu0  ;;  %v4355_v53 = vpop.f32.mrf.mxu1 }
 0x1a2   : > { %v2268_v41 = vpop.f32.mrf.mxu0  ;;  %v4357_v63 = vpop.f32.mrf.mxu1 }
 0x1a4   : > { %v4359_v17 = vpop.f32.mrf.mxu0  ;;  %v4361_v50 = vpop.f32.mrf.mxu1 }
 0x1a5   : > { %v2313_v8 = vadd.f32 %v4359_v17, %v4314_v60 }
 0x1a6   : > { %v2274_v20 = vpop.f32.mrf.mxu0  ;;  %v4363_v23 = vpop.f32.mrf.mxu1 }
 0x1a7   : > { %4627 = vst [vmem:[#allocation14_spill] sm:$0xff] %v4363_v23  ;;  %v2047_v23 = vadd.f32 %v2019_v22, %v1772_v27  ;;  %v4395_v22 = vrot.slane %v2787_v15, %v2791_v3 }
 0x1a8   : > { %v4365_v51 = vpop.f32.mrf.mxu0  ;;  %v4367_v29 = vpop.f32.mrf.mxu1 }
 0x1a9   : > { %4628 = vst [vmem:[#allocation15_spill] sm:$0xff] %v4367_v29  ;;  %v1773_v29 = vadd.f32 %v1746_v28, %v4290_v40  ;;  %v1776_v40 = vadd.f32 %v1754_v59, %v4299_v37  ;;  %v2309_v28 = vadd.f32 %v2262_v6, %v4302_v2  ;;  %v2312_v37 = vadd.f32 %v2268_v41, %v4311_v58 }
 0x1aa   : > { %v4369_v30 = vpop.f32.mrf.mxu0  ;;  %v4371_v55 = vpop.f32.mrf.mxu1  ;;  %v4405_v2 = vrot.slane %v2817_v16, %v2795_v39  ;;  %v2050_v59 = vadd.f32 %v4341_v52, %v1775_v0 }
 0x1ab   : > { %4629 = vst [vmem:[#allocation16_spill] sm:$0xff] %v4371_v55  ;;  %v2048_v36 = vadd.f32 %v4335_v43, %v1773_v29  ;;  %v2311_v43 = vadd.f32 %v2266_v57, %v4308_v13  ;;  %v2555_v29 = vadd.f32 %v4345_v49, %v2309_v28  ;;  %v2314_v13 = vadd.f32 %v2274_v20, %v4317_v7 }
 0x1ac   : > { %v4373_v32 = vpop.f32.mrf.mxu0  ;;  %v4375_v9 = vpop.f32.mrf.mxu1  ;;  %v2315_v49 = vadd.f32 %v4365_v51, %v4320_v5 }
 0x1ad   : > { %4630 = vst [vmem:[#allocation17_spill] sm:$0xff] %v4373_v32  ;;  %4631 = vst [vmem:[#allocation18_spill] sm:$0xff] %v4375_v9  ;;  %v2046_v9 = vadd.f32 %v2017_v18, %v1771_v47 }
 0x1ae   : > { %v4377_v61 = vpop.f32.mrf.mxu0  ;;  %v2538_v38 = vpop.f32.mrf.mxu1 }
 0x1af   : > { %4632 = vst [vmem:[#allocation19_spill] sm:$0xff] %v4377_v61 }
 0x1b0   : > { %v4379_v42 = vpop.f32.mrf.mxu0  ;;  %v2540_v4 = vpop.f32.mrf.mxu1 }
 0x1b1   : > { %4633 = vst [vmem:[#allocation20_spill] sm:$0xff] %v4379_v42 }
 0x1b2   : > { %v4381_v10 = vpop.f32.mrf.mxu0  ;;  %v2542_v33 = vpop.f32.mrf.mxu1 }
 0x1b3   : > { %4634 = vst [vmem:[#allocation21_spill] sm:$0xff] %v4381_v10  ;;  %v1774_v10 = vadd.f32 %v1748_v26, %v4293_v19  ;;  %v4397_v19 = vrot.slane %v2817_v16, %v2791_v3 }
 0x1b4   : > { %v2292_v45 = vpop.f32.mrf.mxu0  ;;  %v2544_v56 = vpop.f32.mrf.mxu1 }
 0x1b5   : > { %v2321_v61 = vadd.f32 %v2292_v45, %v2046_v9  ;;  %v2049_v26 = vadd.f32 %v4339_v48, %v1774_v10  ;;  %v2559_v10 = vadd.f32 %v4353_v11, %v2313_v8 }
 0x1b6   : > { %v2294_v31 = vpop.f32.mrf.mxu0  ;;  %v4385_v55 = vpop.f32.mrf.mxu1 }
 0x1b7   : > { %v2322_v18 = vadd.f32 %v2294_v31, %v2047_v23  ;;  %v2567_v9 = vadd.f32 %v2538_v38, %v2321_v61  ;;  %v2556_v61 = vadd.f32 %v4347_v1, %v2310_v46  ;;  %v2557_v38 = vadd.f32 %v4349_v54, %v2311_v43  ;;  %v4638_v46 = vld [vmem:[#allocation19_spill] sm:$0xff] }
 0x1b8   : > { %v2296_v24 = vpop.f32.mrf.mxu0  ;;  %v4388_v42 = vpop.f32.mrf.mxu1  ;;  %v2316_v1 = vadd.f32 %v4369_v30, %v4323_v62 }
 0x1b9   : > { %4635 = vst [vmem:[#allocation22_spill] sm:$0xff] %v4388_v42  ;;  %v2323_v45 = vadd.f32 %v2296_v24, %v2048_v36  ;;  %v2568_v3 = vadd.f32 %v2540_v4, %v2322_v18  ;;  %v2051_v24 = vadd.f32 %v4343_v25, %v1776_v40  ;;  %v2558_v25 = vadd.f32 %v4351_v34, %v2312_v37 }
 0x1ba   : > { %v2298_v35 = vpop.f32.mrf.mxu0  ;;  %v2552_v32 = vpop.f32.mrf.mxu1  ;;  %v2562_v18 = vadd.f32 %v4361_v50, %v2316_v1 }
 0x1bb   : > { %v2324_v6 = vadd.f32 %v2298_v35, %v2049_v26  ;;  %v2569_v58 = vadd.f32 %v2542_v33, %v2323_v45  ;;  %v4423_v33 = vadd.f32 %v4355_v53, %v2314_v13  ;;  %v2561_v35 = vadd.f32 %v4357_v63, %v2315_v49  ;;  %v4636_v26 = vld [vmem:[#allocation17_spill] sm:$0xff]  ;;  %v4637_v45 = vld [vmem:[#allocation11_spill] sm:$0xff] }
 0x1bc   : > { %v2302_v47 = vpop.f32.mrf.mxu0  ;;  %v2553_v42 = vpop.f32.mrf.mxu1  ;;  %v2318_v43 = vadd.f32 %v4638_v46, %v4637_v45 }
 0x1bd   : > { %v2325_v57 = vadd.f32 %v2302_v47, %v2050_v59  ;;  %v2570_v60 = vadd.f32 %v2544_v56, %v2324_v6 }
 0x1be   : > { %v2304_v32 = vpop.f32.mrf.mxu0  ;;  %v2752_v44 = vpop.f32.mrf.mxu1 }
 0x1bf   : > { %v2781_v48 = vadd.f32 %v2752_v44, %v2567_v9  ;;  %v2571_v5 = vadd.f32 %v4385_v55, %v2325_v57  ;;  %v2317_v9 = vadd.f32 %v4636_v26, %v4326_v14 }
 0x1c0   : > { %v2306_v23 = vpop.f32.mrf.mxu0  ;;  %v2754_v12 = vpop.f32.mrf.mxu1 }
 0x1c1   : > { %v2811_v41 = vmul.f32 %v4395_v22, %v2781_v48  ;;  %v2782_v52 = vadd.f32 %v2754_v12, %v2568_v3  ;;  %v2326_v3 = vadd.f32 %v2304_v32, %v2051_v24  ;;  %v4639_v24 = vld [vmem:[#allocation14_spill] sm:$0xff] }
 0x1c2   : > { %v2307_v16 = vpop.f32.mrf.mxu0  ;;  %v2756_v42 = vpop.f32.mrf.mxu1 }
 0x1c3   : > { %v2841_v7 = vadd.f32 %v4397_v19, %v2811_v41  ;;  %v2812_v20 = vmul.f32 %v4400_v21, %v2782_v52  ;;  %v2783_v4 = vadd.f32 %v2756_v42, %v2569_v58  ;;  %v2563_v52 = vadd.f32 %v4639_v24, %v2317_v9  ;;  %v4643_v42 = vld [vmem:[#allocation21_spill] sm:$0xff] }
 0x1c4   : > { %v2722_v17 = vpop.f32.mrf.mxu0  ;;  %v2758_v34 = vpop.f32.mrf.mxu1 }
 0x1c5   : > { %v2769_v54 = vadd.f32 %v2722_v17, %v2555_v29  ;;  %v2842_v56 = vadd.f32 %v4405_v2, %v2812_v20  ;;  %v2813_v27 = vmul.f32 %v4395_v22, %v2783_v4  ;;  %v2784_v31 = vadd.f32 %v2758_v34, %v2570_v60  ;;  %v4644_v20 = vld [vmem:[#allocation22_spill] sm:$0xff]  ;;  %v4646_v34 = vld [vmem:[#allocation15_spill] sm:$0xff] }
 0x1c6   : > { %v2724_v51 = vpop.f32.mrf.mxu0  ;;  %v2859_v15 = vmax.f32 %v2841_v7, 0.0  ;;  %v2762_v39 = vpop.f32.mrf.mxu1  ;;  %v2572_v4 = vadd.f32 %v4644_v20, %v2326_v3 }
 0x1c7   : > { %v2799_v11 = vmul.f32 %v4395_v22, %v2769_v54  ;;  %v2770_v53 = vadd.f32 %v2724_v51, %v2556_v61  ;;  %v2860_v36 = vmax.f32 %v2842_v56, 0.0  ;;  %v2843_v30 = vadd.f32 %v4397_v19, %v2813_v27  ;;  %v4640_v61 = vld [vmem:[#allocation12_spill] sm:$0xff] }
 0x1c8   : > { %v2726_v62 = vpop.f32.mrf.mxu0  ;;  %v2814_v55 = vmul.f32 %v4400_v21, %v2784_v31  ;;  %v2785_v0 = vadd.f32 %v2762_v39, %v2571_v5  ;;  %v2764_v28 = vpop.f32.mrf.mxu1  ;;  %v2564_v5 = vadd.f32 %v4646_v34, %v2318_v43 }
 0x1c9   : > { %v2829_v47 = vadd.f32 %v4397_v19, %v2799_v11  ;;  %v2800_v40 = vmul.f32 %v4400_v21, %v2770_v53  ;;  %v2771_v63 = vadd.f32 %v2726_v62, %v2557_v38  ;;  %v4441_v37 = vpack.c.bf16 %v2860_v36, %v2859_v15  ;;  %v4641_v38 = vld [vmem:[#allocation20_spill] sm:$0xff] }
 0x1ca   : > { %v2728_v44 = vpop.f32.mrf.mxu0  ;;  %v2844_v59 = vadd.f32 %v4405_v2, %v2814_v55  ;;  %v2766_v48 = vpop.f32.mrf.mxu1  ;;  %v2861_v8 = vmax.f32 %v2843_v30, 0.0  ;;  %v2815_v12 = vmul.f32 %v4395_v22, %v2785_v0  ;;  %v2319_v49 = vadd.f32 %v4641_v38, %v4640_v61  ;;  %v4647_v36 = vld [vmem:[#allocation16_spill] sm:$0xff] }
 0x1cb   : > { %v2830_v50 = vadd.f32 %v4405_v2, %v2800_v40  ;;  %v2801_v6 = vmul.f32 %v4395_v22, %v2771_v63  ;;  %v2772_v23 = vadd.f32 %v2728_v44, %v2558_v25  ;;  %v2847_v29 = vmax.f32 %v2829_v47, 0.0  ;;  %v4642_v25 = vld [vmem:[#allocation13_spill] sm:$0xff]  ;;  %v4648_v40 = vld [vmem:[#allocation18_spill] sm:$0xff] }
 0x1cc   : > { %v2862_v13 = vmax.f32 %v2844_v59, 0.0  ;;  %v2732_v14 = vpop.f32.mrf.mxu0  ;;  %v2767_v32 = vpop.f32.mrf.mxu1  ;;  %v2320_v60 = vadd.f32 %v4643_v42, %v4642_v25  ;;  %v3337_v51 = vrot.slane %v4441_v37, 11  ;;  %v2845_v27 = vadd.f32 %v4397_v19, %v2815_v12 }
 0x1cd   : > { %v2848_v58 = vmax.f32 %v2830_v50, 0.0  ;;  %v2831_v57 = vadd.f32 %v4397_v19, %v2801_v6  ;;  %v2802_v16 = vmul.f32 %v4400_v21, %v2772_v23  ;;  %v2773_v41 = vadd.f32 %v2732_v14, %v2559_v10 }
 0x1ce   : > { %v3353_v17 = vpack.c.bf16 %v2862_v13, %v2861_v8  ;;  %v2734_v7 = vpop.f32.mrf.mxu0  ;;  %v2786_v39 = vadd.f32 %v2764_v28, %v2572_v4  ;;  %v2565_v62 = vadd.f32 %v4647_v36, %v2319_v49  ;;  %v2566_v63 = vadd.f32 %v4648_v40, %v2320_v60 }
 0x1cf   : > { %v3346_v10 = vpack.c.bf16 %v2848_v58, %v2847_v29  ;;  %v2832_v1 = vadd.f32 %v4405_v2, %v2802_v16  ;;  %v2803_v54 = vmul.f32 %v4395_v22, %v2773_v41  ;;  %v2849_v11 = vmax.f32 %v2831_v57, 0.0 }
 0x1d0   : > { %v2993_v56 = vrot.slane %v3353_v17, 7  ;;  %v2736_v31 = vpop.f32.mrf.mxu0  ;;  %v2774_v53 = vadd.f32 %v2734_v7, %v4423_v33  ;;  %v2816_v45 = vmul.f32 %v4400_v21, %v2786_v39  ;;  %v3006_v46 = vshrl.u32 %v3353_v17, 16 }
 0x1d1   : > { %2881 = vst [vmem:[%s4458_s18] sm:$0xff] %v3346_v10  ;;  %v2850_v15 = vmax.f32 %v2832_v1, 0.0  ;;  %v2833_v55 = vadd.f32 %v4397_v19, %v2803_v54  ;;  %v2775_v0 = vadd.f32 %v2736_v31, %v2561_v35  ;;  %v2863_v33 = vmax.f32 %v2845_v27, 0.0 }
 0x1d2   : > { %v2994_v30 = vsel %vm2990_vm3, %v3337_v51, %v2993_v56  ;;  %v2738_v47 = vpop.f32.mrf.mxu0  ;;  %v2804_v9 = vmul.f32 %v4400_v21, %v2774_v53  ;;  %v2846_v50 = vadd.f32 %v4405_v2, %v2816_v45  ;;  %v3340_v57 = vrot.slane %v3006_v46, 11 }
 0x1d3   : > { %v3347_v26 = vpack.c.bf16 %v2850_v15, %v2849_v11  ;;  %3338 = vst [vmem:[%s4458_s18 + $0x30] sm:$0xff] %v2994_v30  ;;  %v2805_v28 = vmul.f32 %v4395_v22, %v2775_v0  ;;  %v2776_v43 = vadd.f32 %v2738_v47, %v2562_v18  ;;  %v2851_v6 = vmax.f32 %v2833_v55, 0.0 }
 0x1d4   : > { %v2742_v44 = vpop.f32.mrf.mxu0  ;;  %v2834_v35 = vadd.f32 %v4405_v2, %v2804_v9  ;;  %v2864_v58 = vmax.f32 %v2846_v50, 0.0  ;;  %vm2964_vm3 = vsmask.f32 5392 }
 0x1d5   : > { %v2893_v59 = vshrl.u32 %v3347_v26, 16  ;;  %v2896_v3 = vshll.u32 %v3347_v26, 16  ;;  %v2835_v23 = vadd.f32 %v4397_v19, %v2805_v28  ;;  %v2806_v48 = vmul.f32 %v4400_v21, %v2776_v43  ;;  %vm2965_vm12 = vmor %vm4660_vm4, %vm2964_vm3 }
 0x1d6   : > { %v2777_v29 = vadd.f32 %v2742_v44, %v2563_v52  ;;  %v2744_v8 = vpop.f32.mrf.mxu0  ;;  %v2852_v12 = vmax.f32 %v2834_v35, 0.0  ;;  %v3354_v38 = vpack.c.bf16 %v2864_v58, %v2863_v33 }
 0x1d7   : > { %v2895_v13 = vrot.slane %v2893_v59, 4  ;;  %v2898_v14 = vrot.slane %v2896_v3, 5  ;;  %v2836_v18 = vadd.f32 %v4405_v2, %v2806_v48  ;;  %v2778_v41 = vadd.f32 %v2744_v8, %v2564_v5 }
 0x1d8   : > { %v2807_v16 = vmul.f32 %v4395_v22, %v2777_v29  ;;  %v2746_v32 = vpop.f32.mrf.mxu0  ;;  %v3348_v61 = vpack.c.bf16 %v2852_v12, %v2851_v6  ;;  %v2853_v25 = vmax.f32 %v2835_v23, 0.0  ;;  %v3011_v10 = vshrl.u32 %v3354_v38, 16 }
 0x1d9   : > { %v2899_v24 = vor.u32 %v2898_v14, %v2895_v13  ;;  %v2779_v49 = vadd.f32 %v2746_v32, %v2565_v62  ;;  %v2854_v42 = vmax.f32 %v2836_v18, 0.0  ;;  %v2808_v60 = vmul.f32 %v4400_v21, %v2778_v41 }
 0x1da   : > { %v2837_v52 = vadd.f32 %v4397_v19, %v2807_v16  ;;  %v2748_v17 = vpop.f32.mrf.mxu0  ;;  %v2902_v20 = vshll.u32 %v3348_v61, 16  ;;  %v3327_v4 = vrot.slane %v3348_v61, 9  ;;  %v3014_v54 = vshll.u32 %v3354_v38, 16 }
 0x1db   : > { %v2900_v7 = vrot.slane %v2899_v24, 4  ;;  %v3349_v34 = vpack.c.bf16 %v2854_v42, %v2853_v25  ;;  %v2838_v51 = vadd.f32 %v4405_v2, %v2808_v60  ;;  %v3013_v27 = vrot.slane %v3011_v10, 7 }
 0x1dc   : > { %v2855_v5 = vmax.f32 %v2837_v52, 0.0  ;;  %v2904_v56 = vrot.slane %v2902_v20, 5  ;;  %v2809_v31 = vmul.f32 %v4395_v22, %v2779_v49  ;;  %v2780_v11 = vadd.f32 %v2748_v17, %v2566_v63 }
 0x1dd   : > { %v2915_v53 = vrot.slane %v3349_v34, 5  ;;  %v2928_v39 = vshrl.u32 %v3349_v34, 16  ;;  %v2931_v36 = vshll.u32 %v3349_v34, 16  ;;  %v2856_v62 = vmax.f32 %v2838_v51, 0.0 }
 0x1de   : > { %v2905_v30 = vsel %vm4487_vm8, %v2900_v7, %v2904_v56  ;;  %v3016_v55 = vor.u32 %v3014_v54, %v3013_v27  ;;  %v2839_v0 = vadd.f32 %v4397_v19, %v2809_v31  ;;  %v2810_v22 = vmul.f32 %v4400_v21, %v2780_v11 }
 0x1df   : > { %3325 = vst [vmem:[%s4458_s18 + $0x8] sm:$0xff] %v2905_v30  ;;  %v2916_v47 = vsel %vm2912_vm11, %v3327_v4, %v2915_v53  ;;  %v2930_v40 = vrot.slane %v2928_v39, 5  ;;  %v2933_v63 = vrot.slane %v2931_v36, 6  ;;  %v3350_v26 = vpack.c.bf16 %v2856_v62, %v2855_v5 }
 0x1e0   : > { %v3017_v9 = vsel %vm4497_vm13, %v3340_v57, %v3016_v55  ;;  %3328 = vst [vmem:[%s4458_s18 + $0x10] sm:$0xff] %v2916_v47  ;;  %v2840_v45 = vadd.f32 %v4405_v2, %v2810_v22  ;;  %v2857_v43 = vmax.f32 %v2839_v0, 0.0  ;;  %v2976_v21 = vshrl.u32 %v4441_v37, 16 }
 0x1e1   : > { %3341 = vst [vmem:[%s4458_s18 + $0x38] sm:$0xff] %v3017_v9  ;;  %v2934_v46 = vor.u32 %v2933_v63, %v2930_v40  ;;  %v2937_v33 = vshrl.u32 %v3350_v26, 16  ;;  %v2940_v28 = vshll.u32 %v3350_v26, 16  ;;  %v2979_v3 = vshll.u32 %v4441_v37, 16 }
 0x1e2   : > { %v2858_v19 = vmax.f32 %v2840_v45, 0.0  ;;  %v3332_v6 = vrot.slane %v3350_v26, 10  ;;  %v2978_v8 = vrot.slane %v2976_v21, 6 }
 0x1e3   : > { %v2939_v44 = vrot.slane %v2937_v33, 5  ;;  %v2942_v59 = vrot.slane %v2940_v28, 6  ;;  %v2935_v50 = vrot.slane %v2934_v46, 4  ;;  %v2981_v14 = vrot.slane %v2979_v3, 7 }
 0x1e4   : > { %v3351_v35 = vpack.c.bf16 %v2858_v19, %v2857_v43 }
 0x1e5   : > { %v2943_v2 = vor.u32 %v2942_v59, %v2939_v44  ;;  %v2982_v18 = vor.u32 %v2981_v14, %v2978_v8 }
 0x1e6   : > { %v2954_v23 = vrot.slane %v3351_v35, 6  ;;  %v2967_v48 = vshrl.u32 %v3351_v35, 16  ;;  %v2970_v29 = vshll.u32 %v3351_v35, 16 }
 0x1e7   : > { %v2944_v13 = vsel %vm2926_vm2, %v2935_v50, %v2943_v2 }
 0x1e8   : > { %3330 = vst [vmem:[%s4458_s18 + $0x18] sm:$0xff] %v2944_v13  ;;  %v2955_v37 = vsel %vm2951_vm14, %v3332_v6, %v2954_v23  ;;  %v2969_v12 = vrot.slane %v2967_v48, 6  ;;  %v2972_v58 = vrot.slane %v2970_v29, 7 }
 0x1e9   : > { %3333 = vst [vmem:[%s4458_s18 + $0x20] sm:$0xff] %v2955_v37 }
 0x1ea   : > { %v2973_v57 = vor.u32 %v2972_v58, %v2969_v12 }
 0x1ec   : > { %v2974_v16 = vrot.slane %v2973_v57, 4 }
 0x1ee   : > { %v2983_v41 = vsel %vm2965_vm12, %v2974_v16, %v2982_v18 }
 0x1ef   : > { %3335 = vst [vmem:[%s4458_s18 + $0x28] sm:$0xff] %v2983_v41 }
 0x1f0 PF: > { %s16_s15 = sadd.s32 1, %s3763_s15  }
 0x1f1   : > { %p13_p8 = scmp.ge.s32.totalorder %s16_s15, 4  }
 0x1f3   :  { %15 = sbr.rel (!%p13_p8) target bundleno = 2 (0x2), region = 109 }
 0x1f8   :  { %3042 = vsyncpa [#allocation5], 1 }
 0x1f9   :  { %3044 = vsyncpa [#allocation5 + $0x1], 1 }
 0x1fa   :  { %3045 = vsyncpa [#allocation7], 1 }

// kernel: face_bone_forward.3
= control target key start
LH: loop header
LB: loop body
LE: loop exit
PB: predicated region body
PF: predicated region fallthrough
CT: control target
= control target key end

     0   :  { %9 = vsyncpa [#allocation4], 0  ;;  %s7984_s0 = inlined_call_operand.vmem [shape: bf16[2,16,16,128], index: 0, kind: input, shape index: {}]   ;;  %s7985_s1 = inlined_call_operand.hbm [shape: bf16[9,128,128], index: 1, kind: input, shape index: {}]   ;;  %s7986_s2 = inlined_call_operand.hbm [shape: f32[1,128], index: 2, kind: input, shape index: {}]   ;;  %s7987_s3 = inlined_call_operand.hbm [shape: f32[1,128], index: 3, kind: input, shape index: {}]   ;;  %s7988_s4 = inlined_call_operand.vmem [shape: bf16[2,16,16,128], index: 4, kind: output, shape index: {}]  }
   0x1   :  { %10 = vsyncpa [#allocation6], 0  ;;  %s6326_s15 = smov 0  }
   0x2 LB: > { %s6295_s16 = smov [#allocation5]   ;;  %s6332_s18 = sadd.s32 4294967295, %s6293_s15   ;;  %s6293_s15 = sphi %s6326_s15, %s16_s15  }
   0x3   : > { %s162_s17 = sshll.u32 %s6295_s16, 4  ;;  %p4981_p0 = scmp.ge.s32.totalorder %s6293_s15, 1  ;;  %s163_s17 = int_to_ptr.vmem [resolvable:$true] %s162_s17 }
   0x4   : > { %p136_p1 = scmp.lt.s32.totalorder %s6293_s15, 3  ;;  %p7989_p2 = scmp.eq.s32.totalorder %s6332_s18, 0 }
   0x5   : > { %s6296_s20 = smov [#allocation3]   ;;  %s6297_s23 = smov [#allocation7]  }
   0x6   : > { %p6337_p3 = pnand %p4981_p0, %p136_p1  ;;  %s148_s21 = sshll.u32 %s6296_s20, 4  ;;  %s149_s21 = int_to_ptr.vmem [resolvable:$true] %s148_s21 }
   0x7   : > { %s173_s24 = sshll.u32 %s6297_s23, 4  ;;  %s6212_s25 = scalar_lea.vmem %s163_s17, 16  ;;  %s6349_s24 = int_to_ptr.vmem [resolvable:$true] %s173_s24 }
   0x8   : > { %s8001_s19 = scalar_select %p6337_p3, 1, 0 }
   0x9   : > { %p6031_p4 = pneg %p6337_p3  ;;  %p6213_p7 = scmp.ne.s32.totalorder %s163_s17, %s6212_s25 }
   0xa   : > { %s6219_s26 = scalar_lea.vmem %s163_s17, 32  ;;  %p6220_p10 = scmp.lt.s32.totalorder %s163_s17, %s163_s17 }
   0xb   : > { %p6345_p5 = pnand %p7989_p2, %p6031_p4  ;;  %p6221_p11 = scmp.lt.s32.totalorder %s6219_s26, %s6212_s25 }
   0xd   : > { %p6203_p6 = pneg %p6345_p5  ;;  %p6222_p12 = por %p6221_p11, %p6220_p10 }
   0xf   : > { %p6215_p8 = pnand %p6213_p7, %p6203_p6 }
  0x11   : > { %p6216_p9 = pneg %p6215_p8 }
  0x13   : > { %p6223_p13 = pnand %p6222_p12, %p6216_p9 }
  0x15   : > { %6226 = shalt.err (!%p6223_p13)
}
  0x16   : > { %6037 = dma.hbm_to_vmem [thread:$0]  (!%p6345_p5), %s7986_s2, 16, %s163_s17, [#allocation6]  }
  0x17   : > { %s6238_s29 = scalar_lea.vmem %s149_s21, 9216  ;;  %p6246_p7 = scmp.lt.s32.totalorder %s149_s21, %s149_s21 }
  0x18   : > { %p6239_p0 = scmp.ne.s32.totalorder %s149_s21, %s6238_s29  ;;  %p6247_p8 = scmp.lt.s32.totalorder %s6238_s29, %s6238_s29 }
  0x1a   : > { %p6241_p1 = pnand %p6239_p0, %p6203_p6  ;;  %p6248_p2 = por %p6247_p8, %p6246_p7 }
  0x1c   : > { %p6242_p4 = pneg %p6241_p1 }
  0x1e   : > { %p6249_p3 = pnand %p6248_p2, %p6242_p4 }
  0x20   : > { %6252 = shalt.err (!%p6249_p3)
}
  0x21   : > { %s6298_s30 = smov 64   ;;  %s6299_s5 = smov 4  }
  0x22   : > { %6034 = dma.hbm_to_vmem [thread:$0]  (!%p6345_p5), %s7985_s1, 9216, %s149_s21, [#allocation4], %s6298_s30, %s6298_s30, %s6299_s5  }
  0x23   : > { %s6264_s8 = scalar_lea.vmem %s6349_s24, 16  ;;  %s6271_s9 = scalar_lea.vmem %s6349_s24, 32 }
  0x24   : > { %p6265_p9 = scmp.ne.s32.totalorder %s6349_s24, %s6264_s8  ;;  %p6272_p3 = scmp.lt.s32.totalorder %s6349_s24, %s6349_s24 }
  0x25   : > { %p6273_p11 = scmp.lt.s32.totalorder %s6271_s9, %s6264_s8 }
  0x26   : > { %p6267_p10 = pnand %p6265_p9, %p6203_p6 }
  0x27   : > { %p6274_p12 = por %p6273_p11, %p6272_p3 }
  0x28   : > { %p6268_p2 = pneg %p6267_p10 }
  0x2a   : > { %p6275_p13 = pnand %p6274_p12, %p6268_p2 }
  0x2c   : > { %6278 = shalt.err (!%p6275_p13)
}
  0x2d   : > { %6040 = dma.hbm_to_vmem [thread:$0]  (!%p6345_p5), %s7987_s3, 16, %s6349_s24, [#allocation6]  }
  0x2e   : > { %p8003_p0 = scmp.ne.s32.totalorder %s8001_s19, 0 }
  0x30   : > { %194 = sbr.rel (%p8003_p0) target bundleno = 681 (0x2a9), region = 36 }
  0x35   : > { %p8004_p6 = scmp.eq.s32.totalorder %s6332_s18, 0 }
  0x37   : > { %6284 = dma.done.wait (%p8004_p6), [#allocation4], 9216   ;;  %p8005_p1 = pmov %p8004_p6 }
  0x39   : > { %6286 = vsyncadd (%p8005_p1), [#allocation4], 4294958080  ;;  %p8006_p4 = pmov %p8005_p1 }
  0x3a   : > { %p8007_p7 = pmov %p8005_p1 }
  0x3b   : > { %6288 = dma.done.wait (%p8006_p4), [#allocation6], 32  }
  0x3c   : > { %6290 = vsyncadd (%p8007_p7), [#allocation6], 4294967264  ;;  %p228_p8 = scmp.lt.s32.totalorder %s6332_s18, 1  ;;  %v6300_v0 = vmov 0   ;;  %v6061_v1 = vld [vmem:[#allocation3 + $0x78] sm:$0xff]   ;;  %v6062_v2 = vld [vmem:[#allocation3 + $0x70] sm:$0xff]  }
  0x3d   : > { %255 = vst [vmem:[#allocation2 + $0x40] sm:$0xf] %v6300_v0  ;;  %256 = vst [vmem:[#allocation2 + $0x44] sm:$0xf] %v6300_v0  ;;  %vm362_vm0 = vsmask.f32 3328  ;;  %6003 = vmatprep.subr.bf16.mxu1 %v6061_v1  ;;  %5535 = vmatprep.subr.bf16.mxu0 %v6061_v1 }
  0x3e   : > { %257 = vst [vmem:[#allocation2 + $0x48] sm:$0xf] %v6300_v0  ;;  %258 = vst [vmem:[#allocation2 + $0x4c] sm:$0xf] %v6300_v0  ;;  %s8129_s18 = smov (!%p228_p8, %s6332_s18), 1  ;;  %6011 = vmatpush3.bf16.msra.mxu1 %v6061_v1  ;;  %5536 = vmatpush3.bf16.msra.mxu0 %v6061_v1  ;;  %v6063_v3 = vld [vmem:[#allocation3 + $0x68] sm:$0xff]  }
  0x3f   : > { %239 = vst [vmem:[#allocation2] sm:$0xf] %v6300_v0  ;;  %240 = vst [vmem:[#allocation2 + $0x4] sm:$0xf] %v6300_v0  ;;  %vm363_vm1 = vsmask.f32 7440  ;;  %6004 = vmatprep.subr.bf16.mxu1 %v6062_v2  ;;  %5537 = vmatprep.subr.bf16.mxu0 %v6062_v2 }
  0x40   : > { %241 = vst [vmem:[#allocation2 + $0x8] sm:$0xf] %v6300_v0  ;;  %242 = vst [vmem:[#allocation2 + $0xc] sm:$0xf] %v6300_v0  ;;  %s5240_s12 = sshll.u32 %s8129_s18, 7  ;;  %vm394_vm3 = vcmask 1043456  }
  0x41   : > { %243 = vst [vmem:[#allocation2 + $0x10] sm:$0xf] %v6300_v0  ;;  %244 = vst [vmem:[#allocation2 + $0x14] sm:$0xf] %v6300_v0  ;;  %vm402_vm2 = vsmask.f32 256  ;;  %s6405_s16 = scalar_lea.vmem %s7984_s0, %s5240_s12  ;;  %s7791_s20 = scalar_lea.vmem %s7988_s4, %s5240_s12 }
  0x42   : > { %245 = vst [vmem:[#allocation2 + $0x18] sm:$0xf] %v6300_v0  ;;  %246 = vst [vmem:[#allocation2 + $0x1c] sm:$0xf] %v6300_v0  ;;  %vm7992_vm4 = vcmask 1040384   ;;  %6012 = vmatpush3.bf16.msra.mxu1 %v6062_v2  ;;  %5538 = vmatpush3.bf16.msra.mxu0 %v6062_v2  ;;  %v6064_v4 = vld [vmem:[#allocation3 + $0x60] sm:$0xff]  }
  0x43   : > { %247 = vst [vmem:[#allocation2 + $0x20] sm:$0xf] %v6300_v0  ;;  %248 = vst [vmem:[#allocation2 + $0x24] sm:$0xf] %v6300_v0  ;;  %vm403_vm5 = vsmask.f32 4368  ;;  %6005 = vmatprep.subr.bf16.mxu1 %v6063_v3  ;;  %5539 = vmatprep.subr.bf16.mxu0 %v6063_v3 }
  0x44   : > { %249 = vst [vmem:[#allocation2 + $0x28] sm:$0xf] %v6300_v0  ;;  %250 = vst [vmem:[#allocation2 + $0x2c] sm:$0xf] %v6300_v0  ;;  %vm425_vm6 = vsmask.f32 7938 }
  0x45   : > { %251 = vst [vmem:[#allocation2 + $0x30] sm:$0xf] %v6300_v0  ;;  %252 = vst [vmem:[#allocation2 + $0x34] sm:$0xf] %v6300_v0  ;;  %v5004_v5 = vld [vmem:[%s6405_s16 + $0x30] sm:$0xf] }
  0x46   : > { %253 = vst [vmem:[#allocation2 + $0x38] sm:$0xf] %v6300_v0  ;;  %254 = vst [vmem:[#allocation2 + $0x3c] sm:$0xf] %v6300_v0  ;;  %v5005_v6 = vld [vmem:[%s6405_s16 + $0x34] sm:$0xf]  ;;  %6013 = vmatpush3.bf16.msra.mxu1 %v6063_v3  ;;  %5540 = vmatpush3.bf16.msra.mxu0 %v6063_v3 }
  0x47   : > { %259 = vst [vmem:[#allocation2 + $0x50] sm:$0xf] %v6300_v0  ;;  %260 = vst [vmem:[#allocation2 + $0x54] sm:$0xf] %v6300_v0  ;;  %vm307_vm7 = vcmask 1043457   ;;  %v504_v7 = vshll.u32 %v5004_v5, 16  ;;  %6006 = vmatprep.subr.bf16.mxu1 %v6064_v4  ;;  %5541 = vmatprep.subr.bf16.mxu0 %v6064_v4 }
  0x48   : > { %261 = vst [vmem:[#allocation2 + $0x58] sm:$0xf] %v6300_v0  ;;  %262 = vst [vmem:[#allocation2 + $0x5c] sm:$0xf] %v6300_v0  ;;  %v507_v8 = vshrl.u32 %v5004_v5, 16  ;;  %v513_v9 = vshll.u32 %v5005_v6, 16 }
  0x49   : > { %263 = vst [vmem:[#allocation2 + $0x60] sm:$0xf] %v6300_v0  ;;  %264 = vst [vmem:[#allocation2 + $0x64] sm:$0xf] %v6300_v0  ;;  %v517_v10 = vshrl.u32 %v5005_v6, 16  ;;  %v6417_v16 = vrot.slane %v504_v7, 5 }
  0x4a   : > { %265 = vst [vmem:[#allocation2 + $0x68] sm:$0xf] %v6300_v0  ;;  %266 = vst [vmem:[#allocation2 + $0x6c] sm:$0xf] %v6300_v0  ;;  %v5006_v11 = vld [vmem:[%s6405_s16 + $0x38] sm:$0xf]  ;;  %6014 = vmatpush3.bf16.msra.mxu1 %v6064_v4  ;;  %5542 = vmatpush3.bf16.msra.mxu0 %v6064_v4 }
  0x4b   : > { %267 = vst [vmem:[#allocation2 + $0x70] sm:$0xf] %v6300_v0  ;;  %268 = vst [vmem:[#allocation2 + $0x74] sm:$0xf] %v6300_v0  ;;  %vm282_vm8 = vsmask.f32 1280 }
  0x4c   : > { %269 = vst [vmem:[#allocation2 + $0x78] sm:$0xf] %v6300_v0  ;;  %270 = vst [vmem:[#allocation2 + $0x7c] sm:$0xf] %v6300_v0  ;;  %vm283_vm9 = vsmask.f32 5392 }
  0x4d   : > { %271 = vst [vmem:[#allocation2 + $0x80] sm:$0xf] %v6300_v0  ;;  %272 = vst [vmem:[#allocation2 + $0x84] sm:$0xf] %v6300_v0  ;;  %v5007_v12 = vld [vmem:[%s6405_s16 + $0x3c] sm:$0xf] }
  0x4e   : > { %273 = vst [vmem:[#allocation2 + $0x88] sm:$0xf] %v6300_v0  ;;  %274 = vst [vmem:[#allocation2 + $0x8c] sm:$0xf] %v6300_v0  ;;  %v536_v13 = vshrl.u32 %v5006_v11, 16  ;;  %v539_v14 = vshll.u32 %v5006_v11, 16 }
  0x4f   : > { %275 = vst [vmem:[#allocation2 + $0x90] sm:$0xf] %v6300_v0  ;;  %276 = vst [vmem:[#allocation2 + $0x94] sm:$0xf] %v6300_v0  ;;  %vm308_vm10 = vsmask.f32 7942 }
  0x50   : > { %277 = vst [vmem:[#allocation2 + $0x98] sm:$0xf] %v6300_v0  ;;  %278 = vst [vmem:[#allocation2 + $0x9c] sm:$0xf] %v6300_v0  ;;  %v509_v17 = vrot.slane %v507_v8, 4  ;;  %v515_v18 = vrot.slane %v513_v9, 5 }
  0x51   : > { %279 = vst [vmem:[#allocation2 + $0xa0] sm:$0xf] %v6300_v0  ;;  %vm6413_vm11 = vmor %vm362_vm0, %vm363_vm1  ;;  %v519_v19 = vrot.slane %v517_v10, 4  ;;  %v555_v20 = vld [vmem:[#allocation2 + $0x48] sm:$0xf]  ;;  %v6065_v21 = vld [vmem:[#allocation3 + $0x58] sm:$0xff]  }
  0x52   : > { %vm6421_vm12 = vmand %vm394_vm3, %vm362_vm0  ;;  %v529_v23 = vld [vmem:[#allocation2 + $0x44] sm:$0xf]  ;;  %v538_v24 = vrot.slane %v536_v13, 7  ;;  %v544_v25 = vshrl.u32 %v5007_v12, 16  ;;  %v547_v26 = vshll.u32 %v5007_v12, 16  ;;  %vm7991_vm13 = vcmask 1041408   ;;  %6007 = vmatprep.subr.bf16.mxu1 %v6065_v21  ;;  %5543 = vmatprep.subr.bf16.mxu0 %v6065_v21 }
  0x53   : > { %v5008_v27 = vld [vmem:[%s6405_s16 + $0x40] sm:$0xf]  ;;  %vm6428_vm14 = vmand %vm394_vm3, %vm425_vm6  ;;  %v510_v29 = vor.u32 %v509_v17, %v6417_v16  ;;  %v520_v30 = vor.u32 %v519_v19, %v515_v18  ;;  %v559_v31 = vld [vmem:[#allocation2 + $0x50] sm:$0x1]  ;;  %vm347_vm15 = vcmask 1043458   ;;  %6015 = vmatpush3.bf16.msra.mxu1 %v6065_v21  ;;  %5544 = vmatpush3.bf16.msra.mxu0 %v6065_v21 }
  0x54   : > { %v5009_v32 = vld [vmem:[%s6405_s16 + $0x44] sm:$0xf]  ;;  %v566_v33 = vshrl.u32 %v5008_v27, 16  ;;  %v569_v34 = vshll.u32 %v5008_v27, 16  ;;  %vm348_vm0 = vsmask.f32 7946  ;;  %vm6438_vm1 = vmor %vm402_vm2, %vm403_vm5  ;;  %v541_v37 = vor.u32 %v539_v14, %v538_v24 }
  0x55   : > { %v6434_v35 = vld [vmem:[#allocation3 + $0x50] sm:$0xff]   ;;  %v542_v38 = vrot.slane %v538_v24, 4  ;;  %v546_v39 = vrot.slane %v544_v25, 7  ;;  %v575_v40 = vshrl.u32 %v5009_v32, 16  ;;  %v587_v41 = vld [vmem:[#allocation2 + $0x50] sm:$0xe]  ;;  %vm6444_vm3 = vmand %vm7992_vm4, %vm402_vm2 }
  0x56   : > { %v511_v43 = vrot.slane %v510_v29, 4  ;;  %v521_v44 = vrot.slane %v520_v30, 4  ;;  %v568_v45 = vrot.slane %v566_v33, 6  ;;  %v571_v46 = vrot.slane %v569_v34, 7  ;;  %vm6452_vm5 = vmand %vm307_vm7, %vm308_vm10  ;;  %v280_v52 = vld [vmem:[%s6405_s16] sm:$0xf]  ;;  %6008 = vmatprep.subr.bf16.mxu1 %v6434_v35  ;;  %5545 = vmatprep.subr.bf16.mxu0 %v6434_v35 }
  0x57   : > { %v549_v47 = vor.u32 %v547_v26, %v546_v39  ;;  %v556_v48 = vsel %vm6428_vm14, %v541_v37, %v555_v20  ;;  %v551_v50 = vrot.slane %v546_v39, 4  ;;  %v577_v51 = vrot.slane %v575_v40, 6  ;;  %v281_v53 = vld [vmem:[%s6405_s16 + $0x4] sm:$0xf]  ;;  %v814_v58 = vld [vmem:[#allocation2] sm:$0xf]  ;;  %vm6473_vm7 = vmor %vm282_vm8, %vm283_vm9  ;;  %6016 = vmatpush3.bf16.msra.mxu1 %v6434_v35  ;;  %5546 = vmatpush3.bf16.msra.mxu0 %v6434_v35 }
  0x58   : > { %v516_v54 = vsel %vm6413_vm11, %v511_v43, %v515_v18  ;;  %v530_v55 = vsel %vm6421_vm12, %v521_v44, %v529_v23  ;;  %557 = vst [vmem:[#allocation2 + $0x48] sm:$0xf] %v556_v48  ;;  %v572_v56 = vor.u32 %v571_v46, %v568_v45  ;;  %v578_v57 = vshll.u32 %v5009_v32, 16  ;;  %v815_v63 = vld [vmem:[#allocation2 + $0x4] sm:$0xf]  ;;  %v6067_v5 = vld [vmem:[#allocation3 + $0x48] sm:$0xff]   ;;  %vm6490_vm9 = vmand %vm7991_vm13, %vm282_vm8 }
  0x59   : > { %528 = vst [vmem:[#allocation2 + $0x40] sm:$0xf] %v516_v54  ;;  %531 = vst [vmem:[#allocation2 + $0x44] sm:$0xf] %v530_v55  ;;  %v550_v59 = vsel %vm6438_vm1, %v542_v38, %v549_v47  ;;  %v560_v60 = vsel %vm6444_vm3, %v551_v50, %v559_v31  ;;  %v286_v61 = vshrl.u32 %v280_v52, 16  ;;  %v289_v62 = vshll.u32 %v280_v52, 16  ;;  %6009 = vmatprep.subr.bf16.mxu1 %v6067_v5 }
  0x5a   : > { %vm322_vm2 = vsmask.f32 2304  ;;  %vm323_vm6 = vsmask.f32 6416  ;;  %558 = vst [vmem:[#allocation2 + $0x4c] sm:$0xf] %v550_v59  ;;  %v588_v2 = vsel %vm6452_vm5, %v572_v56, %v587_v41  ;;  %v6477_v10 = vcombine.low %v814_v58, %v815_v63  ;;  %5547 = vmatprep.subr.bf16.mxu0 %v6067_v5  ;;  %vm6499_vm8 = vmand %vm347_vm15, %vm348_vm0 }
  0x5b   : > { %561 = vst [vmem:[#allocation2 + $0x50] sm:$0x1] %v560_v60  ;;  %v573_v0 = vrot.slane %v572_v56, 4  ;;  %v580_v1 = vrot.slane %v578_v57, 7  ;;  %v295_v3 = vshrl.u32 %v281_v53, 16  ;;  %v288_v7 = vrot.slane %v286_v61, 6  ;;  %6017 = vmatpush3.bf16.msra.mxu1 %v6067_v5  ;;  %5548 = vmatpush3.bf16.msra.mxu0 %v6067_v5  ;;  %vm6517_vm15 = vmor %vm322_vm2, %vm323_vm6 }
  0x5c   : > { %v4994_v4 = vld [vmem:[%s6405_s16 + $0x8] sm:$0xf]  ;;  %589 = vst [vmem:[#allocation2 + $0x50] sm:$0xe] %v588_v2  ;;  %v291_v8 = vrot.slane %v289_v62, 7  ;;  %v298_v9 = vshll.u32 %v281_v53, 16 }
  0x5d   : > { %v4995_v11 = vld [vmem:[%s6405_s16 + $0xc] sm:$0xf]  ;;  %v6480_v12 = vor.u32 %v580_v1, %v577_v51  ;;  %v297_v13 = vrot.slane %v295_v3, 6  ;;  %v310_v14 = vld [vmem:[#allocation2 + $0x8] sm:$0xe]  ;;  %v326_v17 = vshrl.u32 %v4994_v4, 16 }
  0x5e   : > { %v329_v18 = vshll.u32 %v4994_v4, 16  ;;  %v292_v19 = vor.u32 %v291_v8, %v288_v7  ;;  %v300_v20 = vrot.slane %v298_v9, 7  ;;  %v981_v21 = vshll.u32 %v6477_v10, 16  ;;  %v350_v23 = vld [vmem:[#allocation2 + $0x10] sm:$0xc]  ;;  %v6068_v24 = vld [vmem:[#allocation3 + $0x40] sm:$0xff]  }
  0x5f   : > { %v582_v25 = vsel %vm6473_vm7, %v573_v0, %v6480_v12  ;;  %v316_v27 = vld [vmem:[#allocation2 + $0x10] sm:$0x3]  ;;  %v328_v29 = vrot.slane %v326_v17, 5  ;;  %v335_v31 = vshrl.u32 %v4995_v11, 16  ;;  %v979_v35 = vshrl.u32 %v6477_v10, 16  ;;  %v6505_v50 = vld [vmem:[#allocation3 + $0x38] sm:$0xff]   ;;  %6010 = vmatprep.subr.bf16.mxu1 %v6068_v24  ;;  %5549 = vmatprep.subr.bf16.mxu0 %v6068_v24 }
  0x60   : > { %v331_v30 = vrot.slane %v329_v18, 6  ;;  %590 = vst [vmem:[#allocation2 + $0x54] sm:$0xf] %v582_v25  ;;  %v293_v32 = vrot.slane %v292_v19, 4  ;;  %v301_v33 = vor.u32 %v300_v20, %v297_v13  ;;  %v311_v34 = vsel %vm6452_vm5, %v292_v19, %v310_v14  ;;  %v6069_v38 = vld [vmem:[#allocation2 + $0x40] sm:$0xff]   ;;  %6018 = vmatpush3.bf16.msra.mxu1 %v6068_v24  ;;  %5550 = vmatpush3.bf16.msra.mxu0 %v6068_v24 }
  0x61   : > { %vm354_vm13 = vcmask 1042432   ;;  %312 = vst [vmem:[#allocation2 + $0x8] sm:$0xe] %v311_v34  ;;  %v983_v39 = vrot.slane %v981_v21, 1  ;;  %vm387_vm4 = vcmask 1043459   ;;  %v6070_v41 = vld [vmem:[#allocation2 + $0x48] sm:$0xff]   ;;  %5587 = vmatprep.subr.bf16.mxu1 %v6505_v50 }
  0x62   : > { %v332_v40 = vor.u32 %v331_v30, %v328_v29  ;;  %vm388_vm10 = vsmask.f32 7950  ;;  %v302_v43 = vsel %vm6473_vm7, %v293_v32, %v301_v33  ;;  %v303_v44 = vrot.slane %v301_v33, 4  ;;  %v6511_v57 = vld [vmem:[#allocation3 + $0xb8] sm:$0xff]   ;;  %v591_v61 = vld [vmem:[#allocation2 + $0x58] sm:$0x3]  ;;  %vm6547_vm6 = vmand %vm354_vm13, %vm322_vm2 }
  0x63   : > { %v337_v45 = vrot.slane %v335_v31, 5  ;;  %v338_v46 = vshll.u32 %v4995_v11, 16  ;;  %v1042_v47 = vshll.u32 %v6069_v38, 16  ;;  %v1046_v48 = vshrl.u32 %v6069_v38, 16  ;;  %313 = vst [vmem:[#allocation2 + $0xc] sm:$0xf] %v302_v43  ;;  %5639 = vmatprep.subr.bf16.mxu0 %v6511_v57 }
  0x64   : > { %v333_v51 = vrot.slane %v332_v40, 4  ;;  %v351_v52 = vsel %vm6499_vm8, %v332_v40, %v350_v23  ;;  %v1050_v53 = vshll.u32 %v6070_v41, 16  ;;  %v1054_v54 = vshrl.u32 %v6070_v41, 16  ;;  %v5010_v62 = vld [vmem:[%s6405_s16 + $0x48] sm:$0xf] }
  0x65   : > { %v317_v55 = vsel %vm6490_vm9, %v303_v44, %v316_v27  ;;  %v340_v56 = vrot.slane %v338_v46, 6  ;;  %352 = vst [vmem:[#allocation2 + $0x10] sm:$0xc] %v351_v52  ;;  %v6513_v58 = vrot.slane %v1042_v47, 1  ;;  %v583_v60 = vrot.slane %v6480_v12, 4 }
  0x66   : > { %318 = vst [vmem:[#allocation2 + $0x10] sm:$0x3] %v317_v55  ;;  %v1052_v63 = vrot.slane %v1050_v53, 1  ;;  %v5011_v1 = vld [vmem:[%s6405_s16 + $0x4c] sm:$0xf]  ;;  %v598_v2 = vshrl.u32 %v5010_v62, 16  ;;  %v984_v24 = vor.u32 %v983_v39, %v979_v35 }
  0x67   : > { %v6523_v0 = vor.u32 %v340_v56, %v337_v45  ;;  %v601_v3 = vshll.u32 %v5010_v62, 16  ;;  %v1048_v4 = vor.u32 %v1046_v48, %v6513_v58  ;;  %v6527_v5 = vld [vmem:[#allocation2 + $0x50] sm:$0xff]   ;;  %v592_v7 = vsel %vm6490_vm9, %v583_v60, %v591_v61  ;;  %v619_v21 = vld [vmem:[#allocation2 + $0x58] sm:$0xc]  ;;  %v623_v27 = vld [vmem:[#allocation2 + $0x60] sm:$0x7] }
  0x68   : > { %v607_v8 = vshrl.u32 %v5011_v1, 16  ;;  %v610_v9 = vshll.u32 %v5011_v1, 16  ;;  %v1056_v11 = vor.u32 %v1054_v54, %v1052_v63  ;;  %593 = vst [vmem:[#allocation2 + $0x58] sm:$0x3] %v592_v7  ;;  %v600_v13 = vrot.slane %v598_v2, 5  ;;  %v6076_v35 = vld [vmem:[#allocation3 + $0x30] sm:$0xff]  }
  0x69   : > { %v342_v12 = vsel %vm6517_vm15, %v333_v51, %v6523_v0  ;;  %v603_v14 = vrot.slane %v601_v3, 6  ;;  %vm8028_vm0 = vsmask.f32 7424  ;;  %v1058_v18 = vshll.u32 %v6527_v5, 16  ;;  %v5012_v29 = vld [vmem:[%s6405_s16 + $0x50] sm:$0xf] }
  0x6a   : > { %v1053_v17 = vsel %vm8028_vm0, %v1048_v4, %v1052_v63  ;;  %353 = vst [vmem:[#allocation2 + $0x14] sm:$0xf] %v342_v12  ;;  %v609_v19 = vrot.slane %v607_v8, 5  ;;  %v612_v20 = vrot.slane %v610_v9, 6  ;;  %v6538_v23 = vld [vmem:[#allocation2 + $0x8] sm:$0xff]   ;;  %v630_v34 = vshll.u32 %v5012_v29, 16  ;;  %vm6558_vm0 = vmand %vm387_vm4, %vm388_vm10 }
  0x6b   : > { %5567 = vmatprep.mubr.bf16.mxu1 %v1053_v17  ;;  %v604_v25 = vor.u32 %v603_v14, %v600_v13  ;;  %v6543_v30 = vrot.slane %v1058_v18, 1  ;;  %v5013_v33 = vld [vmem:[%s6405_s16 + $0x54] sm:$0xf]  ;;  %v633_v38 = vshrl.u32 %v5012_v29, 16  ;;  %v986_v40 = vshll.u32 %v6538_v23, 16  ;;  %v6081_v55 = vld [vmem:[#allocation3 + $0x28] sm:$0xff]  }
  0x6c   : > { %v613_v31 = vor.u32 %v612_v20, %v609_v19  ;;  %v990_v41 = vshrl.u32 %v6538_v23, 16  ;;  %vm8033_vm2 = vsmask.f32 7424  ;;  %v632_v47 = vrot.slane %v630_v34, 5  ;;  %v651_v48 = vld [vmem:[#allocation2 + $0x60] sm:$0x8] }
  0x6d   : > { %v605_v39 = vrot.slane %v604_v25, 4  ;;  %v620_v43 = vsel %vm6499_vm8, %v604_v25, %v619_v21  ;;  %v1061_v45 = vsel %vm8033_vm2, %v1056_v11, %v6543_v30  ;;  %v988_v51 = vrot.slane %v986_v40, 1  ;;  %vm8034_vm4 = vmmov %vm8033_vm2  ;;  %v356_v3 = vld [vmem:[#allocation2 + $0x18] sm:$0x7]  ;;  %v4996_v9 = vld [vmem:[%s6405_s16 + $0x10] sm:$0xf] }
  0x6e   : > { %621 = vst [vmem:[#allocation2 + $0x58] sm:$0xc] %v620_v43  ;;  %v615_v46 = vrot.slane %v613_v31, 4  ;;  %5568 = vmatmul.mubr.bf16.vlgmr.msra.gmra.mxu1 %v1061_v45  ;;  %v635_v53 = vrot.slane %v633_v38, 4  ;;  %v639_v54 = vshll.u32 %v5013_v33, 16  ;;  %v643_v60 = vshrl.u32 %v5013_v33, 16  ;;  %vm8035_vm10 = vmmov %vm8033_vm2 }
  0x6f   : > { %v614_v52 = vsel %vm6517_vm15, %v605_v39, %v613_v31  ;;  %5588 = vmatpush3.bf16.msra.mxu1 %v6505_v50  ;;  %v652_v61 = vsel %vm6558_vm0, %v632_v47, %v651_v48  ;;  %v343_v62 = vrot.slane %v6523_v0, 4  ;;  %v989_v63 = vsel %vm8034_vm4, %v984_v24, %v988_v51  ;;  %v4997_v11 = vld [vmem:[%s6405_s16 + $0x14] sm:$0xf]  ;;  %v390_v21 = vld [vmem:[#allocation2 + $0x18] sm:$0x8]  ;;  %v6086_v31 = vld [vmem:[#allocation3 + $0x20] sm:$0xff]  }
  0x70   : > { %622 = vst [vmem:[#allocation2 + $0x5c] sm:$0xf] %v614_v52  ;;  %v624_v56 = vsel %vm6547_vm6, %v615_v46, %v623_v27  ;;  %5589 = vmatprep.subr.bf16.mxu1 %v6076_v35  ;;  %v636_v2 = vor.u32 %v635_v53, %v632_v47  ;;  %v641_v50 = vrot.slane %v639_v54, 5  ;;  %653 = vst [vmem:[#allocation2 + $0x60] sm:$0x8] %v652_v61  ;;  %5551 = vmatprep.mubr.bf16.mxu0 %v989_v63  ;;  %v6080_v33 = vld [vmem:[#allocation3 + $0xb0] sm:$0xff]  }
  0x71   : > { %v6573_v1 = vld [vmem:[#allocation2 + $0x10] sm:$0xff]   ;;  %625 = vst [vmem:[#allocation2 + $0x60] sm:$0x7] %v624_v56  ;;  %v992_v4 = vor.u32 %v990_v41, %v988_v51  ;;  %v645_v7 = vrot.slane %v643_v60, 4  ;;  %v357_v8 = vsel %vm6547_vm6, %v343_v62, %v356_v3  ;;  %v366_v13 = vshll.u32 %v4996_v9, 16  ;;  %v6090_v60 = vld [vmem:[#allocation3 + $0x18] sm:$0xff]   ;;  %vm8036_vm4 = vmmov %vm8033_vm2 }
  0x72   : > { %v994_v0 = vshll.u32 %v6573_v1, 16  ;;  %v637_v12 = vrot.slane %v636_v2, 4  ;;  %358 = vst [vmem:[#allocation2 + $0x18] sm:$0x7] %v357_v8  ;;  %v369_v14 = vshrl.u32 %v4996_v9, 16  ;;  %v1062_v17 = vshrl.u32 %v6527_v5, 16 }
  0x73   : > { %5590 = vmatpush3.bf16.msra.mxu1 %v6076_v35  ;;  %v646_v18 = vor.u32 %v645_v7, %v641_v50  ;;  %v375_v19 = vshll.u32 %v4997_v11, 16  ;;  %v379_v20 = vshrl.u32 %v4997_v11, 16  ;;  %v368_v27 = vrot.slane %v366_v13, 5  ;;  %v4998_v40 = vld [vmem:[%s6405_s16 + $0x18] sm:$0xf]  ;;  %v6084_v63 = vld [vmem:[#allocation3 + $0xa8] sm:$0xff]  }
  0x74   : > { %v6581_v24 = vrot.slane %v994_v0, 1  ;;  %v642_v25 = vsel %vm6413_vm11, %v637_v12, %v641_v50  ;;  %5591 = vmatprep.subr.bf16.mxu1 %v6081_v55  ;;  %v371_v29 = vrot.slane %v369_v14, 4  ;;  %v396_v43 = vld [vmem:[#allocation2 + $0x20] sm:$0xf]  ;;  %v406_v46 = vshrl.u32 %v4998_v40, 16  ;;  %v6088_v11 = vld [vmem:[#allocation3 + $0xa0] sm:$0xff]  }
  0x75   : > { %654 = vst [vmem:[#allocation2 + $0x64] sm:$0xf] %v642_v25  ;;  %v377_v34 = vrot.slane %v375_v19, 5  ;;  %v381_v38 = vrot.slane %v379_v20, 4  ;;  %v391_v39 = vsel %vm6558_vm0, %v368_v27, %v390_v21  ;;  %v409_v47 = vshll.u32 %v4998_v40, 16 }
  0x76   : > { %v997_v5 = vsel %vm8035_vm10, %v992_v4, %v6581_v24  ;;  %v372_v35 = vor.u32 %v371_v29, %v368_v27  ;;  %392 = vst [vmem:[#allocation2 + $0x18] sm:$0x8] %v391_v39  ;;  %v1064_v48 = vor.u32 %v1062_v17, %v6543_v30  ;;  %v427_v53 = vld [vmem:[#allocation2 + $0x24] sm:$0xf]  ;;  %v647_v54 = vrot.slane %v646_v18, 4  ;;  %v6095_v17 = vld [vmem:[#allocation3 + $0x10] sm:$0xff]   ;;  %vm8037_vm10 = vmmov %vm8033_vm2 }
  0x77   : > { %v6588_v41 = vld [vmem:[#allocation2 + $0x58] sm:$0xff]   ;;  %5552 = vmatmul.mubr.bf16.vlgmr.msra.gmra.mxu0 %v997_v5  ;;  %5592 = vmatpush3.bf16.msra.mxu1 %v6081_v55  ;;  %v382_v45 = vor.u32 %v381_v38, %v377_v34  ;;  %v655_v56 = vld [vmem:[#allocation2 + $0x68] sm:$0xf]  ;;  %v6596_v62 = vrot.slane %v406_v46, 7  ;;  %v998_v18 = vshrl.u32 %v6573_v1, 16  ;;  %v1635_v15 = vrot.slane %v6538_v23, 1 }
  0x78   : > { %5640 = vmatpush3.bf16.msra.mxu0 %v6511_v57  ;;  %v1066_v51 = vshll.u32 %v6588_v41, 16  ;;  %v373_v52 = vrot.slane %v372_v35, 4  ;;  %5593 = vmatprep.subr.bf16.mxu1 %v6086_v31  ;;  %v1070_v55 = vshrl.u32 %v6588_v41, 16  ;;  %v5014_v2 = vld [vmem:[%s6405_s16 + $0x58] sm:$0xf]  ;;  %v656_v50 = vsel %vm6421_vm12, %v647_v54, %v655_v56  ;;  %v6092_v39 = vld [vmem:[#allocation3 + $0x98] sm:$0xff]  }
  0x79   : > { %5641 = vmatprep.subr.bf16.mxu0 %v6080_v33  ;;  %v383_v61 = vrot.slane %v382_v45, 4  ;;  %v662_v3 = vshrl.u32 %v5014_v2, 16  ;;  %v411_v7 = vor.u32 %v409_v47, %v6596_v62  ;;  %657 = vst [vmem:[#allocation2 + $0x68] sm:$0xf] %v656_v50  ;;  %v665_v8 = vshll.u32 %v5014_v2, 16  ;;  %v6099_v56 = vld [vmem:[#allocation3 + $0x8] sm:$0xff]  }
  0x7a   : > { %v1068_v57 = vrot.slane %v1066_v51, 1  ;;  %v378_v30 = vsel %vm6413_vm11, %v373_v52, %v377_v34  ;;  %v5015_v9 = vld [vmem:[%s6405_s16 + $0x5c] sm:$0xf]  ;;  %v681_v20 = vld [vmem:[#allocation2 + $0x6c] sm:$0xf]  ;;  %v412_v34 = vrot.slane %v6596_v62, 4 }
  0x7b   : > { %393 = vst [vmem:[#allocation2 + $0x1c] sm:$0xf] %v378_v30  ;;  %v397_v4 = vsel %vm6421_vm12, %v383_v61, %v396_v43  ;;  %5594 = vmatpush3.bf16.msra.mxu1 %v6086_v31  ;;  %v664_v13 = vrot.slane %v662_v3, 7  ;;  %v670_v14 = vshrl.u32 %v5015_v9, 16  ;;  %v428_v19 = vsel %vm6428_vm14, %v411_v7, %v427_v53  ;;  %v5016_v25 = vld [vmem:[%s6405_s16 + $0x60] sm:$0xf] }
  0x7c   : > { %v1069_v0 = vsel %vm8033_vm2, %v1064_v48, %v1068_v57  ;;  %v6608_v12 = vld [vmem:[#allocation2 + $0x60] sm:$0xff]   ;;  %5642 = vmatpush3.bf16.msra.mxu0 %v6080_v33  ;;  %398 = vst [vmem:[#allocation2 + $0x20] sm:$0xf] %v397_v4  ;;  %5595 = vmatprep.subr.bf16.mxu1 %v6090_v60  ;;  %v673_v21 = vshll.u32 %v5015_v9, 16  ;;  %v1072_v27 = vor.u32 %v1070_v55, %v1068_v57  ;;  %429 = vst [vmem:[#allocation2 + $0x24] sm:$0xf] %v428_v19 }
  0x7d   : > { %5571 = vmatprep.mubr.bf16.mxu1 %v1069_v0  ;;  %5643 = vmatprep.subr.bf16.mxu0 %v6084_v63  ;;  %v1074_v29 = vshll.u32 %v6608_v12, 16  ;;  %v667_v31 = vor.u32 %v665_v8, %v664_v13  ;;  %v685_v33 = vld [vmem:[#allocation2 + $0x74] sm:$0x1]  ;;  %v668_v38 = vrot.slane %v664_v13, 4  ;;  %v672_v40 = vrot.slane %v670_v14, 7 }
  0x7e   : > { %v692_v5 = vshrl.u32 %v5016_v25, 16  ;;  %v695_v35 = vshll.u32 %v5016_v25, 16  ;;  %v1078_v46 = vshrl.u32 %v6608_v12, 16  ;;  %v4999_v47 = vld [vmem:[%s6405_s16 + $0x1c] sm:$0xf]  ;;  %v1000_v61 = vor.u32 %v998_v18, %v6581_v24  ;;  %v6096_v3 = vld [vmem:[#allocation3 + $0x90] sm:$0xff]  }
  0x7f   : > { %5596 = vmatpush3.bf16.msra.mxu1 %v6090_v60  ;;  %v1076_v43 = vrot.slane %v1074_v29, 1  ;;  %v682_v45 = vsel %vm6428_vm14, %v667_v31, %v681_v20  ;;  %v675_v48 = vor.u32 %v673_v21, %v672_v40  ;;  %v677_v51 = vrot.slane %v672_v40, 4  ;;  %v713_v54 = vld [vmem:[#allocation2 + $0x74] sm:$0xe]  ;;  %v5000_v50 = vld [vmem:[%s6405_s16 + $0x20] sm:$0xf] }
  0x80   : > { %5644 = vmatpush3.bf16.msra.mxu0 %v6084_v63  ;;  %5597 = vmatprep.subr.bf16.mxu1 %v6095_v17  ;;  %683 = vst [vmem:[#allocation2 + $0x6c] sm:$0xf] %v682_v45  ;;  %v694_v52 = vrot.slane %v692_v5, 6  ;;  %v697_v53 = vrot.slane %v695_v35, 7  ;;  %v414_v62 = vshrl.u32 %v4999_v47, 16  ;;  %v417_v30 = vshll.u32 %v4999_v47, 16 }
  0x81   : > { %5645 = vmatprep.subr.bf16.mxu0 %v6088_v11  ;;  %v1077_v60 = vsel %vm8036_vm4, %v1072_v27, %v1076_v43  ;;  %v676_v63 = vsel %vm6438_vm1, %v668_v38, %v675_v48  ;;  %v686_v2 = vsel %vm6444_vm3, %v677_v51, %v685_v33  ;;  %v433_v8 = vld [vmem:[#allocation2 + $0x2c] sm:$0x1]  ;;  %v440_v9 = vshrl.u32 %v5000_v50, 16  ;;  %v5001_v29 = vld [vmem:[%s6405_s16 + $0x24] sm:$0xf]  ;;  %vm8038_vm4 = vmmov %vm8033_vm2 }
  0x82   : > { %v6621_v55 = vld [vmem:[#allocation2 + $0x18] sm:$0xff]   ;;  %5572 = vmatmul.mubr.bf16.gmra.mxu1 %v1077_v60  ;;  %v6628_v57 = vor.u32 %v697_v53, %v694_v52  ;;  %684 = vst [vmem:[#allocation2 + $0x70] sm:$0xf] %v676_v63  ;;  %687 = vst [vmem:[#allocation2 + $0x74] sm:$0x1] %v686_v2  ;;  %v416_v24 = vrot.slane %v414_v62, 7  ;;  %v1080_v25 = vor.u32 %v1078_v46, %v1076_v43 }
  0x83   : > { %v1002_v4 = vshll.u32 %v6621_v55, 16  ;;  %v1006_v7 = vshrl.u32 %v6621_v55, 16  ;;  %5598 = vmatpush3.bf16.msra.mxu1 %v6095_v17  ;;  %v6633_v0 = vld [vmem:[#allocation2 + $0x20] sm:$0xff]   ;;  %v443_v14 = vshll.u32 %v5000_v50, 16  ;;  %v442_v21 = vrot.slane %v440_v9, 6  ;;  %v6098_v60 = vld [vmem:[#allocation3 + $0x88] sm:$0xff]  }
  0x84   : > { %5646 = vmatpush3.bf16.msra.mxu0 %v6088_v11  ;;  %v714_v13 = vsel %vm6452_vm5, %v6628_v57, %v713_v54  ;;  %5599 = vmatprep.subr.bf16.mxu1 %v6099_v56  ;;  %v419_v19 = vor.u32 %v417_v30, %v416_v24  ;;  %v421_v20 = vrot.slane %v416_v24, 4  ;;  %v1010_v11 = vshll.u32 %v6633_v0, 16  ;;  %v6103_v31 = vld [vmem:[#allocation3] sm:$0xff]   ;;  %v461_v45 = vld [vmem:[#allocation2 + $0x2c] sm:$0xe] }
  0x85   : > { %5647 = vmatprep.subr.bf16.mxu0 %v6092_v39  ;;  %v1004_v18 = vrot.slane %v1002_v4, 1  ;;  %715 = vst [vmem:[#allocation2 + $0x74] sm:$0xe] %v714_v13  ;;  %v445_v27 = vrot.slane %v443_v14, 7  ;;  %v1014_v17 = vshrl.u32 %v6633_v0, 16  ;;  %v449_v47 = vshrl.u32 %v5001_v29, 16 }
  0x86   : > { %v420_v5 = vsel %vm6438_vm1, %v412_v34, %v419_v19  ;;  %v434_v35 = vsel %vm6444_vm3, %v421_v20, %v433_v8  ;;  %v6648_v43 = vrot.slane %v1010_v11, 1  ;;  %v452_v48 = vshll.u32 %v5001_v29, 16  ;;  %v5002_v51 = vld [vmem:[%s6405_s16 + $0x28] sm:$0xf]  ;;  %v5017_v8 = vld [vmem:[%s6405_s16 + $0x64] sm:$0xf] }
  0x87   : > { %v1005_v33 = vsel %vm8037_vm10, %v1000_v61, %v1004_v18  ;;  %v1008_v38 = vor.u32 %v1006_v7, %v1004_v18  ;;  %v6642_v40 = vld [vmem:[#allocation2 + $0x68] sm:$0xff]   ;;  %430 = vst [vmem:[#allocation2 + $0x28] sm:$0xf] %v420_v5  ;;  %435 = vst [vmem:[#allocation2 + $0x2c] sm:$0x1] %v434_v35  ;;  %v446_v46 = vor.u32 %v445_v27, %v442_v21  ;;  %v472_v34 = vshrl.u32 %v5002_v51, 16 }
  0x88   : > { %5648 = vmatpush3.bf16.msra.mxu0 %v6092_v39  ;;  %5555 = vmatprep.mubr.bf16.mxu0 %v1005_v33  ;;  %v1082_v52 = vshll.u32 %v6642_v40, 16  ;;  %v1086_v53 = vshrl.u32 %v6642_v40, 16  ;;  %v475_v54 = vshll.u32 %v5002_v51, 16  ;;  %v6653_v39 = vld [vmem:[#allocation3 + $0xf8] sm:$0xff]   ;;  %v699_v2 = vrot.slane %v6628_v57, 4  ;;  %v6102_v20 = vld [vmem:[#allocation3 + $0x80] sm:$0xff]  }
  0x89   : > { %5649 = vmatprep.subr.bf16.mxu0 %v6096_v3  ;;  %5600 = vmatpush3.bf16.msra.mxu1 %v6099_v56  ;;  %v1013_v61 = vsel %vm8033_vm2, %v1008_v38, %v6648_v43  ;;  %v462_v62 = vsel %vm6452_vm5, %v446_v46, %v461_v45  ;;  %v447_v63 = vrot.slane %v446_v46, 4  ;;  %v451_v50 = vrot.slane %v449_v47, 6  ;;  %v493_v14 = vld [vmem:[#allocation2 + $0x34] sm:$0xc]  ;;  %v5018_v19 = vld [vmem:[%s6405_s16 + $0x68] sm:$0xf]  ;;  %vm8039_vm5 = vmmov %vm8033_vm2 }
  0x8a   : > { %5601 = vmatprep.subr.bf16.mxu1 %v6103_v31  ;;  %5556 = vmatmul.mubr.bf16.gmra.mxu0 %v1013_v61  ;;  %v1084_v30 = vrot.slane %v1082_v52, 1  ;;  %463 = vst [vmem:[#allocation2 + $0x2c] sm:$0xe] %v462_v62  ;;  %v454_v4 = vrot.slane %v452_v48, 7  ;;  %v474_v7 = vrot.slane %v472_v34, 5  ;;  %v477_v24 = vrot.slane %v475_v54, 6 }
  0x8b   : > { %v701_v18 = vshrl.u32 %v5017_v8, 16  ;;  %v465_v11 = vld [vmem:[#allocation2 + $0x34] sm:$0x3]  ;;  %v704_v29 = vshll.u32 %v5017_v8, 16  ;;  %v724_v33 = vshrl.u32 %v5018_v19, 16  ;;  %v727_v5 = vshll.u32 %v5018_v19, 16 }
  0x8c   : > { %v6660_v56 = vld [vmem:[#allocation2 + $0x70] sm:$0xff]   ;;  %5650 = vmatpush3.bf16.msra.mxu0 %v6096_v3  ;;  %v1085_v9 = vsel %vm8038_vm4, %v1080_v25, %v1084_v30  ;;  %v1088_v49 = vor.u32 %v1086_v53, %v1084_v30  ;;  %v455_v13 = vor.u32 %v454_v4, %v451_v50  ;;  %v6666_v27 = vor.u32 %v477_v24, %v474_v7  ;;  %v5019_v47 = vld [vmem:[%s6405_s16 + $0x6c] sm:$0xf]  ;;  %v717_v51 = vld [vmem:[#allocation2 + $0x7c] sm:$0x3] }
  0x8d   : > { %5651 = vmatprep.subr.bf16.mxu0 %v6098_v60  ;;  %5602 = vmatpush3.bf16.msra.mxu1 %v6103_v31  ;;  %v1090_v21 = vshll.u32 %v6660_v56, 16  ;;  %v703_v38 = vrot.slane %v701_v18, 6  ;;  %v706_v45 = vrot.slane %v704_v29, 7  ;;  %v726_v46 = vrot.slane %v724_v33, 5  ;;  %v745_v53 = vld [vmem:[#allocation2 + $0x7c] sm:$0xc] }
  0x8e   : > { %5575 = vmatprep.mubr.bf16.mxu1 %v1085_v9  ;;  %5691 = vmatprep.subr.bf16.mxu1 %v6653_v39  ;;  %v456_v3 = vsel %vm6473_vm7, %v447_v63, %v455_v13  ;;  %v457_v25 = vrot.slane %v455_v13, 4  ;;  %v494_v31 = vsel %vm6499_vm8, %v6666_v27, %v493_v14  ;;  %v729_v52 = vrot.slane %v727_v5, 6  ;;  %v6680_v61 = vld [vmem:[#allocation3 + $0x138] sm:$0xff]   ;;  %v5020_v50 = vld [vmem:[%s6405_s16 + $0x70] sm:$0xf] }
  0x8f   : > { %v6671_v35 = vrot.slane %v1090_v21, 1  ;;  %464 = vst [vmem:[#allocation2 + $0x30] sm:$0xf] %v456_v3  ;;  %495 = vst [vmem:[#allocation2 + $0x34] sm:$0xc] %v494_v31  ;;  %v1094_v34 = vshrl.u32 %v6660_v56, 16  ;;  %v1016_v4 = vor.u32 %v1014_v17, %v6648_v43 }
  0x90   : > { %5652 = vmatpush3.bf16.msra.mxu0 %v6098_v60  ;;  %v466_v48 = vsel %vm6490_vm9, %v457_v25, %v465_v11  ;;  %v733_v54 = vshrl.u32 %v5019_v47, 16  ;;  %v707_v60 = vor.u32 %v706_v45, %v703_v38  ;;  %v736_v30 = vshll.u32 %v5019_v47, 16  ;;  %v777_v9 = vld [vmem:[#allocation2 + $0x84] sm:$0x8]  ;;  %v5003_v57 = vld [vmem:[%s6405_s16 + $0x2c] sm:$0xf] }
  0x91   : > { %5653 = vmatprep.subr.bf16.mxu0 %v6102_v20  ;;  %v1093_v62 = vsel %vm8039_vm5, %v1088_v49, %v6671_v35  ;;  %v6684_v63 = vld [vmem:[#allocation2 + $0x28] sm:$0xff]   ;;  %467 = vst [vmem:[#allocation2 + $0x34] sm:$0x3] %v466_v48  ;;  %v730_v7 = vor.u32 %v729_v52, %v726_v46  ;;  %v756_v8 = vshll.u32 %v5020_v50, 16  ;;  %v479_v6 = vrot.slane %v6666_v27, 4 }
  0x92   : > { %5576 = vmatmul.mubr.bf16.gmra.mxu1 %v1093_v62  ;;  %v735_v24 = vrot.slane %v733_v54, 5  ;;  %v1018_v13 = vshll.u32 %v6684_v63, 16  ;;  %v1022_v49 = vshrl.u32 %v6684_v63, 16  ;;  %v708_v14 = vsel %vm6473_vm7, %v699_v2, %v707_v60  ;;  %vm8040_vm7 = vmmov %vm8033_vm2  ;;  %v525_v38 = vld [vmem:[#allocation2 + $0x3c] sm:$0x8] }
  0x93   : > { %v709_v18 = vrot.slane %v707_v60, 4  ;;  %716 = vst [vmem:[#allocation2 + $0x78] sm:$0xf] %v708_v14  ;;  %v746_v17 = vsel %vm6499_vm8, %v730_v7, %v745_v53  ;;  %v731_v43 = vrot.slane %v730_v7, 4  ;;  %v738_v19 = vrot.slane %v736_v30, 6  ;;  %vm8042_vm8 = vmmov %vm8033_vm2 }
  0x94   : > { %5654 = vmatpush3.bf16.msra.mxu0 %v6102_v20  ;;  %v758_v21 = vrot.slane %v756_v8, 5  ;;  %v1020_v11 = vrot.slane %v1018_v13, 1  ;;  %747 = vst [vmem:[#allocation2 + $0x7c] sm:$0xc] %v746_v17  ;;  %v749_v20 = vld [vmem:[#allocation2 + $0x84] sm:$0x7]  ;;  %v526_v46 = vsel %vm6558_vm0, %v6417_v16, %v525_v38  ;;  %v1096_v59 = vor.u32 %v1094_v34, %v6671_v35 }
  0x95   : > { %5743 = vmatprep.subr.bf16.mxu0 %v6680_v61  ;;  %v718_v29 = vsel %vm6490_vm9, %v709_v18, %v717_v51  ;;  %v739_v2 = vor.u32 %v738_v19, %v735_v24  ;;  %v481_v33 = vshrl.u32 %v5003_v57, 16  ;;  %v484_v3 = vshll.u32 %v5003_v57, 16  ;;  %v5021_v47 = vld [vmem:[%s6405_s16 + $0x74] sm:$0xf]  ;;  %v497_v54 = vld [vmem:[#allocation2 + $0x3c] sm:$0x7]  ;;  %vm8041_vm9 = vmmov %vm8033_vm2 }
  0x96   : > { %719 = vst [vmem:[#allocation2 + $0x7c] sm:$0x3] %v718_v29  ;;  %v778_v37 = vsel %vm6558_vm0, %v758_v21, %v777_v9  ;;  %v1021_v25 = vsel %vm8040_vm7, %v1016_v4, %v1020_v11  ;;  %v1024_v48 = vor.u32 %v1022_v49, %v1020_v11  ;;  %527 = vst [vmem:[#allocation2 + $0x3c] sm:$0x8] %v526_v46  ;;  %v5022_v62 = vld [vmem:[%s6405_s16 + $0x78] sm:$0xf] }
  0x97   : > { %779 = vst [vmem:[#allocation2 + $0x84] sm:$0x8] %v778_v37  ;;  %5559 = vmatprep.mubr.bf16.mxu0 %v1021_v25  ;;  %v740_v27 = vsel %vm6517_vm15, %v731_v43, %v739_v2  ;;  %v741_v5 = vrot.slane %v739_v2, 4  ;;  %v483_v31 = vrot.slane %v481_v33, 5  ;;  %v486_v45 = vrot.slane %v484_v3, 6  ;;  %vm8047_vm0 = vmmov %vm8033_vm2 }
  0x98   : > { %v6706_v26 = vld [vmem:[#allocation2 + $0x30] sm:$0xff]   ;;  %748 = vst [vmem:[#allocation2 + $0x80] sm:$0xf] %v740_v27  ;;  %v759_v60 = vshrl.u32 %v5020_v50, 16  ;;  %v765_v30 = vshll.u32 %v5021_v47, 16  ;;  %v769_v4 = vshrl.u32 %v5021_v47, 16 }
  0x99   : > { %v1026_v51 = vshll.u32 %v6706_v26, 16  ;;  %v750_v52 = vsel %vm6547_vm6, %v741_v5, %v749_v20  ;;  %v487_v53 = vor.u32 %v486_v45, %v483_v31  ;;  %v788_v7 = vshrl.u32 %v5022_v62, 16  ;;  %v807_v18 = vld [vmem:[#allocation2 + $0x90] sm:$0xf]  ;;  %v781_v43 = vld [vmem:[#allocation2 + $0x8c] sm:$0xf] }
  0x9a   : > { %751 = vst [vmem:[#allocation2 + $0x84] sm:$0x7] %v750_v52  ;;  %v791_v8 = vshll.u32 %v5022_v62, 16  ;;  %v761_v13 = vrot.slane %v759_v60, 4  ;;  %v767_v49 = vrot.slane %v765_v30, 5  ;;  %v771_v14 = vrot.slane %v769_v4, 4 }
  0x9b   : > { %v1028_v24 = vrot.slane %v1026_v51, 1  ;;  %v488_v16 = vsel %vm6517_vm15, %v479_v6, %v487_v53  ;;  %v489_v44 = vrot.slane %v487_v53, 4  ;;  %v6725_v19 = vrot.slane %v788_v7, 7  ;;  %v1612_v20 = vld [vmem:[#allocation2] sm:$0xe]  ;;  %vm8045_vm15 = vmmov %vm8033_vm2 }
  0x9c   : > { %496 = vst [vmem:[#allocation2 + $0x38] sm:$0xf] %v488_v16  ;;  %v762_v29 = vor.u32 %v761_v13, %v758_v21  ;;  %v772_v57 = vor.u32 %v771_v14, %v767_v49  ;;  %v1030_v5 = vshrl.u32 %v6706_v26, 16  ;;  %v6195_v31 = vld [vmem:[#allocation2 + $0x4] sm:$0xf]  ;;  %vm2905_vm10 = vcmask 1045504  }
  0x9d   : > { %v6720_v9 = vld [vmem:[#allocation2 + $0x78] sm:$0xff]   ;;  %v1029_v17 = vsel %vm8041_vm9, %v1024_v48, %v1028_v24  ;;  %v498_v50 = vsel %vm6547_vm6, %v489_v44, %v497_v54  ;;  %v793_v2 = vor.u32 %v791_v8, %v6725_v19  ;;  %v5059_v28 = vcombine.low %v1612_v20, %v6195_v31  ;;  %vm8046_vm6 = vmmov %vm8033_vm2  ;;  %v6110_v20 = vld [vmem:[#allocation3 + $0x128] sm:$0xff]  }
  0x9e   : > { %5560 = vmatmul.mubr.bf16.gmra.mxu0 %v1029_v17  ;;  %v1098_v11 = vshll.u32 %v6720_v9, 16  ;;  %499 = vst [vmem:[#allocation2 + $0x3c] sm:$0x7] %v498_v50  ;;  %v1102_v6 = vshrl.u32 %v6720_v9, 16  ;;  %v763_v37 = vrot.slane %v762_v29, 4  ;;  %v773_v33 = vrot.slane %v772_v57, 4 }
  0x9f   : > { %v808_v25 = vsel %vm6428_vm14, %v793_v2, %v807_v18  ;;  %vm1633_vm14 = vcmask 1046528   ;;  %v1032_v47 = vor.u32 %v1030_v5, %v1028_v24  ;;  %v1634_v53 = vrot.slane %v5059_v28, 1  ;;  %v6108_v29 = vld [vmem:[#allocation3 + $0x130] sm:$0xff]   ;;  %v6197_v5 = vld [vmem:[#allocation2 + $0x48] sm:$0xff]  }
  0xa0   : > { %v1100_v32 = vrot.slane %v1098_v11, 1  ;;  %v768_v34 = vsel %vm6413_vm11, %v763_v37, %v767_v49  ;;  %v782_v21 = vsel %vm6421_vm12, %v773_v33, %v781_v43  ;;  %809 = vst [vmem:[#allocation2 + $0x90] sm:$0xf] %v808_v25  ;;  %vm8043_vm11 = vmmov %vm8033_vm2  ;;  %v1637_v18 = vrot.slane %v6573_v1, 1  ;;  %v6109_v37 = vld [vmem:[#allocation3 + $0xe8] sm:$0xff]   ;;  %v6111_v25 = vld [vmem:[#allocation3 + $0xe0] sm:$0xff]  }
  0xa1   : > { %v6733_v3 = vld [vmem:[#allocation2 + $0x80] sm:$0xff]   ;;  %780 = vst [vmem:[#allocation2 + $0x88] sm:$0xf] %v768_v34  ;;  %783 = vst [vmem:[#allocation2 + $0x8c] sm:$0xf] %v782_v21  ;;  %v1636_v8 = vsel %vm1633_vm14, %v1634_v53, %v1635_v15  ;;  %v1639_v17 = vrot.slane %v6621_v55, 1 }
  0xa2   : > { %v1101_v35 = vsel %vm8042_vm8, %v1096_v59, %v1100_v32  ;;  %v1104_v38 = vor.u32 %v1102_v6, %v1100_v32  ;;  %v1106_v27 = vshll.u32 %v6733_v3, 16  ;;  %v1110_v52 = vshrl.u32 %v6733_v3, 16  ;;  %vm8044_vm12 = vmmov %vm8033_vm2  ;;  %v6107_v6 = vld [vmem:[#allocation3 + $0xf0] sm:$0xff]   ;;  %v6113_v21 = vld [vmem:[#allocation3 + $0xd8] sm:$0xff]  }
  0xa3   : > { %5579 = vmatprep.mubr.bf16.mxu1 %v1101_v35  ;;  %v1638_v11 = vsel %vm1633_vm14, %v1635_v15, %v1637_v18  ;;  %v1641_v57 = vrot.slane %v6633_v0, 1  ;;  %v1643_v2 = vrot.slane %v6684_v63, 1  ;;  %v1645_v33 = vrot.slane %v6706_v26, 1  ;;  %v6116_v34 = vld [vmem:[#allocation3 + $0x110] sm:$0xff]   ;;  %v6118_v28 = vld [vmem:[#allocation3 + $0x108] sm:$0xff]   ;;  %v6120_v15 = vld [vmem:[#allocation3 + $0x100] sm:$0xff]  }
  0xa4   : > { %v1108_v45 = vrot.slane %v1106_v27, 1  ;;  %v1651_v31 = vrot.slane %v6197_v5, 1  ;;  %vm3706_vm2 = vsmask.f32 5376  ;;  %vm4651_vm4 = vcmask 1046532  }
  0xa5   : > { %v6744_v46 = vld [vmem:[#allocation2 + $0x38] sm:$0xff]   ;;  %v1642_v32 = vsel %vm1633_vm14, %v1639_v17, %v1641_v57  ;;  %vm7795_vm5 = vmor %vm354_vm13, %vm4651_vm4  ;;  %vm4689_vm13 = vcmask 1044484   ;;  %vm4670_vm7 = vcmask 1045508   ;;  %vm8122_vm9 = vcmask 1040384  }
  0xa6   : > { %v1109_v22 = vsel %vm8043_vm11, %v1104_v38, %v1108_v45  ;;  %v1034_v48 = vshll.u32 %v6744_v46, 16  ;;  %v1038_v51 = vshrl.u32 %v6744_v46, 16  ;;  %v1112_v24 = vor.u32 %v1110_v52, %v1108_v45  ;;  %v6196_v38 = vld [vmem:[#allocation2 + $0x40] sm:$0xff]   ;;  %vm7816_vm8 = vmor %vm8122_vm9, %vm4689_vm13 }
  0xa7   : > { %5580 = vmatmul.mubr.bf16.gmra.mxu1 %v1109_v22  ;;  %v6751_v62 = vld [vmem:[#allocation2 + $0x90] ss:$0 sps:$4 sm:$0x11]   ;;  %v1649_v27 = vrot.slane %v6196_v38, 1  ;;  %v6788_v52 = vld [vmem:[#allocation3 + $0x1b8] sm:$0xff]  }
  0xa8   : > { %v1036_v54 = vrot.slane %v1034_v48, 1  ;;  %v6753_v60 = vld [vmem:[#allocation2 + $0x88] sm:$0xff]   ;;  %v1122_v7 = vshll.u32 %v6751_v62, 16 }
  0xa9   : > { %v1114_v16 = vshll.u32 %v6753_v60, 16  ;;  %v1118_v44 = vshrl.u32 %v6753_v60, 16  ;;  %v1652_v45 = vsel %vm1633_vm14, %v1649_v27, %v1651_v31  ;;  %v6117_v22 = vld [vmem:[#allocation3 + $0xc8] sm:$0xff]  }
  0xaa   : > { %v1037_v30 = vsel %vm8044_vm12, %v1032_v47, %v1036_v54  ;;  %v1040_v4 = vor.u32 %v1038_v51, %v1036_v54  ;;  %v1124_v14 = vrot.slane %v1122_v7, 1  ;;  %v6198_v47 = vld [vmem:[#allocation2 + $0x50] sm:$0xff]   ;;  %v1655_v51 = vrot.slane %v6588_v41, 1  ;;  %v6793_v54 = vld [vmem:[#allocation3 + $0x178] sm:$0xff]  }
  0xab   : > { %5563 = vmatprep.mubr.bf16.mxu0 %v1037_v30  ;;  %v1116_v49 = vrot.slane %v1114_v16, 1  ;;  %v1653_v48 = vrot.slane %v6198_v47, 1  ;;  %v1657_v41 = vrot.slane %v6608_v12, 1  ;;  %v1659_v30 = vrot.slane %v6642_v40, 1  ;;  %v5023_v16 = vld [vmem:[%s6405_s16 + $0x7c] sm:$0xf] }
  0xac   : > { %v1045_v13 = vsel %vm8045_vm15, %v1040_v4, %v6513_v58  ;;  %v1640_v58 = vsel %vm1633_vm14, %v1637_v18, %v1639_v17  ;;  %v1661_v4 = vrot.slane %v6660_v56, 1  ;;  %v1663_v7 = vrot.slane %v6720_v9, 1  ;;  %v1951_v18 = vld [vmem:[#allocation2 + $0xc] sm:$0xf] }
  0xad   : > { %5564 = vmatmul.mubr.bf16.gmra.mxu0 %v1045_v13  ;;  %v1117_v50 = vsel %vm8046_vm6, %v1112_v24, %v1116_v49  ;;  %v1120_v43 = vor.u32 %v1118_v44, %v1116_v49  ;;  %v1656_v53 = vsel %vm1633_vm14, %v1653_v48, %v1655_v51  ;;  %v6802_v24 = vld [vmem:[#allocation2 + $0x10] sm:$0xff]   ;;  %v1658_v44 = vsel %vm1633_vm14, %v1655_v51, %v1657_v41 }
  0xae   : > { %5655 = vmatprep.mubr.bf16.mxu0 %v1636_v8  ;;  %5583 = vmatprep.mubr.bf16.mxu1 %v1117_v50  ;;  %v1950_v8 = vld [vmem:[#allocation2 + $0x8] sm:$0xe]  ;;  %v796_v13 = vshrl.u32 %v5023_v16, 16  ;;  %v799_v12 = vshll.u32 %v5023_v16, 16  ;;  %v1660_v49 = vsel %vm1633_vm14, %v1657_v41, %v1659_v30  ;;  %v811_v50 = vld [vmem:[#allocation2 + $0x98] sm:$0x1]  ;;  %v1664_v36 = vsel %vm1633_vm14, %v1661_v4, %v1663_v7 }
  0xaf   : > { %v1125_v59 = vsel %vm8047_vm0, %v1120_v43, %v1124_v14  ;;  %v6807_v14 = vld [vmem:[#allocation2 + $0x18] sm:$0xff]   ;;  %v1667_v43 = vrot.slane %v6753_v60, 1 }
  0xb0   : > { %5584 = vmatmul.mubr.bf16.gmra.mxu1 %v1125_v59  ;;  %v798_v17 = vrot.slane %v796_v13, 7  ;;  %v2907_v59 = vrot.slane %v6802_v24, 2  ;;  %v2456_v42 = vshll.u32 %v6807_v14, 16 }
  0xb1   : > { %5603 = vmatprep.mubr.bf16.mxu1 %v6477_v10  ;;  %v1644_v10 = vsel %vm1633_vm14, %v1641_v57, %v1643_v2  ;;  %v6813_v57 = vcombine.low %v1950_v8, %v1951_v18 }
  0xb2   : > { %v2458_v8 = vrot.slane %v2456_v42, 2 }
  0xb5   : > { %5656 = vmatmul.mubr.bf16.vlgmr.msra.gmra.mxu0 %v1638_v11  ;;  %v1669_v11 = vrot.slane %v6751_v62, 1 }
  0xb6   : > { %5744 = vmatpush3.bf16.msra.mxu0 %v6680_v61  ;;  %5659 = vmatprep.mubr.bf16.mxu0 %v1640_v58  ;;  %v6112_v61 = vld [vmem:[#allocation3 + $0x120] sm:$0xff]   ;;  %v801_v58 = vor.u32 %v799_v12, %v798_v17 }
  0xb7   : > { %5745 = vmatprep.subr.bf16.mxu0 %v6108_v29 }
  0xb8   : > { %5604 = vmatmul.mubr.bf16.vlgmr.msra.gmra.mxu1 %v6538_v23  ;;  %v1647_v23 = vrot.slane %v6744_v46, 1 }
  0xb9   : > { %5692 = vmatpush3.bf16.msra.mxu1 %v6653_v39  ;;  %5607 = vmatprep.mubr.bf16.mxu1 %v6573_v1  ;;  %v6114_v39 = vld [vmem:[#allocation3 + $0x118] sm:$0xff]   ;;  %v1646_v1 = vsel %vm1633_vm14, %v1643_v2, %v1645_v33  ;;  %v2447_v2 = vshll.u32 %v6802_v24, 16 }
  0xba   : > { %5746 = vmatpush3.bf16.msra.mxu0 %v6108_v29  ;;  %5693 = vmatprep.subr.bf16.mxu1 %v6107_v6  ;;  %v1648_v35 = vsel %vm1633_vm14, %v1645_v33, %v1647_v23  ;;  %v803_v29 = vrot.slane %v798_v17, 4  ;;  %v2100_v17 = vrot.slane %v6807_v14, 1 }
  0xbb   : > { %5747 = vmatprep.subr.bf16.mxu0 %v6110_v20 }
  0xbc   : > { %v812_v33 = vsel %vm6444_vm3, %v803_v29, %v811_v50  ;;  %vm4177_vm3 = vcmask 1044480  }
  0xbd   : > { %5660 = vmatmul.mubr.bf16.gmra.mxu0 %v1642_v32  ;;  %5694 = vmatpush3.bf16.msra.mxu1 %v6107_v6  ;;  %v2444_v6 = vshrl.u32 %v6802_v24, 16  ;;  %v2884_v32 = vld [vmem:[#allocation2 + $0x8] sm:$0xc]  ;;  %813 = vst [vmem:[#allocation2 + $0x98] sm:$0x1] %v812_v33 }
  0xbe   : > { %5663 = vmatprep.mubr.bf16.mxu0 %v1644_v10  ;;  %5748 = vmatpush3.bf16.msra.mxu0 %v6110_v20  ;;  %v6817_v20 = vld [vmem:[#allocation2 + $0x20] sm:$0xff]   ;;  %v2909_v10 = vrot.slane %v6807_v14, 2 }
  0xbf   : > { %5749 = vmatprep.subr.bf16.mxu0 %v6112_v61  ;;  %5695 = vmatprep.subr.bf16.mxu1 %v6109_v37 }
  0xc0   : > { %5608 = vmatmul.mubr.bf16.gmra.mxu1 %v6621_v55  ;;  %v6115_v55 = vld [vmem:[#allocation3 + $0xd0] sm:$0xff]  }
  0xc1   : > { %5611 = vmatprep.mubr.bf16.mxu1 %v6633_v0  ;;  %5696 = vmatpush3.bf16.msra.mxu1 %v6109_v37  ;;  %v1650_v0 = vsel %vm1633_vm14, %v1647_v23, %v1649_v27  ;;  %v5104_v23 = vcombine.low %v2884_v32, %v1951_v18  ;;  %v2911_v27 = vrot.slane %v6817_v20, 2 }
  0xc2   : > { %5750 = vmatpush3.bf16.msra.mxu0 %v6112_v61  ;;  %5697 = vmatprep.subr.bf16.mxu1 %v6111_v25  ;;  %v6820_v61 = vld [vmem:[#allocation2 + $0x28] sm:$0xff]  }
  0xc3   : > { %5751 = vmatprep.subr.bf16.mxu0 %v6114_v39  ;;  %v2471_v18 = vshrl.u32 %v6820_v61, 16  ;;  %v2474_v50 = vshll.u32 %v6820_v61, 16  ;;  %v2104_v29 = vrot.slane %v6820_v61, 1 }
  0xc5   : > { %5664 = vmatmul.mubr.bf16.gmra.mxu0 %v1646_v1  ;;  %5698 = vmatpush3.bf16.msra.mxu1 %v6111_v25  ;;  %v6827_v25 = vsel %vm2905_vm10, %v2907_v59, %v2909_v10  ;;  %v1662_v1 = vsel %vm1633_vm14, %v1659_v30, %v1661_v4  ;;  %v2462_v30 = vshrl.u32 %v6817_v20, 16  ;;  %v2476_v33 = vrot.slane %v2474_v50, 2 }
  0xc6   : > { %5667 = vmatprep.mubr.bf16.mxu0 %v1648_v35  ;;  %5752 = vmatpush3.bf16.msra.mxu0 %v6114_v39  ;;  %v6199_v39 = vld [vmem:[#allocation2 + $0x58] sm:$0xff]   ;;  %v2453_v35 = vshrl.u32 %v6807_v14, 16  ;;  %v6132_v14 = vld [vmem:[#allocation3 + $0x168] sm:$0xff]  }
  0xc7   : > { %5753 = vmatprep.subr.bf16.mxu0 %v6116_v34  ;;  %5699 = vmatprep.subr.bf16.mxu1 %v6113_v21 }
  0xc8   : > { %5612 = vmatmul.mubr.bf16.gmra.mxu1 %v6684_v63  ;;  %v6119_v63 = vld [vmem:[#allocation3 + $0xc0] sm:$0xff]  }
  0xc9   : > { %5615 = vmatprep.mubr.bf16.mxu1 %v6706_v26  ;;  %5700 = vmatpush3.bf16.msra.mxu1 %v6113_v21  ;;  %v1654_v26 = vsel %vm1633_vm14, %v1651_v31, %v1653_v48  ;;  %v6200_v21 = vld [vmem:[#allocation2 + $0x60] sm:$0xff]   ;;  %v2436_v31 = vshrl.u32 %v6813_v57, 16  ;;  %v2449_v48 = vrot.slane %v2447_v2, 2  ;;  %v2473_v2 = vrot.slane %v2471_v18, 1 }
  0xca   : > { %5754 = vmatpush3.bf16.msra.mxu0 %v6116_v34  ;;  %5701 = vmatprep.subr.bf16.mxu1 %v6115_v55  ;;  %v2906_v34 = vrot.slane %v5104_v23, 2  ;;  %v6889_v23 = vld [vmem:[#allocation2 + $0x58] sm:$0xff]  }
  0xcb   : > { %5755 = vmatprep.subr.bf16.mxu0 %v6118_v28 }
  0xcd   : > { %5668 = vmatmul.mubr.bf16.gmra.mxu0 %v1650_v0  ;;  %5702 = vmatpush3.bf16.msra.mxu1 %v6115_v55  ;;  %v6838_v55 = vld [vmem:[#allocation2 + $0x38] sm:$0xff]   ;;  %v2439_v0 = vshll.u32 %v6813_v57, 16 }
  0xce   : > { %5671 = vmatprep.mubr.bf16.mxu0 %v1652_v45  ;;  %5756 = vmatpush3.bf16.msra.mxu0 %v6118_v28  ;;  %v6841_v28 = vsel %vm2905_vm10, %v2906_v34, %v2907_v59  ;;  %v6844_v45 = vld [vmem:[#allocation2 + $0x40] sm:$0xff]   ;;  %v2102_v59 = vrot.slane %v6817_v20, 1  ;;  %v2492_v42 = vshll.u32 %v6838_v55, 16 }
  0xcf   : > { %5757 = vmatprep.subr.bf16.mxu0 %v6120_v15  ;;  %5703 = vmatprep.subr.bf16.mxu1 %v6117_v22  ;;  %v2919_v41 = vrot.slane %v6844_v45, 2 }
  0xd0   : > { %5616 = vmatmul.mubr.bf16.gmra.mxu1 %v6744_v46  ;;  %v794_v46 = vrot.slane %v6725_v19, 4  ;;  %v1665_v19 = vrot.slane %v6733_v3, 1 }
  0xd1   : > { %5619 = vmatprep.mubr.bf16.mxu1 %v6196_v38  ;;  %5704 = vmatpush3.bf16.msra.mxu1 %v6117_v22  ;;  %v6833_v38 = vld [vmem:[#allocation2 + $0x30] sm:$0xff]  }
  0xd2   : > { %5758 = vmatpush3.bf16.msra.mxu0 %v6120_v15  ;;  %5705 = vmatprep.subr.bf16.mxu1 %v6119_v63  ;;  %v802_v37 = vsel %vm6438_vm1, %v794_v46, %v801_v58  ;;  %v6847_v15 = vsel %vm2905_vm10, %v2909_v10, %v2911_v27  ;;  %v2915_v51 = vrot.slane %v6833_v38, 2  ;;  %vm2434_vm1 = vsmask.f32 6400  ;;  %v6886_v10 = vld [vmem:[#allocation2 + $0x50] sm:$0xff]  }
  0xd3   : > { %5847 = vmatprep.subr.bf16.mxu0 %v6788_v52  ;;  %810 = vst [vmem:[#allocation2 + $0x94] sm:$0xf] %v802_v37  ;;  %v2465_v46 = vshll.u32 %v6817_v20, 16  ;;  %v1668_v12 = vsel %vm1633_vm14, %v1665_v19, %v1667_v43  ;;  %v2464_v58 = vrot.slane %v2462_v30, 1  ;;  %v2480_v32 = vshrl.u32 %v6833_v38, 16 }
  0xd4   : > { %v2923_v34 = vrot.slane %v6886_v10, 2 }
  0xd5   : > { %5672 = vmatmul.mubr.bf16.gmra.mxu0 %v1654_v26  ;;  %5706 = vmatpush3.bf16.msra.mxu1 %v6119_v63  ;;  %v2917_v63 = vrot.slane %v6838_v55, 2  ;;  %v1666_v26 = vsel %vm1633_vm14, %v1663_v7, %v1665_v19  ;;  %v2097_v7 = vrot.slane %v6813_v57, 1  ;;  %v6883_v57 = vld [vmem:[#allocation2 + $0x48] sm:$0xff]   ;;  %v2482_v62 = vrot.slane %v2480_v32, 1 }
  0xd6   : > { %5675 = vmatprep.mubr.bf16.mxu0 %v1656_v53  ;;  %5795 = vmatprep.subr.bf16.mxu1 %v6793_v54  ;;  %v2455_v53 = vrot.slane %v2453_v35, 1  ;;  %v2921_v37 = vrot.slane %v6883_v57, 2  ;;  %v2483_v35 = vshll.u32 %v6833_v38, 16 }
  0xd7   : > { %v6864_v16 = vsel %vm2905_vm10, %v2915_v51, %v2917_v63  ;;  %v6869_v13 = vsel %vm2905_vm10, %v2917_v63, %v2919_v41 }
  0xd8   : > { %5620 = vmatmul.mubr.bf16.gmra.mxu1 %v6197_v5  ;;  %v2913_v5 = vrot.slane %v6820_v61, 2  ;;  %v2485_v30 = vrot.slane %v2483_v35, 2  ;;  %v2477_v35 = vor.u32 %v2476_v33, %v2473_v2  ;;  %v2108_v33 = vrot.slane %v6838_v55, 1 }
  0xd9   : > { %5623 = vmatprep.mubr.bf16.mxu1 %v6198_v47  ;;  %v2446_v47 = vrot.slane %v2444_v6, 1 }
  0xda   : > { %v6850_v22 = vsel %vm2905_vm10, %v2911_v27, %v2913_v5  ;;  %v6861_v4 = vsel %vm2905_vm10, %v2913_v5, %v2915_v51  ;;  %v6906_v27 = vld [vmem:[#allocation2 + $0x60] sm:$0xff]   ;;  %v6909_v5 = vld [vmem:[#allocation2 + $0x68] sm:$0xff]   ;;  %v6921_v51 = vld [vmem:[#allocation2 + $0x78] sm:$0xff]  }
  0xdb   : > { %v2450_v19 = vor.u32 %v2449_v48, %v2446_v47  ;;  %v2501_v48 = vshll.u32 %v6844_v45, 16  ;;  %v2927_v63 = vrot.slane %v6906_v27, 2 }
  0xdd   : > { %5676 = vmatmul.mubr.bf16.gmra.mxu0 %v1658_v44  ;;  %v2438_v44 = vrot.slane %v2436_v31, 1 }
  0xde   : > { %5679 = vmatprep.mubr.bf16.mxu0 %v1660_v49  ;;  %v2441_v49 = vrot.slane %v2439_v0, 2  ;;  %v2459_v0 = vor.u32 %v2458_v8, %v2455_v53 }
  0xe0   : > { %5624 = vmatmul.mubr.bf16.gmra.mxu1 %v6199_v39  ;;  %v2442_v6 = vor.u32 %v2441_v49, %v2438_v44  ;;  %v6892_v39 = vsel %vm2905_vm10, %v2919_v41, %v2921_v37  ;;  %v6129_v44 = vld [vmem:[#allocation3 + $0x1b0] sm:$0xff]   ;;  %v2933_v49 = vrot.slane %v6921_v51, 2  ;;  %v2460_v18 = vsel %vm2434_vm1, %v2450_v19, %v2459_v0 }
  0xe1   : > { %5627 = vmatprep.mubr.bf16.mxu1 %v6200_v21 }
  0xe2   : > { %v2451_v21 = vsel %vm2434_vm1, %v2442_v6, %v2450_v19  ;;  %v2503_v6 = vrot.slane %v2501_v48, 2  ;;  %v6950_v19 = vld [vmem:[#allocation2 + $0x88] sm:$0xff]  }
  0xe3   : > { %v6134_v48 = vld [vmem:[#allocation3 + $0x1a8] sm:$0xff]  }
  0xe5   : > { %5680 = vmatmul.mubr.bf16.gmra.mxu0 %v1662_v1  ;;  %v1670_v1 = vsel %vm1633_vm14, %v1667_v43, %v1669_v11  ;;  %v6912_v43 = vsel %vm2905_vm10, %v2921_v37, %v2923_v34  ;;  %v2498_v11 = vshrl.u32 %v6844_v45, 16  ;;  %v2507_v37 = vshrl.u32 %v6883_v57, 16 }
  0xe6   : > { %5683 = vmatprep.mubr.bf16.mxu0 %v1664_v36  ;;  %v2489_v36 = vshrl.u32 %v6838_v55, 16  ;;  %v6139_v55 = vld [vmem:[#allocation3 + $0x1a0] sm:$0xff]  }
  0xe8   : > { %5628 = vmatmul.mubr.bf16.gmra.mxu1 %v6642_v40  ;;  %v2098_v40 = vrot.slane %v6802_v24, 1  ;;  %v2491_v50 = vrot.slane %v2489_v36, 1 }
  0xe9   : > { %5631 = vmatprep.mubr.bf16.mxu1 %v6660_v56  ;;  %v2467_v56 = vrot.slane %v2465_v46, 2 }
  0xea   : > { %v2099_v41 = vsel %vm1633_vm14, %v2097_v7, %v2098_v40  ;;  %v2494_v7 = vrot.slane %v2492_v42, 2  ;;  %v2101_v42 = vsel %vm1633_vm14, %v2098_v40, %v2100_v17  ;;  %v2509_v40 = vrot.slane %v2507_v37, 1  ;;  %v3223_v37 = vld [vmem:[#allocation2 + $0x14] sm:$0xf] }
  0xeb   : > { %v2468_v47 = vor.u32 %v2467_v56, %v2464_v58  ;;  %v2500_v56 = vrot.slane %v2498_v11, 1  ;;  %v2519_v11 = vshll.u32 %v6886_v10, 16 }
  0xec   : > { %v2495_v2 = vor.u32 %v2494_v7, %v2491_v50  ;;  %v2528_v50 = vshll.u32 %v6889_v23, 16  ;;  %v6982_v7 = vld [vmem:[#allocation2 + $0x90] sm:$0xff]  }
  0xed   : > { %5684 = vmatmul.mubr.bf16.gmra.mxu0 %v1666_v26  ;;  %v2929_v26 = vrot.slane %v6909_v5, 2  ;;  %v2939_v61 = vrot.slane %v6982_v7, 2 }
  0xee   : > { %5687 = vmatprep.mubr.bf16.mxu0 %v1668_v12  ;;  %v2106_v12 = vrot.slane %v6833_v38, 1  ;;  %v2469_v38 = vsel %vm2434_vm1, %v2459_v0, %v2468_v47  ;;  %v2937_v0 = vrot.slane %v6950_v19, 2 }
  0xef   : > { %v6934_v8 = vsel %vm2905_vm10, %v2927_v63, %v2929_v26 }
  0xf0   : > { %5632 = vmatmul.mubr.bf16.gmra.mxu1 %v6720_v9  ;;  %v2925_v9 = vrot.slane %v6889_v23, 2 }
  0xf1   : > { %5635 = vmatprep.mubr.bf16.mxu1 %v6733_v3  ;;  %v6915_v3 = vld [vmem:[#allocation2 + $0x70] sm:$0xff]  }
  0xf2   : > { %v6918_v31 = vsel %vm2905_vm10, %v2923_v34, %v2925_v9  ;;  %v2931_v46 = vrot.slane %v6915_v3, 2  ;;  %v6931_v53 = vsel %vm2905_vm10, %v2925_v9, %v2927_v63  ;;  %v6128_v34 = vld [vmem:[#allocation3 + $0x170] sm:$0xff]   ;;  %v2486_v9 = vor.u32 %v2485_v30, %v2482_v62 }
  0xf3   : > { %v7993_v62 = vrot.slane %v6844_v45, 1 }
  0xf4   : > { %v6940_v58 = vsel %vm2905_vm10, %v2929_v26, %v2931_v46  ;;  %v6944_v32 = vsel %vm2905_vm10, %v2931_v46, %v2933_v49  ;;  %v2487_v46 = vsel %vm2434_vm1, %v2477_v35, %v2486_v9 }
  0xf5   : > { %5688 = vmatmul.mubr.bf16.gmra.mxu0 %v1670_v1  ;;  %8048 = vst [vmem:[#allocation10_spill] sm:$0xff] %v6944_v32  ;;  %v6947_v1 = vld [vmem:[#allocation2 + $0x80] sm:$0xff]   ;;  %v7005_v20 = vsel %vm1633_vm14, %v2108_v33, %v7993_v62 }
  0xf6   : > { %5759 = vmatprep.mubr.bf16.mxu0 %v2451_v21  ;;  %v2516_v21 = vshrl.u32 %v6886_v10, 16  ;;  %v2935_v36 = vrot.slane %v6947_v1, 2 }
  0xf8   : > { %5636 = vmatmul.mubr.bf16.gmra.mxu1 %v6753_v60  ;;  %v2510_v60 = vshll.u32 %v6883_v57, 16  ;;  %v6969_v24 = vsel %vm2905_vm10, %v2933_v49, %v2935_v36  ;;  %v6973_v26 = vsel %vm2905_vm10, %v2935_v36, %v2937_v0  ;;  %v2518_v30 = vrot.slane %v2516_v21, 1  ;;  %v4156_v36 = vld [vmem:[#allocation2 + $0x10] sm:$0x8] }
  0xf9   : > { %5707 = vmatprep.mubr.bf16.mxu1 %v2099_v41  ;;  %8049 = vst [vmem:[#allocation11_spill] sm:$0xff] %v6969_v24  ;;  %8050 = vst [vmem:[#allocation12_spill] sm:$0xff] %v6973_v26  ;;  %v2478_v41 = vsel %vm2434_vm1, %v2468_v47, %v2477_v35  ;;  %v2521_v49 = vrot.slane %v2519_v11, 2  ;;  %v3222_v47 = vld [vmem:[#allocation2 + $0x10] sm:$0xc]  ;;  %v6143_v11 = vld [vmem:[#allocation3 + $0x198] sm:$0xff]  }
  0xfa   : > { %v2512_v63 = vrot.slane %v2510_v60, 2 }
  0xfc   : > { %v7000_v35 = vor.u32 %v2512_v63, %v2509_v40  ;;  %v2543_v40 = vshrl.u32 %v6909_v5, 16  ;;  %v2546_v63 = vshll.u32 %v6909_v5, 16 }
  0xfd   : > { %5760 = vmatmul.mubr.bf16.vlgmr.msra.gmra.mxu0 %v2460_v18  ;;  %v2525_v18 = vshrl.u32 %v6889_v23, 16 }
  0xfe   : > { %5848 = vmatpush3.bf16.msra.mxu0 %v6788_v52  ;;  %5763 = vmatprep.mubr.bf16.mxu0 %v2469_v38  ;;  %v2103_v52 = vsel %vm1633_vm14, %v2100_v17, %v2102_v59  ;;  %v6976_v17 = vor.u32 %v2503_v6, %v2500_v56  ;;  %v2107_v38 = vsel %vm1633_vm14, %v2104_v29, %v2106_v12  ;;  %v6996_v6 = vld [vmem:[#allocation2 + $0x98] ss:$0 sps:$4 sm:$0x33]  }
  0xff   : > { %5849 = vmatprep.subr.bf16.mxu0 %v6129_v44  ;;  %v6994_v56 = vsel %vm1633_vm14, %v2106_v12, %v2108_v33  ;;  %v2534_v12 = vshrl.u32 %v6906_v27, 16  ;;  %v2941_v21 = vrot.slane %v6996_v6, 2  ;;  %v7017_v33 = vsel %vm2905_vm10, %v2937_v0, %v2939_v61 }
 0x100   : > { %5708 = vmatmul.mubr.bf16.vlgmr.msra.gmra.mxu1 %v2101_v42  ;;  %v2505_v60 = vsel %vm2434_vm1, %v2495_v2, %v6976_v17  ;;  %v6136_v42 = vld [vmem:[#allocation3 + $0x160] sm:$0xff]   ;;  %8051 = vst [vmem:[#allocation13_spill] sm:$0xff] %v7017_v33 }
 0x101   : > { %5796 = vmatpush3.bf16.msra.mxu1 %v6793_v54  ;;  %5711 = vmatprep.mubr.bf16.mxu1 %v2103_v52  ;;  %v2105_v54 = vsel %vm1633_vm14, %v2102_v59, %v2104_v29  ;;  %v7008_v59 = vor.u32 %v2521_v49, %v2518_v30  ;;  %v2527_v29 = vrot.slane %v2525_v18, 1  ;;  %v7012_v52 = vcombine.low %v3222_v47, %v3223_v37 }
 0x102   : > { %5850 = vmatpush3.bf16.msra.mxu0 %v6129_v44  ;;  %5797 = vmatprep.subr.bf16.mxu1 %v6128_v34  ;;  %v2496_v44 = vsel %vm2434_vm1, %v2486_v9, %v2495_v2  ;;  %v2530_v9 = vrot.slane %v2528_v50, 2  ;;  %v7014_v2 = vld [vmem:[#allocation2 + $0x18] sm:$0xff]   ;;  %v7025_v30 = vsel %vm2905_vm10, %v2939_v61, %v2941_v21  ;;  %v2536_v33 = vrot.slane %v2534_v12, 1 }
 0x103   : > { %5851 = vmatprep.subr.bf16.mxu0 %v6134_v48  ;;  %8052 = vst [vmem:[#allocation14_spill] sm:$0xff] %v7025_v30  ;;  %v4179_v49 = vrot.slane %v7014_v2, 3  ;;  %v3708_v0 = vshrl.u32 %v7012_v52, 16  ;;  %v3711_v18 = vshll.u32 %v7012_v52, 16  ;;  %v6147_v50 = vld [vmem:[#allocation3 + $0x190] sm:$0xff]   ;;  %v3719_v61 = vshll.u32 %v7014_v2, 16 }
 0x104   : > { %v2531_v12 = vor.u32 %v2530_v9, %v2527_v29 }
 0x105   : > { %5764 = vmatmul.mubr.bf16.gmra.mxu0 %v2478_v41  ;;  %5798 = vmatpush3.bf16.msra.mxu1 %v6128_v34  ;;  %v5149_v34 = vcombine.low %v4156_v36, %v3223_v37  ;;  %v7022_v41 = vld [vmem:[#allocation2 + $0x20] sm:$0xff]   ;;  %v3716_v37 = vshrl.u32 %v7014_v2, 16  ;;  %v3710_v21 = vrot.slane %v3708_v0, 2  ;;  %v3713_v36 = vrot.slane %v3711_v18, 3  ;;  %v6151_v18 = vld [vmem:[#allocation3 + $0x188] sm:$0xff]  }
 0x106   : > { %5767 = vmatprep.mubr.bf16.mxu0 %v2487_v46  ;;  %5852 = vmatpush3.bf16.msra.mxu0 %v6134_v48  ;;  %v2537_v48 = vshll.u32 %v6906_v27, 16  ;;  %v4181_v47 = vrot.slane %v7022_v41, 3  ;;  %v3721_v62 = vrot.slane %v3719_v61, 3  ;;  %v3728_v30 = vshll.u32 %v7022_v41, 16 }
 0x107   : > { %5853 = vmatprep.subr.bf16.mxu0 %v6139_v55  ;;  %5799 = vmatprep.subr.bf16.mxu1 %v6132_v14  ;;  %v4178_v46 = vrot.slane %v5149_v34, 3  ;;  %v3725_v34 = vshrl.u32 %v7022_v41, 16  ;;  %v3714_v24 = vor.u32 %v3713_v36, %v3710_v21  ;;  %v2555_v21 = vshll.u32 %v6915_v3, 16 }
 0x108   : > { %5712 = vmatmul.mubr.bf16.gmra.mxu1 %v2105_v54  ;;  %v6141_v54 = vld [vmem:[#allocation3 + $0x158] sm:$0xff]   ;;  %v2539_v26 = vrot.slane %v2537_v48, 2  ;;  %v6146_v48 = vld [vmem:[#allocation3 + $0x150] sm:$0xff]  }
 0x109   : > { %5715 = vmatprep.mubr.bf16.mxu1 %v2107_v38  ;;  %5800 = vmatpush3.bf16.msra.mxu1 %v6132_v14  ;;  %v7038_v14 = vsel %vm4177_vm3, %v4179_v49, %v4181_v47  ;;  %v3718_v38 = vrot.slane %v3716_v37, 2  ;;  %v3727_v32 = vrot.slane %v3725_v34, 2  ;;  %v2548_v37 = vrot.slane %v2546_v63, 2 }
 0x10a   : > { %5854 = vmatpush3.bf16.msra.mxu0 %v6139_v55  ;;  %5801 = vmatprep.subr.bf16.mxu1 %v6136_v42  ;;  %v7034_v55 = vsel %vm4177_vm3, %v4178_v46, %v4179_v49  ;;  %v2112_v46 = vrot.slane %v6883_v57, 1  ;;  %v2514_v49 = vsel %vm2434_vm1, %v6976_v17, %v7000_v35  ;;  %v7049_v57 = vld [vmem:[#allocation2 + $0x28] sm:$0xff]   ;;  %v7057_v61 = vor.u32 %v2539_v26, %v2536_v33 }
 0x10b   : > { %5855 = vmatprep.subr.bf16.mxu0 %v6143_v11  ;;  %v3722_v0 = vor.u32 %v3721_v62, %v3718_v38  ;;  %v7051_v62 = vld [vmem:[#allocation2 + $0x30] sm:$0xff]   ;;  %v3734_v29 = vshrl.u32 %v7049_v57, 16  ;;  %v3737_v9 = vshll.u32 %v7049_v57, 16 }
 0x10c   : > { %v3746_v26 = vshll.u32 %v7051_v62, 16  ;;  %v6150_v33 = vld [vmem:[#allocation3 + $0x148] sm:$0xff]  }
 0x10d   : > { %5768 = vmatmul.mubr.bf16.gmra.mxu0 %v2496_v44  ;;  %5802 = vmatpush3.bf16.msra.mxu1 %v6136_v42  ;;  %v3730_v44 = vrot.slane %v3728_v30, 3  ;;  %v2545_v42 = vrot.slane %v2543_v40, 1  ;;  %v7054_v30 = vsel %vm3706_vm2, %v3714_v24, %v3722_v0  ;;  %v6156_v40 = vld [vmem:[#allocation3 + $0x180] sm:$0xff]   ;;  %v3743_v24 = vshrl.u32 %v7051_v62, 16 }
 0x10e   : > { %5771 = vmatprep.mubr.bf16.mxu0 %v2505_v60  ;;  %5856 = vmatpush3.bf16.msra.mxu0 %v6143_v11  ;;  %v2523_v60 = vsel %vm2434_vm1, %v7000_v35, %v7008_v59  ;;  %v4183_v35 = vrot.slane %v7049_v57, 3  ;;  %v3748_v38 = vrot.slane %v3746_v26, 3  ;;  %v2561_v11 = vshrl.u32 %v6921_v51, 16 }
 0x10f   : > { %5857 = vmatprep.subr.bf16.mxu0 %v6147_v50  ;;  %5803 = vmatprep.subr.bf16.mxu1 %v6141_v54  ;;  %v3731_v17 = vor.u32 %v3730_v44, %v3727_v32  ;;  %v4185_v32 = vrot.slane %v7051_v62, 3  ;;  %v3745_v34 = vrot.slane %v3743_v24, 2  ;;  %v2549_v26 = vor.u32 %v2548_v37, %v2545_v42 }
 0x110   : > { %5716 = vmatmul.mubr.bf16.gmra.mxu1 %v6994_v56  ;;  %v2552_v56 = vshrl.u32 %v6915_v3, 16  ;;  %v2563_v42 = vrot.slane %v2561_v11, 1  ;;  %v7110_v11 = vld [vmem:[#allocation3 + $0x1f8] sm:$0xff]  }
 0x111   : > { %5719 = vmatprep.mubr.bf16.mxu1 %v7005_v20  ;;  %5804 = vmatpush3.bf16.msra.mxu1 %v6141_v54  ;;  %v7064_v63 = vsel %vm3706_vm2, %v3722_v0, %v3731_v17  ;;  %v3736_v20 = vrot.slane %v3734_v29, 2  ;;  %v3739_v54 = vrot.slane %v3737_v9, 3  ;;  %v7075_v36 = vsel %vm4177_vm3, %v4183_v35, %v4185_v32 }
 0x112   : > { %5858 = vmatpush3.bf16.msra.mxu0 %v6147_v50  ;;  %8053 = vst [vmem:[#allocation15_spill] sm:$0xff] %v7064_v63  ;;  %5805 = vmatprep.subr.bf16.mxu1 %v6146_v48  ;;  %v7071_v50 = vsel %vm4177_vm3, %v4181_v47, %v4183_v35  ;;  %8055 = vst [vmem:[#allocation17_spill] sm:$0xff] %v7075_v36  ;;  %v8056_v0 = vrot.slane %v6844_v45, 1  ;;  %v8057_v29 = vrot.slane %v6886_v10, 1  ;;  %v2116_v9 = vrot.slane %v6889_v23, 1 }
 0x113   : > { %5859 = vmatprep.subr.bf16.mxu0 %v6151_v18  ;;  %8054 = vst [vmem:[#allocation16_spill] sm:$0xff] %v7071_v50  ;;  %v3740_v47 = vor.u32 %v3739_v54, %v3736_v20  ;;  %v2564_v35 = vshll.u32 %v6921_v51, 16  ;;  %v3749_v24 = vor.u32 %v3748_v38, %v3745_v34  ;;  %v2532_v45 = vsel %vm2434_vm1, %v7008_v59, %v2531_v12  ;;  %v7089_v20 = vld [vmem:[#allocation3 + $0x238] sm:$0xff]  }
 0x114   : > { %v2113_v44 = vsel %vm1633_vm14, %v8056_v0, %v2112_v46  ;;  %v7091_v54 = vld [vmem:[#allocation2 + $0x38] sm:$0xff]   ;;  %v2541_v23 = vsel %vm2434_vm1, %v2531_v12, %v7057_v61  ;;  %v2557_v34 = vrot.slane %v2555_v21, 2  ;;  %v7098_v38 = vld [vmem:[#allocation2 + $0x40] sm:$0xff]   ;;  %v8061_v63 = vrot.slane %v6886_v10, 1 }
 0x115   : > { %5772 = vmatmul.mubr.bf16.gmra.mxu0 %v2514_v49  ;;  %v2115_v49 = vsel %vm1633_vm14, %v2112_v46, %v8057_v29  ;;  %5806 = vmatpush3.bf16.msra.mxu1 %v6146_v48  ;;  %v7094_v46 = vsel %vm3706_vm2, %v3731_v17, %v3740_v47  ;;  %v2554_v48 = vrot.slane %v2552_v56, 1  ;;  %v7101_v59 = vsel %vm3706_vm2, %v3740_v47, %v3749_v24 }
 0x116   : > { %5775 = vmatprep.mubr.bf16.mxu0 %v2523_v60  ;;  %5860 = vmatpush3.bf16.msra.mxu0 %v6151_v18  ;;  %v6154_v18 = vld [vmem:[#allocation3 + $0x140] sm:$0xff]   ;;  %8058 = vst [vmem:[#allocation18_spill] sm:$0xff] %v7094_v46  ;;  %8059 = vst [vmem:[#allocation19_spill] sm:$0xff] %v7101_v59  ;;  %v4187_v37 = vrot.slane %v7091_v54, 3  ;;  %v3752_v0 = vshrl.u32 %v7091_v54, 16  ;;  %v3755_v17 = vshll.u32 %v7091_v54, 16  ;;  %v2117_v50 = vsel %vm1633_vm14, %v8061_v63, %v2116_v9 }
 0x117   : > { %5861 = vmatprep.subr.bf16.mxu0 %v6156_v40  ;;  %5807 = vmatprep.subr.bf16.mxu1 %v6150_v33  ;;  %v2566_v29 = vrot.slane %v2564_v35, 2  ;;  %v4189_v12 = vrot.slane %v7098_v38, 3  ;;  %v3761_v56 = vshrl.u32 %v7098_v38, 16  ;;  %v3764_v21 = vshll.u32 %v7098_v38, 16 }
 0x118   : > { %5720 = vmatmul.mubr.bf16.gmra.mxu1 %v2113_v44  ;;  %v2570_v47 = vshrl.u32 %v6947_v1, 16  ;;  %v3754_v44 = vrot.slane %v3752_v0, 2  ;;  %v2558_v36 = vor.u32 %v2557_v34, %v2554_v48 }
 0x119   : > { %5723 = vmatprep.mubr.bf16.mxu1 %v2115_v49  ;;  %5808 = vmatpush3.bf16.msra.mxu1 %v6150_v33  ;;  %v3757_v49 = vrot.slane %v3755_v17, 3  ;;  %v2573_v33 = vshll.u32 %v6947_v1, 16  ;;  %v7118_v35 = vsel %vm4177_vm3, %v4187_v37, %v4189_v12  ;;  %v3763_v60 = vrot.slane %v3761_v56, 2 }
 0x11a   : > { %5862 = vmatpush3.bf16.msra.mxu0 %v6156_v40  ;;  %5809 = vmatprep.subr.bf16.mxu1 %v6154_v18  ;;  %v7114_v40 = vsel %vm4177_vm3, %v4185_v32, %v4187_v37  ;;  %8060 = vst [vmem:[#allocation20_spill] sm:$0xff] %v7118_v35  ;;  %v3766_v59 = vrot.slane %v3764_v21, 3  ;;  %v2120_v32 = vrot.slane %v6909_v5, 1  ;;  %v8062_v17 = vrot.slane %v6906_v27, 1 }
 0x11b   : > { %5951 = vmatprep.subr.bf16.mxu0 %v7089_v20  ;;  %v3758_v46 = vor.u32 %v3757_v49, %v3754_v44  ;;  %v2567_v63 = vor.u32 %v2566_v29, %v2563_v42  ;;  %v2572_v5 = vrot.slane %v2570_v47, 1 }
 0x11c   : > { %v3767_v0 = vor.u32 %v3766_v59, %v3763_v60  ;;  %v2119_v37 = vsel %vm1633_vm14, %v2116_v9, %v8062_v17  ;;  %v7136_v60 = vld [vmem:[#allocation2 + $0x50] sm:$0xff]   ;;  %v2559_v9 = vsel %vm2434_vm1, %v2549_v26, %v2558_v36 }
 0x11d   : > { %5776 = vmatmul.mubr.bf16.gmra.mxu0 %v2532_v45  ;;  %5810 = vmatpush3.bf16.msra.mxu1 %v6154_v18  ;;  %v2550_v45 = vsel %vm2434_vm1, %v7057_v61, %v2549_v26  ;;  %v7134_v10 = vsel %vm3706_vm2, %v3749_v24, %v3758_v46  ;;  %v2575_v18 = vrot.slane %v2573_v33, 2  ;;  %v2579_v24 = vshrl.u32 %v6950_v19, 16 }
 0x11e   : > { %5779 = vmatprep.mubr.bf16.mxu0 %v2541_v23  ;;  %5899 = vmatprep.subr.bf16.mxu1 %v7110_v11  ;;  %v7131_v23 = vld [vmem:[#allocation2 + $0x48] sm:$0xff]   ;;  %v7139_v61 = vsel %vm3706_vm2, %v3758_v46, %v3767_v0  ;;  %v4193_v42 = vrot.slane %v7136_v60, 3  ;;  %v3779_v29 = vshrl.u32 %v7136_v60, 16  ;;  %v3782_v21 = vshll.u32 %v7136_v60, 16 }
 0x11f   : > { %8063 = vst [vmem:[#allocation21_spill] sm:$0xff] %v7139_v61  ;;  %v4191_v48 = vrot.slane %v7131_v23, 3  ;;  %v3770_v34 = vshrl.u32 %v7131_v23, 16  ;;  %v3773_v59 = vshll.u32 %v7131_v23, 16  ;;  %v2582_v46 = vshll.u32 %v6950_v19, 16 }
 0x120   : > { %5724 = vmatmul.mubr.bf16.gmra.mxu1 %v2117_v50  ;;  %v2576_v44 = vor.u32 %v2575_v18, %v2572_v5  ;;  %v3781_v33 = vrot.slane %v3779_v29, 2  ;;  %v3784_v17 = vrot.slane %v3782_v21, 3  ;;  %v8065_v61 = vrot.slane %v6906_v27, 1  ;;  %v7165_v29 = vld [vmem:[#allocation2 + $0x58] sm:$0xff]  }
 0x121   : > { %5727 = vmatprep.mubr.bf16.mxu1 %v2119_v37  ;;  %v7151_v50 = vsel %vm4177_vm3, %v4189_v12, %v4191_v48  ;;  %v3772_v26 = vrot.slane %v3770_v34, 2  ;;  %v3775_v47 = vrot.slane %v3773_v59, 3  ;;  %v7154_v49 = vsel %vm4177_vm3, %v4191_v48, %v4193_v42 }
 0x122   : > { %8064 = vst [vmem:[#allocation22_spill] sm:$0xff] %v7154_v49  ;;  %v2588_v37 = vshrl.u32 %v6982_v7, 16  ;;  %v2121_v35 = vsel %vm1633_vm14, %v8065_v61, %v2120_v32  ;;  %v8066_v12 = vrot.slane %v6915_v3, 1  ;;  %v3785_v5 = vor.u32 %v3784_v17, %v3781_v33 }
 0x123   : > { %v3776_v56 = vor.u32 %v3775_v47, %v3772_v26  ;;  %v2124_v18 = vrot.slane %v6921_v51, 1  ;;  %v2581_v48 = vrot.slane %v2579_v24, 1  ;;  %v2584_v59 = vrot.slane %v2582_v46, 2  ;;  %v7173_v26 = vld [vmem:[#allocation2 + $0x60] sm:$0xff]  }
 0x124   : > { %v2123_v34 = vsel %vm1633_vm14, %v2120_v32, %v8066_v12  ;;  %v2568_v27 = vsel %vm2434_vm1, %v2558_v36, %v2567_v63  ;;  %v2577_v61 = vsel %vm2434_vm1, %v2567_v63, %v2576_v44  ;;  %v2126_v21 = vrot.slane %v6947_v1, 1 }
 0x125   : > { %5780 = vmatmul.mubr.bf16.gmra.mxu0 %v2550_v45  ;;  %v2591_v45 = vshll.u32 %v6982_v7, 16  ;;  %v7176_v32 = vsel %vm3706_vm2, %v3776_v56, %v3785_v5  ;;  %v2590_v51 = vrot.slane %v2588_v37, 1  ;;  %v4195_v24 = vrot.slane %v7165_v29, 3 }
 0x126   : > { %5783 = vmatprep.mubr.bf16.mxu0 %v2559_v9  ;;  %v7168_v9 = vsel %vm3706_vm2, %v3767_v0, %v3776_v56  ;;  %8068 = vst [vmem:[#allocation24_spill] sm:$0xff] %v7176_v32  ;;  %v3788_v46 = vshrl.u32 %v7165_v29, 16  ;;  %v3791_v0 = vshll.u32 %v7165_v29, 16  ;;  %v4197_v36 = vrot.slane %v7173_v26, 3 }
 0x127   : > { %8067 = vst [vmem:[#allocation23_spill] sm:$0xff] %v7168_v9  ;;  %v2593_v47 = vrot.slane %v2591_v45, 2  ;;  %v3797_v63 = vshrl.u32 %v7173_v26, 16  ;;  %v3800_v1 = vshll.u32 %v7173_v26, 16  ;;  %v2585_v33 = vor.u32 %v2584_v59, %v2581_v48 }
 0x128   : > { %5728 = vmatmul.mubr.bf16.gmra.mxu1 %v2121_v35  ;;  %v7185_v56 = vsel %vm4177_vm3, %v4193_v42, %v4195_v24  ;;  %v3790_v35 = vrot.slane %v3788_v46, 2  ;;  %v3793_v17 = vrot.slane %v3791_v0, 3  ;;  %v2597_v37 = vshrl.u32 %v6996_v6, 16  ;;  %v7197_v0 = vld [vmem:[#allocation2 + $0x68] sm:$0xff]  }
 0x129   : > { %5731 = vmatprep.mubr.bf16.mxu1 %v2123_v34  ;;  %v7189_v12 = vsel %vm4177_vm3, %v4195_v24, %v4197_v36  ;;  %v3799_v34 = vrot.slane %v3797_v63, 2  ;;  %v3802_v45 = vrot.slane %v3800_v1, 3  ;;  %v2600_v32 = vshll.u32 %v6996_v6, 16  ;;  %v7204_v1 = vld [vmem:[#allocation2 + $0x70] sm:$0xff]  }
 0x12a   : > { %8069 = vst [vmem:[#allocation25_spill] sm:$0xff] %v7189_v12  ;;  %v3794_v49 = vor.u32 %v3793_v17, %v3790_v35  ;;  %v8070_v9 = vrot.slane %v6915_v3, 1  ;;  %v2594_v42 = vor.u32 %v2593_v47, %v2590_v51  ;;  %v2127_v46 = vsel %vm1633_vm14, %v2124_v18, %v2126_v21  ;;  %v6155_v12 = vld [vmem:[#allocation2 + $0x98] ss:$0 sps:$4 sm:$0x11]  }
 0x12b   : > { %v3803_v59 = vor.u32 %v3802_v45, %v3799_v34  ;;  %v2599_v63 = vrot.slane %v2597_v37, 1  ;;  %v3369_v6 = vrot.slane %v7012_v52, 2  ;;  %v3809_v51 = vshll.u32 %v7197_v0, 16 }
 0x12c   : > { %v2125_v48 = vsel %vm1633_vm14, %v8070_v9, %v2124_v18  ;;  %v7200_v24 = vsel %vm3706_vm2, %v3785_v5, %v3794_v49  ;;  %v2602_v9 = vrot.slane %v2600_v32, 2  ;;  %v4199_v18 = vrot.slane %v7197_v0, 3 }
 0x12d   : > { %5784 = vmatmul.mubr.bf16.gmra.mxu0 %v2568_v27  ;;  %v2128_v27 = vrot.slane %v6950_v19, 1  ;;  %v7207_v3 = vsel %vm3706_vm2, %v3794_v49, %v3803_v59  ;;  %v3806_v19 = vshrl.u32 %v7197_v0, 16  ;;  %v2595_v5 = vsel %vm2434_vm1, %v2585_v33, %v2594_v42 }
 0x12e   : > { %5787 = vmatprep.mubr.bf16.mxu0 %v2577_v61  ;;  %v2586_v61 = vsel %vm2434_vm1, %v2576_v44, %v2585_v33  ;;  %8071 = vst [vmem:[#allocation26_spill] sm:$0xff] %v7207_v3  ;;  %v4201_v44 = vrot.slane %v7204_v1, 3  ;;  %v3815_v52 = vshrl.u32 %v7204_v1, 16  ;;  %v3818_v47 = vshll.u32 %v7204_v1, 16 }
 0x12f   : > { %v2130_v49 = vrot.slane %v6982_v7, 1  ;;  %v7218_v35 = vsel %vm4177_vm3, %v4197_v36, %v4199_v18  ;;  %v3808_v32 = vrot.slane %v3806_v19, 2  ;;  %v3811_v17 = vrot.slane %v3809_v51, 3  ;;  %v7225_v7 = vpop.f32.mrf.mxu1  ;;  %v7228_v51 = vld [vmem:[#allocation2 + $0x78] sm:$0xff]  }
 0x130   : > { %5732 = vmatmul.mubr.bf16.gmra.mxu1 %v2125_v48  ;;  %v3370_v37 = vrot.slane %v7014_v2, 2  ;;  %v7222_v34 = vsel %vm4177_vm3, %v4199_v18, %v4201_v44  ;;  %v3817_v33 = vrot.slane %v3815_v52, 2  ;;  %v3820_v45 = vrot.slane %v3818_v47, 3  ;;  %v7234_v18 = vld [vmem:[#allocation2 + $0x80] sm:$0xff]  }
 0x131   : > { %5735 = vmatprep.mubr.bf16.mxu1 %v2127_v46  ;;  %v2603_v48 = vor.u32 %v2602_v9, %v2599_v63  ;;  %v3812_v46 = vor.u32 %v3811_v17, %v3808_v32  ;;  %v2129_v3 = vsel %vm1633_vm14, %v2126_v21, %v2128_v27  ;;  %v2131_v19 = vsel %vm1633_vm14, %v2128_v27, %v2130_v49 }
 0x132   : > { %v3821_v36 = vor.u32 %v3820_v45, %v3817_v33  ;;  %8072 = vst [vmem:[#allocation27_spill] sm:$0xff] %v7234_v18  ;;  %v4203_v9 = vrot.slane %v7228_v51, 3  ;;  %v3827_v27 = vshll.u32 %v7228_v51, 16  ;;  %v2132_v52 = vrot.slane %v6155_v12, 1 }
 0x133   : > { %v7231_v2 = vsel %vm3706_vm2, %v3803_v59, %v3812_v46  ;;  %v2604_v21 = vsel %vm2434_vm1, %v2594_v42, %v2603_v48  ;;  %v7243_v59 = vpop.f32.mrf.mxu1  ;;  %v3833_v47 = vshrl.u32 %v7234_v18, 16  ;;  %v3836_v32 = vshll.u32 %v7234_v18, 16 }
 0x134   : > { %v7237_v63 = vsel %vm3706_vm2, %v3812_v46, %v3821_v36  ;;  %v3829_v17 = vrot.slane %v3827_v27, 3  ;;  %v3372_v46 = vrot.slane %v7022_v41, 2 }
 0x135   : > { %5788 = vmatmul.mubr.bf16.gmra.mxu0 %v2586_v61  ;;  %v3371_v61 = vsel %vm2905_vm10, %v3369_v6, %v3370_v37  ;;  %8073 = vst [vmem:[#allocation28_spill] sm:$0xff] %v7237_v63  ;;  %v7994_v6 = vrot.slane %v7234_v18, 3  ;;  %v3835_v45 = vrot.slane %v3833_v47, 2  ;;  %v3838_v48 = vrot.slane %v3836_v32, 3 }
 0x136   : > { %5791 = vmatprep.mubr.bf16.mxu0 %v2595_v5  ;;  %v3824_v5 = vshrl.u32 %v7228_v51, 16  ;;  %v2133_v63 = vsel %vm1633_vm14, %v2130_v49, %v2132_v52  ;;  %v3373_v41 = vsel %vm2905_vm10, %v3370_v37, %v3372_v46  ;;  %v6166_v49 = vld [vmem:[#allocation3 + $0x230] sm:$0xff]   ;;  %vm8125_vm14 = vcmask 1041408  }
 0x137   : > { %v7251_v33 = vpop.f32.mrf.mxu0  ;;  %v7256_v12 = vsel %vm4177_vm3, %v4203_v9, %v7994_v6  ;;  %v6165_v37 = vld [vmem:[#allocation3 + $0x1f0] sm:$0xff]   ;;  %vm7828_vm11 = vmor %vm8125_vm14, %vm4670_vm7 }
 0x138   : > { %5736 = vmatmul.mubr.bf16.gmra.mxu1 %v2129_v3  ;;  %v7249_v3 = vsel %vm4177_vm3, %v4201_v44, %v4203_v9  ;;  %v3826_v42 = vrot.slane %v3824_v5, 2  ;;  %8075 = vst [vmem:[#allocation30_spill] sm:$0xff] %v7256_v12  ;;  %v3374_v44 = vrot.slane %v7049_v57, 2  ;;  %v7261_v5 = vpop.f32.mrf.mxu1  ;;  %v6190_v12 = vld [vmem:[#allocation2 + $0xa0] ss:$0 sps:$4 sm:$0x33]  }
 0x139   : > { %5739 = vmatprep.mubr.bf16.mxu1 %v2131_v19  ;;  %8074 = vst [vmem:[#allocation29_spill] sm:$0xff] %v7249_v3  ;;  %v7268_v3 = vpop.f32.mrf.mxu0 }
 0x13a   : > { %v3830_v19 = vor.u32 %v3829_v17, %v3826_v42  ;;  %v3375_v57 = vsel %vm2905_vm10, %v3372_v46, %v3374_v44  ;;  %v6169_v17 = vld [vmem:[#allocation3 + $0x1e8] sm:$0xff]   ;;  %v6180_v46 = vld [vmem:[#allocation3 + $0x218] sm:$0xff]  }
 0x13b   : > { %v7279_v52 = vpop.f32.mrf.mxu0 }
 0x13c   : > { %v7266_v27 = vsel %vm3706_vm2, %v3821_v36, %v3830_v19  ;;  %v3376_v36 = vrot.slane %v7051_v62, 2 }
 0x13d   : > { %5792 = vmatmul.mubr.bf16.gmra.mxu0 %v2604_v21  ;;  %v7263_v21 = vor.u32 %v3838_v48, %v3835_v45  ;;  %8077 = vst [vmem:[#allocation32_spill] sm:$0xff] %v7266_v27  ;;  %v7286_v32 = vpop.f32.mrf.mxu0 }
 0x13e   : > { %5863 = vmatprep.mubr.bf16.mxu0 %v3371_v61  ;;  %v7277_v61 = vpop.f32.mrf.mxu1  ;;  %v3377_v42 = vsel %vm2905_vm10, %v3374_v44, %v3376_v36 }
 0x13f   : > { %8076 = vst [vmem:[#allocation31_spill] sm:$0xff] %v7263_v21  ;;  %v7272_v9 = vsel %vm3706_vm2, %v3830_v19, %v7263_v21  ;;  %v8087_v21 = vld [vmem:[#allocation10_spill] sm:$0xff] }
 0x140   : > { %8078 = vst [vmem:[#allocation33_spill] sm:$0xff] %v7272_v9  ;;  %5740 = vmatmul.mubr.bf16.gmra.mxu1 %v2133_v63  ;;  %v3378_v63 = vrot.slane %v7091_v54, 2  ;;  %v6176_v54 = vld [vmem:[#allocation3 + $0x220] sm:$0xff]  }
 0x141   : > { %5811 = vmatprep.mubr.bf16.mxu1 %v6841_v28  ;;  %v6171_v28 = vld [vmem:[#allocation3 + $0x228] sm:$0xff]  }
 0x142   : > { %v7284_v47 = vpop.f32.mrf.mxu1  ;;  %v3379_v62 = vsel %vm2905_vm10, %v3376_v36, %v3378_v63 }
 0x145   : > { %5864 = vmatmul.mubr.bf16.vlgmr.msra.gmra.mxu0 %v3373_v41 }
 0x146   : > { %5952 = vmatpush3.bf16.msra.mxu0 %v7089_v20  ;;  %5867 = vmatprep.mubr.bf16.mxu0 %v3375_v57  ;;  %v7293_v20 = vpop.f32.mrf.mxu1  ;;  %v6184_v57 = vld [vmem:[#allocation3 + $0x210] sm:$0xff]  }
 0x147   : > { %5953 = vmatprep.subr.bf16.mxu0 %v6166_v49 }
 0x148   : > { %5812 = vmatmul.mubr.bf16.vlgmr.msra.gmra.mxu1 %v6827_v25  ;;  %v3380_v25 = vrot.slane %v7098_v38, 2  ;;  %v7298_v48 = vpop.f32.mrf.mxu1 }
 0x149   : > { %5900 = vmatpush3.bf16.msra.mxu1 %v7110_v11  ;;  %5815 = vmatprep.mubr.bf16.mxu1 %v6847_v15  ;;  %v3382_v15 = vrot.slane %v7131_v23, 2  ;;  %v6173_v11 = vld [vmem:[#allocation3 + $0x1e0] sm:$0xff]   ;;  %v6178_v23 = vld [vmem:[#allocation3 + $0x1d8] sm:$0xff]  }
 0x14a   : > { %5954 = vmatpush3.bf16.msra.mxu0 %v6166_v49  ;;  %5901 = vmatprep.subr.bf16.mxu1 %v6165_v37  ;;  %v7295_v45 = vpop.f32.mrf.mxu0  ;;  %v3381_v44 = vsel %vm2905_vm10, %v3378_v63, %v3380_v25  ;;  %v7307_v41 = vpop.f32.mrf.mxu1  ;;  %v6183_v63 = vld [vmem:[#allocation3 + $0x1d0] sm:$0xff]  }
 0x14b   : > { %5955 = vmatprep.subr.bf16.mxu0 %v6171_v28  ;;  %v3383_v38 = vsel %vm2905_vm10, %v3380_v25, %v3382_v15 }
 0x14c   : > { %v7301_v19 = vpop.f32.mrf.mxu0 }
 0x14d   : > { %5868 = vmatmul.mubr.bf16.gmra.mxu0 %v3377_v42  ;;  %5902 = vmatpush3.bf16.msra.mxu1 %v6165_v37  ;;  %v6188_v37 = vld [vmem:[#allocation3 + $0x208] sm:$0xff]  }
 0x14e   : > { %5871 = vmatprep.mubr.bf16.mxu0 %v3379_v62  ;;  %5956 = vmatpush3.bf16.msra.mxu0 %v6171_v28  ;;  %v7309_v49 = vpop.f32.mrf.mxu0 }
 0x14f   : > { %5957 = vmatprep.subr.bf16.mxu0 %v6176_v54  ;;  %5903 = vmatprep.subr.bf16.mxu1 %v6169_v17 }
 0x150   : > { %5816 = vmatmul.mubr.bf16.gmra.mxu1 %v6850_v22  ;;  %v3384_v22 = vrot.slane %v7136_v60, 2  ;;  %v7315_v28 = vpop.f32.mrf.mxu0 }
 0x151   : > { %5819 = vmatprep.mubr.bf16.mxu1 %v6861_v4  ;;  %5904 = vmatpush3.bf16.msra.mxu1 %v6169_v17  ;;  %v3386_v4 = vrot.slane %v7165_v29, 2  ;;  %v6192_v29 = vld [vmem:[#allocation3 + $0x200] sm:$0xff]  }
 0x152   : > { %5958 = vmatpush3.bf16.msra.mxu0 %v6176_v54  ;;  %5905 = vmatprep.subr.bf16.mxu1 %v6173_v11  ;;  %v7312_v36 = vpop.f32.mrf.mxu1  ;;  %v3385_v42 = vsel %vm2905_vm10, %v3382_v15, %v3384_v22  ;;  %v6187_v54 = vld [vmem:[#allocation3 + $0x1c8] sm:$0xff]   ;;  %v6191_v15 = vld [vmem:[#allocation3 + $0x1c0] sm:$0xff]  }
 0x153   : > { %5959 = vmatprep.subr.bf16.mxu0 %v6180_v46  ;;  %v3387_v62 = vsel %vm2905_vm10, %v3384_v22, %v3386_v4 }
 0x154   : > { %v7320_v60 = vpop.f32.mrf.mxu1 }
 0x155   : > { %5872 = vmatmul.mubr.bf16.gmra.mxu0 %v3381_v44  ;;  %5906 = vmatpush3.bf16.msra.mxu1 %v6173_v11 }
 0x156   : > { %5875 = vmatprep.mubr.bf16.mxu0 %v3383_v38  ;;  %5960 = vmatpush3.bf16.msra.mxu0 %v6180_v46  ;;  %v7326_v25 = vpop.f32.mrf.mxu1  ;;  %v3392_v38 = vrot.slane %v7204_v1, 2  ;;  %v7353_v1 = vld [vmem:[#allocation2 + $0x88] sm:$0xff]  }
 0x157   : > { %5961 = vmatprep.subr.bf16.mxu0 %v6184_v57  ;;  %5907 = vmatprep.subr.bf16.mxu1 %v6178_v23 }
 0x158   : > { %5820 = vmatmul.mubr.bf16.gmra.mxu1 %v6864_v16  ;;  %v3388_v16 = vrot.slane %v7173_v26, 2  ;;  %v7333_v44 = vpop.f32.mrf.mxu1 }
 0x159   : > { %5823 = vmatprep.mubr.bf16.mxu1 %v6869_v13  ;;  %5908 = vmatpush3.bf16.msra.mxu1 %v6178_v23  ;;  %v3390_v13 = vrot.slane %v7197_v0, 2 }
 0x15a   : > { %5962 = vmatpush3.bf16.msra.mxu0 %v6184_v57  ;;  %5909 = vmatprep.subr.bf16.mxu1 %v6183_v63  ;;  %v3389_v46 = vsel %vm2905_vm10, %v3386_v4, %v3388_v16 }
 0x15b   : > { %5963 = vmatprep.subr.bf16.mxu0 %v6188_v37  ;;  %v3391_v26 = vsel %vm2905_vm10, %v3388_v16, %v3390_v13  ;;  %v7369_v16 = vld [vmem:[#allocation2 + $0x90] sm:$0xff]  }
 0x15c   : > { %8082 = vst [vmem:[#allocation37_spill] sm:$0xff] %v7369_v16 }
 0x15d   : > { %5876 = vmatmul.mubr.bf16.gmra.mxu0 %v3385_v42  ;;  %5910 = vmatpush3.bf16.msra.mxu1 %v6183_v63  ;;  %v3396_v42 = vrot.slane %v7234_v18, 2  ;;  %v8088_v18 = vld [vmem:[#allocation11_spill] sm:$0xff] }
 0x15e   : > { %v7323_v17 = vpop.f32.mrf.mxu0  ;;  %5879 = vmatprep.mubr.bf16.mxu0 %v3387_v62  ;;  %5964 = vmatpush3.bf16.msra.mxu0 %v6188_v37 }
 0x15f   : > { %5965 = vmatprep.subr.bf16.mxu0 %v6192_v29  ;;  %5911 = vmatprep.subr.bf16.mxu1 %v6187_v54 }
 0x160   : > { %v7329_v11 = vpop.f32.mrf.mxu0  ;;  %5824 = vmatmul.mubr.bf16.gmra.mxu1 %v6892_v39  ;;  %v3394_v39 = vrot.slane %v7228_v51, 2 }
 0x161   : > { %5827 = vmatprep.mubr.bf16.mxu1 %v6912_v43  ;;  %5912 = vmatpush3.bf16.msra.mxu1 %v6187_v54  ;;  %v3393_v43 = vsel %vm2905_vm10, %v3390_v13, %v3392_v38 }
 0x162   : > { %5966 = vmatpush3.bf16.msra.mxu0 %v6192_v29  ;;  %5913 = vmatprep.subr.bf16.mxu1 %v6191_v15  ;;  %v7337_v0 = vpop.f32.mrf.mxu0  ;;  %v3395_v63 = vsel %vm2905_vm10, %v3392_v38, %v3394_v39 }
 0x164   : > { %v7345_v22 = vpop.f32.mrf.mxu0 }
 0x165   : > { %5880 = vmatmul.mubr.bf16.gmra.mxu0 %v3389_v46  ;;  %5914 = vmatpush3.bf16.msra.mxu1 %v6191_v15  ;;  %v7375_v46 = vld [vmem:[#allocation2 + $0x98] sm:$0xff]  }
 0x166   : > { %5883 = vmatprep.mubr.bf16.mxu0 %v3391_v26  ;;  %8083 = vst [vmem:[#allocation38_spill] sm:$0xff] %v7375_v46 }
 0x167   : > { %v7340_v57 = vpop.f32.mrf.mxu1 }
 0x168   : > { %5828 = vmatmul.mubr.bf16.gmra.mxu1 %v6918_v31  ;;  %v3398_v31 = vrot.slane %v7353_v1, 2 }
 0x169   : > { %v7343_v23 = vpop.f32.mrf.mxu1  ;;  %5831 = vmatprep.mubr.bf16.mxu1 %v6931_v53  ;;  %v3397_v53 = vsel %vm2905_vm10, %v3394_v39, %v3396_v42 }
 0x16a   : > { %v3399_v15 = vsel %vm2905_vm10, %v3396_v42, %v3398_v31 }
 0x16b   : > { %v7349_v4 = vpop.f32.mrf.mxu1 }
 0x16c   : > { %8079 = vst [vmem:[#allocation34_spill] sm:$0xff] %v7349_v4 }
 0x16d   : > { %v7355_v37 = vpop.f32.mrf.mxu0  ;;  %5884 = vmatmul.mubr.bf16.gmra.mxu0 %v3393_v43  ;;  %v7357_v51 = vpop.f32.mrf.mxu1 }
 0x16e   : > { %8080 = vst [vmem:[#allocation35_spill] sm:$0xff] %v7357_v51  ;;  %5887 = vmatprep.mubr.bf16.mxu0 %v3395_v63  ;;  %v3402_v63 = vrot.slane %v7375_v46, 2 }
 0x16f   : > { %v7360_v62 = vpop.f32.mrf.mxu0 }
 0x170   : > { %v7365_v54 = vpop.f32.mrf.mxu1  ;;  %5832 = vmatmul.mubr.bf16.gmra.mxu1 %v6934_v8  ;;  %v3400_v8 = vrot.slane %v7369_v16, 2 }
 0x171   : > { %v7363_v29 = vpop.f32.mrf.mxu0  ;;  %8081 = vst [vmem:[#allocation36_spill] sm:$0xff] %v7365_v54  ;;  %5835 = vmatprep.mubr.bf16.mxu1 %v6940_v58 }
 0x172   : > { %v7377_v26 = vpop.f32.mrf.mxu1  ;;  %v3401_v42 = vsel %vm2905_vm10, %v3398_v31, %v3400_v8 }
 0x173   : > { %v7371_v13 = vpop.f32.mrf.mxu0  ;;  %8084 = vst [vmem:[#allocation39_spill] sm:$0xff] %v7377_v26 }
 0x174   : > { %v7379_v43 = vpop.f32.mrf.mxu1 }
 0x175   : > { %v5657_v38 = vpop.f32.mrf.mxu0  ;;  %5888 = vmatmul.mubr.bf16.gmra.mxu0 %v3397_v53  ;;  %8085 = vst [vmem:[#allocation40_spill] sm:$0xff] %v7379_v43 }
 0x176   : > { %5891 = vmatprep.mubr.bf16.mxu0 %v3399_v15  ;;  %v7383_v6 = vpop.f32.mrf.mxu1  ;;  %v3403_v15 = vsel %vm2905_vm10, %v3400_v8, %v3402_v63 }
 0x177   : > { %v1771_v39 = vpop.f32.mrf.mxu0  ;;  %8086 = vst [vmem:[#allocation41_spill] sm:$0xff] %v7383_v6 }
 0x178   : > { %v5605_v58 = vpop.f32.mrf.mxu1  ;;  %5836 = vmatmul.mubr.bf16.gmra.mxu1 %v8087_v21  ;;  %v3404_v21 = vrot.slane %v6190_v12, 2  ;;  %v8090_v12 = vld [vmem:[#allocation13_spill] sm:$0xff] }
 0x179   : > { %v5658_v9 = vpop.f32.mrf.mxu0  ;;  %v1478_v26 = vadd.f32 %v5605_v58, %v7251_v33  ;;  %5839 = vmatprep.mubr.bf16.mxu1 %v8088_v18 }
 0x17a   : > { %v1469_v43 = vpop.f32.mrf.mxu1 }
 0x17b   : > { %v1774_v53 = vpop.f32.mrf.mxu0  ;;  %v1470_v27 = vadd.f32 %v1469_v43, %v7268_v3  ;;  %v7391_v6 = vadd.f32 %v5657_v38, %v1478_v26  ;;  %v8089_v3 = vld [vmem:[#allocation12_spill] sm:$0xff]  ;;  %v3405_v26 = vsel %vm2905_vm10, %v3402_v63, %v3404_v21 }
 0x17c   : > { %v5606_v54 = vpop.f32.mrf.mxu1 }
 0x17d   : > { %v5661_v46 = vpop.f32.mrf.mxu0  ;;  %5892 = vmatmul.mubr.bf16.gmra.mxu0 %v3401_v42  ;;  %v1481_v31 = vadd.f32 %v5606_v54, %v7279_v52  ;;  %v7394_v51 = vadd.f32 %v1771_v39, %v1470_v27 }
 0x17e   : > { %5895 = vmatprep.mubr.bf16.mxu0 %v3403_v15  ;;  %v1472_v33 = vpop.f32.mrf.mxu1 }
 0x17f   : > { %v1787_v16 = vpop.f32.mrf.mxu0  ;;  %v1473_v18 = vadd.f32 %v1472_v33, %v7286_v32  ;;  %v7397_v8 = vadd.f32 %v5658_v9, %v1481_v31 }
 0x180   : > { %v5609_v4 = vpop.f32.mrf.mxu1  ;;  %5840 = vmatmul.mubr.bf16.gmra.mxu1 %v8089_v3  ;;  %v8092_v3 = vld [vmem:[#allocation16_spill] sm:$0xff] }
 0x181   : > { %v5662_v58 = vpop.f32.mrf.mxu0  ;;  %v1494_v38 = vadd.f32 %v5609_v4, %v7295_v45  ;;  %5843 = vmatprep.mubr.bf16.mxu1 %v8090_v12  ;;  %v7403_v52 = vadd.f32 %v1774_v53, %v1473_v18 }
 0x182   : > { %v1485_v27 = vpop.f32.mrf.mxu1 }
 0x183   : > { %v1790_v43 = vpop.f32.mrf.mxu0  ;;  %v1486_v54 = vadd.f32 %v1485_v27, %v7301_v19  ;;  %v7406_v32 = vadd.f32 %v5661_v46, %v1494_v38  ;;  %v8091_v19 = vld [vmem:[#allocation14_spill] sm:$0xff] }
 0x184   : > { %v5610_v9 = vpop.f32.mrf.mxu1 }
 0x185   : > { %v5665_v39 = vpop.f32.mrf.mxu0  ;;  %5896 = vmatmul.mubr.bf16.gmra.mxu0 %v3405_v26  ;;  %v1497_v42 = vadd.f32 %v5610_v9, %v7309_v49  ;;  %v7410_v15 = vadd.f32 %v1787_v16, %v1486_v54  ;;  %v8093_v54 = vld [vmem:[#allocation15_spill] sm:$0xff]  ;;  %v8094_v9 = vld [vmem:[#allocation18_spill] sm:$0xff] }
 0x186   : > { %5967 = vmatprep.mubr.bf16.mxu0 %v7034_v55  ;;  %v1488_v45 = vpop.f32.mrf.mxu1 }
 0x187   : > { %v1803_v63 = vpop.f32.mrf.mxu0  ;;  %v1489_v4 = vadd.f32 %v1488_v45, %v7315_v28  ;;  %v7413_v21 = vadd.f32 %v5662_v58, %v1497_v42 }
 0x188   : > { %v5613_v31 = vpop.f32.mrf.mxu1  ;;  %5844 = vmatmul.mubr.bf16.gmra.mxu1 %v8091_v19 }
 0x189   : > { %v5666_v53 = vpop.f32.mrf.mxu0  ;;  %v1510_v46 = vadd.f32 %v5613_v31, %v7323_v17  ;;  %5915 = vmatprep.mubr.bf16.mxu1 %v7054_v30  ;;  %v7418_v55 = vadd.f32 %v1790_v43, %v1489_v4  ;;  %v8095_v4 = vld [vmem:[#allocation17_spill] sm:$0xff] }
 0x18a   : > { %v1501_v49 = vpop.f32.mrf.mxu1 }
 0x18b   : > { %v1806_v33 = vpop.f32.mrf.mxu0  ;;  %v1502_v16 = vadd.f32 %v1501_v49, %v7329_v11  ;;  %v7422_v28 = vadd.f32 %v5665_v39, %v1510_v46 }
 0x18c   : > { %v5614_v58 = vpop.f32.mrf.mxu1 }
 0x18d   : > { %v5669_v18 = vpop.f32.mrf.mxu0  ;;  %5968 = vmatmul.mubr.bf16.vlgmr.msra.gmra.mxu0 %v7038_v14  ;;  %v1513_v26 = vadd.f32 %v5614_v58, %v7337_v0  ;;  %v7426_v17 = vadd.f32 %v1803_v63, %v1502_v16  ;;  %v8096_v58 = vld [vmem:[#allocation19_spill] sm:$0xff] }
 0x18e   : > { %5971 = vmatprep.mubr.bf16.mxu0 %v8092_v3  ;;  %v1504_v12 = vpop.f32.mrf.mxu1 }
 0x18f   : > { %v1819_v38 = vpop.f32.mrf.mxu0  ;;  %v1505_v30 = vadd.f32 %v1504_v12, %v7345_v22  ;;  %v7429_v27 = vadd.f32 %v5666_v53, %v1513_v26  ;;  %v8097_v12 = vld [vmem:[#allocation20_spill] sm:$0xff] }
 0x190   : > { %v5617_v11 = vpop.f32.mrf.mxu1  ;;  %5916 = vmatmul.mubr.bf16.vlgmr.msra.gmra.mxu1 %v8093_v54 }
 0x191   : > { %v5670_v43 = vpop.f32.mrf.mxu0  ;;  %v1526_v14 = vadd.f32 %v5617_v11, %v7355_v37  ;;  %5919 = vmatprep.mubr.bf16.mxu1 %v8094_v9  ;;  %v7434_v42 = vadd.f32 %v1806_v33, %v1505_v30  ;;  %v8098_v9 = vld [vmem:[#allocation21_spill] sm:$0xff] }
 0x192   : > { %v1517_v0 = vpop.f32.mrf.mxu1 }
 0x193   : > { %v1822_v39 = vpop.f32.mrf.mxu0  ;;  %v1518_v63 = vadd.f32 %v1517_v0, %v7360_v62  ;;  %v7438_v22 = vadd.f32 %v5669_v18, %v1526_v14 }
 0x194   : > { %v5618_v53 = vpop.f32.mrf.mxu1 }
 0x195   : > { %v5673_v45 = vpop.f32.mrf.mxu0  ;;  %5972 = vmatmul.mubr.bf16.gmra.mxu0 %v8095_v4  ;;  %v1529_v31 = vadd.f32 %v5618_v53, %v7363_v29  ;;  %v7442_v37 = vadd.f32 %v1819_v38, %v1518_v63 }
 0x196   : > { %5975 = vmatprep.mubr.bf16.mxu0 %v7114_v40  ;;  %v1520_v46 = vpop.f32.mrf.mxu1 }
 0x197   : > { %v1835_v19 = vpop.f32.mrf.mxu0  ;;  %v1521_v33 = vadd.f32 %v1520_v46, %v7371_v13  ;;  %v7445_v16 = vadd.f32 %v5670_v43, %v1529_v31  ;;  %v8100_v31 = vld [vmem:[#allocation22_spill] sm:$0xff] }
 0x198   : > { %v5621_v62 = vpop.f32.mrf.mxu1  ;;  %5920 = vmatmul.mubr.bf16.gmra.mxu1 %v8096_v58 }
 0x199   : > { %v5674_v49 = vpop.f32.mrf.mxu0  ;;  %v1542_v18 = vadd.f32 %v5621_v62, %v7225_v7  ;;  %5923 = vmatprep.mubr.bf16.mxu1 %v7134_v10  ;;  %v7450_v40 = vadd.f32 %v1822_v39, %v1521_v33 }
 0x19a   : > { %v1533_v29 = vpop.f32.mrf.mxu1 }
 0x19b   : > { %v1838_v3 = vpop.f32.mrf.mxu0  ;;  %v1534_v26 = vadd.f32 %v1533_v29, %v7243_v59  ;;  %v7454_v13 = vadd.f32 %v5673_v45, %v1542_v18  ;;  %v8099_v45 = vld [vmem:[#allocation23_spill] sm:$0xff] }
 0x19c   : > { %v5622_v30 = vpop.f32.mrf.mxu1 }
 0x19d   : > { %v5677_v38 = vpop.f32.mrf.mxu0  ;;  %5976 = vmatmul.mubr.bf16.gmra.mxu0 %v8097_v12  ;;  %v1545_v43 = vadd.f32 %v5622_v30, %v7261_v5  ;;  %v7458_v7 = vadd.f32 %v1835_v19, %v1534_v26  ;;  %v8102_v30 = vld [vmem:[#allocation25_spill] sm:$0xff] }
 0x19e   : > { %5979 = vmatprep.mubr.bf16.mxu0 %v7151_v50  ;;  %v1536_v54 = vpop.f32.mrf.mxu1 }
 0x19f   : > { %v1851_v11 = vpop.f32.mrf.mxu0  ;;  %v1537_v10 = vadd.f32 %v1536_v54, %v7277_v61  ;;  %v7461_v39 = vadd.f32 %v5674_v49, %v1545_v43 }
 0x1a0   : > { %v5625_v59 = vpop.f32.mrf.mxu1  ;;  %5924 = vmatmul.mubr.bf16.gmra.mxu1 %v8098_v9  ;;  %v8103_v9 = vld [vmem:[#allocation26_spill] sm:$0xff] }
 0x1a1   : > { %v5678_v14 = vpop.f32.mrf.mxu0  ;;  %v1558_v0 = vadd.f32 %v5625_v59, %v7284_v47  ;;  %5927 = vmatprep.mubr.bf16.mxu1 %v8099_v45  ;;  %v7466_v50 = vadd.f32 %v1838_v3, %v1537_v10  ;;  %v8101_v3 = vld [vmem:[#allocation24_spill] sm:$0xff]  ;;  %v3842_v45 = vshrl.u32 %v7353_v1, 16 }
 0x1a2   : > { %v1549_v5 = vpop.f32.mrf.mxu1 }
 0x1a3   : > { %v1854_v63 = vpop.f32.mrf.mxu0  ;;  %v1550_v4 = vadd.f32 %v1549_v5, %v7293_v20  ;;  %v7470_v61 = vadd.f32 %v5677_v38, %v1558_v0  ;;  %v3845_v5 = vshll.u32 %v7353_v1, 16 }
 0x1a4   : > { %v5626_v19 = vpop.f32.mrf.mxu1 }
 0x1a5   : > { %v5681_v53 = vpop.f32.mrf.mxu0  ;;  %5980 = vmatmul.mubr.bf16.gmra.mxu0 %v8100_v31  ;;  %v1561_v46 = vadd.f32 %v5626_v19, %v7298_v48  ;;  %v7474_v47 = vadd.f32 %v1851_v11, %v1550_v4  ;;  %v8104_v19 = vld [vmem:[#allocation29_spill] sm:$0xff] }
 0x1a6   : > { %5983 = vmatprep.mubr.bf16.mxu0 %v7185_v56  ;;  %v1552_v49 = vpop.f32.mrf.mxu1 }
 0x1a7   : > { %v1867_v33 = vpop.f32.mrf.mxu0  ;;  %v1553_v62 = vadd.f32 %v1552_v49, %v7307_v41  ;;  %v7477_v18 = vadd.f32 %v5678_v14, %v1561_v46 }
 0x1a8   : > { %v5629_v20 = vpop.f32.mrf.mxu1  ;;  %5928 = vmatmul.mubr.bf16.gmra.mxu1 %v8101_v3  ;;  %v8106_v3 = vld [vmem:[#allocation35_spill] sm:$0xff] }
 0x1a9   : > { %v5682_v58 = vpop.f32.mrf.mxu0  ;;  %v1574_v29 = vadd.f32 %v5629_v20, %v7312_v36  ;;  %5931 = vmatprep.mubr.bf16.mxu1 %v7200_v24  ;;  %v7482_v56 = vadd.f32 %v1854_v63, %v1553_v62  ;;  %v3847_v20 = vrot.slane %v3845_v5, 3 }
 0x1aa   : > { %v1565_v48 = vpop.f32.mrf.mxu1 }
 0x1ab   : > { %v1870_v26 = vpop.f32.mrf.mxu0  ;;  %v1566_v38 = vadd.f32 %v1565_v48, %v7320_v60  ;;  %v7486_v41 = vadd.f32 %v5681_v53, %v1574_v29  ;;  %v8107_v48 = vld [vmem:[#allocation28_spill] sm:$0xff] }
 0x1ac   : > { %v5630_v43 = vpop.f32.mrf.mxu1 }
 0x1ad   : > { %v5685_v12 = vpop.f32.mrf.mxu0  ;;  %5984 = vmatmul.mubr.bf16.gmra.mxu0 %v8102_v30  ;;  %v1577_v11 = vadd.f32 %v5630_v43, %v7326_v25  ;;  %v7490_v36 = vadd.f32 %v1867_v33, %v1566_v38  ;;  %v4207_v33 = vrot.slane %v7353_v1, 3  ;;  %v8108_v38 = vld [vmem:[#allocation37_spill] sm:$0xff]  ;;  %v8109_v43 = vld [vmem:[#allocation36_spill] sm:$0xff] }
 0x1ae   : > { %5987 = vmatprep.mubr.bf16.mxu0 %v7218_v35  ;;  %v1568_v10 = vpop.f32.mrf.mxu1  ;;  %v3854_v30 = vshll.u32 %v8108_v38, 16 }
 0x1af   : > { %v1883_v54 = vpop.f32.mrf.mxu0  ;;  %v1569_v24 = vadd.f32 %v1568_v10, %v7333_v44  ;;  %v7493_v59 = vadd.f32 %v5682_v58, %v1577_v11  ;;  %v3844_v58 = vrot.slane %v3842_v45, 2  ;;  %v8111_v10 = vld [vmem:[#allocation27_spill] sm:$0xff] }
 0x1b0   : > { %v5633_v60 = vpop.f32.mrf.mxu1  ;;  %5932 = vmatmul.mubr.bf16.gmra.mxu1 %v8103_v9 }
 0x1b1   : > { %v5686_v14 = vpop.f32.mrf.mxu0  ;;  %v1590_v0 = vadd.f32 %v5633_v60, %v7340_v57  ;;  %5935 = vmatprep.mubr.bf16.mxu1 %v7231_v2  ;;  %v7498_v35 = vadd.f32 %v1870_v26, %v1569_v24  ;;  %v8105_v57 = vld [vmem:[#allocation34_spill] sm:$0xff]  ;;  %v8112_v24 = vrot.slane %v8111_v10, 3 }
 0x1b2   : > { %v1581_v25 = vpop.f32.mrf.mxu1 }
 0x1b3   : > { %v1886_v63 = vpop.f32.mrf.mxu0  ;;  %v1582_v44 = vadd.f32 %v1581_v25, %v7343_v23  ;;  %v7504_v53 = vadd.f32 %v5685_v12, %v1590_v0  ;;  %v3851_v12 = vshrl.u32 %v8108_v38, 16  ;;  %v4208_v60 = vsel %vm4177_vm3, %v8112_v24, %v4207_v33  ;;  %v8113_v25 = vld [vmem:[#allocation38_spill] sm:$0xff]  ;;  %v8117_v24 = vld [vmem:[#allocation31_spill] sm:$0xff] }
 0x1b4   : > { %v5634_v31 = vpop.f32.mrf.mxu1  ;;  %v3848_v0 = vor.u32 %v3847_v20, %v3844_v58  ;;  %v3860_v45 = vshrl.u32 %v8113_v25, 16  ;;  %v3863_v5 = vshll.u32 %v8113_v25, 16 }
 0x1b5   : > { %v5689_v4 = vpop.f32.mrf.mxu0  ;;  %5988 = vmatmul.mubr.bf16.gmra.mxu0 %v7222_v34  ;;  %v1593_v46 = vadd.f32 %v5634_v31, %v8105_v57  ;;  %v7509_v49 = vadd.f32 %v1883_v54, %v1582_v44  ;;  %v8110_v54 = vld [vmem:[#allocation32_spill] sm:$0xff]  ;;  %v8114_v44 = vld [vmem:[#allocation39_spill] sm:$0xff]  ;;  %v8115_v57 = vld [vmem:[#allocation30_spill] sm:$0xff] }
 0x1b6   : > { %5991 = vmatprep.mubr.bf16.mxu0 %v8104_v19  ;;  %v1584_v62 = vpop.f32.mrf.mxu1 }
 0x1b7   : > { %v1899_v2 = vpop.f32.mrf.mxu0  ;;  %v1585_v23 = vadd.f32 %v1584_v62, %v8106_v3  ;;  %v7512_v26 = vadd.f32 %v5686_v14, %v1593_v46  ;;  %v4209_v3 = vrot.slane %v8108_v38, 3 }
 0x1b8   : > { %v5637_v34 = vpop.f32.mrf.mxu1  ;;  %5936 = vmatmul.mubr.bf16.gmra.mxu1 %v8107_v48  ;;  %v8116_v48 = vld [vmem:[#allocation40_spill] sm:$0xff] }
 0x1b9   : > { %v5690_v29 = vpop.f32.mrf.mxu0  ;;  %v1606_v11 = vadd.f32 %v5637_v34, %v8109_v43  ;;  %5939 = vmatprep.mubr.bf16.mxu1 %v8110_v54  ;;  %v7522_v9 = vadd.f32 %v1886_v63, %v1585_v23  ;;  %v3853_v34 = vrot.slane %v3851_v12, 2  ;;  %v3856_v63 = vrot.slane %v3854_v30, 3  ;;  %v6194_v23 = vld [vmem:[#allocation2 + $0xa0] ss:$0 sps:$4 sm:$0x77]  }
 0x1ba   : > { %v1597_v14 = vpop.f32.mrf.mxu1  ;;  %v4211_v43 = vrot.slane %v8113_v25, 3  ;;  %v8119_v30 = vld [vmem:[#allocation33_spill] sm:$0xff]  ;;  %v3869_v25 = vshrl.u32 %v6194_v23, 16 }
 0x1bb   : > { %v1902_v1 = vpop.f32.mrf.mxu0  ;;  %v1598_v31 = vadd.f32 %v1597_v14, %v8114_v44  ;;  %v7528_v46 = vadd.f32 %v5689_v4, %v1606_v11  ;;  %v3849_v14 = vsel %vm3706_vm2, %v8117_v24, %v3848_v0  ;;  %v3862_v4 = vrot.slane %v3860_v45, 2  ;;  %v8118_v44 = vld [vmem:[#allocation41_spill] sm:$0xff] }
 0x1bc   : > { %v5638_v62 = vpop.f32.mrf.mxu1  ;;  %v3865_v11 = vrot.slane %v3863_v5, 3  ;;  %v4212_v24 = vsel %vm4177_vm3, %v4209_v3, %v4211_v43  ;;  %v3872_v45 = vshll.u32 %v6194_v23, 16 }
 0x1bd   : > { %v5761_v19 = vpop.f32.mrf.mxu0  ;;  %5992 = vmatmul.mubr.bf16.gmra.mxu0 %v8115_v57  ;;  %v1609_v58 = vadd.f32 %v5638_v62, %v8116_v48  ;;  %v7533_v54 = vadd.f32 %v1899_v2, %v1598_v31  ;;  %v4210_v62 = vsel %vm4177_vm3, %v4207_v33, %v4209_v3  ;;  %v3857_v48 = vor.u32 %v3856_v63, %v3853_v34 }
 0x1be   : > { %5995 = vmatprep.mubr.bf16.mxu0 %v4208_v60  ;;  %v1600_v10 = vpop.f32.mrf.mxu1  ;;  %v3871_v3 = vrot.slane %v3869_v25, 2 }
 0x1bf   : > { %v2705_v20 = vpop.f32.mrf.mxu0  ;;  %v1601_v60 = vadd.f32 %v1600_v10, %v8118_v44  ;;  %v7538_v38 = vadd.f32 %v5690_v29, %v1609_v58  ;;  %v3866_v44 = vor.u32 %v3865_v11, %v3862_v4  ;;  %v3858_v34 = vsel %vm3706_vm2, %v3848_v0, %v3857_v48 }
 0x1c0   : > { %v5709_v12 = vpop.f32.mrf.mxu1  ;;  %5940 = vmatmul.mubr.bf16.gmra.mxu1 %v8119_v30 }
 0x1c1   : > { %v5762_v57 = vpop.f32.mrf.mxu0  ;;  %v2379_v2 = vadd.f32 %v5709_v12, %v7391_v6  ;;  %5943 = vmatprep.mubr.bf16.mxu1 %v3849_v14  ;;  %v7544_v5 = vadd.f32 %v1902_v1, %v1601_v60  ;;  %v4213_v6 = vrot.slane %v6194_v23, 3  ;;  %v3874_v12 = vrot.slane %v3872_v45, 3 }
 0x1c2   : > { %v2234_v10 = vpop.f32.mrf.mxu1  ;;  %v3867_v4 = vsel %vm3706_vm2, %v3857_v48, %v3866_v44 }
 0x1c3   : > { %v2708_v31 = vpop.f32.mrf.mxu0  ;;  %v2377_v29 = vadd.f32 %v2234_v10, %v7394_v51  ;;  %v7547_v30 = vadd.f32 %v5761_v19, %v2379_v2  ;;  %v4214_v0 = vsel %vm4177_vm3, %v4211_v43, %v4213_v6  ;;  %v3875_v25 = vor.u32 %v3874_v12, %v3871_v3 }
 0x1c4   : > { %v5710_v33 = vpop.f32.mrf.mxu1 }
 0x1c5   : > { %v5765_v58 = vpop.f32.mrf.mxu0  ;;  %5996 = vmatmul.mubr.bf16.gmra.mxu0 %v4210_v62  ;;  %v2380_v63 = vadd.f32 %v5710_v33, %v7397_v8  ;;  %v7551_v1 = vadd.f32 %v2705_v20, %v2377_v29  ;;  %v3876_v43 = vsel %vm3706_vm2, %v3866_v44, %v3875_v25 }
 0x1c6   : > { %5999 = vmatprep.mubr.bf16.mxu0 %v4212_v24  ;;  %v2237_v60 = vpop.f32.mrf.mxu1 }
 0x1c7   : > { %v2721_v14 = vpop.f32.mrf.mxu0  ;;  %v2378_v51 = vadd.f32 %v2237_v60, %v7403_v52  ;;  %v7555_v19 = vadd.f32 %v5762_v57, %v2380_v63 }
 0x1c8   : > { %v5713_v62 = vpop.f32.mrf.mxu1  ;;  %5944 = vmatmul.mubr.bf16.gmra.mxu1 %v3858_v34 }
 0x1c9   : > { %v5766_v11 = vpop.f32.mrf.mxu0  ;;  %v2383_v23 = vadd.f32 %v5713_v62, %v7406_v32  ;;  %5947 = vmatprep.mubr.bf16.mxu1 %v3867_v4  ;;  %v7559_v2 = vadd.f32 %v2708_v31, %v2378_v51 }
 0x1ca   : > { %v2250_v20 = vpop.f32.mrf.mxu1 }
 0x1cb   : > { %v2724_v8 = vpop.f32.mrf.mxu0  ;;  %v2381_v24 = vadd.f32 %v2250_v20, %v7410_v15  ;;  %v7562_v52 = vadd.f32 %v5765_v58, %v2383_v23 }
 0x1cc   : > { %v5714_v57 = vpop.f32.mrf.mxu1 }
 0x1cd   : > { %v5769_v48 = vpop.f32.mrf.mxu0  ;;  %6000 = vmatmul.mubr.bf16.gmra.mxu0 %v4214_v0  ;;  %v2384_v45 = vadd.f32 %v5714_v57, %v7413_v21  ;;  %v7566_v29 = vadd.f32 %v2721_v14, %v2381_v24 }
 0x1ce   : > { %v2253_v32 = vpop.f32.mrf.mxu1 }
 0x1cf   : > { %v2737_v10 = vpop.f32.mrf.mxu0  ;;  %v2382_v33 = vadd.f32 %v2253_v32, %v7418_v55  ;;  %v7569_v34 = vadd.f32 %v5766_v11, %v2384_v45 }
 0x1d0   : > { %v5717_v6 = vpop.f32.mrf.mxu1  ;;  %5948 = vmatmul.mubr.bf16.gmra.mxu1 %v3876_v43 }
 0x1d1   : > { %v5770_v31 = vpop.f32.mrf.mxu0  ;;  %v2387_v15 = vadd.f32 %v5717_v6, %v7422_v28  ;;  %v7572_v63 = vadd.f32 %v2724_v8, %v2382_v33 }
 0x1d2   : > { %v2266_v3 = vpop.f32.mrf.mxu1 }
 0x1d3   : > { %v2740_v58 = vpop.f32.mrf.mxu0  ;;  %v2385_v21 = vadd.f32 %v2266_v3, %v7426_v17  ;;  %v7575_v44 = vadd.f32 %v5769_v48, %v2387_v15 }
 0x1d4   : > { %v5718_v14 = vpop.f32.mrf.mxu1 }
 0x1d5   : > { %v5773_v12 = vpop.f32.mrf.mxu0  ;;  %v2388_v60 = vadd.f32 %v5718_v14, %v7429_v27  ;;  %v7578_v4 = vadd.f32 %v2737_v10, %v2385_v21 }
 0x1d6   : > { %v2269_v51 = vpop.f32.mrf.mxu1 }
 0x1d7   : > { %v2753_v55 = vpop.f32.mrf.mxu0  ;;  %v2386_v11 = vadd.f32 %v2269_v51, %v7434_v42  ;;  %v7581_v28 = vadd.f32 %v5770_v31, %v2388_v60 }
 0x1d8   : > { %v5721_v0 = vpop.f32.mrf.mxu1 }
 0x1d9   : > { %v5774_v62 = vpop.f32.mrf.mxu0  ;;  %v2391_v23 = vadd.f32 %v5721_v0, %v7438_v22  ;;  %v7584_v17 = vadd.f32 %v2740_v58, %v2386_v11 }
 0x1da   : > { %v2282_v25 = vpop.f32.mrf.mxu1 }
 0x1db   : > { %v2756_v8 = vpop.f32.mrf.mxu0  ;;  %v2389_v20 = vadd.f32 %v2282_v25, %v7442_v37  ;;  %v7587_v27 = vadd.f32 %v5773_v12, %v2391_v23 }
 0x1dc   : > { %v5722_v48 = vpop.f32.mrf.mxu1 }
 0x1dd   : > { %v5777_v24 = vpop.f32.mrf.mxu0  ;;  %v2392_v57 = vadd.f32 %v5722_v48, %v7445_v16  ;;  %v7590_v42 = vadd.f32 %v2753_v55, %v2389_v20 }
 0x1de   : > { %v2285_v10 = vpop.f32.mrf.mxu1 }
 0x1df   : > { %v2769_v45 = vpop.f32.mrf.mxu0  ;;  %v2390_v43 = vadd.f32 %v2285_v10, %v7450_v40  ;;  %v7593_v22 = vadd.f32 %v5774_v62, %v2392_v57 }
 0x1e0   : > { %v5725_v33 = vpop.f32.mrf.mxu1 }
 0x1e1   : > { %v5778_v32 = vpop.f32.mrf.mxu0  ;;  %v2395_v31 = vadd.f32 %v5725_v33, %v7454_v13  ;;  %v7596_v37 = vadd.f32 %v2756_v8, %v2390_v43 }
 0x1e2   : > { %v2298_v15 = vpop.f32.mrf.mxu1 }
 0x1e3   : > { %v2772_v6 = vpop.f32.mrf.mxu0  ;;  %v2393_v58 = vadd.f32 %v2298_v15, %v7458_v7  ;;  %v7599_v16 = vadd.f32 %v5777_v24, %v2395_v31 }
 0x1e4   : > { %v5726_v21 = vpop.f32.mrf.mxu1 }
 0x1e5   : > { %v5781_v3 = vpop.f32.mrf.mxu0  ;;  %v2396_v12 = vadd.f32 %v5726_v21, %v7461_v39  ;;  %v7602_v40 = vadd.f32 %v2769_v45, %v2393_v58 }
 0x1e6   : > { %v2301_v60 = vpop.f32.mrf.mxu1 }
 0x1e7   : > { %v2785_v14 = vpop.f32.mrf.mxu0  ;;  %v2394_v55 = vadd.f32 %v2301_v60, %v7466_v50  ;;  %v7605_v13 = vadd.f32 %v5778_v32, %v2396_v12 }
 0x1e8   : > { %v5729_v11 = vpop.f32.mrf.mxu1 }
 0x1e9   : > { %v5782_v51 = vpop.f32.mrf.mxu0  ;;  %v2399_v62 = vadd.f32 %v5729_v11, %v7470_v61  ;;  %v7608_v7 = vadd.f32 %v2772_v6, %v2394_v55 }
 0x1ea   : > { %v2314_v23 = vpop.f32.mrf.mxu1 }
 0x1eb   : > { %v2788_v0 = vpop.f32.mrf.mxu0  ;;  %v2397_v8 = vadd.f32 %v2314_v23, %v7474_v47  ;;  %v7611_v39 = vadd.f32 %v5781_v3, %v2399_v62 }
 0x1ec   : > { %v5730_v20 = vpop.f32.mrf.mxu1 }
 0x1ed   : > { %v5785_v25 = vpop.f32.mrf.mxu0  ;;  %v2400_v24 = vadd.f32 %v5730_v20, %v7477_v18  ;;  %v7614_v50 = vadd.f32 %v2785_v14, %v2397_v8 }
 0x1ee   : > { %v2317_v57 = vpop.f32.mrf.mxu1 }
 0x1ef   : > { %v2801_v48 = vpop.f32.mrf.mxu0  ;;  %v2398_v45 = vadd.f32 %v2317_v57, %v7482_v56  ;;  %v7617_v61 = vadd.f32 %v5782_v51, %v2400_v24 }
 0x1f0   : > { %v5733_v43 = vpop.f32.mrf.mxu1 }
 0x1f1   : > { %v5786_v10 = vpop.f32.mrf.mxu0  ;;  %v2403_v32 = vadd.f32 %v5733_v43, %v7486_v41  ;;  %v7620_v47 = vadd.f32 %v2788_v0, %v2398_v45 }
 0x1f2   : > { %v2330_v31 = vpop.f32.mrf.mxu1 }
 0x1f3   : > { %v2804_v33 = vpop.f32.mrf.mxu0  ;;  %v2401_v6 = vadd.f32 %v2330_v31, %v7490_v36  ;;  %v7623_v18 = vadd.f32 %v5785_v25, %v2403_v32 }
 0x1f4   : > { %v5734_v58 = vpop.f32.mrf.mxu1 }
 0x1f5   : > { %v5789_v15 = vpop.f32.mrf.mxu0  ;;  %v2404_v3 = vadd.f32 %v5734_v58, %v7493_v59  ;;  %v7626_v56 = vadd.f32 %v2801_v48, %v2401_v6 }
 0x1f6   : > { %v2333_v12 = vpop.f32.mrf.mxu1 }
 0x1f7   : > { %v2817_v21 = vpop.f32.mrf.mxu0  ;;  %v2402_v14 = vadd.f32 %v2333_v12, %v7498_v35  ;;  %v7629_v41 = vadd.f32 %v5786_v10, %v2404_v3 }
 0x1f8   : > { %v5737_v55 = vpop.f32.mrf.mxu1 }
 0x1f9   : > { %v5790_v60 = vpop.f32.mrf.mxu0  ;;  %v2407_v51 = vadd.f32 %v5737_v55, %v7504_v53  ;;  %v7632_v36 = vadd.f32 %v2804_v33, %v2402_v14 }
 0x1fa   : > { %v2346_v62 = vpop.f32.mrf.mxu1 }
 0x1fb   : > { %v2820_v11 = vpop.f32.mrf.mxu0  ;;  %v2405_v0 = vadd.f32 %v2346_v62, %v7509_v49  ;;  %v7635_v59 = vadd.f32 %v5789_v15, %v2407_v51 }
 0x1fc   : > { %v5738_v8 = vpop.f32.mrf.mxu1 }
 0x1fd   : > { %v5793_v23 = vpop.f32.mrf.mxu0  ;;  %v2408_v25 = vadd.f32 %v5738_v8, %v7512_v26  ;;  %v7638_v35 = vadd.f32 %v2817_v21, %v2405_v0 }
 0x1fe   : > { %v2349_v24 = vpop.f32.mrf.mxu1 }
 0x1ff   : > { %v2833_v20 = vpop.f32.mrf.mxu0  ;;  %v2406_v48 = vadd.f32 %v2349_v24, %v7522_v9  ;;  %v7641_v53 = vadd.f32 %v5790_v60, %v2408_v25 }
 0x200   : > { %v5741_v45 = vpop.f32.mrf.mxu1 }
 0x201   : > { %v5794_v57 = vpop.f32.mrf.mxu0  ;;  %v2411_v10 = vadd.f32 %v5741_v45, %v7528_v46  ;;  %v7644_v49 = vadd.f32 %v2820_v11, %v2406_v48 }
 0x202   : > { %v2362_v32 = vpop.f32.mrf.mxu1 }
 0x203   : > { %v2836_v43 = vpop.f32.mrf.mxu0  ;;  %v2409_v33 = vadd.f32 %v2362_v32, %v7533_v54  ;;  %v7647_v26 = vadd.f32 %v5793_v23, %v2411_v10 }
 0x204   : > { %v5742_v6 = vpop.f32.mrf.mxu1 }
 0x205   : > { %v5865_v31 = vpop.f32.mrf.mxu0  ;;  %v2412_v15 = vadd.f32 %v5742_v6, %v7538_v38  ;;  %v7650_v9 = vadd.f32 %v2833_v20, %v2409_v33 }
 0x206   : > { %v2365_v3 = vpop.f32.mrf.mxu1 }
 0x207   : > { %v3506_v58 = vpop.f32.mrf.mxu0  ;;  %v2410_v21 = vadd.f32 %v2365_v3, %v7544_v5  ;;  %v7653_v46 = vadd.f32 %v5794_v57, %v2412_v15 }
 0x208   : > { %v5813_v14 = vpop.f32.mrf.mxu1 }
 0x209   : > { %v5866_v12 = vpop.f32.mrf.mxu0  ;;  %v3188_v60 = vadd.f32 %v5813_v14, %v7547_v30  ;;  %v7656_v54 = vadd.f32 %v2836_v43, %v2410_v21 }
 0x20a   : > { %v3043_v51 = vpop.f32.mrf.mxu1 }
 0x20b   : > { %v3509_v55 = vpop.f32.mrf.mxu0  ;;  %v3186_v11 = vadd.f32 %v3043_v51, %v7551_v1  ;;  %v7659_v38 = vadd.f32 %v5865_v31, %v3188_v60 }
 0x20c   : > { %v5814_v0 = vpop.f32.mrf.mxu1 }
 0x20d   : > { %v5869_v62 = vpop.f32.mrf.mxu0  ;;  %v3189_v23 = vadd.f32 %v5814_v0, %v7555_v19  ;;  %v7662_v5 = vadd.f32 %v3506_v58, %v3186_v11 }
 0x20e   : > { %v3046_v25 = vpop.f32.mrf.mxu1 }
 0x20f   : > { %v3522_v8 = vpop.f32.mrf.mxu0  ;;  %v3187_v20 = vadd.f32 %v3046_v25, %v7559_v2  ;;  %v7665_v30 = vadd.f32 %v5866_v12, %v3189_v23 }
 0x210   : > { %v5817_v48 = vpop.f32.mrf.mxu1 }
 0x211   : > { %v5870_v24 = vpop.f32.mrf.mxu0  ;;  %v3192_v57 = vadd.f32 %v5817_v48, %v7562_v52  ;;  %v7668_v1 = vadd.f32 %v3509_v55, %v3187_v20 }
 0x212   : > { %v3059_v10 = vpop.f32.mrf.mxu1 }
 0x213   : > { %v3525_v45 = vpop.f32.mrf.mxu0  ;;  %v3190_v43 = vadd.f32 %v3059_v10, %v7566_v29  ;;  %v7671_v19 = vadd.f32 %v5869_v62, %v3192_v57 }
 0x214   : > { %v5818_v33 = vpop.f32.mrf.mxu1 }
 0x215   : > { %v5873_v32 = vpop.f32.mrf.mxu0  ;;  %v3193_v31 = vadd.f32 %v5818_v33, %v7569_v34  ;;  %v7674_v2 = vadd.f32 %v3522_v8, %v3190_v43 }
 0x216   : > { %v3062_v15 = vpop.f32.mrf.mxu1 }
 0x217   : > { %v3538_v6 = vpop.f32.mrf.mxu0  ;;  %v3191_v58 = vadd.f32 %v3062_v15, %v7572_v63  ;;  %v7677_v52 = vadd.f32 %v5870_v24, %v3193_v31 }
 0x218   : > { %v5821_v21 = vpop.f32.mrf.mxu1 }
 0x219   : > { %v5874_v3 = vpop.f32.mrf.mxu0  ;;  %v3196_v12 = vadd.f32 %v5821_v21, %v7575_v44  ;;  %v7680_v29 = vadd.f32 %v3525_v45, %v3191_v58 }
 0x21a   : > { %v3075_v60 = vpop.f32.mrf.mxu1 }
 0x21b   : > { %v3541_v14 = vpop.f32.mrf.mxu0  ;;  %v3194_v55 = vadd.f32 %v3075_v60, %v7578_v4  ;;  %v7683_v34 = vadd.f32 %v5873_v32, %v3196_v12 }
 0x21c   : > { %v5822_v11 = vpop.f32.mrf.mxu1 }
 0x21d   : > { %v5877_v51 = vpop.f32.mrf.mxu0  ;;  %v3197_v62 = vadd.f32 %v5822_v11, %v7581_v28  ;;  %v7686_v63 = vadd.f32 %v3538_v6, %v3194_v55 }
 0x21e   : > { %v3078_v23 = vpop.f32.mrf.mxu1 }
 0x21f   : > { %v3554_v0 = vpop.f32.mrf.mxu0  ;;  %v3195_v8 = vadd.f32 %v3078_v23, %v7584_v17  ;;  %v7689_v44 = vadd.f32 %v5874_v3, %v3197_v62 }
 0x220   : > { %v5825_v20 = vpop.f32.mrf.mxu1 }
 0x221   : > { %v5878_v25 = vpop.f32.mrf.mxu0  ;;  %v3200_v24 = vadd.f32 %v5825_v20, %v7587_v27  ;;  %v7692_v4 = vadd.f32 %v3541_v14, %v3195_v8 }
 0x222   : > { %v3091_v57 = vpop.f32.mrf.mxu1 }
 0x223   : > { %v3557_v48 = vpop.f32.mrf.mxu0  ;;  %v3198_v45 = vadd.f32 %v3091_v57, %v7590_v42  ;;  %v7695_v28 = vadd.f32 %v5877_v51, %v3200_v24 }
 0x224   : > { %v5826_v43 = vpop.f32.mrf.mxu1 }
 0x225   : > { %v5881_v10 = vpop.f32.mrf.mxu0  ;;  %v3201_v32 = vadd.f32 %v5826_v43, %v7593_v22  ;;  %v7698_v17 = vadd.f32 %v3554_v0, %v3198_v45 }
 0x226   : > { %v3094_v31 = vpop.f32.mrf.mxu1 }
 0x227   : > { %v3570_v33 = vpop.f32.mrf.mxu0  ;;  %v3199_v6 = vadd.f32 %v3094_v31, %v7596_v37  ;;  %v7701_v27 = vadd.f32 %v5878_v25, %v3201_v32 }
 0x228   : > { %v5829_v58 = vpop.f32.mrf.mxu1 }
 0x229   : > { %v5882_v15 = vpop.f32.mrf.mxu0  ;;  %v3204_v3 = vadd.f32 %v5829_v58, %v7599_v16  ;;  %v7704_v42 = vadd.f32 %v3557_v48, %v3199_v6 }
 0x22a   : > { %v3107_v12 = vpop.f32.mrf.mxu1 }
 0x22b   : > { %v3573_v21 = vpop.f32.mrf.mxu0  ;;  %v3202_v14 = vadd.f32 %v3107_v12, %v7602_v40  ;;  %v7707_v22 = vadd.f32 %v5881_v10, %v3204_v3 }
 0x22c   : > { %v5830_v55 = vpop.f32.mrf.mxu1 }
 0x22d   : > { %v5885_v60 = vpop.f32.mrf.mxu0  ;;  %v3205_v51 = vadd.f32 %v5830_v55, %v7605_v13  ;;  %v7710_v37 = vadd.f32 %v3570_v33, %v3202_v14 }
 0x22e   : > { %v3110_v62 = vpop.f32.mrf.mxu1 }
 0x22f   : > { %v3586_v11 = vpop.f32.mrf.mxu0  ;;  %v3203_v0 = vadd.f32 %v3110_v62, %v7608_v7  ;;  %v7713_v16 = vadd.f32 %v5882_v15, %v3205_v51 }
 0x230   : > { %v5833_v8 = vpop.f32.mrf.mxu1 }
 0x231   : > { %v5886_v23 = vpop.f32.mrf.mxu0  ;;  %v3208_v25 = vadd.f32 %v5833_v8, %v7611_v39  ;;  %v7716_v40 = vadd.f32 %v3573_v21, %v3203_v0 }
 0x232   : > { %v3123_v24 = vpop.f32.mrf.mxu1 }
 0x233   : > { %v3589_v20 = vpop.f32.mrf.mxu0  ;;  %v3206_v48 = vadd.f32 %v3123_v24, %v7614_v50  ;;  %v7719_v13 = vadd.f32 %v5885_v60, %v3208_v25 }
 0x234   : > { %v5834_v45 = vpop.f32.mrf.mxu1 }
 0x235   : > { %v5889_v57 = vpop.f32.mrf.mxu0  ;;  %v3209_v10 = vadd.f32 %v5834_v45, %v7617_v61  ;;  %v7722_v7 = vadd.f32 %v3586_v11, %v3206_v48 }
 0x236   : > { %v3126_v32 = vpop.f32.mrf.mxu1 }
 0x237   : > { %v3602_v43 = vpop.f32.mrf.mxu0  ;;  %v3207_v33 = vadd.f32 %v3126_v32, %v7620_v47  ;;  %v7725_v39 = vadd.f32 %v5886_v23, %v3209_v10 }
 0x238   : > { %v5837_v6 = vpop.f32.mrf.mxu1 }
 0x239   : > { %v5890_v31 = vpop.f32.mrf.mxu0  ;;  %v3212_v15 = vadd.f32 %v5837_v6, %v7623_v18  ;;  %v7728_v50 = vadd.f32 %v3589_v20, %v3207_v33 }
 0x23a   : > { %v3139_v3 = vpop.f32.mrf.mxu1 }
 0x23b   : > { %v3605_v58 = vpop.f32.mrf.mxu0  ;;  %v3210_v21 = vadd.f32 %v3139_v3, %v7626_v56  ;;  %v7731_v61 = vadd.f32 %v5889_v57, %v3212_v15 }
 0x23c   : > { %v5838_v14 = vpop.f32.mrf.mxu1 }
 0x23d   : > { %v5893_v12 = vpop.f32.mrf.mxu0  ;;  %v3213_v60 = vadd.f32 %v5838_v14, %v7629_v41  ;;  %v7734_v47 = vadd.f32 %v3602_v43, %v3210_v21 }
 0x23e   : > { %v3142_v51 = vpop.f32.mrf.mxu1 }
 0x23f   : > { %v3618_v55 = vpop.f32.mrf.mxu0  ;;  %v3211_v11 = vadd.f32 %v3142_v51, %v7632_v36  ;;  %v7737_v18 = vadd.f32 %v5890_v31, %v3213_v60 }
 0x240   : > { %v5841_v0 = vpop.f32.mrf.mxu1 }
 0x241   : > { %v5894_v62 = vpop.f32.mrf.mxu0  ;;  %v3216_v23 = vadd.f32 %v5841_v0, %v7635_v59  ;;  %v7740_v56 = vadd.f32 %v3605_v58, %v3211_v11 }
 0x242   : > { %v3155_v25 = vpop.f32.mrf.mxu1 }
 0x243   : > { %v3621_v8 = vpop.f32.mrf.mxu0  ;;  %v3214_v20 = vadd.f32 %v3155_v25, %v7638_v35  ;;  %v7743_v41 = vadd.f32 %v5893_v12, %v3216_v23  ;;  %v7766_v23 = vld [vmem:[#allocation5] ss:$0 sm:$0xff] }
 0x244   : > { %v5842_v48 = vpop.f32.mrf.mxu1 }
 0x245   : > { %v5897_v24 = vpop.f32.mrf.mxu0  ;;  %v3217_v57 = vadd.f32 %v5842_v48, %v7641_v53  ;;  %v7746_v36 = vadd.f32 %v3618_v55, %v3214_v20 }
 0x246   : > { %v3158_v10 = vpop.f32.mrf.mxu1 }
 0x247   : > { %v3634_v45 = vpop.f32.mrf.mxu0  ;;  %v3215_v43 = vadd.f32 %v3158_v10, %v7644_v49  ;;  %v7749_v59 = vadd.f32 %v5894_v62, %v3217_v57 }
 0x248   : > { %v5845_v33 = vpop.f32.mrf.mxu1 }
 0x249   : > { %v5898_v32 = vpop.f32.mrf.mxu0  ;;  %v3220_v31 = vadd.f32 %v5845_v33, %v7647_v26  ;;  %v7752_v35 = vadd.f32 %v3621_v8, %v3215_v43 }
 0x24a   : > { %v3171_v15 = vpop.f32.mrf.mxu1 }
 0x24b   : > { %v3637_v6 = vpop.f32.mrf.mxu0  ;;  %v3218_v58 = vadd.f32 %v3171_v15, %v7650_v9  ;;  %v7755_v53 = vadd.f32 %v5897_v24, %v3220_v31  ;;  %v7769_v24 = vld [vmem:[#allocation7] ss:$0 sm:$0xff] }
 0x24c   : > { %v5846_v21 = vpop.f32.mrf.mxu1 }
 0x24d   : > { %v5969_v3 = vpop.f32.mrf.mxu0  ;;  %v3221_v12 = vadd.f32 %v5846_v21, %v7653_v46  ;;  %v7758_v49 = vadd.f32 %v3634_v45, %v3218_v58 }
 0x24e   : > { %v3174_v60 = vpop.f32.mrf.mxu1 }
 0x24f   : > { %v4315_v14 = vpop.f32.mrf.mxu0  ;;  %v3219_v55 = vadd.f32 %v3174_v60, %v7656_v54  ;;  %v7761_v26 = vadd.f32 %v5898_v32, %v3221_v12 }
 0x250   : > { %v5917_v11 = vpop.f32.mrf.mxu1 }
 0x251   : > { %v5970_v51 = vpop.f32.mrf.mxu0  ;;  %v4122_v62 = vadd.f32 %v5917_v11, %v7659_v38  ;;  %v7764_v9 = vadd.f32 %v3637_v6, %v3219_v55 }
 0x252   : > { %v3977_v8 = vpop.f32.mrf.mxu1 }
 0x253   : > { %v4318_v0 = vpop.f32.mrf.mxu0  ;;  %v4460_v25 = vadd.f32 %v5969_v3, %v4122_v62  ;;  %v4120_v46 = vadd.f32 %v3977_v8, %v7662_v5 }
 0x254   : > { %v5918_v48 = vpop.f32.mrf.mxu1 }
 0x255   : > { %v5973_v20 = vpop.f32.mrf.mxu0  ;;  %v4503_v54 = vmul.f32 %v7766_v23, %v4460_v25  ;;  %v4458_v57 = vadd.f32 %v4315_v14, %v4120_v46  ;;  %v4123_v45 = vadd.f32 %v5918_v48, %v7665_v30 }
 0x256   : > { %v3980_v38 = vpop.f32.mrf.mxu1 }
 0x257   : > { %v4331_v10 = vpop.f32.mrf.mxu0  ;;  %v4546_v43 = vadd.f32 %v7769_v24, %v4503_v54  ;;  %v4501_v32 = vmul.f32 %v7766_v23, %v4458_v57  ;;  %v4461_v33 = vadd.f32 %v5970_v51, %v4123_v45  ;;  %v4121_v31 = vadd.f32 %v3980_v38, %v7668_v1 }
 0x258   : > { %v5921_v5 = vpop.f32.mrf.mxu1 }
 0x259   : > { %v5974_v6 = vpop.f32.mrf.mxu0  ;;  %v4582_v15 = vmax.f32 %v4546_v43, 0.0  ;;  %v4504_v58 = vmul.f32 %v7766_v23, %v4461_v33  ;;  %v4459_v3 = vadd.f32 %v4318_v0, %v4121_v31  ;;  %v4544_v12 = vadd.f32 %v7769_v24, %v4501_v32 }
 0x25a   : > { %v4126_v30 = vadd.f32 %v5921_v5, %v7671_v19  ;;  %v3993_v14 = vpop.f32.mrf.mxu1 }
 0x25b   : > { %v4334_v21 = vpop.f32.mrf.mxu0  ;;  %v4547_v60 = vadd.f32 %v7769_v24, %v4504_v58  ;;  %v4502_v55 = vmul.f32 %v7766_v23, %v4459_v3  ;;  %v5244_v51 = vpack.c.bf16 %v4582_v15, %v4582_v15  ;;  %v4124_v1 = vadd.f32 %v3993_v14, %v7674_v2 }
 0x25c   : > { %v4464_v62 = vadd.f32 %v5973_v20, %v4126_v30  ;;  %v5922_v8 = vpop.f32.mrf.mxu1  ;;  %v4580_v19 = vmax.f32 %v4544_v12, 0.0 }
 0x25d   : > { %v5977_v11 = vpop.f32.mrf.mxu0  ;;  %v4583_v25 = vmax.f32 %v4547_v60, 0.0  ;;  %v4545_v0 = vadd.f32 %v7769_v24, %v4502_v55  ;;  %v4127_v46 = vadd.f32 %v5922_v8, %v7677_v52  ;;  %v4462_v57 = vadd.f32 %v4331_v10, %v4124_v1 }
 0x25e   : > { %v4507_v54 = vmul.f32 %v7766_v23, %v4464_v62  ;;  %v3996_v45 = vpop.f32.mrf.mxu1  ;;  %v5165_v33 = vrot.slane %v5244_v51, 9 }
 0x25f   : > { %v4347_v48 = vpop.f32.mrf.mxu0  ;;  %v5245_v38 = vpack.c.bf16 %v4583_v25, %v4583_v25  ;;  %v4581_v43 = vmax.f32 %v4545_v0, 0.0  ;;  %v4465_v32 = vadd.f32 %v5974_v6, %v4127_v46  ;;  %v4125_v20 = vadd.f32 %v3996_v45, %v7680_v29 }
 0x260   : > { %v4550_v10 = vadd.f32 %v7769_v24, %v4507_v54  ;;  %v4505_v31 = vmul.f32 %v7766_v23, %v4462_v57  ;;  %v5925_v29 = vpop.f32.mrf.mxu1 }
 0x261   : > { %v5978_v2 = vpop.f32.mrf.mxu0  ;;  %v4655_v6 = vrot.slane %v5245_v38, 5  ;;  %v5281_v5 = vpack.c.bf16 %v4581_v43, %v4580_v19  ;;  %v4508_v15 = vmul.f32 %v7766_v23, %v4465_v32  ;;  %v4463_v58 = vadd.f32 %v4334_v21, %v4125_v20 }
 0x262   : > { %v4586_v12 = vmax.f32 %v4550_v10, 0.0  ;;  %v4548_v30 = vadd.f32 %v7769_v24, %v4505_v31  ;;  %v4130_v14 = vadd.f32 %v5925_v29, %v7683_v34  ;;  %v4009_v60 = vpop.f32.mrf.mxu1 }
 0x263   : > { %v4350_v3 = vpop.f32.mrf.mxu0  ;;  %v4656_v55 = vsel %vm7795_vm5, %v5165_v33, %v4655_v6  ;;  %5282 = vst [vmem:[%s7791_s20] sm:$0xff] %v5281_v5   ;;  %v4551_v51 = vadd.f32 %v7769_v24, %v4508_v15  ;;  %v4506_v62 = vmul.f32 %v7766_v23, %v4463_v58  ;;  %v4128_v0 = vadd.f32 %v4009_v60, %v7686_v63 }
 0x264   : > { %5166 = vst [vmem:[%s7791_s20 + $0x8] sm:$0xf] %v4656_v55  ;;  %v5248_v8 = vpack.c.bf16 %v4586_v12, %v4586_v12  ;;  %v4584_v21 = vmax.f32 %v4548_v30, 0.0  ;;  %v4468_v25 = vadd.f32 %v5977_v11, %v4130_v14  ;;  %v5926_v46 = vpop.f32.mrf.mxu1  ;;  %v4657_v45 = vrot.slane %v4655_v6, 4 }
 0x265   : > { %v5981_v1 = vpop.f32.mrf.mxu0  ;;  %v4587_v19 = vmax.f32 %v4551_v51, 0.0  ;;  %v4549_v34 = vadd.f32 %v7769_v24, %v4506_v62  ;;  %v4131_v54 = vadd.f32 %v5926_v46, %v7689_v44  ;;  %v4466_v31 = vadd.f32 %v4347_v48, %v4128_v0 }
 0x266   : > { %v4677_v38 = vrot.slane %v5248_v8, 6  ;;  %v5246_v43 = vpack.c.bf16 %v4584_v21, %v4584_v21  ;;  %v4511_v32 = vmul.f32 %v7766_v23, %v4468_v25  ;;  %v4012_v20 = vpop.f32.mrf.mxu1  ;;  %v5175_v63 = vrot.slane %v5248_v8, 11 }
 0x267   : > { %v4363_v57 = vpop.f32.mrf.mxu0  ;;  %v5249_v33 = vpack.c.bf16 %v4587_v19, %v4587_v19  ;;  %v4585_v10 = vmax.f32 %v4549_v34, 0.0  ;;  %v4469_v11 = vadd.f32 %v5978_v2, %v4131_v54  ;;  %v4129_v6 = vadd.f32 %v4012_v20, %v7692_v4 }
 0x268   : > { %v4658_v5 = vrot.slane %v5246_v43, 5  ;;  %v4554_v44 = vadd.f32 %v7769_v24, %v4511_v32  ;;  %v5929_v58 = vpop.f32.mrf.mxu1  ;;  %v4509_v48 = vmul.f32 %v7766_v23, %v4466_v31  ;;  %v5170_v55 = vrot.slane %v5246_v43, 10 }
 0x269   : > { %v5982_v29 = vpop.f32.mrf.mxu0  ;;  %v4693_v12 = vrot.slane %v5249_v33, 7  ;;  %v5247_v30 = vpack.c.bf16 %v4585_v10, %v4585_v10  ;;  %v4512_v2 = vmul.f32 %v7766_v23, %v4469_v11  ;;  %v4467_v4 = vadd.f32 %v4350_v3, %v4129_v6 }
 0x26a   : > { %v4659_v60 = vsel %vm7795_vm5, %v4657_v45, %v4658_v5  ;;  %v4134_v62 = vadd.f32 %v5929_v58, %v7695_v28  ;;  %v4025_v8 = vpop.f32.mrf.mxu1  ;;  %v4590_v0 = vmax.f32 %v4554_v44, 0.0  ;;  %v4552_v46 = vadd.f32 %v7769_v24, %v4509_v48 }
 0x26b   : > { %v4366_v14 = vpop.f32.mrf.mxu0  ;;  %5167 = vst [vmem:[%s7791_s20 + $0xc] sm:$0xf] %v4659_v60  ;;  %v4694_v21 = vsel %vm7816_vm8, %v5175_v63, %v4693_v12  ;;  %v4674_v25 = vrot.slane %v5247_v30, 6  ;;  %v4555_v34 = vadd.f32 %v7769_v24, %v4512_v2  ;;  %v4510_v54 = vmul.f32 %v7766_v23, %v4467_v4 }
 0x26c   : > { %5176 = vst [vmem:[%s7791_s20 + $0x18] sm:$0xf] %v4694_v21  ;;  %v4472_v45 = vadd.f32 %v5981_v1, %v4134_v62  ;;  %v4132_v3 = vadd.f32 %v4025_v8, %v7698_v17  ;;  %v5930_v28 = vpop.f32.mrf.mxu1  ;;  %v4588_v20 = vmax.f32 %v4552_v46, 0.0  ;;  %v4695_v31 = vrot.slane %v4693_v12, 4 }
 0x26d   : > { %v5985_v19 = vpop.f32.mrf.mxu0  ;;  %v4675_v43 = vsel %vm7828_vm11, %v5170_v55, %v4674_v25  ;;  %v4676_v32 = vrot.slane %v4674_v25, 4  ;;  %v4135_v33 = vadd.f32 %v5930_v28, %v7701_v27  ;;  %v4553_v11 = vadd.f32 %v7769_v24, %v4510_v54 }
 0x26e   : > { %5171 = vst [vmem:[%s7791_s20 + $0x10] sm:$0xf] %v4675_v43  ;;  %v4515_v63 = vmul.f32 %v7766_v23, %v4472_v45  ;;  %v4470_v5 = vadd.f32 %v4363_v57, %v4132_v3  ;;  %v4028_v1 = vpop.f32.mrf.mxu1  ;;  %v5250_v44 = vpack.c.bf16 %v4588_v20, %v4588_v20  ;;  %v4591_v48 = vmax.f32 %v4555_v34, 0.0 }
 0x26f   : > { %v4379_v10 = vpop.f32.mrf.mxu0  ;;  %v4678_v17 = vsel %vm7828_vm11, %v4676_v32, %v4677_v38  ;;  %v4473_v6 = vadd.f32 %v5982_v29, %v4135_v33  ;;  %v4133_v58 = vadd.f32 %v4028_v1, %v7704_v42  ;;  %v4589_v27 = vmax.f32 %v4553_v11, 0.0 }
 0x270   : > { %5172 = vst [vmem:[%s7791_s20 + $0x14] sm:$0xf] %v4678_v17  ;;  %v4558_v12 = vadd.f32 %v7769_v24, %v4515_v63  ;;  %v4513_v2 = vmul.f32 %v7766_v23, %v4470_v5  ;;  %v5933_v60 = vpop.f32.mrf.mxu1  ;;  %v4696_v55 = vrot.slane %v5250_v44, 7  ;;  %v5253_v3 = vpack.c.bf16 %v4591_v48, %v4591_v48 }
 0x271   : > { %v5986_v30 = vpop.f32.mrf.mxu0  ;;  %v4516_v57 = vmul.f32 %v7766_v23, %v4473_v6  ;;  %v4471_v4 = vadd.f32 %v4366_v14, %v4133_v58  ;;  %v4138_v38 = vadd.f32 %v5933_v60, %v7707_v22  ;;  %v5286_v62 = vpack.c.bf16 %v4590_v0, %v4589_v27 }
 0x272   : > { %v4594_v42 = vmax.f32 %v4558_v12, 0.0  ;;  %v4556_v8 = vadd.f32 %v7769_v24, %v4513_v2  ;;  %v4041_v21 = vpop.f32.mrf.mxu1  ;;  %v4697_v25 = vsel %vm7816_vm8, %v4695_v31, %v4696_v55 }
 0x273   : > { %v4382_v29 = vpop.f32.mrf.mxu0  ;;  %v4559_v46 = vadd.f32 %v7769_v24, %v4516_v57  ;;  %v4514_v34 = vmul.f32 %v7766_v23, %v4471_v4  ;;  %v4476_v54 = vadd.f32 %v5985_v19, %v4138_v38  ;;  %5177 = vst [vmem:[%s7791_s20 + $0x1c] sm:$0xf] %v4697_v25  ;;  %5298 = vst [vmem:[%s7791_s20 + $0x20] sm:$0xff] %v5286_v62  }
 0x274   : > { %v5256_v14 = vpack.c.bf16 %v4594_v42, %v4594_v42  ;;  %v4592_v22 = vmax.f32 %v4556_v8, 0.0  ;;  %v4136_v0 = vadd.f32 %v4041_v21, %v7710_v37  ;;  %v5934_v28 = vpop.f32.mrf.mxu1  ;;  %v5185_v37 = vrot.slane %v5253_v3, 9 }
 0x275   : > { %v5989_v45 = vpop.f32.mrf.mxu0  ;;  %v4595_v43 = vmax.f32 %v4559_v46, 0.0  ;;  %v4557_v32 = vadd.f32 %v7769_v24, %v4514_v34  ;;  %v4519_v20 = vmul.f32 %v7766_v23, %v4476_v54  ;;  %v4139_v33 = vadd.f32 %v5934_v28, %v7713_v16 }
 0x276   : > { %v4739_v11 = vrot.slane %v5256_v14, 6  ;;  %v5254_v63 = vpack.c.bf16 %v4592_v22, %v4592_v22  ;;  %v4474_v19 = vadd.f32 %v4379_v10, %v4136_v0  ;;  %v4044_v5 = vpop.f32.mrf.mxu1 }
 0x277   : > { %v4395_v31 = vpop.f32.mrf.mxu0  ;;  %v5257_v1 = vpack.c.bf16 %v4595_v43, %v4595_v43  ;;  %v4593_v17 = vmax.f32 %v4557_v32, 0.0  ;;  %v4562_v44 = vadd.f32 %v7769_v24, %v4519_v20  ;;  %v4477_v6 = vadd.f32 %v5986_v30, %v4139_v33 }
 0x278   : > { %v4722_v48 = vrot.slane %v5254_v63, 5  ;;  %v4517_v27 = vmul.f32 %v7766_v23, %v4474_v19  ;;  %v4137_v12 = vadd.f32 %v4044_v5, %v7716_v40  ;;  %v5937_v2 = vpop.f32.mrf.mxu1  ;;  %v4741_v16 = vrot.slane %v4739_v11, 4 }
 0x279   : > { %v5990_v58 = vpop.f32.mrf.mxu0  ;;  %v4742_v60 = vrot.slane %v5257_v1, 6  ;;  %v5255_v55 = vpack.c.bf16 %v4593_v17, %v4593_v17  ;;  %v4598_v10 = vmax.f32 %v4562_v44, 0.0  ;;  %v4520_v62 = vmul.f32 %v7766_v23, %v4477_v6 }
 0x27a   : > { %v4723_v4 = vsel %vm7795_vm5, %v5185_v37, %v4722_v48  ;;  %v4724_v38 = vrot.slane %v4722_v48, 4  ;;  %v4560_v30 = vadd.f32 %v7769_v24, %v4517_v27  ;;  %v4057_v42 = vpop.f32.mrf.mxu1  ;;  %v4475_v25 = vadd.f32 %v4382_v29, %v4137_v12 }
 0x27b   : > { %v4398_v57 = vpop.f32.mrf.mxu0  ;;  %5186 = vst [vmem:[%s7791_s20 + $0x28] sm:$0xf] %v4723_v4  ;;  %v4743_v40 = vsel %vm7828_vm11, %v4741_v16, %v4742_v60  ;;  %v4725_v8 = vrot.slane %v5255_v55, 5  ;;  %v5190_v21 = vrot.slane %v5255_v55, 10  ;;  %v4563_v54 = vadd.f32 %v7769_v24, %v4520_v62 }
 0x27c   : > { %5192 = vst [vmem:[%s7791_s20 + $0x34] sm:$0xf] %v4743_v40  ;;  %v4596_v34 = vmax.f32 %v4560_v30, 0.0  ;;  %v4142_v3 = vadd.f32 %v5937_v2, %v7719_v13  ;;  %v4140_v14 = vadd.f32 %v4057_v42, %v7722_v7  ;;  %v5938_v22 = vpop.f32.mrf.mxu1  ;;  %v4518_v43 = vmul.f32 %v7766_v23, %v4475_v25 }
 0x27d   : > { %v5993_v46 = vpop.f32.mrf.mxu0  ;;  %v4726_v0 = vsel %vm7795_vm5, %v4724_v38, %v4725_v8  ;;  %v4740_v28 = vsel %vm7828_vm11, %v5190_v21, %v4739_v11  ;;  %v4143_v29 = vadd.f32 %v5938_v22, %v7725_v39  ;;  %v4599_v33 = vmax.f32 %v4563_v54, 0.0 }
 0x27e   : > { %5187 = vst [vmem:[%s7791_s20 + $0x2c] sm:$0xf] %v4726_v0  ;;  %5191 = vst [vmem:[%s7791_s20 + $0x30] sm:$0xf] %v4740_v28  ;;  %v5258_v20 = vpack.c.bf16 %v4596_v34, %v4596_v34  ;;  %v4480_v63 = vadd.f32 %v5989_v45, %v4142_v3  ;;  %v4478_v13 = vadd.f32 %v4395_v31, %v4140_v14  ;;  %v4060_v19 = vpop.f32.mrf.mxu1  ;;  %v5195_v7 = vrot.slane %v5257_v1, 11 }
 0x27f   : > { %v4411_v32 = vpop.f32.mrf.mxu0  ;;  %v4561_v5 = vadd.f32 %v7769_v24, %v4518_v43  ;;  %v4481_v17 = vadd.f32 %v5990_v58, %v4143_v29  ;;  %v4141_v44 = vadd.f32 %v4060_v19, %v7728_v50  ;;  %v5291_v37 = vpack.c.bf16 %v4599_v33, %v4598_v10 }
 0x280   : > { %v4756_v6 = vrot.slane %v5258_v20, 7  ;;  %v4523_v39 = vmul.f32 %v7766_v23, %v4480_v63  ;;  %v4521_v48 = vmul.f32 %v7766_v23, %v4478_v13  ;;  %v5941_v27 = vpop.f32.mrf.mxu1 }
 0x281   : > { %v5994_v11 = vpop.f32.mrf.mxu0  ;;  %v4597_v12 = vmax.f32 %v4561_v5, 0.0  ;;  %v4524_v45 = vmul.f32 %v7766_v23, %v4481_v17  ;;  %v4479_v31 = vadd.f32 %v4398_v57, %v4141_v44  ;;  %v4146_v1 = vadd.f32 %v5941_v27, %v7731_v61  ;;  %5299 = vst [vmem:[%s7791_s20 + $0x40] sm:$0xff] %v5291_v37  }
 0x282   : > { %v4757_v58 = vsel %vm7816_vm8, %v5195_v7, %v4756_v6  ;;  %v4566_v50 = vadd.f32 %v7769_v24, %v4523_v39  ;;  %v4564_v16 = vadd.f32 %v7769_v24, %v4521_v48  ;;  %v4073_v60 = vpop.f32.mrf.mxu1  ;;  %v4758_v30 = vrot.slane %v4756_v6, 4 }
 0x283   : > { %v4414_v2 = vpop.f32.mrf.mxu0  ;;  %5196 = vst [vmem:[%s7791_s20 + $0x38] sm:$0xf] %v4757_v58  ;;  %v5259_v55 = vpack.c.bf16 %v4597_v12, %v4597_v12  ;;  %v4567_v10 = vadd.f32 %v7769_v24, %v4524_v45  ;;  %v4522_v4 = vmul.f32 %v7766_v23, %v4479_v31  ;;  %v4484_v38 = vadd.f32 %v5993_v46, %v4146_v1 }
 0x284   : > { %v4602_v61 = vmax.f32 %v4566_v50, 0.0  ;;  %v4600_v62 = vmax.f32 %v4564_v16, 0.0  ;;  %v4144_v42 = vadd.f32 %v4073_v60, %v7734_v47  ;;  %v5942_v40 = vpop.f32.mrf.mxu1 }
 0x285   : > { %v5997_v57 = vpop.f32.mrf.mxu0  ;;  %v4759_v8 = vrot.slane %v5259_v55, 7  ;;  %v4603_v21 = vmax.f32 %v4567_v10, 0.0  ;;  %v4565_v25 = vadd.f32 %v7769_v24, %v4522_v4  ;;  %v4527_v34 = vmul.f32 %v7766_v23, %v4484_v38 }
 0x286   : > { %v5264_v3 = vpack.c.bf16 %v4602_v61, %v4602_v61  ;;  %v5262_v14 = vpack.c.bf16 %v4600_v62, %v4600_v62  ;;  %v4482_v22 = vadd.f32 %v4411_v32, %v4144_v42  ;;  %v4147_v46 = vadd.f32 %v5942_v40, %v7737_v18  ;;  %v4076_v0 = vpop.f32.mrf.mxu1 }
 0x287   : > { %v4427_v54 = vpop.f32.mrf.mxu0  ;;  %v4760_v28 = vsel %vm7816_vm8, %v4758_v30, %v4759_v8  ;;  %v5265_v43 = vpack.c.bf16 %v4603_v21, %v4603_v21  ;;  %v4601_v47 = vmax.f32 %v4565_v25, 0.0  ;;  %v4570_v29 = vadd.f32 %v7769_v24, %v4527_v34 }
 0x288   : > { %5197 = vst [vmem:[%s7791_s20 + $0x3c] sm:$0xf] %v4760_v28  ;;  %v5210_v33 = vrot.slane %v5264_v3, 10  ;;  %v4525_v63 = vmul.f32 %v7766_v23, %v4482_v22  ;;  %v5945_v13 = vpop.f32.mrf.mxu1  ;;  %v4485_v5 = vadd.f32 %v5994_v11, %v4147_v46  ;;  %v4145_v17 = vadd.f32 %v4076_v0, %v7740_v56 }
 0x289   : > { %v5998_v20 = vpop.f32.mrf.mxu0  ;;  %v4803_v19 = vrot.slane %v5265_v43, 6  ;;  %v5263_v7 = vpack.c.bf16 %v4601_v47, %v4601_v47  ;;  %v4606_v32 = vmax.f32 %v4570_v29, 0.0  ;;  %v4150_v44 = vadd.f32 %v5945_v13, %v7743_v41 }
 0x28a   : > { %v4568_v18 = vadd.f32 %v7769_v24, %v4525_v63  ;;  %v4089_v6 = vpop.f32.mrf.mxu1  ;;  %v5205_v37 = vrot.slane %v5262_v14, 9  ;;  %v4528_v11 = vmul.f32 %v7766_v23, %v4485_v5  ;;  %v4483_v31 = vadd.f32 %v4414_v2, %v4145_v17 }
 0x28b   : > { %v4804_v39 = vsel %vm7828_vm11, %v5210_v33, %v4803_v19  ;;  %v4786_v48 = vrot.slane %v5263_v7, 5  ;;  %v7916_v27 = vpack.c.bf16 %v4606_v32, %v4606_v32  ;;  %v4430_v12 = vpop.f32.mrf.mxu0  ;;  %v4488_v1 = vadd.f32 %v5997_v57, %v4150_v44 }
 0x28c   : > { %5211 = vst [vmem:[%s7791_s20 + $0x50] sm:$0xf] %v4804_v39  ;;  %v4604_v45 = vmax.f32 %v4568_v18, 0.0  ;;  %v5946_v58 = vpop.f32.mrf.mxu1  ;;  %v4789_v56 = vrot.slane %v5264_v3, 5  ;;  %v4148_v16 = vadd.f32 %v4089_v6, %v7746_v36  ;;  %v4805_v60 = vrot.slane %v4803_v19, 4 }
 0x28d   : > { %v4787_v41 = vsel %vm7795_vm5, %v5205_v37, %v4786_v48  ;;  %v4788_v50 = vrot.slane %v4786_v48, 4  ;;  %v4526_v10 = vmul.f32 %v7766_v23, %v4483_v31  ;;  %v4531_v4 = vmul.f32 %v7766_v23, %v4488_v1  ;;  %v6001_v61 = vpop.f32.mrf.mxu0 }
 0x28e   : > { %5206 = vst [vmem:[%s7791_s20 + $0x48] sm:$0xf] %v4787_v41  ;;  %v5266_v55 = vpack.c.bf16 %v4604_v45, %v4604_v45  ;;  %v4092_v38 = vpop.f32.mrf.mxu1  ;;  %v4486_v57 = vadd.f32 %v4427_v54, %v4148_v16  ;;  %v4151_v30 = vadd.f32 %v5946_v58, %v7749_v59  ;;  %v4823_v36 = vrot.slane %v7916_v27, 7 }
 0x28f   : > { %v4790_v2 = vsel %vm7795_vm5, %v4788_v50, %v4789_v56  ;;  %v4149_v62 = vadd.f32 %v4092_v38, %v7752_v35  ;;  %v4571_v40 = vadd.f32 %v7769_v24, %v4528_v11  ;;  %v4569_v8 = vadd.f32 %v7769_v24, %v4526_v10  ;;  %v4443_v29 = vpop.f32.mrf.mxu0 }
 0x290   : > { %5207 = vst [vmem:[%s7791_s20 + $0x4c] sm:$0xf] %v4790_v2  ;;  %v4806_v42 = vrot.slane %v5266_v55, 6  ;;  %v5949_v21 = vpop.f32.mrf.mxu1  ;;  %v4574_v25 = vadd.f32 %v7769_v24, %v4531_v4  ;;  %v4529_v34 = vmul.f32 %v7766_v23, %v4486_v57  ;;  %v4489_v54 = vadd.f32 %v5998_v20, %v4151_v30 }
 0x291   : > { %v4487_v3 = vadd.f32 %v4430_v12, %v4149_v62  ;;  %v5215_v35 = vrot.slane %v5266_v55, 11  ;;  %v4605_v14 = vmax.f32 %v4569_v8, 0.0  ;;  %v4154_v22 = vadd.f32 %v5949_v21, %v7755_v53 }
 0x292   : > { %v4807_v59 = vsel %vm7828_vm11, %v4805_v60, %v4806_v42  ;;  %v4105_v46 = vpop.f32.mrf.mxu1  ;;  %v4610_v0 = vmax.f32 %v4574_v25, 0.0  ;;  %v4572_v28 = vadd.f32 %v7769_v24, %v4529_v34  ;;  %v4532_v43 = vmul.f32 %v7766_v23, %v4489_v54 }
 0x293   : > { %5212 = vst [vmem:[%s7791_s20 + $0x54] sm:$0xf] %v4807_v59  ;;  %v4530_v47 = vmul.f32 %v7766_v23, %v4487_v3  ;;  %v4607_v33 = vmax.f32 %v4571_v40, 0.0  ;;  %v5267_v20 = vpack.c.bf16 %v4605_v14, %v4605_v14  ;;  %v4492_v63 = vadd.f32 %v6001_v61, %v4154_v22 }
 0x294   : > { %v4152_v13 = vadd.f32 %v4105_v46, %v7758_v49  ;;  %v5950_v19 = vpop.f32.mrf.mxu1  ;;  %v5272_v7 = vpack.c.bf16 %v4610_v0, %v4610_v0  ;;  %v4608_v32 = vmax.f32 %v4572_v28, 0.0  ;;  %v4575_v53 = vadd.f32 %v7769_v24, %v4532_v43  ;;  %v6002_v49 = vpop.f32.mrf.mxu0 }
 0x295   : > { %v4573_v5 = vadd.f32 %v7769_v24, %v4530_v47  ;;  %v4820_v18 = vrot.slane %v5267_v20, 7  ;;  %v4535_v17 = vmul.f32 %v7766_v23, %v4492_v63  ;;  %v4155_v6 = vadd.f32 %v5950_v19, %v7761_v26 }
 0x296   : > { %v4490_v44 = vadd.f32 %v4443_v29, %v4152_v13  ;;  %v4849_v37 = vrot.slane %v5272_v7, 5  ;;  %v5296_v39 = vpack.c.bf16 %v4608_v32, %v4607_v33  ;;  %v4611_v48 = vmax.f32 %v4575_v53, 0.0  ;;  %v4108_v12 = vpop.f32.mrf.mxu1  ;;  %v4446_v38 = vpop.f32.mrf.mxu0 }
 0x297   : > { %v4609_v27 = vmax.f32 %v4573_v5, 0.0  ;;  %v4821_v45 = vsel %vm7816_vm8, %v5215_v35, %v4820_v18  ;;  %v4822_v11 = vrot.slane %v4820_v18, 4  ;;  %v4578_v31 = vadd.f32 %v7769_v24, %v4535_v17 }
 0x298   : > { %v4533_v1 = vmul.f32 %v7766_v23, %v4490_v44  ;;  %5216 = vst [vmem:[%s7791_s20 + $0x58] sm:$0xf] %v4821_v45  ;;  %5300 = vst [vmem:[%s7791_s20 + $0x60] sm:$0xff] %v5296_v39   ;;  %v5273_v58 = vpack.c.bf16 %v4611_v48, %v4611_v48  ;;  %v4493_v26 = vadd.f32 %v6002_v49, %v4155_v6  ;;  %v4851_v55 = vrot.slane %v4849_v37, 4 }
 0x299   : > { %v5271_v56 = vpack.c.bf16 %v4609_v27, %v4609_v27  ;;  %v4824_v41 = vsel %vm7816_vm8, %v4822_v11, %v4823_v36  ;;  %v4614_v50 = vmax.f32 %v4578_v31, 0.0  ;;  %v4153_v60 = vadd.f32 %v4108_v12, %v7764_v9 }
 0x29a   : > { %v4576_v16 = vadd.f32 %v7769_v24, %v4533_v1  ;;  %5217 = vst [vmem:[%s7791_s20 + $0x5c] sm:$0xf] %v4824_v41  ;;  %v4852_v10 = vrot.slane %v5273_v58, 5  ;;  %v4536_v2 = vmul.f32 %v7766_v23, %v4493_v26  ;;  %v5230_v25 = vrot.slane %v5273_v58, 10 }
 0x29b   : > { %v5225_v4 = vrot.slane %v5271_v56, 9  ;;  %v5276_v57 = vpack.c.bf16 %v4614_v50, %v4614_v50  ;;  %v4491_v61 = vadd.f32 %v4446_v38, %v4153_v60 }
 0x29c   : > { %v4612_v30 = vmax.f32 %v4576_v16, 0.0  ;;  %v4853_v62 = vsel %vm7795_vm5, %v4851_v55, %v4852_v10  ;;  %v4579_v42 = vadd.f32 %v7769_v24, %v4536_v2 }
 0x29d   : > { %v4850_v36 = vsel %vm7795_vm5, %v5225_v4, %v4849_v37  ;;  %5227 = vst [vmem:[%s7791_s20 + $0x6c] sm:$0xf] %v4853_v62  ;;  %v4534_v40 = vmul.f32 %v7766_v23, %v4491_v61  ;;  %v4883_v8 = vrot.slane %v5276_v57, 7 }
 0x29e   : > { %5226 = vst [vmem:[%s7791_s20 + $0x68] sm:$0xf] %v4850_v36  ;;  %v5274_v9 = vpack.c.bf16 %v4612_v30, %v4612_v30  ;;  %v4615_v21 = vmax.f32 %v4579_v42, 0.0 }
 0x29f   : > { %v4577_v54 = vadd.f32 %v7769_v24, %v4534_v40  ;;  %v4885_v35 = vrot.slane %v4883_v8, 4 }
 0x2a0   : > { %v4866_v34 = vrot.slane %v5274_v9, 6  ;;  %v5277_v3 = vpack.c.bf16 %v4615_v21, %v4615_v21 }
 0x2a1   : > { %v4613_v59 = vmax.f32 %v4577_v54, 0.0 }
 0x2a2   : > { %v4867_v52 = vsel %vm7828_vm11, %v5230_v25, %v4866_v34  ;;  %v4886_v14 = vrot.slane %v5277_v3, 7  ;;  %v4868_v46 = vrot.slane %v4866_v34, 4 }
 0x2a3   : > { %5231 = vst [vmem:[%s7791_s20 + $0x70] sm:$0xf] %v4867_v52  ;;  %v5275_v22 = vpack.c.bf16 %v4613_v59, %v4613_v59 }
 0x2a4   : > { %v4887_v23 = vsel %vm7816_vm8, %v4885_v35, %v4886_v14 }
 0x2a5   : > { %5237 = vst [vmem:[%s7791_s20 + $0x7c] sm:$0xf] %v4887_v23  ;;  %v4869_v0 = vrot.slane %v5275_v22, 6  ;;  %v5235_v28 = vrot.slane %v5275_v22, 11 }
 0x2a7   : > { %v4870_v24 = vsel %vm7828_vm11, %v4868_v46, %v4869_v0  ;;  %v4884_v43 = vsel %vm7816_vm8, %v5235_v28, %v4883_v8 }
 0x2a8   : > { %5232 = vst [vmem:[%s7791_s20 + $0x74] sm:$0xf] %v4870_v24  ;;  %5236 = vst [vmem:[%s7791_s20 + $0x78] sm:$0xf] %v4884_v43 }
 0x2a9 PF: > { %s16_s15 = sadd.s32 1, %s6293_s15  }
 0x2aa   : > { %p13_p5 = scmp.ge.s32.totalorder %s16_s15, 4  }
 0x2ac   :  { %15 = sbr.rel (!%p13_p5) target bundleno = 2 (0x2), region = 117 }
 0x2b1   :  { %4914 = vsyncpa [#allocation4], 1 }
 0x2b2   :  { %4916 = vsyncpa [#allocation4 + $0x1], 1 }
 0x2b3   :  { %4917 = vsyncpa [#allocation6], 1 }

// kernel: face_bone_forward.5
= control target key start
LH: loop header
LB: loop body
LE: loop exit
PB: predicated region body
PF: predicated region fallthrough
CT: control target
= control target key end

     0   :  { %13 = vsyncpa [#allocation5], 0  ;;  %s9191_s0 = inlined_call_operand.vmem [shape: bf16[2,8,4,512], index: 0, kind: input, shape index: {}]   ;;  %s9192_s1 = inlined_call_operand.hbm [shape: bf16[9,256,512], index: 1, kind: input, shape index: {}]   ;;  %s9193_s2 = inlined_call_operand.hbm [shape: f32[1,512], index: 2, kind: input, shape index: {}]   ;;  %s9194_s3 = inlined_call_operand.hbm [shape: f32[1,512], index: 3, kind: input, shape index: {}]   ;;  %s9195_s4 = inlined_call_operand.hbm [shape: bf16[512,128], index: 4, kind: input, shape index: {}]   ;;  %s9196_s5 = inlined_call_operand.hbm [shape: f32[1,128], index: 5, kind: input, shape index: {}]   ;;  %s9197_s6 = inlined_call_operand.hbm [shape: bf16[128,128], index: 6, kind: input, shape index: {}]   ;;  %s9198_s7 = inlined_call_operand.hbm [shape: f32[1,128], index: 7, kind: input, shape index: {}]   ;;  %s9199_s8 = inlined_call_operand.vmem [shape: f32[2,8,128], index: 8, kind: output, shape index: {}]  }
   0x1   :  { %14 = vsyncpa [#allocation7], 0 }
   0x2   :  { %15 = vsyncpa [#allocation10], 0 }
   0x3   :  { %16 = vsyncpa [#allocation13], 0  ;;  %s8409_s27 = smov 0  }
   0x4 LB: > { %s8349_s28 = smov [#allocation6]   ;;  %s8415_s30 = sadd.s32 4294967295, %s8347_s27   ;;  %s8347_s27 = sphi %s8409_s27, %s22_s27  }
   0x5   : > { %s252_s29 = sshll.u32 %s8349_s28, 4  ;;  %p6356_p0 = scmp.ge.s32.totalorder %s8347_s27, 1  ;;  %s253_s29 = int_to_ptr.vmem [resolvable:$true] %s252_s29 }
   0x6   : > { %p226_p1 = scmp.lt.s32.totalorder %s8347_s27, 3  ;;  %p9200_p2 = scmp.eq.s32.totalorder %s8415_s30, 0 }
   0x7   : > { %s8350_s10 = smov [#allocation9]   ;;  %s8351_s13 = smov [#allocation12]  }
   0x8   : > { %p8420_p3 = pnand %p6356_p0, %p226_p1  ;;  %s273_s11 = sshll.u32 %s8350_s10, 4  ;;  %s8426_s11 = int_to_ptr.vmem [resolvable:$true] %s273_s11 }
   0x9   : > { %s297_s14 = sshll.u32 %s8351_s13, 4  ;;  %s8352_s15 = smov [#allocation4]   ;;  %s8434_s14 = int_to_ptr.vmem [resolvable:$true] %s297_s14 }
   0xa   : > { %p7137_p4 = pneg %p8420_p3  ;;  %s8436_s16 = sshll.u32 %s8352_s15, 4  ;;  %s239_s16 = int_to_ptr.vmem [resolvable:$true] %s8436_s16 }
   0xb   : > { %s8154_s18 = scalar_lea.vmem %s253_s29, 64  ;;  %p8162_p10 = scmp.lt.s32.totalorder %s253_s29, %s253_s29 }
   0xc   : > { %p8430_p5 = pnand %p9200_p2, %p7137_p4  ;;  %p8155_p7 = scmp.ne.s32.totalorder %s253_s29, %s8154_s18 }
   0xd   : > { %p8163_p11 = scmp.lt.s32.totalorder %s8154_s18, %s8154_s18 }
   0xe   : > { %p8440_p6 = pneg %p8430_p5 }
   0xf   : > { %p8164_p12 = por %p8163_p11, %p8162_p10 }
  0x10   : > { %p8157_p8 = pnand %p8155_p7, %p8440_p6 }
  0x12   : > { %p8158_p9 = pneg %p8157_p8 }
  0x14   : > { %p8165_p13 = pnand %p8164_p12, %p8158_p9 }
  0x16   : > { %8168 = shalt.err (!%p8165_p13)
}
  0x17   : > { %7143 = dma.hbm_to_vmem [thread:$0]  (!%p8430_p5), %s9193_s2, 64, %s253_s29, [#allocation7]  }
  0x18   : > { %s8180_s21 = scalar_lea.vmem %s8426_s11, 4096  ;;  %p8188_p7 = scmp.lt.s32.totalorder %s8426_s11, %s8426_s11 }
  0x19   : > { %p8181_p0 = scmp.ne.s32.totalorder %s8426_s11, %s8180_s21  ;;  %p8189_p8 = scmp.lt.s32.totalorder %s8180_s21, %s8180_s21 }
  0x1b   : > { %p8183_p1 = pnand %p8181_p0, %p8440_p6  ;;  %p8190_p9 = por %p8189_p8, %p8188_p7 }
  0x1d   : > { %p8184_p4 = pneg %p8183_p1 }
  0x1f   : > { %p8191_p10 = pnand %p8190_p9, %p8184_p4 }
  0x21   : > { %8194 = shalt.err (!%p8191_p10)
}
  0x22   : > { %s8353_s22 = smov 64   ;;  %s8354_s23 = smov 4  }
  0x23   : > { %7149 = dma.hbm_to_vmem [thread:$0]  (!%p8430_p5), %s9195_s4, 4096, %s8426_s11, [#allocation10], %s8353_s22, %s8353_s22, %s8354_s23  }
  0x24   : > { %s8206_s26 = scalar_lea.vmem %s8434_s14, 1024  ;;  %p8214_p0 = scmp.lt.s32.totalorder %s8434_s14, %s8434_s14 }
  0x25   : > { %p8207_p11 = scmp.ne.s32.totalorder %s8434_s14, %s8206_s26  ;;  %p8215_p1 = scmp.lt.s32.totalorder %s8206_s26, %s8206_s26 }
  0x27   : > { %p8209_p12 = pnand %p8207_p11, %p8440_p6  ;;  %p8216_p4 = por %p8215_p1, %p8214_p0 }
  0x29   : > { %p8210_p13 = pneg %p8209_p12 }
  0x2b   : > { %p8217_p7 = pnand %p8216_p4, %p8210_p13 }
  0x2d   : > { %8220 = shalt.err (!%p8217_p7)
}
  0x2e   : > { %7155 = dma.hbm_to_vmem [thread:$0]  (!%p8430_p5), %s9197_s6, 1024, %s8434_s14, [#allocation13], %s8353_s22, %s8353_s22, %s8354_s23  }
  0x2f   : > { %s8232_s10 = scalar_lea.vmem %s239_s16, 73728  ;;  %p8240_p11 = scmp.lt.s32.totalorder %s239_s16, %s239_s16 }
  0x30   : > { %p8233_p8 = scmp.ne.s32.totalorder %s239_s16, %s8232_s10  ;;  %p8241_p12 = scmp.lt.s32.totalorder %s8232_s10, %s8232_s10 }
  0x32   : > { %p8235_p9 = pnand %p8233_p8, %p8440_p6  ;;  %p8242_p0 = por %p8241_p12, %p8240_p11 }
  0x34   : > { %p8236_p10 = pneg %p8235_p9 }
  0x36   : > { %p8243_p13 = pnand %p8242_p0, %p8236_p10 }
  0x38   : > { %8246 = shalt.err (!%p8243_p13)
}
  0x39   : > { %s8355_s11 = smov 256   ;;  %s8356_s13 = smov 16  }
  0x3a   : > { %7140 = dma.hbm_to_vmem [thread:$0]  (!%p8430_p5), %s9192_s1, 73728, %s239_s16, [#allocation5], %s8355_s11, %s8355_s11, %s8356_s13  }
  0x3b   : > { %s8357_s14 = smov [#allocation8]   ;;  %s8358_s20 = smov [#allocation11]  }
  0x3c   : > { %s263_s19 = sshll.u32 %s8357_s14, 4  ;;  %s287_s21 = sshll.u32 %s8358_s20, 4  ;;  %s264_s19 = int_to_ptr.vmem [resolvable:$true] %s263_s19  ;;  %s288_s21 = int_to_ptr.vmem [resolvable:$true] %s287_s21 }
  0x3d   : > { %s8258_s22 = scalar_lea.vmem %s264_s19, 64  ;;  %p8266_p8 = scmp.lt.s32.totalorder %s264_s19, %s264_s19 }
  0x3e   : > { %p8259_p1 = scmp.ne.s32.totalorder %s264_s19, %s8258_s22  ;;  %p8267_p9 = scmp.lt.s32.totalorder %s8258_s22, %s8258_s22 }
  0x40   : > { %p8261_p4 = pnand %p8259_p1, %p8440_p6  ;;  %p8268_p10 = por %p8267_p9, %p8266_p8 }
  0x42   : > { %p8262_p7 = pneg %p8261_p4 }
  0x44   : > { %p8269_p11 = pnand %p8268_p10, %p8262_p7 }
  0x46   : > { %8272 = shalt.err (!%p8269_p11)
}
  0x47   : > { %7146 = dma.hbm_to_vmem [thread:$0]  (!%p8430_p5), %s9194_s3, 64, %s264_s19, [#allocation7]  }
  0x48   : > { %s8284_s16 = scalar_lea.vmem %s288_s21, 16  ;;  %s8291_s25 = scalar_lea.vmem %s288_s21, 32 }
  0x49   : > { %p8285_p12 = scmp.ne.s32.totalorder %s288_s21, %s8284_s16  ;;  %p8292_p1 = scmp.lt.s32.totalorder %s288_s21, %s288_s21 }
  0x4a   : > { %p8293_p4 = scmp.lt.s32.totalorder %s8291_s25, %s8284_s16 }
  0x4b   : > { %p8287_p0 = pnand %p8285_p12, %p8440_p6 }
  0x4c   : > { %p8294_p2 = por %p8293_p4, %p8292_p1 }
  0x4d   : > { %p8288_p13 = pneg %p8287_p0 }
  0x4f   : > { %p8295_p8 = pnand %p8294_p2, %p8288_p13 }
  0x51   : > { %8298 = shalt.err (!%p8295_p8)
}
  0x52   : > { %7152 = dma.hbm_to_vmem [thread:$0]  (!%p8430_p5), %s9196_s5, 16, %s288_s21, [#allocation10]  }
  0x53   : > { %s8359_s29 = smov [#allocation14]  }
  0x54   : > { %s311_s10 = sshll.u32 %s8359_s29, 4  ;;  %s312_s10 = int_to_ptr.vmem [resolvable:$true] %s311_s10 }
  0x55   : > { %s8310_s11 = scalar_lea.vmem %s312_s10, 16  ;;  %s8317_s13 = scalar_lea.vmem %s312_s10, 32 }
  0x56   : > { %p8311_p7 = scmp.ne.s32.totalorder %s312_s10, %s8310_s11  ;;  %p8318_p11 = scmp.lt.s32.totalorder %s312_s10, %s312_s10 }
  0x57   : > { %p8319_p12 = scmp.lt.s32.totalorder %s8317_s13, %s8310_s11 }
  0x58   : > { %p8313_p9 = pnand %p8311_p7, %p8440_p6 }
  0x59   : > { %p8320_p2 = por %p8319_p12, %p8318_p11 }
  0x5a   : > { %p8314_p10 = pneg %p8313_p9 }
  0x5c   : > { %p8321_p0 = pnand %p8320_p2, %p8314_p10 }
  0x5e   : > { %8324 = shalt.err (!%p8321_p0)
}
  0x5f   : > { %7158 = dma.hbm_to_vmem [thread:$0]  (!%p8430_p5), %s9198_s7, 16, %s312_s10, [#allocation13]  }
  0x60   : > { %332 = sbr.rel (%p8420_p3) target bundleno = 1347 (0x543), region = 52  ;;  %p9204_p13 = scmp.eq.s32.totalorder (!%p8420_p3), %s8415_s30, 0 }
  0x65   : > { %8330 = dma.done.wait (%p9204_p13), [#allocation5], 73728   ;;  %p9205_p6 = pmov %p9204_p13 }
  0x67   : > { %8332 = vsyncadd (%p9205_p6), [#allocation5], 4294893568  ;;  %p9206_p1 = pmov %p9205_p6 }
  0x69   : > { %8334 = dma.done.wait (%p9206_p1), [#allocation7], 128   ;;  %p9207_p4 = pmov %p9206_p1 }
  0x6a   : > { %p9208_p8 = pmov %p9206_p1 }
  0x6b   : > { %8336 = vsyncadd (%p9207_p4), [#allocation7], 4294967168 }
  0x6c   : > { %8338 = dma.done.wait (%p9208_p8), [#allocation10], 4112   ;;  %p9209_p5 = pmov %p9206_p1 }
  0x6d   : > { %p9210_p3 = pmov %p9206_p1 }
  0x6e   : > { %8340 = vsyncadd (%p9209_p5), [#allocation10], 4294963184 }
  0x6f   : > { %8342 = dma.done.wait (%p9210_p3), [#allocation13], 1040   ;;  %p9211_p7 = pmov %p9206_p1 }
  0x70   : > { %v8360_v0 = vmov 0   ;;  %v7196_v1 = vld [vmem:[#allocation4 + $0x2e4] ss:$16 sps:$4 sm:$0xff]   ;;  %v7198_v2 = vld [vmem:[#allocation4 + $0x2ec] ss:$16 sps:$4 sm:$0xff]   ;;  %p389_p9 = scmp.lt.s32.totalorder %s8415_s30, 1  ;;  %v419_v40 = vlaneseq }
  0x71   : > { %8344 = vsyncadd (%p9211_p7), [#allocation13], 4294966256  ;;  %399 = vst [vmem:[#allocation2] sm:$0xff] %v8360_v0  ;;  %1223 = vmatprep.subr.bf16.mxu0 %v7196_v1  ;;  %v7200_v3 = vld [vmem:[#allocation4 + $0x2e0] ss:$16 sps:$4 sm:$0xff]   ;;  %1274 = vmatprep.subr.bf16.mxu1 %v7198_v2  ;;  %vm555_vm0 = vcmask 1043457  }
  0x72   : > { %401 = vst [vmem:[#allocation2 + $0x10] sm:$0xff] %v8360_v0  ;;  %403 = vst [vmem:[#allocation2 + $0x20] sm:$0xff] %v8360_v0  ;;  %v7201_v4 = vld [vmem:[#allocation4 + $0x2e8] ss:$16 sps:$4 sm:$0xff]   ;;  %v7202_v5 = vld [vmem:[#allocation4 + $0x2c4] ss:$16 sps:$4 sm:$0xff]   ;;  %1224 = vmatpush1.bf16.msra.mxu0 %v7200_v3 }
  0x73   : > { %400 = vst [vmem:[#allocation2 + $0x8] sm:$0xff] %v8360_v0  ;;  %402 = vst [vmem:[#allocation2 + $0x18] sm:$0xff] %v8360_v0  ;;  %1275 = vmatpush1.bf16.msra.mxu1 %v7201_v4  ;;  %v7204_v6 = vld [vmem:[#allocation4 + $0x2cc] ss:$16 sps:$4 sm:$0xff]   ;;  %v7206_v7 = vld [vmem:[#allocation4 + $0x2c0] ss:$16 sps:$4 sm:$0xff]   ;;  %1225 = vmatprep.subr.bf16.mxu0 %v7202_v5 }
  0x74   : > { %404 = vst [vmem:[#allocation2 + $0x28] sm:$0xff] %v8360_v0  ;;  %405 = vst [vmem:[#allocation2 + $0x30] sm:$0xff] %v8360_v0  ;;  %v7207_v8 = vld [vmem:[#allocation4 + $0x2c8] ss:$16 sps:$4 sm:$0xff]   ;;  %1276 = vmatprep.subr.bf16.mxu1 %v7204_v6  ;;  %v7208_v9 = vld [vmem:[#allocation4 + $0x2a4] ss:$16 sps:$4 sm:$0xff]  }
  0x75   : > { %406 = vst [vmem:[#allocation2 + $0x38] sm:$0xff] %v8360_v0  ;;  %407 = vst [vmem:[#allocation3] sm:$0xff] %v8360_v0  ;;  %v7210_v10 = vld [vmem:[#allocation4 + $0x2ac] ss:$16 sps:$4 sm:$0xff]   ;;  %v7212_v11 = vld [vmem:[#allocation4 + $0x2a0] ss:$16 sps:$4 sm:$0xff]  }
  0x76   : > { %408 = vst [vmem:[#allocation3 + $0x8] sm:$0xff] %v8360_v0  ;;  %409 = vst [vmem:[#allocation3 + $0x10] sm:$0xff] %v8360_v0  ;;  %v7213_v12 = vld [vmem:[#allocation4 + $0x2a8] ss:$16 sps:$4 sm:$0xff]   ;;  %1226 = vmatpush1.bf16.msra.mxu0 %v7206_v7  ;;  %v7214_v13 = vld [vmem:[#allocation4 + $0x284] ss:$16 sps:$4 sm:$0xff]  }
  0x77   : > { %410 = vst [vmem:[#allocation3 + $0x18] sm:$0xff] %v8360_v0  ;;  %411 = vst [vmem:[#allocation3 + $0x20] sm:$0xff] %v8360_v0  ;;  %1277 = vmatpush1.bf16.msra.mxu1 %v7207_v8  ;;  %1227 = vmatprep.subr.bf16.mxu0 %v7208_v9  ;;  %v7216_v14 = vld [vmem:[#allocation4 + $0x28c] ss:$16 sps:$4 sm:$0xff]   ;;  %v7218_v15 = vld [vmem:[#allocation4 + $0x280] ss:$16 sps:$4 sm:$0xff]  }
  0x78   : > { %412 = vst [vmem:[#allocation3 + $0x28] sm:$0xff] %v8360_v0  ;;  %1278 = vmatprep.subr.bf16.mxu1 %v7210_v10  ;;  %v7219_v16 = vld [vmem:[#allocation4 + $0x288] ss:$16 sps:$4 sm:$0xff]   ;;  %v7220_v17 = vld [vmem:[#allocation4 + $0x264] ss:$16 sps:$4 sm:$0xff]   ;;  %s9231_s30 = smov (!%p389_p9, %s8415_s30), 1 }
  0x79   : > { %v7222_v18 = vld [vmem:[#allocation4 + $0x26c] ss:$16 sps:$4 sm:$0xff]   ;;  %v7224_v19 = vld [vmem:[#allocation4 + $0x260] ss:$16 sps:$4 sm:$0xff]   ;;  %v7225_v20 = vld [vmem:[#allocation4 + $0x268] ss:$16 sps:$4 sm:$0xff]  }
  0x7a   : > { %1228 = vmatpush1.bf16.msra.mxu0 %v7212_v11  ;;  %v7226_v21 = vld [vmem:[#allocation4 + $0x244] ss:$16 sps:$4 sm:$0xff]   ;;  %v7228_v22 = vld [vmem:[#allocation4 + $0x24c] ss:$16 sps:$4 sm:$0xff]   ;;  %v7230_v23 = vld [vmem:[#allocation4 + $0x240] ss:$16 sps:$4 sm:$0xff]  }
  0x7b   : > { %1279 = vmatpush1.bf16.msra.mxu1 %v7213_v12  ;;  %1229 = vmatprep.subr.bf16.mxu0 %v7214_v13  ;;  %v7231_v24 = vld [vmem:[#allocation4 + $0x248] ss:$16 sps:$4 sm:$0xff]   ;;  %v7232_v25 = vld [vmem:[#allocation4 + $0x224] ss:$16 sps:$4 sm:$0xff]   ;;  %v7234_v26 = vld [vmem:[#allocation4 + $0x22c] ss:$16 sps:$4 sm:$0xff]  }
  0x7c   : > { %1280 = vmatprep.subr.bf16.mxu1 %v7216_v14  ;;  %v7236_v27 = vld [vmem:[#allocation4 + $0x220] ss:$16 sps:$4 sm:$0xff]   ;;  %v7237_v28 = vld [vmem:[#allocation4 + $0x228] ss:$16 sps:$4 sm:$0xff]   ;;  %v7238_v29 = vld [vmem:[#allocation4 + $0x204] ss:$16 sps:$4 sm:$0xff]  }
  0x7d   : > { %v7240_v30 = vld [vmem:[#allocation4 + $0x20c] ss:$16 sps:$4 sm:$0xff]   ;;  %v7242_v31 = vld [vmem:[#allocation4 + $0x200] ss:$16 sps:$4 sm:$0xff]   ;;  %v7243_v32 = vld [vmem:[#allocation4 + $0x208] ss:$16 sps:$4 sm:$0xff]  }
  0x7e   : > { %1230 = vmatpush1.bf16.msra.mxu0 %v7218_v15  ;;  %v7244_v33 = vld [vmem:[#allocation4 + $0x3e4] ss:$16 sps:$4 sm:$0xff]   ;;  %v7246_v34 = vld [vmem:[#allocation4 + $0x3ec] ss:$16 sps:$4 sm:$0xff]   ;;  %v7248_v35 = vld [vmem:[#allocation4 + $0x3e0] ss:$16 sps:$4 sm:$0xff]  }
  0x7f   : > { %1281 = vmatpush1.bf16.msra.mxu1 %v7219_v16  ;;  %1231 = vmatprep.subr.bf16.mxu0 %v7220_v17  ;;  %v7249_v36 = vld [vmem:[#allocation4 + $0x3e8] ss:$16 sps:$4 sm:$0xff]   ;;  %v7250_v37 = vld [vmem:[#allocation4 + $0x3c4] ss:$16 sps:$4 sm:$0xff]   ;;  %v8361_v38 = vmov 1983009808  }
  0x80   : > { %1282 = vmatprep.subr.bf16.mxu1 %v7222_v18  ;;  %v417_v39 = vunpack.c.l.s4 %v8361_v38  ;;  %v7252_v41 = vld [vmem:[#allocation4 + $0x3cc] ss:$16 sps:$4 sm:$0xff]   ;;  %vm556_vm1 = vsmask.f32 3334  ;;  %vm558_vm2 = vcmask 1047557   ;;  %v8528_v46 = vshrl.u32 %v419_v40, 7 }
  0x81   : > { %v7254_v42 = vld [vmem:[#allocation4 + $0x3c0] ss:$16 sps:$4 sm:$0xff]   ;;  %vm559_vm3 = vsmask.f32 7446  ;;  %v7255_v43 = vld [vmem:[#allocation4 + $0x3c8] ss:$16 sps:$4 sm:$0xff]   ;;  %vm8532_vm4 = vmand %vm555_vm0, %vm556_vm1 }
  0x82   : > { %1232 = vmatpush1.bf16.msra.mxu0 %v7224_v19  ;;  %v7256_v44 = vld [vmem:[#allocation4 + $0x3a4] ss:$16 sps:$4 sm:$0xff]   ;;  %v418_v45 = vunpack.c.0.s8 %v417_v39  ;;  %v7258_v47 = vld [vmem:[#allocation4 + $0x3ac] ss:$16 sps:$4 sm:$0xff]   ;;  %s7035_s9 = sshll.u32 %s9231_s30, 6  ;;  %vm694_vm5 = vcmask 1043458   ;;  %vm8538_vm6 = vmand %vm558_vm2, %vm559_vm3 }
  0x83   : > { %1283 = vmatpush1.bf16.msra.mxu1 %v7225_v20  ;;  %1233 = vmatprep.subr.bf16.mxu0 %v7226_v21  ;;  %v7260_v49 = vld [vmem:[#allocation4 + $0x3a0] ss:$16 sps:$4 sm:$0xff]   ;;  %v7261_v50 = vld [vmem:[#allocation4 + $0x3a8] ss:$16 sps:$4 sm:$0xff]   ;;  %vm695_vm7 = vsmask.f32 7946  ;;  %s8545_s14 = scalar_lea.vmem %s9191_s0, %s7035_s9  ;;  %vm8578_vm12 = vmor %vm8538_vm6, %vm8532_vm4 }
  0x84   : > { %1284 = vmatprep.subr.bf16.mxu1 %v7228_v22  ;;  %v7262_v52 = vld [vmem:[#allocation4 + $0x384] ss:$16 sps:$4 sm:$0xff]   ;;  %v8548_v53 = vsub.s32 %v418_v45, %v8528_v46  ;;  %v7264_v54 = vld [vmem:[#allocation4 + $0x38c] ss:$16 sps:$4 sm:$0xff]   ;;  %vm8551_vm8 = vmand %vm694_vm5, %vm695_vm7  ;;  %vm698_vm9 = vsmask.f32 7962 }
  0x85   : > { %v6376_v55 = vld [vmem:[%s8545_s14 + $0x8] sm:$0xff]  ;;  %v7266_v57 = vld [vmem:[#allocation4 + $0x380] ss:$16 sps:$4 sm:$0xff]   ;;  %v8557_v59 = vld [vmem:[%s8545_s14 + $0x18] sm:$0xff]  ;;  %vm697_vm10 = vcmask 1047558   ;;  %vm446_vm15 = vcmask 1042432  }
  0x86   : > { %1234 = vmatpush1.bf16.msra.mxu0 %v7230_v23  ;;  %v469_v58 = vrot.slane %v6376_v55, %v8548_v53  ;;  %v6380_v60 = vld [vmem:[%s8545_s14 + $0x28] sm:$0xff]  ;;  %v462_v61 = vcombine.high %v6376_v55, %v6376_v55  ;;  %v7268_v63 = vld [vmem:[#allocation4 + $0x364] ss:$16 sps:$4 sm:$0xff]   ;;  %v529_v0 = vrot.slane %v8557_v59, %v8548_v53  ;;  %v8563_v1 = vld [vmem:[%s8545_s14 + $0x38] sm:$0xff]  ;;  %vm868_vm14 = vsmask.f32 7424 }
  0x87   : > { %1285 = vmatpush1.bf16.msra.mxu1 %v7231_v24  ;;  %1235 = vmatprep.subr.bf16.mxu0 %v7232_v25  ;;  %v7267_v62 = vld [vmem:[#allocation4 + $0x388] ss:$16 sps:$4 sm:$0xff]   ;;  %6381 = vst.sshfl [vmem:[#allocation2 + $0x20] sm:$0xf pattern:$0x76325410] %v6380_v60  ;;  %v613_v2 = vcombine.high %v6380_v60, %v6380_v60  ;;  %v664_v5 = vrot.slane %v8563_v1, %v8548_v53  ;;  %vm8570_vm11 = vmand %vm697_vm10, %vm698_vm9 }
  0x88   : > { %1286 = vmatprep.subr.bf16.mxu1 %v7234_v26  ;;  %v7270_v3 = vld [vmem:[#allocation4 + $0x36c] ss:$16 sps:$4 sm:$0xff]   ;;  %v477_v4 = vrot.slane %v469_v58, 5  ;;  %v7272_v6 = vld [vmem:[#allocation4 + $0x360] ss:$16 sps:$4 sm:$0xff]   ;;  %v538_v7 = vshrl.u32 %v529_v0, 16  ;;  %v476_v9 = vrot.slane %v462_v61, %v8548_v53  ;;  %vm700_vm13 = vmor %vm8570_vm11, %vm8551_vm8 }
  0x89   : > { %v541_v8 = vshll.u32 %v529_v0, 16  ;;  %6382 = vst.sshfl [vmem:[#allocation2 + $0x28] sm:$0xf pattern:$0x76325410] %v613_v2  ;;  %v673_v12 = vshrl.u32 %v664_v5, 16 }
  0x8a   : > { %1236 = vmatpush1.bf16.msra.mxu0 %v7236_v27  ;;  %v7273_v10 = vld [vmem:[#allocation4 + $0x368] ss:$16 sps:$4 sm:$0xff]   ;;  %v479_v11 = vrot.slane %v477_v4, 4  ;;  %485 = vst [vmem:[#allocation2] sm:$0x88] %v477_v4  ;;  %v676_v13 = vshll.u32 %v664_v5, 16 }
  0x8b   : > { %1287 = vmatpush1.bf16.msra.mxu1 %v7237_v28  ;;  %1237 = vmatprep.subr.bf16.mxu0 %v7238_v29  ;;  %v7274_v15 = vld [vmem:[#allocation4 + $0x344] ss:$16 sps:$4 sm:$0xff]   ;;  %v540_v16 = vrot.slane %v538_v7, 6  ;;  %v543_v17 = vrot.slane %v541_v8, 7  ;;  %v7276_v18 = vld [vmem:[#allocation4 + $0x34c] ss:$16 sps:$4 sm:$0xff]  }
  0x8c   : > { %1288 = vmatprep.subr.bf16.mxu1 %v7240_v30  ;;  %487 = vst [vmem:[#allocation2 + $0x10] sm:$0x11] %v479_v11  ;;  %v562_v20 = vld [vmem:[#allocation2 + $0x10] sm:$0xee]  ;;  %v8582_v21 = vrot.slane %v673_v12, 5  ;;  %v678_v22 = vrot.slane %v676_v13, 6 }
  0x8d   : > { %v544_v23 = vor.u32 %v543_v17, %v540_v16  ;;  %v701_v24 = vld [vmem:[#allocation2 + $0x20] sm:$0xcc]  ;;  %v478_v25 = vrot.slane %v476_v9, 5  ;;  %v7279_v28 = vld [vmem:[#allocation4 + $0x348] ss:$16 sps:$4 sm:$0xff]   ;;  %v522_v9 = vcombine.high %v8557_v59, %v8557_v59  ;;  %vm449_vm1 = vcmask 1046532  }
  0x8e   : > { %1238 = vmatpush1.bf16.msra.mxu0 %v7242_v31  ;;  %v7278_v26 = vld [vmem:[#allocation4 + $0x340] ss:$16 sps:$4 sm:$0xff]   ;;  %v679_v27 = vor.u32 %v678_v22, %v8582_v21  ;;  %v7280_v31 = vld [vmem:[#allocation4 + $0x324] ss:$16 sps:$4 sm:$0xff]   ;;  %v7291_v39 = vld [vmem:[#allocation4 + $0x308] ss:$16 sps:$4 sm:$0xff]  }
  0x8f   : > { %1289 = vmatpush1.bf16.msra.mxu1 %v7243_v32  ;;  %1239 = vmatprep.subr.bf16.mxu0 %v7244_v33  ;;  %v563_v29 = vsel %vm8578_vm12, %v544_v23, %v562_v20  ;;  %v480_v30 = vrot.slane %v478_v25, 4  ;;  %486 = vst [vmem:[#allocation2 + $0x8] sm:$0x88] %v478_v25  ;;  %v7282_v32 = vld [vmem:[#allocation4 + $0x32c] ss:$16 sps:$4 sm:$0xff]   ;;  %v536_v16 = vrot.slane %v522_v9, %v8548_v53  ;;  %vm707_vm6 = vcmask 1040384  }
  0x90   : > { %1290 = vmatprep.subr.bf16.mxu1 %v7246_v34  ;;  %564 = vst [vmem:[#allocation2 + $0x10] sm:$0xee] %v563_v29  ;;  %v702_v33 = vsel %vm700_vm13, %v679_v27, %v701_v24  ;;  %v7284_v34 = vld [vmem:[#allocation4 + $0x320] ss:$16 sps:$4 sm:$0xff]   ;;  %v7301_v0 = vld [vmem:[#allocation4 + $0xe8] ss:$16 sps:$4 sm:$0xff]  }
  0x91   : > { %703 = vst [vmem:[#allocation2 + $0x20] sm:$0xcc] %v702_v33  ;;  %488 = vst [vmem:[#allocation2 + $0x18] sm:$0x11] %v480_v30  ;;  %v7290_v38 = vld [vmem:[#allocation4 + $0x300] ss:$16 sps:$4 sm:$0xff]  }
  0x92   : > { %1240 = vmatpush2.bf16.msra.mxu0 %v7248_v35  ;;  %v7285_v35 = vld [vmem:[#allocation4 + $0x328] ss:$16 sps:$4 sm:$0xff]   ;;  %v7306_v4 = vld [vmem:[#allocation4 + $0xc4] ss:$16 sps:$4 sm:$0xff]   ;;  %v7309_v5 = vld [vmem:[#allocation4 + $0xcc] ss:$16 sps:$4 sm:$0xff]  }
  0x93   : > { %1291 = vmatpush2.bf16.msra.mxu1 %v7249_v36  ;;  %1241 = vmatprep.subr.bf16.mxu0 %v7250_v37  ;;  %v7286_v36 = vld [vmem:[#allocation4 + $0x304] ss:$16 sps:$4 sm:$0xff]   ;;  %v7288_v37 = vld [vmem:[#allocation4 + $0x30c] ss:$16 sps:$4 sm:$0xff]   ;;  %v7307_v11 = vld [vmem:[#allocation4 + $0xc8] ss:$16 sps:$4 sm:$0xff]  }
  0x94   : > { %1292 = vmatprep.subr.bf16.mxu1 %v7252_v41  ;;  %v7312_v12 = vld [vmem:[#allocation4 + $0xa4] ss:$16 sps:$4 sm:$0xff]   ;;  %v7315_v13 = vld [vmem:[#allocation4 + $0xac] ss:$16 sps:$4 sm:$0xff]   ;;  %v7310_v17 = vld [vmem:[#allocation4 + $0xa0] ss:$16 sps:$4 sm:$0xff]  }
  0x95   : > { %v7318_v59 = vld [vmem:[#allocation4 + $0x84] ss:$16 sps:$4 sm:$0xff]   ;;  %v7321_v20 = vld [vmem:[#allocation4 + $0x8c] ss:$16 sps:$4 sm:$0xff]   ;;  %v546_v22 = vshrl.u32 %v536_v16, 16  ;;  %v549_v25 = vshll.u32 %v536_v16, 16 }
  0x96   : > { %1242 = vmatpush2.bf16.msra.mxu0 %v7254_v42  ;;  %v7316_v23 = vld [vmem:[#allocation4 + $0x80] ss:$16 sps:$4 sm:$0xff]   ;;  %v7319_v24 = vld [vmem:[#allocation4 + $0x88] ss:$16 sps:$4 sm:$0xff]   ;;  %v7327_v27 = vld [vmem:[#allocation4 + $0x6c] ss:$16 sps:$4 sm:$0xff]  }
  0x97   : > { %1293 = vmatpush2.bf16.msra.mxu1 %v7255_v43  ;;  %1243 = vmatprep.subr.bf16.mxu0 %v7256_v44  ;;  %v7293_v40 = vld [vmem:[#allocation2 + $0x4] ss:$16 sps:$4 sm:$0xff]   ;;  %v7296_v41 = vld [vmem:[#allocation2] ss:$16 sps:$4 sm:$0xff]   ;;  %v7303_v44 = vld [vmem:[#allocation4 + $0xec] ss:$16 sps:$4 sm:$0xff]  }
  0x98   : > { %1294 = vmatprep.subr.bf16.mxu1 %v7258_v47  ;;  %v789_v42 = vld [vmem:[#allocation2 + $0x20] sm:$0x77]  ;;  %v882_v47 = vshrl.u32 %v7293_v40, 16  ;;  %v884_v48 = vshll.u32 %v7293_v40, 16  ;;  %v872_v51 = vshll.u32 %v7296_v41, 16  ;;  %vm710_vm8 = vcmask 1044484  }
  0x99   : > { %v7300_v43 = vld [vmem:[#allocation4 + $0xe4] ss:$16 sps:$4 sm:$0xff]   ;;  %v6390_v45 = vcombine.high %v789_v42, %v789_v42  ;;  %v7322_v29 = vld [vmem:[#allocation4 + $0x60] ss:$16 sps:$4 sm:$0xff]   ;;  %v7325_v30 = vld [vmem:[#allocation4 + $0x68] ss:$16 sps:$4 sm:$0xff]  }
  0x9a   : > { %1244 = vmatpush2.bf16.msra.mxu0 %v7260_v49  ;;  %v6389_v49 = vcombine.low %v789_v42, %v789_v42  ;;  %v7333_v33 = vld [vmem:[#allocation4 + $0x4c] ss:$16 sps:$4 sm:$0xff]   ;;  %v7337_v40 = vld [vmem:[#allocation4 + $0x28] ss:$16 sps:$4 sm:$0xff]   ;;  %v7342_v42 = vld [vmem:[#allocation4 + $0x4] ss:$16 sps:$4 sm:$0xff]  }
  0x9b   : > { %1295 = vmatpush2.bf16.msra.mxu1 %v7261_v50  ;;  %1245 = vmatprep.subr.bf16.mxu0 %v7262_v52  ;;  %v870_v50 = vshrl.u32 %v7296_v41, 16  ;;  %v886_v52 = vrot.slane %v884_v48, 1  ;;  %v896_v2 = vshrl.u32 %v6390_v45, 16  ;;  %v565_v41 = vld [vmem:[#allocation2 + $0x18] sm:$0xee]  ;;  %s6375_s19 = sshll.u32 %s9231_s30, 3 }
  0x9c   : > { %1296 = vmatprep.subr.bf16.mxu1 %v7264_v54  ;;  %v889_v54 = vshll.u32 %v6390_v45, 16  ;;  %v877_v55 = vshll.u32 %v6389_v49, 16  ;;  %v893_v8 = vshrl.u32 %v6389_v49, 16  ;;  %v7340_v45 = vld [vmem:[#allocation4] ss:$16 sps:$4 sm:$0xff]   ;;  %s397_s22 = scalar_lea.vmem %s9199_s8, %s6375_s19 }
  0x9d   : > { %v887_v58 = vor.u32 %v886_v52, %v882_v47  ;;  %v7343_v47 = vld [vmem:[#allocation4 + $0x8] ss:$16 sps:$4 sm:$0xff]   ;;  %v7348_v48 = vld [vmem:[#allocation4 + $0x1e4] ss:$16 sps:$4 sm:$0xff]   ;;  %v7351_v49 = vld [vmem:[#allocation4 + $0x1ec] ss:$16 sps:$4 sm:$0xff]  }
  0x9e   : > { %1246 = vmatpush2.bf16.msra.mxu0 %v7266_v57  ;;  %v874_v57 = vrot.slane %v872_v51, 1  ;;  %v891_v60 = vrot.slane %v889_v54, 1  ;;  %v879_v61 = vrot.slane %v877_v55, 1  ;;  %v7349_v51 = vld [vmem:[#allocation4 + $0x1e8] ss:$16 sps:$4 sm:$0xff]  }
  0x9f   : > { %1297 = vmatpush2.bf16.msra.mxu1 %v7267_v62  ;;  %1247 = vmatprep.subr.bf16.mxu0 %v7268_v63  ;;  %v7298_v63 = vld [vmem:[#allocation4 + $0xe0] ss:$16 sps:$4 sm:$0xff]   ;;  %v7354_v52 = vld [vmem:[#allocation4 + $0x1c4] ss:$16 sps:$4 sm:$0xff]   ;;  %v7357_v55 = vld [vmem:[#allocation4 + $0x1cc] ss:$16 sps:$4 sm:$0xff]  }
  0xa0   : > { %1298 = vmatprep.subr.bf16.mxu1 %v7270_v3  ;;  %v875_v62 = vor.u32 %v874_v57, %v870_v50  ;;  %v892_v3 = vsel %vm868_vm14, %v887_v58, %v891_v60  ;;  %v898_v7 = vor.u32 %v896_v2, %v891_v60  ;;  %v7346_v50 = vld [vmem:[#allocation4 + $0x1e0] ss:$16 sps:$4 sm:$0xff]   ;;  %v7355_v58 = vld [vmem:[#allocation4 + $0x1c8] ss:$16 sps:$4 sm:$0xff]   ;;  %v7360_v60 = vld [vmem:[#allocation4 + $0x1a4] ss:$16 sps:$4 sm:$0xff]  }
  0xa1   : > { %1255 = vmatprep.mubr.bf16.mxu0 %v892_v3  ;;  %1306 = vmatprep.mubr.bf16.mxu1 %v892_v3  ;;  %v7352_v57 = vld [vmem:[#allocation4 + $0x1c0] ss:$16 sps:$4 sm:$0xff]   ;;  %v7369_v2 = vld [vmem:[#allocation4 + $0x18c] ss:$16 sps:$4 sm:$0xff]   ;;  %v7378_v9 = vld [vmem:[#allocation4 + $0x144] ss:$16 sps:$4 sm:$0xff]  }
  0xa2   : > { %1248 = vmatpush2.bf16.msra.mxu0 %v7272_v6  ;;  %v880_v6 = vsel %vm868_vm14, %v875_v62, %v879_v61  ;;  %v7358_v62 = vld [vmem:[#allocation4 + $0x1a0] ss:$16 sps:$4 sm:$0xff]   ;;  %v7387_v16 = vld [vmem:[#allocation4 + $0x12c] ss:$16 sps:$4 sm:$0xff]   ;;  %v7420_v56 = vld [vmem:[#allocation4 + $0x488] ss:$16 sps:$4 sm:$0xff]  }
  0xa3   : > { %1299 = vmatpush2.bf16.msra.mxu1 %v7273_v10  ;;  %1249 = vmatprep.subr.bf16.mxu0 %v7274_v15  ;;  %v7304_v10 = vld [vmem:[#allocation4 + $0xc0] ss:$16 sps:$4 sm:$0xff]   ;;  %v895_v15 = vor.u32 %v893_v8, %v879_v61  ;;  %v7363_v61 = vld [vmem:[#allocation4 + $0x1ac] ss:$16 sps:$4 sm:$0xff]   ;;  %v7373_v8 = vld [vmem:[#allocation4 + $0x168] ss:$16 sps:$4 sm:$0xff]  }
  0xa4   : > { %1300 = vmatprep.subr.bf16.mxu1 %v7276_v18  ;;  %v7313_v18 = vld [vmem:[#allocation4 + $0xa8] ss:$16 sps:$4 sm:$0xff]   ;;  %v7364_v3 = vld [vmem:[#allocation4 + $0x180] ss:$16 sps:$4 sm:$0xff]   ;;  %vm447_vm0 = vsmask.f32 2306 }
  0xa5   : > { %v7417_v14 = vld [vmem:[#allocation4 + $0x480] ss:$16 sps:$4 sm:$0xff]   ;;  %vm450_vm2 = vsmask.f32 6418  ;;  %vm8654_vm3 = vmand %vm446_vm15, %vm447_vm0  ;;  %v7565_v19 = vld [vmem:[#allocation4 + $0x784] ss:$16 sps:$4 sm:$0xff]  }
  0xa6   : > { %1250 = vmatpush2.bf16.msra.mxu0 %v7278_v26  ;;  %v7324_v26 = vld [vmem:[#allocation4 + $0x64] ss:$16 sps:$4 sm:$0xff]   ;;  %vm8661_vm4 = vmand %vm449_vm1, %vm450_vm2  ;;  %vm708_vm7 = vsmask.f32 256  ;;  %vm711_vm9 = vsmask.f32 4352 }
  0xa7   : > { %1301 = vmatpush2.bf16.msra.mxu1 %v7279_v28  ;;  %1251 = vmatprep.subr.bf16.mxu0 %v7280_v31  ;;  %v548_v28 = vrot.slane %v546_v22, 6  ;;  %v551_v31 = vrot.slane %v549_v25, 7  ;;  %v7391_v25 = vld [vmem:[#allocation4 + $0x108] ss:$16 sps:$4 sm:$0xff]   ;;  %vm452_vm5 = vmor %vm8661_vm4, %vm8654_vm3  ;;  %vm5593_vm0 = vcmask 1043456  }
  0xa8   : > { %1302 = vmatprep.subr.bf16.mxu1 %v7282_v32  ;;  %v7330_v32 = vld [vmem:[#allocation4 + $0x44] ss:$16 sps:$4 sm:$0xff]   ;;  %vm8741_vm10 = vmand %vm707_vm6, %vm708_vm7 }
  0xa9   : > { %vm8745_vm11 = vmand %vm710_vm8, %vm711_vm9 }
  0xaa   : > { %1252 = vmatpush2.bf16.msra.mxu0 %v7284_v34  ;;  %v7328_v34 = vld [vmem:[#allocation4 + $0x40] ss:$16 sps:$4 sm:$0xff]  }
  0xab   : > { %1303 = vmatpush2.bf16.msra.mxu1 %v7285_v35  ;;  %1253 = vmatprep.subr.bf16.mxu0 %v7286_v36  ;;  %v7331_v35 = vld [vmem:[#allocation4 + $0x48] ss:$16 sps:$4 sm:$0xff]   ;;  %v552_v36 = vor.u32 %v551_v31, %v548_v28 }
  0xac   : > { %1304 = vmatprep.subr.bf16.mxu1 %v7288_v37  ;;  %v7336_v37 = vld [vmem:[#allocation4 + $0x24] ss:$16 sps:$4 sm:$0xff]   ;;  %v7400_v31 = vld [vmem:[#allocation4 + $0x4e8] ss:$16 sps:$4 sm:$0xff]  }
  0xae   : > { %1254 = vmatpush2.bf16.msra.mxu0 %v7290_v38  ;;  %v7339_v38 = vld [vmem:[#allocation4 + $0x2c] ss:$16 sps:$4 sm:$0xff]  }
  0xaf   : > { %1305 = vmatpush2.bf16.msra.mxu1 %v7291_v39  ;;  %1662 = vmatprep.subr.bf16.mxu0 %v7300_v43  ;;  %v7334_v39 = vld [vmem:[#allocation4 + $0x20] ss:$16 sps:$4 sm:$0xff]   ;;  %v566_v43 = vsel %vm8578_vm12, %v552_v36, %v565_v41  ;;  %v7413_v41 = vld [vmem:[#allocation4 + $0x4a4] ss:$16 sps:$4 sm:$0xff]  }
  0xb0   : > { %1713 = vmatprep.subr.bf16.mxu1 %v7303_v44  ;;  %v7345_v44 = vld [vmem:[#allocation4 + $0xc] ss:$16 sps:$4 sm:$0xff]   ;;  %567 = vst [vmem:[#allocation2 + $0x18] sm:$0xee] %v566_v43 }
  0xb1   : > { %1256 = vmatmul.mubr.bf16.vlgmr.msra.gmra.mxu0 %v880_v6 }
  0xb2   : > { %1307 = vmatmul.mubr.bf16.vlgmr.msra.gmra.mxu1 %v880_v6  ;;  %1663 = vmatpush1.bf16.msra.mxu0 %v7298_v63  ;;  %v7361_v63 = vld [vmem:[#allocation4 + $0x1a8] ss:$16 sps:$4 sm:$0xff]   ;;  %v7375_v6 = vld [vmem:[#allocation4 + $0x16c] ss:$16 sps:$4 sm:$0xff]  }
  0xb3   : > { %1714 = vmatpush1.bf16.msra.mxu1 %v7301_v0  ;;  %1664 = vmatprep.subr.bf16.mxu0 %v7306_v4  ;;  %v7366_v0 = vld [vmem:[#allocation4 + $0x184] ss:$16 sps:$4 sm:$0xff]   ;;  %v7367_v4 = vld [vmem:[#allocation4 + $0x188] ss:$16 sps:$4 sm:$0xff]  }
  0xb4   : > { %1715 = vmatprep.subr.bf16.mxu1 %v7309_v5  ;;  %1265 = vmatprep.mubr.bf16.mxu0 %v898_v7  ;;  %v7372_v5 = vld [vmem:[#allocation4 + $0x164] ss:$16 sps:$4 sm:$0xff]  }
  0xb5   : > { %1316 = vmatprep.mubr.bf16.mxu1 %v898_v7  ;;  %v7370_v7 = vld [vmem:[#allocation4 + $0x160] ss:$16 sps:$4 sm:$0xff]  }
  0xb6   : > { %1665 = vmatpush1.bf16.msra.mxu0 %v7304_v10  ;;  %v657_v10 = vcombine.high %v8563_v1, %v8563_v1  ;;  %v7393_v1 = vld [vmem:[#allocation4 + $0x10c] ss:$16 sps:$4 sm:$0xff]  }
  0xb7   : > { %1716 = vmatpush1.bf16.msra.mxu1 %v7307_v11  ;;  %1666 = vmatprep.subr.bf16.mxu0 %v7312_v12  ;;  %v8603_v54 = vld [vmem:[#allocation2 + $0xc] ss:$16 sps:$4 sm:$0xff]   ;;  %v7376_v12 = vld [vmem:[#allocation4 + $0x140] ss:$16 sps:$4 sm:$0xff]  }
  0xb8   : > { %1717 = vmatprep.subr.bf16.mxu1 %v7315_v13  ;;  %v7381_v11 = vld [vmem:[#allocation4 + $0x14c] ss:$16 sps:$4 sm:$0xff]   ;;  %v7379_v13 = vld [vmem:[#allocation4 + $0x148] ss:$16 sps:$4 sm:$0xff]  }
  0xb9   : > { %1266 = vmatmul.mubr.bf16.gmra.mxu0 %v895_v15 }
  0xba   : > { %1317 = vmatmul.mubr.bf16.gmra.mxu1 %v895_v15  ;;  %1667 = vmatpush1.bf16.msra.mxu0 %v7310_v17  ;;  %v7384_v15 = vld [vmem:[#allocation4 + $0x124] ss:$16 sps:$4 sm:$0xff]   ;;  %v671_v17 = vrot.slane %v657_v10, %v8548_v53  ;;  %v7438_v10 = vld [vmem:[#allocation4 + $0x428] ss:$16 sps:$4 sm:$0xff]  }
  0xbb   : > { %1718 = vmatpush1.bf16.msra.mxu1 %v7313_v18  ;;  %1668 = vmatprep.subr.bf16.mxu0 %v7318_v59  ;;  %v7382_v18 = vld [vmem:[#allocation4 + $0x120] ss:$16 sps:$4 sm:$0xff]   ;;  %v7385_v59 = vld [vmem:[#allocation4 + $0x128] ss:$16 sps:$4 sm:$0xff]  }
  0xbc   : > { %1719 = vmatprep.subr.bf16.mxu1 %v7321_v20  ;;  %1694 = vmatprep.mubr.bf16.mxu0 %v8603_v54  ;;  %v7390_v20 = vld [vmem:[#allocation4 + $0x104] ss:$16 sps:$4 sm:$0xff]   ;;  %v681_v22 = vshrl.u32 %v671_v17, 16 }
  0xbd   : > { %1745 = vmatprep.mubr.bf16.mxu1 %v8603_v54 }
  0xbe   : > { %1669 = vmatpush1.bf16.msra.mxu0 %v7316_v23  ;;  %v684_v23 = vshll.u32 %v671_v17, 16  ;;  %v8610_v28 = vrot.slane %v681_v22, 5  ;;  %v7452_v17 = vld [vmem:[#allocation4 + $0x5ec] ss:$16 sps:$4 sm:$0xff]   ;;  %v7453_v22 = vld [vmem:[#allocation4 + $0x5c0] ss:$16 sps:$4 sm:$0xff]  }
  0xbf   : > { %1720 = vmatpush1.bf16.msra.mxu1 %v7319_v24  ;;  %1670 = vmatprep.subr.bf16.mxu0 %v7324_v26  ;;  %v7388_v24 = vld [vmem:[#allocation4 + $0x100] ss:$16 sps:$4 sm:$0xff]   ;;  %v7399_v26 = vld [vmem:[#allocation4 + $0x4e4] ss:$16 sps:$4 sm:$0xff]  }
  0xc0   : > { %1721 = vmatprep.subr.bf16.mxu1 %v7327_v27  ;;  %v7402_v27 = vld [vmem:[#allocation4 + $0x4ec] ss:$16 sps:$4 sm:$0xff]  }
  0xc2   : > { %1671 = vmatpush1.bf16.msra.mxu0 %v7322_v29  ;;  %v686_v29 = vrot.slane %v684_v23, 6  ;;  %v7456_v23 = vld [vmem:[#allocation4 + $0x5c8] ss:$16 sps:$4 sm:$0xff]  }
  0xc3   : > { %1722 = vmatpush1.bf16.msra.mxu1 %v7325_v30  ;;  %1672 = vmatprep.subr.bf16.mxu0 %v7330_v32  ;;  %v7397_v30 = vld [vmem:[#allocation4 + $0x4e0] ss:$16 sps:$4 sm:$0xff]   ;;  %v8612_v32 = vld [vmem:[#allocation2 + $0x8] ss:$16 sps:$4 sm:$0xff]  }
  0xc4   : > { %1723 = vmatprep.subr.bf16.mxu1 %v7333_v33  ;;  %v722_v33 = vld [vmem:[#allocation2 + $0x28] sm:$0x33]  ;;  %v687_v36 = vor.u32 %v686_v29, %v8610_v28  ;;  %v7467_v29 = vld [vmem:[#allocation4 + $0x584] ss:$16 sps:$4 sm:$0xff]  }
  0xc6   : > { %1673 = vmatpush1.bf16.msra.mxu0 %v7328_v34  ;;  %v7405_v34 = vld [vmem:[#allocation4 + $0x4c4] ss:$16 sps:$4 sm:$0xff]  }
  0xc7   : > { %1724 = vmatpush1.bf16.msra.mxu1 %v7331_v35  ;;  %1674 = vmatprep.subr.bf16.mxu0 %v7336_v37  ;;  %v7408_v35 = vld [vmem:[#allocation4 + $0x4cc] ss:$16 sps:$4 sm:$0xff]   ;;  %v6458_v37 = vcombine.high %v722_v33, %v722_v33 }
  0xc8   : > { %1725 = vmatprep.subr.bf16.mxu1 %v7339_v38  ;;  %v7403_v38 = vld [vmem:[#allocation4 + $0x4c0] ss:$16 sps:$4 sm:$0xff]  }
  0xca   : > { %1675 = vmatpush1.bf16.msra.mxu0 %v7334_v39  ;;  %v7406_v39 = vld [vmem:[#allocation4 + $0x4c8] ss:$16 sps:$4 sm:$0xff]  }
  0xcb   : > { %1726 = vmatpush1.bf16.msra.mxu1 %v7337_v40  ;;  %1676 = vmatprep.subr.bf16.mxu0 %v7342_v42  ;;  %v704_v40 = vld [vmem:[#allocation2 + $0x28] sm:$0xcc] }
  0xcc   : > { %1727 = vmatprep.subr.bf16.mxu1 %v7345_v44  ;;  %v7416_v42 = vld [vmem:[#allocation4 + $0x4ac] ss:$16 sps:$4 sm:$0xff]   ;;  %v705_v43 = vsel %vm700_vm13, %v687_v36, %v704_v40  ;;  %v6457_v44 = vcombine.low %v722_v33, %v722_v33  ;;  %v7468_v33 = vld [vmem:[#allocation4 + $0x588] ss:$16 sps:$4 sm:$0xff]   ;;  %v7471_v36 = vld [vmem:[#allocation4 + $0x560] ss:$16 sps:$4 sm:$0xff]  }
  0xcd   : > { %706 = vst [vmem:[#allocation2 + $0x28] sm:$0xcc] %v705_v43  ;;  %v7482_v40 = vld [vmem:[#allocation4 + $0x54c] ss:$16 sps:$4 sm:$0xff]   ;;  %v8642_v43 = vld [vmem:[%s8545_s14 + $0x20] sm:$0xff] }
  0xce   : > { %1677 = vmatpush1.bf16.msra.mxu0 %v7340_v45  ;;  %v7411_v45 = vld [vmem:[#allocation4 + $0x4a0] ss:$16 sps:$4 sm:$0xff]   ;;  %vm3995_vm13 = vsmask.f32 5376 }
  0xcf   : > { %1728 = vmatpush1.bf16.msra.mxu1 %v7343_v47  ;;  %1678 = vmatprep.subr.bf16.mxu0 %v7348_v48  ;;  %v7414_v47 = vld [vmem:[#allocation4 + $0x4a8] ss:$16 sps:$4 sm:$0xff]   ;;  %v1850_v48 = vshll.u32 %v8603_v54, 16 }
  0xd0   : > { %1729 = vmatprep.subr.bf16.mxu1 %v7351_v49  ;;  %v7419_v49 = vld [vmem:[#allocation4 + $0x484] ss:$16 sps:$4 sm:$0xff]  }
  0xd2   : > { %1679 = vmatpush2.bf16.msra.mxu0 %v7346_v50  ;;  %v7422_v50 = vld [vmem:[#allocation4 + $0x48c] ss:$16 sps:$4 sm:$0xff]  }
  0xd3   : > { %1730 = vmatpush2.bf16.msra.mxu1 %v7349_v51  ;;  %1680 = vmatprep.subr.bf16.mxu0 %v7354_v52  ;;  %v1848_v51 = vshrl.u32 %v8603_v54, 16  ;;  %v1852_v52 = vrot.slane %v1850_v48, 1  ;;  %v7434_v54 = vld [vmem:[#allocation4 + $0x44c] ss:$16 sps:$4 sm:$0xff]   ;;  %v7480_v48 = vld [vmem:[#allocation4 + $0x548] ss:$16 sps:$4 sm:$0xff]  }
  0xd4   : > { %1731 = vmatprep.subr.bf16.mxu1 %v7357_v55  ;;  %v7425_v55 = vld [vmem:[#allocation4 + $0x464] ss:$16 sps:$4 sm:$0xff]  }
  0xd6   : > { %1681 = vmatpush2.bf16.msra.mxu0 %v7352_v57  ;;  %v7428_v57 = vld [vmem:[#allocation4 + $0x46c] ss:$16 sps:$4 sm:$0xff]  }
  0xd7   : > { %1732 = vmatpush2.bf16.msra.mxu1 %v7355_v58  ;;  %1682 = vmatprep.subr.bf16.mxu0 %v7360_v60  ;;  %v8624_v58 = vld [vmem:[#allocation2 + $0x28] sm:$0x77] }
  0xd8   : > { %1733 = vmatprep.subr.bf16.mxu1 %v7363_v61  ;;  %v8628_v60 = vcombine.high %v8624_v58, %v8624_v58  ;;  %v7423_v61 = vld [vmem:[#allocation4 + $0x460] ss:$16 sps:$4 sm:$0xff]  }
  0xda   : > { %1683 = vmatpush2.bf16.msra.mxu0 %v7358_v62  ;;  %v7426_v62 = vld [vmem:[#allocation4 + $0x468] ss:$16 sps:$4 sm:$0xff]  }
  0xdb   : > { %1734 = vmatpush2.bf16.msra.mxu1 %v7361_v63  ;;  %1684 = vmatprep.subr.bf16.mxu0 %v7366_v0  ;;  %v7431_v63 = vld [vmem:[#allocation4 + $0x444] ss:$16 sps:$4 sm:$0xff]   ;;  %v1853_v0 = vor.u32 %v1852_v52, %v1848_v51  ;;  %v1836_v52 = vshrl.u32 %v8612_v32, 16 }
  0xdc   : > { %1735 = vmatprep.subr.bf16.mxu1 %v7369_v2  ;;  %v1855_v2 = vshll.u32 %v8628_v60, 16  ;;  %v7485_v51 = vld [vmem:[#allocation4 + $0x524] ss:$16 sps:$4 sm:$0xff]  }
  0xde   : > { %1685 = vmatpush2.bf16.msra.mxu0 %v7364_v3  ;;  %v8631_v3 = vrot.slane %v1855_v2, 1  ;;  %v7486_v2 = vld [vmem:[#allocation4 + $0x528] ss:$16 sps:$4 sm:$0xff]  }
  0xdf   : > { %1736 = vmatpush2.bf16.msra.mxu1 %v7367_v4  ;;  %1686 = vmatprep.subr.bf16.mxu0 %v7372_v5  ;;  %v7429_v4 = vld [vmem:[#allocation4 + $0x440] ss:$16 sps:$4 sm:$0xff]   ;;  %v7432_v5 = vld [vmem:[#allocation4 + $0x448] ss:$16 sps:$4 sm:$0xff]  }
  0xe0   : > { %1737 = vmatprep.subr.bf16.mxu1 %v7375_v6  ;;  %v1858_v6 = vsel %vm868_vm14, %v1853_v0, %v8631_v3  ;;  %v7483_v0 = vld [vmem:[#allocation4 + $0x520] ss:$16 sps:$4 sm:$0xff]  }
  0xe2   : > { %1687 = vmatpush2.bf16.msra.mxu0 %v7370_v7  ;;  %v7437_v7 = vld [vmem:[#allocation4 + $0x424] ss:$16 sps:$4 sm:$0xff]  }
  0xe3   : > { %1738 = vmatpush2.bf16.msra.mxu1 %v7373_v8  ;;  %1688 = vmatprep.subr.bf16.mxu0 %v7378_v9  ;;  %v7440_v8 = vld [vmem:[#allocation4 + $0x42c] ss:$16 sps:$4 sm:$0xff]   ;;  %v7435_v9 = vld [vmem:[#allocation4 + $0x420] ss:$16 sps:$4 sm:$0xff]  }
  0xe4   : > { %1739 = vmatprep.subr.bf16.mxu1 %v7381_v11  ;;  %v7443_v11 = vld [vmem:[#allocation4 + $0x404] ss:$16 sps:$4 sm:$0xff]  }
  0xe6   : > { %1689 = vmatpush2.bf16.msra.mxu0 %v7376_v12  ;;  %v7446_v12 = vld [vmem:[#allocation4 + $0x40c] ss:$16 sps:$4 sm:$0xff]  }
  0xe7   : > { %1740 = vmatpush2.bf16.msra.mxu1 %v7379_v13  ;;  %1690 = vmatprep.subr.bf16.mxu0 %v7384_v15  ;;  %v7441_v13 = vld [vmem:[#allocation4 + $0x400] ss:$16 sps:$4 sm:$0xff]   ;;  %v7444_v15 = vld [vmem:[#allocation4 + $0x408] ss:$16 sps:$4 sm:$0xff]  }
  0xe8   : > { %1741 = vmatprep.subr.bf16.mxu1 %v7387_v16  ;;  %v7449_v16 = vld [vmem:[#allocation4 + $0x5e4] ss:$16 sps:$4 sm:$0xff]  }
  0xea   : > { %1691 = vmatpush2.bf16.msra.mxu0 %v7382_v18  ;;  %v7447_v18 = vld [vmem:[#allocation4 + $0x5e0] ss:$16 sps:$4 sm:$0xff]  }
  0xeb   : > { %1742 = vmatpush2.bf16.msra.mxu1 %v7385_v59  ;;  %1692 = vmatprep.subr.bf16.mxu0 %v7390_v20  ;;  %v7450_v59 = vld [vmem:[#allocation4 + $0x5e8] ss:$16 sps:$4 sm:$0xff]   ;;  %v7455_v20 = vld [vmem:[#allocation4 + $0x5c4] ss:$16 sps:$4 sm:$0xff]  }
  0xec   : > { %1743 = vmatprep.subr.bf16.mxu1 %v7393_v1  ;;  %v7458_v1 = vld [vmem:[#allocation4 + $0x5cc] ss:$16 sps:$4 sm:$0xff]  }
  0xee   : > { %1693 = vmatpush2.bf16.msra.mxu0 %v7388_v24  ;;  %v7461_v24 = vld [vmem:[#allocation4 + $0x5a4] ss:$16 sps:$4 sm:$0xff]  }
  0xef   : > { %1744 = vmatpush2.bf16.msra.mxu1 %v7391_v25  ;;  %2189 = vmatprep.subr.bf16.mxu0 %v7399_v26  ;;  %v7464_v25 = vld [vmem:[#allocation4 + $0x5ac] ss:$16 sps:$4 sm:$0xff]   ;;  %v7459_v26 = vld [vmem:[#allocation4 + $0x5a0] ss:$16 sps:$4 sm:$0xff]  }
  0xf0   : > { %2240 = vmatprep.subr.bf16.mxu1 %v7402_v27  ;;  %v7462_v27 = vld [vmem:[#allocation4 + $0x5a8] ss:$16 sps:$4 sm:$0xff]  }
  0xf1   : > { %1695 = vmatmul.mubr.bf16.vlgmr.msra.gmra.mxu0 %v8612_v32 }
  0xf2   : > { %1746 = vmatmul.mubr.bf16.vlgmr.msra.gmra.mxu1 %v8612_v32  ;;  %2190 = vmatpush1.bf16.msra.mxu0 %v7397_v30  ;;  %v7470_v30 = vld [vmem:[#allocation4 + $0x58c] ss:$16 sps:$4 sm:$0xff]  }
  0xf3   : > { %2241 = vmatpush1.bf16.msra.mxu1 %v7400_v31  ;;  %2191 = vmatprep.subr.bf16.mxu0 %v7405_v34  ;;  %v7465_v31 = vld [vmem:[#allocation4 + $0x580] ss:$16 sps:$4 sm:$0xff]   ;;  %v7473_v34 = vld [vmem:[#allocation4 + $0x564] ss:$16 sps:$4 sm:$0xff]  }
  0xf4   : > { %2242 = vmatprep.subr.bf16.mxu1 %v7408_v35  ;;  %1704 = vmatprep.mubr.bf16.mxu0 %v6458_v37  ;;  %v7476_v35 = vld [vmem:[#allocation4 + $0x56c] ss:$16 sps:$4 sm:$0xff]  }
  0xf5   : > { %1755 = vmatprep.mubr.bf16.mxu1 %v6458_v37  ;;  %v7474_v37 = vld [vmem:[#allocation4 + $0x568] ss:$16 sps:$4 sm:$0xff]  }
  0xf6   : > { %2192 = vmatpush1.bf16.msra.mxu0 %v7403_v38  ;;  %v7479_v38 = vld [vmem:[#allocation4 + $0x544] ss:$16 sps:$4 sm:$0xff]  }
  0xf7   : > { %2243 = vmatpush1.bf16.msra.mxu1 %v7406_v39  ;;  %2193 = vmatprep.subr.bf16.mxu0 %v7413_v41  ;;  %v8636_v39 = vld [vmem:[%s8545_s14] sm:$0xff] }
  0xf8   : > { %2244 = vmatprep.subr.bf16.mxu1 %v7416_v42  ;;  %v415_v41 = vcombine.high %v8636_v39, %v8636_v39  ;;  %v6377_v42 = vld [vmem:[%s8545_s14 + $0x10] sm:$0xff] }
  0xf9   : > { %1705 = vmatmul.mubr.bf16.gmra.mxu0 %v6457_v44 }
  0xfa   : > { %1756 = vmatmul.mubr.bf16.gmra.mxu1 %v6457_v44  ;;  %2194 = vmatpush1.bf16.msra.mxu0 %v7411_v45  ;;  %v7477_v44 = vld [vmem:[#allocation4 + $0x540] ss:$16 sps:$4 sm:$0xff]   ;;  %v492_v45 = vcombine.high %v6377_v42, %v6377_v42 }
  0xfb   : > { %2245 = vmatpush1.bf16.msra.mxu1 %v7414_v47  ;;  %2195 = vmatprep.subr.bf16.mxu0 %v7419_v49  ;;  %v571_v47 = vcombine.high %v8642_v43, %v8642_v43  ;;  %v8648_v49 = vcombine.low %v8624_v58, %v8624_v58 }
  0xfc   : > { %2246 = vmatprep.subr.bf16.mxu1 %v7422_v50  ;;  %2221 = vmatprep.mubr.bf16.mxu0 %v1858_v6  ;;  %v1838_v50 = vshll.u32 %v8612_v32, 16 }
  0xfd   : > { %2272 = vmatprep.mubr.bf16.mxu1 %v1858_v6  ;;  %v585_v58 = vrot.slane %v571_v47, %v8548_v53  ;;  %v7491_v6 = vld [vmem:[#allocation4 + $0x504] ss:$16 sps:$4 sm:$0xff]  }
  0xfe   : > { %2196 = vmatpush1.bf16.msra.mxu0 %v7417_v14  ;;  %v429_v14 = vrot.slane %v415_v41, %v8548_v53  ;;  %v1859_v41 = vshrl.u32 %v8648_v49, 16 }
  0xff   : > { %2247 = vmatpush1.bf16.msra.mxu1 %v7420_v56  ;;  %2197 = vmatprep.subr.bf16.mxu0 %v7425_v55  ;;  %v595_v32 = vshrl.u32 %v585_v58, 16  ;;  %v7559_v55 = vld [vmem:[#allocation4 + $0x7a4] ss:$16 sps:$4 sm:$0xff]   ;;  %v7557_v56 = vld [vmem:[#allocation4 + $0x7a0] ss:$16 sps:$4 sm:$0xff]  }
 0x100   : > { %2248 = vmatprep.subr.bf16.mxu1 %v7428_v57  ;;  %v506_v57 = vrot.slane %v492_v45, %v8548_v53  ;;  %v7514_v45 = vld [vmem:[#allocation4 + $0x6ac] ss:$16 sps:$4 sm:$0xff]  }
 0x102   : > { %2198 = vmatpush1.bf16.msra.mxu0 %v7423_v61  ;;  %v7488_v61 = vld [vmem:[#allocation4 + $0x52c] ss:$16 sps:$4 sm:$0xff]  }
 0x103   : > { %2249 = vmatpush1.bf16.msra.mxu1 %v7426_v62  ;;  %2199 = vmatprep.subr.bf16.mxu0 %v7431_v63  ;;  %v438_v62 = vshrl.u32 %v429_v14, 16  ;;  %v441_v63 = vshll.u32 %v429_v14, 16  ;;  %v7520_v14 = vld [vmem:[#allocation4 + $0x68c] ss:$16 sps:$4 sm:$0xff]  }
 0x104   : > { %2250 = vmatprep.subr.bf16.mxu1 %v7434_v54  ;;  %v508_v54 = vrot.slane %v506_v57, 5  ;;  %v7523_v57 = vld [vmem:[#allocation4 + $0x664] ss:$16 sps:$4 sm:$0xff]  }
 0x106   : > { %2200 = vmatpush1.bf16.msra.mxu0 %v7429_v4  ;;  %v598_v4 = vshll.u32 %v585_v58, 16  ;;  %516 = vst [vmem:[#allocation3 + $0x8] sm:$0x88] %v508_v54  ;;  %v7526_v58 = vld [vmem:[#allocation4 + $0x66c] ss:$16 sps:$4 sm:$0xff]  }
 0x107   : > { %2251 = vmatpush1.bf16.msra.mxu1 %v7432_v5  ;;  %2201 = vmatprep.subr.bf16.mxu0 %v7437_v7  ;;  %v499_v5 = vrot.slane %v6377_v42, %v8548_v53  ;;  %v1840_v7 = vrot.slane %v1838_v50, 1  ;;  %v7506_v42 = vld [vmem:[#allocation4 + $0x6c8] ss:$16 sps:$4 sm:$0xff]  }
 0x108   : > { %2252 = vmatprep.subr.bf16.mxu1 %v7440_v8  ;;  %v1843_v8 = vshll.u32 %v8648_v49, 16  ;;  %v7512_v50 = vld [vmem:[#allocation4 + $0x6a8] ss:$16 sps:$4 sm:$0xff]  }
 0x10a   : > { %2202 = vmatpush1.bf16.msra.mxu0 %v7435_v9  ;;  %v440_v9 = vrot.slane %v438_v62, 7  ;;  %v7524_v62 = vld [vmem:[#allocation4 + $0x668] ss:$16 sps:$4 sm:$0xff]  }
 0x10b   : > { %2253 = vmatpush1.bf16.msra.mxu1 %v7438_v10  ;;  %2203 = vmatprep.subr.bf16.mxu0 %v7443_v11  ;;  %v456_v10 = vld [vmem:[#allocation3 + $0x8] sm:$0x77]  ;;  %v510_v11 = vrot.slane %v508_v54, 4 }
 0x10c   : > { %2254 = vmatprep.subr.bf16.mxu1 %v7446_v12  ;;  %v597_v12 = vrot.slane %v595_v32, 6  ;;  %v7532_v54 = vld [vmem:[#allocation4 + $0x64c] ss:$16 sps:$4 sm:$0xff]   ;;  %v7527_v32 = vld [vmem:[#allocation4 + $0x640] ss:$16 sps:$4 sm:$0xff]  }
 0x10d   : > { %518 = vst [vmem:[#allocation3 + $0x18] sm:$0x11] %v510_v11 }
 0x10e   : > { %2204 = vmatpush1.bf16.msra.mxu0 %v7441_v13  ;;  %v600_v13 = vrot.slane %v598_v4, 7  ;;  %v7530_v4 = vld [vmem:[#allocation4 + $0x648] ss:$16 sps:$4 sm:$0xff]  }
 0x10f   : > { %2255 = vmatpush1.bf16.msra.mxu1 %v7444_v15  ;;  %2205 = vmatprep.subr.bf16.mxu0 %v7449_v16  ;;  %v6383_v15 = vld [vmem:[%s8545_s14 + $0x30] sm:$0xff]  ;;  %v7494_v16 = vld [vmem:[#allocation4 + $0x50c] ss:$16 sps:$4 sm:$0xff]  }
 0x110   : > { %2256 = vmatprep.subr.bf16.mxu1 %v7452_v17  ;;  %v443_v17 = vor.u32 %v441_v63, %v440_v9  ;;  %6384 = vst.sshfl [vmem:[#allocation3 + $0x20] sm:$0xf pattern:$0x76325410] %v6383_v15  ;;  %v422_v63 = vrot.slane %v8636_v39, %v8548_v53  ;;  %v7538_v9 = vld [vmem:[#allocation4 + $0x62c] ss:$16 sps:$4 sm:$0xff]  }
 0x111   : > { %v7536_v39 = vld [vmem:[#allocation4 + $0x628] ss:$16 sps:$4 sm:$0xff]  }
 0x112   : > { %2206 = vmatpush2.bf16.msra.mxu0 %v7447_v18  ;;  %v607_v18 = vld [vmem:[#allocation3 + $0x18] sm:$0xee] }
 0x113   : > { %2257 = vmatpush2.bf16.msra.mxu1 %v7450_v59  ;;  %2207 = vmatprep.subr.bf16.mxu0 %v7455_v20  ;;  %v635_v59 = vcombine.high %v6383_v15, %v6383_v15  ;;  %v601_v20 = vor.u32 %v600_v13, %v597_v12  ;;  %v7541_v13 = vld [vmem:[#allocation4 + $0x604] ss:$16 sps:$4 sm:$0xff]   ;;  %v7544_v15 = vld [vmem:[#allocation4 + $0x60c] ss:$16 sps:$4 sm:$0xff]  }
 0x114   : > { %2258 = vmatprep.subr.bf16.mxu1 %v7458_v1  ;;  %v507_v1 = vrot.slane %v499_v5, 5  ;;  %v431_v5 = vshrl.u32 %v422_v63, 16 }
 0x115   : > { %6385 = vst.sshfl [vmem:[#allocation3 + $0x28] sm:$0xf pattern:$0x76325410] %v635_v59 }
 0x116   : > { %2208 = vmatpush2.bf16.msra.mxu0 %v7453_v22  ;;  %v7489_v22 = vld [vmem:[#allocation4 + $0x500] ss:$16 sps:$4 sm:$0xff]   ;;  %515 = vst [vmem:[#allocation3] sm:$0x88] %v507_v1 }
 0x117   : > { %2259 = vmatpush2.bf16.msra.mxu1 %v7456_v23  ;;  %2209 = vmatprep.subr.bf16.mxu0 %v7461_v24  ;;  %v457_v23 = vsel %vm452_vm5, %v443_v17, %v456_v10  ;;  %v7492_v24 = vld [vmem:[#allocation4 + $0x508] ss:$16 sps:$4 sm:$0xff]   ;;  %v7533_v10 = vld [vmem:[#allocation4 + $0x620] ss:$16 sps:$4 sm:$0xff]  }
 0x118   : > { %2260 = vmatprep.subr.bf16.mxu1 %v7464_v25  ;;  %v1841_v25 = vor.u32 %v1840_v7, %v1836_v52  ;;  %458 = vst [vmem:[#allocation3 + $0x8] sm:$0x77] %v457_v23  ;;  %v7518_v52 = vld [vmem:[#allocation4 + $0x688] ss:$16 sps:$4 sm:$0xff]   ;;  %v453_v23 = vld [vmem:[#allocation3] sm:$0x77] }
 0x119   : > { %v7542_v17 = vld [vmem:[#allocation4 + $0x608] ss:$16 sps:$4 sm:$0xff]  }
 0x11a   : > { %2210 = vmatpush2.bf16.msra.mxu0 %v7459_v26  ;;  %v1845_v26 = vrot.slane %v1843_v8, 1  ;;  %v7535_v8 = vld [vmem:[#allocation4 + $0x624] ss:$16 sps:$4 sm:$0xff]  }
 0x11b   : > { %2261 = vmatpush2.bf16.msra.mxu1 %v7462_v27  ;;  %2211 = vmatprep.subr.bf16.mxu0 %v7467_v29  ;;  %v608_v27 = vsel %vm8578_vm12, %v601_v20, %v607_v18  ;;  %v509_v29 = vrot.slane %v507_v1, 4  ;;  %v7547_v20 = vld [vmem:[#allocation4 + $0x7e4] ss:$16 sps:$4 sm:$0xff]   ;;  %v7550_v1 = vld [vmem:[#allocation4 + $0x7ec] ss:$16 sps:$4 sm:$0xff]  }
 0x11c   : > { %2262 = vmatprep.subr.bf16.mxu1 %v7470_v30  ;;  %v7499_v30 = vld [vmem:[#allocation4 + $0x6e4] ss:$16 sps:$4 sm:$0xff]   ;;  %609 = vst [vmem:[#allocation3 + $0x18] sm:$0xee] %v608_v27  ;;  %v1861_v47 = vor.u32 %v1859_v41, %v1845_v26  ;;  %v7574_v41 = vld [vmem:[#allocation4 + $0x76c] ss:$16 sps:$4 sm:$0xff]  }
 0x11d   : > { %517 = vst [vmem:[#allocation3 + $0x10] sm:$0x11] %v509_v29  ;;  %v7553_v29 = vld [vmem:[#allocation4 + $0x7c4] ss:$16 sps:$4 sm:$0xff]  }
 0x11e   : > { %2212 = vmatpush2.bf16.msra.mxu0 %v7465_v31  ;;  %v7502_v31 = vld [vmem:[#allocation4 + $0x6ec] ss:$16 sps:$4 sm:$0xff]  }
 0x11f   : > { %2263 = vmatpush2.bf16.msra.mxu1 %v7468_v33  ;;  %2213 = vmatprep.subr.bf16.mxu0 %v7473_v34  ;;  %v1862_v33 = vshrl.u32 %v8628_v60, 16  ;;  %v7497_v34 = vld [vmem:[#allocation4 + $0x6e0] ss:$16 sps:$4 sm:$0xff]  }
 0x120   : > { %2264 = vmatprep.subr.bf16.mxu1 %v7476_v35  ;;  %v1846_v35 = vsel %vm868_vm14, %v1841_v25, %v1845_v26  ;;  %v7503_v60 = vld [vmem:[#allocation4 + $0x6c0] ss:$16 sps:$4 sm:$0xff]   ;;  %v7548_v25 = vld [vmem:[#allocation4 + $0x7e8] ss:$16 sps:$4 sm:$0xff]  }
 0x122   : > { %2214 = vmatpush2.bf16.msra.mxu0 %v7471_v36  ;;  %v7500_v36 = vld [vmem:[#allocation4 + $0x6e8] ss:$16 sps:$4 sm:$0xff]  }
 0x123   : > { %2265 = vmatpush2.bf16.msra.mxu1 %v7474_v37  ;;  %2215 = vmatprep.subr.bf16.mxu0 %v7479_v38  ;;  %v7505_v37 = vld [vmem:[#allocation4 + $0x6c4] ss:$16 sps:$4 sm:$0xff]   ;;  %v7508_v38 = vld [vmem:[#allocation4 + $0x6cc] ss:$16 sps:$4 sm:$0xff]  }
 0x124   : > { %2266 = vmatprep.subr.bf16.mxu1 %v7482_v40  ;;  %v1864_v40 = vor.u32 %v1862_v33, %v8631_v3  ;;  %v7517_v3 = vld [vmem:[#allocation4 + $0x684] ss:$16 sps:$4 sm:$0xff]   ;;  %v8685_v49 = vld [vmem:[#allocation3 + $0xc] ss:$16 sps:$4 sm:$0xff]   ;;  %v7554_v33 = vld [vmem:[#allocation4 + $0x7c8] ss:$16 sps:$4 sm:$0xff]  }
 0x126   : > { %2216 = vmatpush2.bf16.msra.mxu0 %v7477_v44  ;;  %v7511_v44 = vld [vmem:[#allocation4 + $0x6a4] ss:$16 sps:$4 sm:$0xff]  }
 0x127   : > { %2267 = vmatpush2.bf16.msra.mxu1 %v7480_v48  ;;  %2217 = vmatprep.subr.bf16.mxu0 %v7485_v51  ;;  %v7509_v48 = vld [vmem:[#allocation4 + $0x6a0] ss:$16 sps:$4 sm:$0xff]  }
 0x128   : > { %2268 = vmatprep.subr.bf16.mxu1 %v7488_v61  ;;  %v7515_v51 = vld [vmem:[#allocation4 + $0x680] ss:$16 sps:$4 sm:$0xff]  }
 0x129   : > { %v7521_v61 = vld [vmem:[#allocation4 + $0x660] ss:$16 sps:$4 sm:$0xff]  }
 0x12a   : > { %2218 = vmatpush2.bf16.msra.mxu0 %v7483_v0  ;;  %v578_v0 = vrot.slane %v8642_v43, %v8548_v53  ;;  %v433_v53 = vrot.slane %v431_v5, 7  ;;  %v434_v43 = vshll.u32 %v422_v63, 16  ;;  %v8700_v63 = vld [vmem:[#allocation3 + $0x20] sm:$0x77] }
 0x12b   : > { %2269 = vmatpush2.bf16.msra.mxu1 %v7486_v2  ;;  %2219 = vmatprep.subr.bf16.mxu0 %v7491_v6  ;;  %v7529_v2 = vld [vmem:[#allocation4 + $0x644] ss:$16 sps:$4 sm:$0xff]  }
 0x12c   : > { %2270 = vmatprep.subr.bf16.mxu1 %v7494_v16  ;;  %v587_v6 = vshrl.u32 %v578_v0, 16  ;;  %v590_v7 = vshll.u32 %v578_v0, 16  ;;  %v7539_v16 = vld [vmem:[#allocation4 + $0x600] ss:$16 sps:$4 sm:$0xff]   ;;  %v436_v18 = vor.u32 %v434_v43, %v433_v53  ;;  %v7601_v0 = vld [vmem:[#allocation4 + $0x8e4] ss:$16 sps:$4 sm:$0xff]  }
 0x12e   : > { %2220 = vmatpush2.bf16.msra.mxu0 %v7489_v22  ;;  %v589_v11 = vrot.slane %v587_v6, 6  ;;  %v592_v12 = vrot.slane %v590_v7, 7  ;;  %v7545_v22 = vld [vmem:[#allocation4 + $0x7e0] ss:$16 sps:$4 sm:$0xff]   ;;  %v454_v26 = vsel %vm452_vm5, %v436_v18, %v453_v23  ;;  %v7602_v7 = vld [vmem:[#allocation4 + $0x8e8] ss:$16 sps:$4 sm:$0xff]  }
 0x12f   : > { %2271 = vmatpush2.bf16.msra.mxu1 %v7492_v24  ;;  %2708 = vmatprep.subr.bf16.mxu0 %v7499_v30  ;;  %v604_v24 = vld [vmem:[#allocation3 + $0x10] sm:$0xee]  ;;  %v7556_v30 = vld [vmem:[#allocation4 + $0x7cc] ss:$16 sps:$4 sm:$0xff]   ;;  %455 = vst [vmem:[#allocation3] sm:$0x77] %v454_v26 }
 0x130   : > { %2759 = vmatprep.subr.bf16.mxu1 %v7502_v31  ;;  %v593_v59 = vor.u32 %v592_v12, %v589_v11  ;;  %v7551_v31 = vld [vmem:[#allocation4 + $0x7c0] ss:$16 sps:$4 sm:$0xff]   ;;  %v7615_v18 = vld [vmem:[#allocation4 + $0x8a4] ss:$16 sps:$4 sm:$0xff]   ;;  %v7616_v26 = vld [vmem:[#allocation4 + $0x8a8] ss:$16 sps:$4 sm:$0xff]  }
 0x131   : > { %2222 = vmatmul.mubr.bf16.vlgmr.msra.gmra.mxu0 %v1846_v35  ;;  %v7599_v6 = vld [vmem:[#allocation4 + $0x8e0] ss:$16 sps:$4 sm:$0xff]  }
 0x132   : > { %2273 = vmatmul.mubr.bf16.vlgmr.msra.gmra.mxu1 %v1846_v35  ;;  %2709 = vmatpush1.bf16.msra.mxu0 %v7497_v34  ;;  %v605_v27 = vsel %vm8578_vm12, %v593_v59, %v604_v24  ;;  %v7562_v34 = vld [vmem:[#allocation4 + $0x7ac] ss:$16 sps:$4 sm:$0xff]   ;;  %v7560_v35 = vld [vmem:[#allocation4 + $0x7a8] ss:$16 sps:$4 sm:$0xff]   ;;  %vm713_vm12 = vmor %vm8745_vm11, %vm8741_vm10 }
 0x133   : > { %2760 = vmatpush1.bf16.msra.mxu1 %v7500_v36  ;;  %2710 = vmatprep.subr.bf16.mxu0 %v7505_v37  ;;  %606 = vst [vmem:[#allocation3 + $0x10] sm:$0xee] %v605_v27  ;;  %v7568_v36 = vld [vmem:[#allocation4 + $0x78c] ss:$16 sps:$4 sm:$0xff]   ;;  %v7563_v37 = vld [vmem:[#allocation4 + $0x780] ss:$16 sps:$4 sm:$0xff]  }
 0x134   : > { %2761 = vmatprep.subr.bf16.mxu1 %v7508_v38  ;;  %2231 = vmatprep.mubr.bf16.mxu0 %v1864_v40  ;;  %v7566_v38 = vld [vmem:[#allocation4 + $0x788] ss:$16 sps:$4 sm:$0xff]   ;;  %v7618_v59 = vld [vmem:[#allocation4 + $0x8ac] ss:$16 sps:$4 sm:$0xff]  }
 0x135   : > { %2282 = vmatprep.mubr.bf16.mxu1 %v1864_v40  ;;  %v7571_v40 = vld [vmem:[#allocation4 + $0x764] ss:$16 sps:$4 sm:$0xff]  }
 0x136   : > { %2711 = vmatpush1.bf16.msra.mxu0 %v7503_v60  ;;  %v7569_v60 = vld [vmem:[#allocation4 + $0x760] ss:$16 sps:$4 sm:$0xff]  }
 0x137   : > { %2762 = vmatpush1.bf16.msra.mxu1 %v7506_v42  ;;  %2712 = vmatprep.subr.bf16.mxu0 %v7511_v44  ;;  %v7572_v42 = vld [vmem:[#allocation4 + $0x768] ss:$16 sps:$4 sm:$0xff]   ;;  %v7577_v44 = vld [vmem:[#allocation4 + $0x744] ss:$16 sps:$4 sm:$0xff]  }
 0x138   : > { %2763 = vmatprep.subr.bf16.mxu1 %v7514_v45  ;;  %v7580_v45 = vld [vmem:[#allocation4 + $0x74c] ss:$16 sps:$4 sm:$0xff]  }
 0x139   : > { %2232 = vmatmul.mubr.bf16.gmra.mxu0 %v1861_v47 }
 0x13a   : > { %2283 = vmatmul.mubr.bf16.gmra.mxu1 %v1861_v47  ;;  %2713 = vmatpush1.bf16.msra.mxu0 %v7509_v48  ;;  %v7575_v47 = vld [vmem:[#allocation4 + $0x740] ss:$16 sps:$4 sm:$0xff]   ;;  %v7578_v48 = vld [vmem:[#allocation4 + $0x748] ss:$16 sps:$4 sm:$0xff]  }
 0x13b   : > { %2764 = vmatpush1.bf16.msra.mxu1 %v7512_v50  ;;  %2714 = vmatprep.subr.bf16.mxu0 %v7517_v3  ;;  %v7583_v50 = vld [vmem:[#allocation4 + $0x724] ss:$16 sps:$4 sm:$0xff]   ;;  %v7586_v3 = vld [vmem:[#allocation4 + $0x72c] ss:$16 sps:$4 sm:$0xff]  }
 0x13c   : > { %2765 = vmatprep.subr.bf16.mxu1 %v7520_v14  ;;  %2740 = vmatprep.mubr.bf16.mxu0 %v8685_v49  ;;  %v7581_v14 = vld [vmem:[#allocation4 + $0x720] ss:$16 sps:$4 sm:$0xff]  }
 0x13d   : > { %2791 = vmatprep.mubr.bf16.mxu1 %v8685_v49 }
 0x13e   : > { %2715 = vmatpush1.bf16.msra.mxu0 %v7515_v51  ;;  %v7584_v51 = vld [vmem:[#allocation4 + $0x728] ss:$16 sps:$4 sm:$0xff]  }
 0x13f   : > { %2766 = vmatpush1.bf16.msra.mxu1 %v7518_v52  ;;  %2716 = vmatprep.subr.bf16.mxu0 %v7523_v57  ;;  %v7589_v52 = vld [vmem:[#allocation4 + $0x704] ss:$16 sps:$4 sm:$0xff]   ;;  %v7592_v57 = vld [vmem:[#allocation4 + $0x70c] ss:$16 sps:$4 sm:$0xff]  }
 0x140   : > { %2767 = vmatprep.subr.bf16.mxu1 %v7526_v58  ;;  %v7587_v58 = vld [vmem:[#allocation4 + $0x700] ss:$16 sps:$4 sm:$0xff]  }
 0x142   : > { %2717 = vmatpush1.bf16.msra.mxu0 %v7521_v61  ;;  %v7699_v61 = vld [vmem:[#allocation3 + $0x4] ss:$16 sps:$4 sm:$0xff]  }
 0x143   : > { %2768 = vmatpush1.bf16.msra.mxu1 %v7524_v62  ;;  %2718 = vmatprep.subr.bf16.mxu0 %v7529_v2  ;;  %v7590_v62 = vld [vmem:[#allocation4 + $0x708] ss:$16 sps:$4 sm:$0xff]   ;;  %v7604_v2 = vld [vmem:[#allocation4 + $0x8ec] ss:$16 sps:$4 sm:$0xff]   ;;  %v2918_v5 = vshll.u32 %v7699_v61, 16  ;;  %v2916_v43 = vshrl.u32 %v7699_v61, 16 }
 0x144   : > { %2769 = vmatprep.subr.bf16.mxu1 %v7532_v54  ;;  %v2305_v54 = vld [vmem:[#allocation3 + $0x28] sm:$0x33] }
 0x145   : > { %v2920_v11 = vrot.slane %v2918_v5, 1  ;;  %v7648_v61 = vld [vmem:[#allocation4 + $0x80c] ss:$16 sps:$4 sm:$0xff]   ;;  %v7652_v5 = vld [vmem:[#allocation4 + $0x9e8] ss:$16 sps:$4 sm:$0xff]  }
 0x146   : > { %2719 = vmatpush1.bf16.msra.mxu0 %v7527_v32  ;;  %v7596_v32 = vld [vmem:[#allocation3 + $0x8] ss:$16 sps:$4 sm:$0xff]  }
 0x147   : > { %2770 = vmatpush1.bf16.msra.mxu1 %v7530_v4  ;;  %2720 = vmatprep.subr.bf16.mxu0 %v7535_v8  ;;  %v8704_v4 = vcombine.high %v8700_v63, %v8700_v63  ;;  %v7607_v8 = vld [vmem:[#allocation4 + $0x8c4] ss:$16 sps:$4 sm:$0xff]   ;;  %v2921_v23 = vor.u32 %v2920_v11, %v2916_v43  ;;  %v7666_v43 = vld [vmem:[#allocation4 + $0x9ac] ss:$16 sps:$4 sm:$0xff]   ;;  %v7661_v11 = vld [vmem:[#allocation4 + $0x9a0] ss:$16 sps:$4 sm:$0xff]  }
 0x148   : > { %2771 = vmatprep.subr.bf16.mxu1 %v7538_v9  ;;  %v7610_v9 = vld [vmem:[#allocation4 + $0x8cc] ss:$16 sps:$4 sm:$0xff]  }
 0x149   : > { %v2923_v12 = vshll.u32 %v8704_v4, 16 }
 0x14a   : > { %2721 = vmatpush1.bf16.msra.mxu0 %v7533_v10  ;;  %v6592_v10 = vcombine.high %v2305_v54, %v2305_v54 }
 0x14b   : > { %2772 = vmatpush1.bf16.msra.mxu1 %v7536_v39  ;;  %2722 = vmatprep.subr.bf16.mxu0 %v7541_v13  ;;  %v7605_v13 = vld [vmem:[#allocation4 + $0x8c0] ss:$16 sps:$4 sm:$0xff]   ;;  %v8719_v24 = vrot.slane %v2923_v12, 1  ;;  %v7664_v12 = vld [vmem:[#allocation4 + $0x9a8] ss:$16 sps:$4 sm:$0xff]  }
 0x14c   : > { %2773 = vmatprep.subr.bf16.mxu1 %v7544_v15  ;;  %v7608_v15 = vld [vmem:[#allocation4 + $0x8c8] ss:$16 sps:$4 sm:$0xff]  }
 0x14e   : > { %2723 = vmatpush1.bf16.msra.mxu0 %v7539_v16 }
 0x14f   : > { %2774 = vmatpush1.bf16.msra.mxu1 %v7542_v17  ;;  %2724 = vmatprep.subr.bf16.mxu0 %v7547_v20 }
 0x150   : > { %2775 = vmatprep.subr.bf16.mxu1 %v7550_v1 }
 0x152   : > { %2725 = vmatpush2.bf16.msra.mxu0 %v7545_v22  ;;  %v6591_v22 = vcombine.low %v2305_v54, %v2305_v54  ;;  %v7654_v54 = vld [vmem:[#allocation4 + $0x9ec] ss:$16 sps:$4 sm:$0xff]  }
 0x153   : > { %2776 = vmatpush2.bf16.msra.mxu1 %v7548_v25  ;;  %2726 = vmatprep.subr.bf16.mxu0 %v7553_v29  ;;  %v7613_v25 = vld [vmem:[#allocation4 + $0x8a0] ss:$16 sps:$4 sm:$0xff]  }
 0x154   : > { %2777 = vmatprep.subr.bf16.mxu1 %v7556_v30  ;;  %v7621_v30 = vld [vmem:[#allocation4 + $0x884] ss:$16 sps:$4 sm:$0xff]  }
 0x156   : > { %2727 = vmatpush2.bf16.msra.mxu0 %v7551_v31  ;;  %v7624_v31 = vld [vmem:[#allocation4 + $0x88c] ss:$16 sps:$4 sm:$0xff]  }
 0x157   : > { %2778 = vmatpush2.bf16.msra.mxu1 %v7554_v33  ;;  %2728 = vmatprep.subr.bf16.mxu0 %v7559_v55 }
 0x158   : > { %2779 = vmatprep.subr.bf16.mxu1 %v7562_v34  ;;  %v2926_v34 = vsel %vm868_vm14, %v2921_v23, %v8719_v24  ;;  %v7678_v23 = vld [vmem:[#allocation4 + $0x96c] ss:$16 sps:$4 sm:$0xff]  }
 0x15a   : > { %2729 = vmatpush2.bf16.msra.mxu0 %v7557_v56  ;;  %v7619_v56 = vld [vmem:[#allocation4 + $0x880] ss:$16 sps:$4 sm:$0xff]  }
 0x15b   : > { %2780 = vmatpush2.bf16.msra.mxu1 %v7560_v35  ;;  %2730 = vmatprep.subr.bf16.mxu0 %v7565_v19  ;;  %v7622_v35 = vld [vmem:[#allocation4 + $0x888] ss:$16 sps:$4 sm:$0xff]   ;;  %v7627_v19 = vld [vmem:[#allocation4 + $0x864] ss:$16 sps:$4 sm:$0xff]  }
 0x15c   : > { %2781 = vmatprep.subr.bf16.mxu1 %v7568_v36  ;;  %v7630_v36 = vld [vmem:[#allocation4 + $0x86c] ss:$16 sps:$4 sm:$0xff]  }
 0x15e   : > { %2731 = vmatpush2.bf16.msra.mxu0 %v7563_v37 }
 0x15f   : > { %2782 = vmatpush2.bf16.msra.mxu1 %v7566_v38  ;;  %2732 = vmatprep.subr.bf16.mxu0 %v7571_v40  ;;  %v7625_v40 = vld [vmem:[#allocation4 + $0x860] ss:$16 sps:$4 sm:$0xff]  }
 0x160   : > { %2783 = vmatprep.subr.bf16.mxu1 %v7574_v41  ;;  %v7628_v41 = vld [vmem:[#allocation4 + $0x868] ss:$16 sps:$4 sm:$0xff]  }
 0x162   : > { %2733 = vmatpush2.bf16.msra.mxu0 %v7569_v60 }
 0x163   : > { %2784 = vmatpush2.bf16.msra.mxu1 %v7572_v42  ;;  %2734 = vmatprep.subr.bf16.mxu0 %v7577_v44  ;;  %v7633_v44 = vld [vmem:[#allocation4 + $0x844] ss:$16 sps:$4 sm:$0xff]  }
 0x164   : > { %2785 = vmatprep.subr.bf16.mxu1 %v7580_v45  ;;  %v7636_v45 = vld [vmem:[#allocation4 + $0x84c] ss:$16 sps:$4 sm:$0xff]  }
 0x166   : > { %2735 = vmatpush2.bf16.msra.mxu0 %v7575_v47 }
 0x167   : > { %2786 = vmatpush2.bf16.msra.mxu1 %v7578_v48  ;;  %2736 = vmatprep.subr.bf16.mxu0 %v7583_v50  ;;  %v7631_v50 = vld [vmem:[#allocation4 + $0x840] ss:$16 sps:$4 sm:$0xff]  }
 0x168   : > { %2787 = vmatprep.subr.bf16.mxu1 %v7586_v3  ;;  %v7634_v3 = vld [vmem:[#allocation4 + $0x848] ss:$16 sps:$4 sm:$0xff]  }
 0x16a   : > { %2737 = vmatpush2.bf16.msra.mxu0 %v7581_v14  ;;  %v7639_v14 = vld [vmem:[#allocation4 + $0x824] ss:$16 sps:$4 sm:$0xff]  }
 0x16b   : > { %2788 = vmatpush2.bf16.msra.mxu1 %v7584_v51  ;;  %2738 = vmatprep.subr.bf16.mxu0 %v7589_v52  ;;  %v7642_v51 = vld [vmem:[#allocation4 + $0x82c] ss:$16 sps:$4 sm:$0xff]   ;;  %v7637_v52 = vld [vmem:[#allocation4 + $0x820] ss:$16 sps:$4 sm:$0xff]  }
 0x16c   : > { %2789 = vmatprep.subr.bf16.mxu1 %v7592_v57  ;;  %v7640_v57 = vld [vmem:[#allocation4 + $0x828] ss:$16 sps:$4 sm:$0xff]  }
 0x16e   : > { %2739 = vmatpush2.bf16.msra.mxu0 %v7587_v58  ;;  %v7645_v58 = vld [vmem:[#allocation4 + $0x804] ss:$16 sps:$4 sm:$0xff]  }
 0x16f   : > { %2790 = vmatpush2.bf16.msra.mxu1 %v7590_v62  ;;  %3257 = vmatprep.subr.bf16.mxu0 %v7601_v0  ;;  %v7643_v62 = vld [vmem:[#allocation4 + $0x800] ss:$16 sps:$4 sm:$0xff]   ;;  %v7646_v0 = vld [vmem:[#allocation4 + $0x808] ss:$16 sps:$4 sm:$0xff]  }
 0x170   : > { %3308 = vmatprep.subr.bf16.mxu1 %v7604_v2  ;;  %v7651_v2 = vld [vmem:[#allocation4 + $0x9e4] ss:$16 sps:$4 sm:$0xff]  }
 0x171   : > { %v8706_v39 = vpop.f32.mrf.mxu0  ;;  %2741 = vmatmul.mubr.bf16.vlgmr.msra.gmra.mxu0 %v7596_v32 }
 0x172   : > { %v8708_v53 = vpop.f32.mrf.mxu1  ;;  %2792 = vmatmul.mubr.bf16.vlgmr.msra.gmra.mxu1 %v7596_v32  ;;  %3258 = vmatpush1.bf16.msra.mxu0 %v7599_v6  ;;  %v7649_v32 = vld [vmem:[#allocation4 + $0x9e0] ss:$16 sps:$4 sm:$0xff]   ;;  %v7657_v6 = vld [vmem:[#allocation4 + $0x9c4] ss:$16 sps:$4 sm:$0xff]  }
 0x173   : > { %3309 = vmatpush1.bf16.msra.mxu1 %v7602_v7  ;;  %v8711_v16 = vpop.f32.mrf.mxu0  ;;  %3259 = vmatprep.subr.bf16.mxu0 %v7607_v8  ;;  %v7660_v7 = vld [vmem:[#allocation4 + $0x9cc] ss:$16 sps:$4 sm:$0xff]   ;;  %v7655_v8 = vld [vmem:[#allocation4 + $0x9c0] ss:$16 sps:$4 sm:$0xff]  }
 0x174   : > { %v8713_v17 = vpop.f32.mrf.mxu1  ;;  %3310 = vmatprep.subr.bf16.mxu1 %v7610_v9  ;;  %2750 = vmatprep.mubr.bf16.mxu0 %v6592_v10  ;;  %v7658_v9 = vld [vmem:[#allocation4 + $0x9c8] ss:$16 sps:$4 sm:$0xff]  }
 0x175   : > { %2801 = vmatprep.mubr.bf16.mxu1 %v6592_v10  ;;  %v8715_v20 = vpop.f32.mrf.mxu0  ;;  %v7663_v10 = vld [vmem:[#allocation4 + $0x9a4] ss:$16 sps:$4 sm:$0xff]  }
 0x176   : > { %v8717_v1 = vpop.f32.mrf.mxu1  ;;  %3260 = vmatpush1.bf16.msra.mxu0 %v7605_v13  ;;  %v7669_v13 = vld [vmem:[#allocation4 + $0x984] ss:$16 sps:$4 sm:$0xff]  }
 0x177   : > { %3311 = vmatpush1.bf16.msra.mxu1 %v7608_v15  ;;  %v8721_v27 = vpop.f32.mrf.mxu0  ;;  %3261 = vmatprep.subr.bf16.mxu0 %v7615_v18  ;;  %v7672_v15 = vld [vmem:[#allocation4 + $0x98c] ss:$16 sps:$4 sm:$0xff]   ;;  %v7667_v18 = vld [vmem:[#allocation4 + $0x980] ss:$16 sps:$4 sm:$0xff]  }
 0x178   : > { %v8723_v29 = vpop.f32.mrf.mxu1  ;;  %3312 = vmatprep.subr.bf16.mxu1 %v7618_v59  ;;  %v7670_v59 = vld [vmem:[#allocation4 + $0x988] ss:$16 sps:$4 sm:$0xff]  }
 0x179   : > { %2751 = vmatmul.mubr.bf16.gmra.mxu0 %v6591_v22  ;;  %v8725_v33 = vpop.f32.mrf.mxu0 }
 0x17a   : > { %2802 = vmatmul.mubr.bf16.gmra.mxu1 %v6591_v22  ;;  %v8727_v55 = vpop.f32.mrf.mxu1  ;;  %3262 = vmatpush1.bf16.msra.mxu0 %v7613_v25  ;;  %v7675_v22 = vld [vmem:[#allocation4 + $0x964] ss:$16 sps:$4 sm:$0xff]   ;;  %v7673_v25 = vld [vmem:[#allocation4 + $0x960] ss:$16 sps:$4 sm:$0xff]  }
 0x17b   : > { %3313 = vmatpush1.bf16.msra.mxu1 %v7616_v26  ;;  %3263 = vmatprep.subr.bf16.mxu0 %v7621_v30  ;;  %v8731_v37 = vpop.f32.mrf.mxu0  ;;  %v7676_v26 = vld [vmem:[#allocation4 + $0x968] ss:$16 sps:$4 sm:$0xff]   ;;  %v7681_v30 = vld [vmem:[#allocation4 + $0x944] ss:$16 sps:$4 sm:$0xff]  }
 0x17c   : > { %3314 = vmatprep.subr.bf16.mxu1 %v7624_v31  ;;  %v8733_v38 = vpop.f32.mrf.mxu1  ;;  %3289 = vmatprep.mubr.bf16.mxu0 %v2926_v34  ;;  %v7697_v31 = vld [vmem:[#allocation3] ss:$16 sps:$4 sm:$0xff]  }
 0x17d   : > { %3340 = vmatprep.mubr.bf16.mxu1 %v2926_v34  ;;  %v1271_v60 = vpop.f32.mrf.mxu0  ;;  %v7684_v34 = vld [vmem:[#allocation4 + $0x94c] ss:$16 sps:$4 sm:$0xff]  }
 0x17e   : > { %v1322_v42 = vpop.f32.mrf.mxu1  ;;  %3264 = vmatpush1.bf16.msra.mxu0 %v7619_v56  ;;  %v689_v56 = vrot.slane %v8610_v28, 4  ;;  %v7687_v60 = vld [vmem:[#allocation4 + $0x924] ss:$16 sps:$4 sm:$0xff]   ;;  %v7792_v28 = vld [vmem:[#allocation4 + $0xb00] ss:$16 sps:$4 sm:$0xff]  }
 0x17f   : > { %3315 = vmatpush1.bf16.msra.mxu1 %v7622_v35  ;;  %3265 = vmatprep.subr.bf16.mxu0 %v7627_v19  ;;  %v1272_v47 = vpop.f32.mrf.mxu0  ;;  %v7679_v35 = vld [vmem:[#allocation4 + $0x940] ss:$16 sps:$4 sm:$0xff]   ;;  %v7682_v19 = vld [vmem:[#allocation4 + $0x948] ss:$16 sps:$4 sm:$0xff]   ;;  %v7690_v42 = vld [vmem:[#allocation4 + $0x92c] ss:$16 sps:$4 sm:$0xff]  }
 0x180   : > { %3316 = vmatprep.subr.bf16.mxu1 %v7630_v36  ;;  %v1323_v48 = vpop.f32.mrf.mxu1  ;;  %v8738_v36 = vcombine.low %v8700_v63, %v8700_v63  ;;  %v717_v63 = vld [vmem:[#allocation2 + $0x38] sm:$0x11] }
 0x181   : > { %v7688_v47 = vld [vmem:[#allocation4 + $0x928] ss:$16 sps:$4 sm:$0xff]   ;;  %v2904_v48 = vshrl.u32 %v7697_v31, 16 }
 0x182   : > { %3266 = vmatpush1.bf16.msra.mxu0 %v7625_v40  ;;  %v2906_v40 = vshll.u32 %v7697_v31, 16  ;;  %v7719_v31 = vld [vmem:[#allocation4 + $0xaac] ss:$16 sps:$4 sm:$0xff]  }
 0x183   : > { %3317 = vmatpush1.bf16.msra.mxu1 %v7628_v41  ;;  %3267 = vmatprep.subr.bf16.mxu0 %v7633_v44  ;;  %v7685_v44 = vld [vmem:[#allocation4 + $0x920] ss:$16 sps:$4 sm:$0xff]  }
 0x184   : > { %3318 = vmatprep.subr.bf16.mxu1 %v7636_v45  ;;  %v718_v45 = vsel %vm713_vm12, %v689_v56, %v717_v63  ;;  %v7717_v56 = vld [vmem:[#allocation4 + $0xaa8] ss:$16 sps:$4 sm:$0xff]   ;;  %v7725_v63 = vld [vmem:[#allocation4 + $0xa8c] ss:$16 sps:$4 sm:$0xff]  }
 0x185   : > { %719 = vst [vmem:[#allocation2 + $0x38] sm:$0x11] %v718_v45 }
 0x186   : > { %3268 = vmatpush1.bf16.msra.mxu0 %v7631_v50  ;;  %v2908_v50 = vrot.slane %v2906_v40, 1 }
 0x187   : > { %3319 = vmatpush1.bf16.msra.mxu1 %v7634_v3  ;;  %3269 = vmatprep.subr.bf16.mxu0 %v7639_v14  ;;  %v2911_v3 = vshll.u32 %v8738_v36, 16  ;;  %v7693_v14 = vld [vmem:[#allocation4 + $0x904] ss:$16 sps:$4 sm:$0xff]  }
 0x188   : > { %3320 = vmatprep.subr.bf16.mxu1 %v7642_v51  ;;  %v7696_v51 = vld [vmem:[#allocation4 + $0x90c] ss:$16 sps:$4 sm:$0xff]  }
 0x18a   : > { %3270 = vmatpush1.bf16.msra.mxu0 %v7637_v52  ;;  %v7691_v52 = vld [vmem:[#allocation4 + $0x900] ss:$16 sps:$4 sm:$0xff]  }
 0x18b   : > { %3321 = vmatpush1.bf16.msra.mxu1 %v7640_v57  ;;  %3271 = vmatprep.subr.bf16.mxu0 %v7645_v58  ;;  %v7694_v57 = vld [vmem:[#allocation4 + $0x908] ss:$16 sps:$4 sm:$0xff]   ;;  %v2909_v58 = vor.u32 %v2908_v50, %v2904_v48  ;;  %v7720_v48 = vld [vmem:[#allocation4 + $0xa80] ss:$16 sps:$4 sm:$0xff]  }
 0x18c   : > { %3322 = vmatprep.subr.bf16.mxu1 %v7648_v61  ;;  %v2913_v61 = vrot.slane %v2911_v3, 1 }
 0x18e   : > { %3272 = vmatpush1.bf16.msra.mxu0 %v7643_v62  ;;  %v8759_v62 = vld [vmem:[#allocation3 + $0x28] sm:$0x77] }
 0x18f   : > { %3323 = vmatpush1.bf16.msra.mxu1 %v7646_v0  ;;  %3273 = vmatprep.subr.bf16.mxu0 %v7651_v2  ;;  %v7704_v0 = vld [vmem:[#allocation4 + $0xae4] ss:$16 sps:$4 sm:$0xff]   ;;  %v7707_v2 = vld [vmem:[#allocation4 + $0xaec] ss:$16 sps:$4 sm:$0xff]  }
 0x190   : > { %3324 = vmatprep.subr.bf16.mxu1 %v7654_v54  ;;  %v2930_v54 = vshrl.u32 %v8704_v4, 16 }
 0x192   : > { %3274 = vmatpush2.bf16.msra.mxu0 %v7649_v32  ;;  %v8764_v32 = vcombine.high %v8759_v62, %v8759_v62  ;;  %v2932_v4 = vor.u32 %v2930_v54, %v8719_v24  ;;  %v7734_v54 = vld [vmem:[#allocation4 + $0xa44] ss:$16 sps:$4 sm:$0xff]  }
 0x193   : > { %3325 = vmatpush2.bf16.msra.mxu1 %v7652_v5  ;;  %3275 = vmatprep.subr.bf16.mxu0 %v7657_v6  ;;  %v3457_v5 = vshll.u32 %v8685_v49, 16  ;;  %v2914_v6 = vsel %vm868_vm14, %v2909_v58, %v2913_v61 }
 0x194   : > { %3326 = vmatprep.subr.bf16.mxu1 %v7660_v7  ;;  %v7702_v7 = vld [vmem:[#allocation4 + $0xae0] ss:$16 sps:$4 sm:$0xff]  }
 0x196   : > { %3276 = vmatpush2.bf16.msra.mxu0 %v7655_v8  ;;  %v7705_v8 = vld [vmem:[#allocation4 + $0xae8] ss:$16 sps:$4 sm:$0xff]  }
 0x197   : > { %3327 = vmatpush2.bf16.msra.mxu1 %v7658_v9  ;;  %3277 = vmatprep.subr.bf16.mxu0 %v7663_v10  ;;  %v7710_v9 = vld [vmem:[#allocation4 + $0xac4] ss:$16 sps:$4 sm:$0xff]   ;;  %v7713_v10 = vld [vmem:[#allocation4 + $0xacc] ss:$16 sps:$4 sm:$0xff]  }
 0x198   : > { %3328 = vmatprep.subr.bf16.mxu1 %v7666_v43  ;;  %v7708_v43 = vld [vmem:[#allocation4 + $0xac0] ss:$16 sps:$4 sm:$0xff]  }
 0x19a   : > { %3278 = vmatpush2.bf16.msra.mxu0 %v7661_v11  ;;  %v7711_v11 = vld [vmem:[#allocation4 + $0xac8] ss:$16 sps:$4 sm:$0xff]  }
 0x19b   : > { %3329 = vmatpush2.bf16.msra.mxu1 %v7664_v12  ;;  %3279 = vmatprep.subr.bf16.mxu0 %v7669_v13  ;;  %v2927_v12 = vshrl.u32 %v8738_v36, 16 }
 0x19c   : > { %3330 = vmatprep.subr.bf16.mxu1 %v7672_v15 }
 0x19e   : > { %3280 = vmatpush2.bf16.msra.mxu0 %v7667_v18  ;;  %v3455_v18 = vshrl.u32 %v8685_v49, 16 }
 0x19f   : > { %3331 = vmatpush2.bf16.msra.mxu1 %v7670_v59  ;;  %3281 = vmatprep.subr.bf16.mxu0 %v7675_v22  ;;  %v3459_v59 = vrot.slane %v3457_v5, 1  ;;  %v3462_v22 = vshll.u32 %v8764_v32, 16  ;;  %v7737_v5 = vld [vmem:[#allocation4 + $0xa4c] ss:$16 sps:$4 sm:$0xff]  }
 0x1a0   : > { %3332 = vmatprep.subr.bf16.mxu1 %v7678_v23 }
 0x1a1   : > { %v3460_v36 = vor.u32 %v3459_v59, %v3455_v18  ;;  %v8784_v40 = vrot.slane %v3462_v22, 1  ;;  %v7755_v18 = vld [vmem:[#allocation4 + $0xbec] ss:$16 sps:$4 sm:$0xff]   ;;  %v7750_v59 = vld [vmem:[#allocation4 + $0xbe0] ss:$16 sps:$4 sm:$0xff]  }
 0x1a2   : > { %3282 = vmatpush2.bf16.msra.mxu0 %v7673_v25  ;;  %v7753_v22 = vld [vmem:[#allocation4 + $0xbe8] ss:$16 sps:$4 sm:$0xff]  }
 0x1a3   : > { %3333 = vmatpush2.bf16.msra.mxu1 %v7676_v26  ;;  %3283 = vmatprep.subr.bf16.mxu0 %v7681_v30  ;;  %v7716_v30 = vld [vmem:[#allocation4 + $0xaa4] ss:$16 sps:$4 sm:$0xff]  }
 0x1a4   : > { %3334 = vmatprep.subr.bf16.mxu1 %v7684_v34 }
 0x1a6   : > { %3284 = vmatpush2.bf16.msra.mxu0 %v7679_v35 }
 0x1a7   : > { %3335 = vmatpush2.bf16.msra.mxu1 %v7682_v19  ;;  %3285 = vmatprep.subr.bf16.mxu0 %v7687_v60  ;;  %v2929_v19 = vor.u32 %v2927_v12, %v2913_v61  ;;  %v7744_v12 = vld [vmem:[#allocation4 + $0xa00] ss:$16 sps:$4 sm:$0xff]  }
 0x1a8   : > { %3336 = vmatprep.subr.bf16.mxu1 %v7690_v42 }
 0x1aa   : > { %3286 = vmatpush2.bf16.msra.mxu0 %v7685_v44  ;;  %v7722_v44 = vld [vmem:[#allocation4 + $0xa84] ss:$16 sps:$4 sm:$0xff]  }
 0x1ab   : > { %3337 = vmatpush2.bf16.msra.mxu1 %v7688_v47  ;;  %3287 = vmatprep.subr.bf16.mxu0 %v7693_v14 }
 0x1ac   : > { %3338 = vmatprep.subr.bf16.mxu1 %v7696_v51 }
 0x1ae   : > { %3288 = vmatpush2.bf16.msra.mxu0 %v7691_v52  ;;  %v7728_v52 = vld [vmem:[#allocation4 + $0xa64] ss:$16 sps:$4 sm:$0xff]  }
 0x1af   : > { %3339 = vmatpush2.bf16.msra.mxu1 %v7694_v57  ;;  %3796 = vmatprep.subr.bf16.mxu0 %v7704_v0  ;;  %v7731_v57 = vld [vmem:[#allocation4 + $0xa6c] ss:$16 sps:$4 sm:$0xff]  }
 0x1b0   : > { %3847 = vmatprep.subr.bf16.mxu1 %v7707_v2  ;;  %v7729_v2 = vld [vmem:[#allocation4 + $0xa68] ss:$16 sps:$4 sm:$0xff]  }
 0x1b1   : > { %v1696_v13 = vpop.f32.mrf.mxu0  ;;  %3290 = vmatmul.mubr.bf16.vlgmr.msra.gmra.mxu0 %v2914_v6 }
 0x1b2   : > { %v1747_v15 = vpop.f32.mrf.mxu1  ;;  %3341 = vmatmul.mubr.bf16.vlgmr.msra.gmra.mxu1 %v2914_v6  ;;  %v8773_v23 = vadd.f32 %v1696_v13, %v8706_v39  ;;  %3797 = vmatpush1.bf16.msra.mxu0 %v7702_v7  ;;  %v7714_v39 = vld [vmem:[#allocation4 + $0xaa0] ss:$16 sps:$4 sm:$0xff]   ;;  %v7747_v13 = vld [vmem:[#allocation4 + $0xa08] ss:$16 sps:$4 sm:$0xff]  }
 0x1b3   : > { %v8776_v25 = vadd.f32 %v1747_v15, %v8708_v53  ;;  %3848 = vmatpush1.bf16.msra.mxu1 %v7705_v8  ;;  %v1698_v24 = vpop.f32.mrf.mxu0  ;;  %3798 = vmatprep.subr.bf16.mxu0 %v7710_v9  ;;  %v7735_v8 = vld [vmem:[#allocation4 + $0xa48] ss:$16 sps:$4 sm:$0xff]   ;;  %v7743_v9 = vld [vmem:[#allocation4 + $0xa2c] ss:$16 sps:$4 sm:$0xff]   ;;  %v7752_v15 = vld [vmem:[#allocation4 + $0xbe4] ss:$16 sps:$4 sm:$0xff]  }
 0x1b4   : > { %v1749_v26 = vpop.f32.mrf.mxu1  ;;  %3849 = vmatprep.subr.bf16.mxu1 %v7713_v10  ;;  %v8779_v34 = vadd.f32 %v1698_v24, %v8711_v16  ;;  %3299 = vmatprep.mubr.bf16.mxu0 %v2932_v4  ;;  %v7738_v10 = vld [vmem:[#allocation4 + $0xa20] ss:$16 sps:$4 sm:$0xff]   ;;  %v7758_v24 = vld [vmem:[#allocation4 + $0xbc4] ss:$16 sps:$4 sm:$0xff]  }
 0x1b5   : > { %v8782_v49 = vadd.f32 %v1749_v26, %v8713_v17  ;;  %3350 = vmatprep.mubr.bf16.mxu1 %v2932_v4  ;;  %v1700_v53 = vpop.f32.mrf.mxu0  ;;  %v7749_v4 = vld [vmem:[#allocation4 + $0xa0c] ss:$16 sps:$4 sm:$0xff]  }
 0x1b6   : > { %v1751_v35 = vpop.f32.mrf.mxu1  ;;  %v8787_v60 = vadd.f32 %v1700_v53, %v8715_v20  ;;  %3799 = vmatpush1.bf16.msra.mxu0 %v7708_v43  ;;  %v7723_v20 = vld [vmem:[#allocation4 + $0xa88] ss:$16 sps:$4 sm:$0xff]   ;;  %v7761_v26 = vld [vmem:[#allocation4 + $0xbcc] ss:$16 sps:$4 sm:$0xff]   ;;  %v7762_v53 = vld [vmem:[#allocation4 + $0xba0] ss:$16 sps:$4 sm:$0xff]  }
 0x1b7   : > { %v8790_v42 = vadd.f32 %v1751_v35, %v8717_v1  ;;  %3850 = vmatpush1.bf16.msra.mxu1 %v7711_v11  ;;  %v1702_v16 = vpop.f32.mrf.mxu0  ;;  %3800 = vmatprep.subr.bf16.mxu0 %v7716_v30  ;;  %v3465_v1 = vsel %vm868_vm14, %v3460_v36, %v8784_v40  ;;  %v7741_v43 = vld [vmem:[#allocation4 + $0xa28] ss:$16 sps:$4 sm:$0xff]   ;;  %v7746_v11 = vld [vmem:[#allocation4 + $0xa04] ss:$16 sps:$4 sm:$0xff]   ;;  %v7756_v30 = vld [vmem:[#allocation4 + $0xbc0] ss:$16 sps:$4 sm:$0xff]  }
 0x1b8   : > { %v1753_v17 = vpop.f32.mrf.mxu1  ;;  %3851 = vmatprep.subr.bf16.mxu1 %v7719_v31  ;;  %v8793_v45 = vadd.f32 %v1702_v16, %v8721_v27  ;;  %v7759_v31 = vld [vmem:[#allocation4 + $0xbc8] ss:$16 sps:$4 sm:$0xff]   ;;  %v7773_v36 = vld [vmem:[#allocation4 + $0xb8c] ss:$16 sps:$4 sm:$0xff]   ;;  %v7768_v16 = vld [vmem:[#allocation4 + $0xb80] ss:$16 sps:$4 sm:$0xff]  }
 0x1b9   : > { %v8796_v47 = vadd.f32 %v1753_v17, %v8723_v29  ;;  %v1706_v50 = vpop.f32.mrf.mxu0  ;;  %3300 = vmatmul.mubr.bf16.gmra.mxu0 %v2929_v19  ;;  %v7765_v35 = vld [vmem:[#allocation4 + $0xba8] ss:$16 sps:$4 sm:$0xff]  }
 0x1ba   : > { %v1757_v3 = vpop.f32.mrf.mxu1  ;;  %3351 = vmatmul.mubr.bf16.gmra.mxu1 %v2929_v19  ;;  %v8801_v14 = vadd.f32 %v1706_v50, %v8725_v33  ;;  %3801 = vmatpush1.bf16.msra.mxu0 %v7714_v39  ;;  %v7764_v39 = vld [vmem:[#allocation4 + $0xba4] ss:$16 sps:$4 sm:$0xff]   ;;  %v7771_v17 = vld [vmem:[#allocation4 + $0xb88] ss:$16 sps:$4 sm:$0xff]  }
 0x1bb   : > { %v8804_v51 = vadd.f32 %v1757_v3, %v8727_v55  ;;  %3852 = vmatpush1.bf16.msra.mxu1 %v7717_v56  ;;  %v1708_v27 = vpop.f32.mrf.mxu0  ;;  %3802 = vmatprep.subr.bf16.mxu0 %v7722_v44  ;;  %v7726_v55 = vld [vmem:[#allocation4 + $0xa60] ss:$16 sps:$4 sm:$0xff]   ;;  %v7767_v56 = vld [vmem:[#allocation4 + $0xbac] ss:$16 sps:$4 sm:$0xff]   ;;  %v7770_v19 = vld [vmem:[#allocation4 + $0xb84] ss:$16 sps:$4 sm:$0xff]  }
 0x1bc   : > { %v1759_v29 = vpop.f32.mrf.mxu1  ;;  %3853 = vmatprep.subr.bf16.mxu1 %v7725_v63  ;;  %v8807_v58 = vadd.f32 %v1708_v27, %v8731_v37  ;;  %3828 = vmatprep.mubr.bf16.mxu0 %v3465_v1  ;;  %v7732_v37 = vld [vmem:[#allocation4 + $0xa40] ss:$16 sps:$4 sm:$0xff]   ;;  %v7776_v44 = vld [vmem:[#allocation4 + $0xb64] ss:$16 sps:$4 sm:$0xff]   ;;  %v7779_v63 = vld [vmem:[#allocation4 + $0xb6c] ss:$16 sps:$4 sm:$0xff]  }
 0x1bd   : > { %v8810_v61 = vadd.f32 %v1759_v29, %v8733_v38  ;;  %3879 = vmatprep.mubr.bf16.mxu1 %v3465_v1  ;;  %v1710_v33 = vpop.f32.mrf.mxu0  ;;  %v7740_v38 = vld [vmem:[#allocation4 + $0xa24] ss:$16 sps:$4 sm:$0xff]   ;;  %v7785_v3 = vld [vmem:[#allocation4 + $0xb4c] ss:$16 sps:$4 sm:$0xff]   ;;  %v7780_v1 = vld [vmem:[#allocation4 + $0xb40] ss:$16 sps:$4 sm:$0xff]  }
 0x1be   : > { %v1761_v0 = vpop.f32.mrf.mxu1  ;;  %3803 = vmatpush1.bf16.msra.mxu0 %v7720_v48  ;;  %v7774_v48 = vld [vmem:[#allocation4 + $0xb60] ss:$16 sps:$4 sm:$0xff]   ;;  %v7782_v50 = vld [vmem:[#allocation4 + $0xb44] ss:$16 sps:$4 sm:$0xff]   ;;  %v7783_v27 = vld [vmem:[#allocation4 + $0xb48] ss:$16 sps:$4 sm:$0xff]  }
 0x1bf   : > { %3854 = vmatpush1.bf16.msra.mxu1 %v7723_v20  ;;  %3804 = vmatprep.subr.bf16.mxu0 %v7728_v52  ;;  %v1711_v6 = vpop.f32.mrf.mxu0  ;;  %v7777_v20 = vld [vmem:[#allocation4 + $0xb68] ss:$16 sps:$4 sm:$0xff]   ;;  %v7788_v33 = vld [vmem:[#allocation4 + $0xb24] ss:$16 sps:$4 sm:$0xff]   ;;  %v7791_v0 = vld [vmem:[#allocation4 + $0xb2c] ss:$16 sps:$4 sm:$0xff]  }
 0x1c0   : > { %3855 = vmatprep.subr.bf16.mxu1 %v7731_v57  ;;  %v1762_v7 = vpop.f32.mrf.mxu1  ;;  %v8141_v29 = vld [vmem:[#allocation3 + $0x8] ss:$16 sps:$4 sm:$0xff]   ;;  %v688_v57 = vrot.slane %v8582_v21, 4  ;;  %v7786_v6 = vld [vmem:[#allocation4 + $0xb20] ss:$16 sps:$4 sm:$0xff]  }
 0x1c1   : > { %v3445_v52 = vshll.u32 %v8141_v29, 16  ;;  %v3443_v7 = vshrl.u32 %v8141_v29, 16 }
 0x1c2   : > { %3805 = vmatpush1.bf16.msra.mxu0 %v7726_v55  ;;  %v8815_v55 = vcombine.low %v8759_v62, %v8759_v62  ;;  %v7789_v62 = vld [vmem:[#allocation4 + $0xb28] ss:$16 sps:$4 sm:$0xff]  }
 0x1c3   : > { %3856 = vmatpush1.bf16.msra.mxu1 %v7729_v2  ;;  %3806 = vmatprep.subr.bf16.mxu0 %v7734_v54  ;;  %v714_v2 = vld [vmem:[#allocation2 + $0x30] sm:$0x11]  ;;  %v8817_v54 = vld [vmem:[#allocation2 + $0x8] sm:$0xcc] }
 0x1c4   : > { %3857 = vmatprep.subr.bf16.mxu1 %v7737_v5  ;;  %v8819_v5 = vld [vmem:[#allocation2 + $0x18] sm:$0xff]  ;;  %v715_v21 = vsel %vm713_vm12, %v688_v57, %v714_v2 }
 0x1c5   : > { %716 = vst [vmem:[#allocation2 + $0x30] sm:$0x11] %v715_v21  ;;  %v6792_v41 = vcombine.high %v8817_v54, %v8819_v5  ;;  %v7815_v57 = vld [vmem:[#allocation4 + $0xca8] ss:$16 sps:$4 sm:$0xff]  }
 0x1c6   : > { %3807 = vmatpush1.bf16.msra.mxu0 %v7732_v37  ;;  %v3447_v37 = vrot.slane %v3445_v52, 1 }
 0x1c7   : > { %3858 = vmatpush1.bf16.msra.mxu1 %v7735_v8  ;;  %3808 = vmatprep.subr.bf16.mxu0 %v7740_v38  ;;  %v7794_v8 = vld [vmem:[#allocation4 + $0xb04] ss:$16 sps:$4 sm:$0xff]   ;;  %v3450_v38 = vshll.u32 %v8815_v55, 16 }
 0x1c8   : > { %3859 = vmatprep.subr.bf16.mxu1 %v7743_v9  ;;  %v7797_v9 = vld [vmem:[#allocation4 + $0xb0c] ss:$16 sps:$4 sm:$0xff]  }
 0x1ca   : > { %3809 = vmatpush1.bf16.msra.mxu0 %v7738_v10  ;;  %v8827_v10 = vld [vmem:[#allocation2 + $0x2c] ss:$16 sps:$4 sm:$0x1f]  }
 0x1cb   : > { %3860 = vmatpush1.bf16.msra.mxu1 %v7741_v43  ;;  %3810 = vmatprep.subr.bf16.mxu0 %v7746_v11  ;;  %v7795_v43 = vld [vmem:[#allocation4 + $0xb08] ss:$16 sps:$4 sm:$0xff]   ;;  %v3448_v11 = vor.u32 %v3447_v37, %v3443_v7  ;;  %v7820_v7 = vld [vmem:[#allocation4 + $0xc84] ss:$16 sps:$4 sm:$0xff]   ;;  %v7823_v37 = vld [vmem:[#allocation4 + $0xc8c] ss:$16 sps:$4 sm:$0xff]  }
 0x1cc   : > { %3861 = vmatprep.subr.bf16.mxu1 %v7749_v4  ;;  %v3452_v4 = vrot.slane %v3450_v38, 1  ;;  %v7818_v38 = vld [vmem:[#allocation4 + $0xc80] ss:$16 sps:$4 sm:$0xff]  }
 0x1ce   : > { %3811 = vmatpush1.bf16.msra.mxu0 %v7744_v12  ;;  %v7802_v12 = vld [vmem:[#allocation4 + $0xce4] ss:$16 sps:$4 sm:$0xff]  }
 0x1cf   : > { %3862 = vmatpush1.bf16.msra.mxu1 %v7747_v13  ;;  %3812 = vmatprep.subr.bf16.mxu0 %v7752_v15  ;;  %v7805_v13 = vld [vmem:[#allocation4 + $0xcec] ss:$16 sps:$4 sm:$0xff]   ;;  %v3469_v15 = vshrl.u32 %v8764_v32, 16  ;;  %v3466_v32 = vshrl.u32 %v8815_v55, 16 }
 0x1d0   : > { %3863 = vmatprep.subr.bf16.mxu1 %v7755_v18  ;;  %v4014_v18 = vshrl.u32 %v6792_v41, 16 }
 0x1d2   : > { %3813 = vmatpush2.bf16.msra.mxu0 %v7750_v59  ;;  %v4017_v59 = vshll.u32 %v6792_v41, 16 }
 0x1d3   : > { %3864 = vmatpush2.bf16.msra.mxu1 %v7753_v22  ;;  %3814 = vmatprep.subr.bf16.mxu0 %v7758_v24  ;;  %v4022_v22 = vshrl.u32 %v8827_v10, 16  ;;  %v4025_v24 = vshll.u32 %v8827_v10, 16 }
 0x1d4   : > { %3865 = vmatprep.subr.bf16.mxu1 %v7761_v26  ;;  %v7800_v26 = vld [vmem:[#allocation4 + $0xce0] ss:$16 sps:$4 sm:$0xff]  }
 0x1d6   : > { %3815 = vmatpush2.bf16.msra.mxu0 %v7756_v30  ;;  %v7803_v30 = vld [vmem:[#allocation4 + $0xce8] ss:$16 sps:$4 sm:$0xff]  }
 0x1d7   : > { %3866 = vmatpush2.bf16.msra.mxu1 %v7759_v31  ;;  %3816 = vmatprep.subr.bf16.mxu0 %v7764_v39  ;;  %v3453_v31 = vsel %vm868_vm14, %v3448_v11, %v3452_v4  ;;  %v7808_v39 = vld [vmem:[#allocation4 + $0xcc4] ss:$16 sps:$4 sm:$0xff]   ;;  %vm4553_vm14 = vcmask 1044480  }
 0x1d8   : > { %3867 = vmatprep.subr.bf16.mxu1 %v7767_v56  ;;  %v7811_v56 = vld [vmem:[#allocation4 + $0xccc] ss:$16 sps:$4 sm:$0xff]   ;;  %v7826_v11 = vld [vmem:[#allocation4 + $0xc64] ss:$16 sps:$4 sm:$0xff]  }
 0x1da   : > { %3817 = vmatpush2.bf16.msra.mxu0 %v7762_v53  ;;  %v3471_v53 = vor.u32 %v3469_v15, %v8784_v40 }
 0x1db   : > { %3868 = vmatpush2.bf16.msra.mxu1 %v7765_v35  ;;  %3818 = vmatprep.subr.bf16.mxu0 %v7770_v19  ;;  %v7806_v35 = vld [vmem:[#allocation4 + $0xcc0] ss:$16 sps:$4 sm:$0xff]   ;;  %v7809_v19 = vld [vmem:[#allocation4 + $0xcc8] ss:$16 sps:$4 sm:$0xff]  }
 0x1dc   : > { %3869 = vmatprep.subr.bf16.mxu1 %v7773_v36  ;;  %v4016_v36 = vrot.slane %v4014_v18, 2  ;;  %v7827_v18 = vld [vmem:[#allocation4 + $0xc68] ss:$16 sps:$4 sm:$0xff]  }
 0x1de   : > { %3819 = vmatpush2.bf16.msra.mxu0 %v7768_v16  ;;  %v4019_v16 = vrot.slane %v4017_v59, 3  ;;  %v7832_v59 = vld [vmem:[#allocation4 + $0xc44] ss:$16 sps:$4 sm:$0xff]  }
 0x1df   : > { %3870 = vmatpush2.bf16.msra.mxu1 %v7771_v17  ;;  %3820 = vmatprep.subr.bf16.mxu0 %v7776_v44  ;;  %v4024_v17 = vrot.slane %v4022_v22, 2  ;;  %v4027_v44 = vrot.slane %v4025_v24, 3  ;;  %v7835_v22 = vld [vmem:[#allocation4 + $0xc4c] ss:$16 sps:$4 sm:$0xff]  }
 0x1e0   : > { %3871 = vmatprep.subr.bf16.mxu1 %v7779_v63  ;;  %v4020_v55 = vor.u32 %v4019_v16, %v4016_v36  ;;  %v7850_v36 = vld [vmem:[#allocation4 + $0xde4] ss:$16 sps:$4 sm:$0xff]   ;;  %v7853_v16 = vld [vmem:[#allocation4 + $0xdec] ss:$16 sps:$4 sm:$0xff]  }
 0x1e1   : > { %v8849_v2 = vor.u32 %v4027_v44, %v4024_v17  ;;  %v7848_v17 = vld [vmem:[#allocation4 + $0xde0] ss:$16 sps:$4 sm:$0xff]   ;;  %v7851_v44 = vld [vmem:[#allocation4 + $0xde8] ss:$16 sps:$4 sm:$0xff]  }
 0x1e2   : > { %3821 = vmatpush2.bf16.msra.mxu0 %v7774_v48 }
 0x1e3   : > { %3872 = vmatpush2.bf16.msra.mxu1 %v7777_v20  ;;  %3822 = vmatprep.subr.bf16.mxu0 %v7782_v50 }
 0x1e4   : > { %3873 = vmatprep.subr.bf16.mxu1 %v7785_v3 }
 0x1e6   : > { %3823 = vmatpush2.bf16.msra.mxu0 %v7780_v1  ;;  %v7814_v1 = vld [vmem:[#allocation4 + $0xca4] ss:$16 sps:$4 sm:$0xff]  }
 0x1e7   : > { %3874 = vmatpush2.bf16.msra.mxu1 %v7783_v27  ;;  %3824 = vmatprep.subr.bf16.mxu0 %v7788_v33  ;;  %v7817_v27 = vld [vmem:[#allocation4 + $0xcac] ss:$16 sps:$4 sm:$0xff]  }
 0x1e8   : > { %3875 = vmatprep.subr.bf16.mxu1 %v7791_v0  ;;  %v3468_v0 = vor.u32 %v3466_v32, %v3452_v4  ;;  %v7829_v4 = vld [vmem:[#allocation4 + $0xc6c] ss:$16 sps:$4 sm:$0xff]  }
 0x1e9   : > { %v7847_v32 = vld [vmem:[#allocation4 + $0xc0c] ss:$16 sps:$4 sm:$0xff]  }
 0x1ea   : > { %3825 = vmatpush2.bf16.msra.mxu0 %v7786_v6 }
 0x1eb   : > { %3876 = vmatpush2.bf16.msra.mxu1 %v7789_v62  ;;  %3826 = vmatprep.subr.bf16.mxu0 %v7794_v8 }
 0x1ec   : > { %3877 = vmatprep.subr.bf16.mxu1 %v7797_v9 }
 0x1ee   : > { %3827 = vmatpush2.bf16.msra.mxu0 %v7792_v28 }
 0x1ef   : > { %3878 = vmatpush2.bf16.msra.mxu1 %v7795_v43  ;;  %4354 = vmatprep.subr.bf16.mxu0 %v7802_v12 }
 0x1f0   : > { %4405 = vmatprep.subr.bf16.mxu1 %v7805_v13 }
 0x1f1   : > { %v2223_v63 = vpop.f32.mrf.mxu0  ;;  %3829 = vmatmul.mubr.bf16.vlgmr.msra.gmra.mxu0 %v3453_v31 }
 0x1f2   : > { %v2274_v48 = vpop.f32.mrf.mxu1  ;;  %3880 = vmatmul.mubr.bf16.vlgmr.msra.gmra.mxu1 %v3453_v31  ;;  %v8838_v20 = vadd.f32 %v2223_v63, %v8773_v23  ;;  %4355 = vmatpush1.bf16.msra.mxu0 %v7800_v26  ;;  %v7812_v23 = vld [vmem:[#allocation4 + $0xca0] ss:$16 sps:$4 sm:$0xff]   ;;  %v7841_v31 = vld [vmem:[#allocation4 + $0xc2c] ss:$16 sps:$4 sm:$0xff]   ;;  %v7856_v63 = vld [vmem:[#allocation4 + $0xdc4] ss:$16 sps:$4 sm:$0xff]  }
 0x1f3   : > { %v8841_v50 = vadd.f32 %v2274_v48, %v8776_v25  ;;  %4406 = vmatpush1.bf16.msra.mxu1 %v7803_v30  ;;  %v2225_v40 = vpop.f32.mrf.mxu0  ;;  %4356 = vmatprep.subr.bf16.mxu0 %v7808_v39  ;;  %v7833_v30 = vld [vmem:[#allocation4 + $0xc48] ss:$16 sps:$4 sm:$0xff]   ;;  %v7836_v39 = vld [vmem:[#allocation4 + $0xc20] ss:$16 sps:$4 sm:$0xff]   ;;  %v7859_v48 = vld [vmem:[#allocation4 + $0xdcc] ss:$16 sps:$4 sm:$0xff]  }
 0x1f4   : > { %v2276_v3 = vpop.f32.mrf.mxu1  ;;  %4407 = vmatprep.subr.bf16.mxu1 %v7811_v56  ;;  %v8844_v29 = vadd.f32 %v2225_v40, %v8779_v34  ;;  %3838 = vmatprep.mubr.bf16.mxu0 %v3471_v53  ;;  %v7839_v56 = vld [vmem:[#allocation4 + $0xc28] ss:$16 sps:$4 sm:$0xff]   ;;  %v7854_v40 = vld [vmem:[#allocation4 + $0xdc0] ss:$16 sps:$4 sm:$0xff]  }
 0x1f5   : > { %v8847_v52 = vadd.f32 %v2276_v3, %v8782_v49  ;;  %3889 = vmatprep.mubr.bf16.mxu1 %v3471_v53  ;;  %v2227_v25 = vpop.f32.mrf.mxu0  ;;  %v7844_v53 = vld [vmem:[#allocation4 + $0xc04] ss:$16 sps:$4 sm:$0xff]   ;;  %v7857_v3 = vld [vmem:[#allocation4 + $0xdc8] ss:$16 sps:$4 sm:$0xff]  }
 0x1f6   : > { %v2278_v33 = vpop.f32.mrf.mxu1  ;;  %v8852_v21 = vadd.f32 %v2227_v25, %v8787_v60  ;;  %4357 = vmatpush1.bf16.msra.mxu0 %v7806_v35  ;;  %v7821_v60 = vld [vmem:[#allocation4 + $0xc88] ss:$16 sps:$4 sm:$0xff]   ;;  %v7842_v35 = vld [vmem:[#allocation4 + $0xc00] ss:$16 sps:$4 sm:$0xff]   ;;  %v7868_v25 = vld [vmem:[#allocation4 + $0xd84] ss:$16 sps:$4 sm:$0xff]  }
 0x1f7   : > { %v8855_v34 = vadd.f32 %v2278_v33, %v8790_v42  ;;  %4408 = vmatpush1.bf16.msra.mxu1 %v7809_v19  ;;  %v2229_v49 = vpop.f32.mrf.mxu0  ;;  %4358 = vmatprep.subr.bf16.mxu0 %v7814_v1  ;;  %v4029_v42 = vsel %vm3995_vm13, %v4020_v55, %v8849_v2  ;;  %v7845_v19 = vld [vmem:[#allocation4 + $0xc08] ss:$16 sps:$4 sm:$0xff]   ;;  %v7862_v1 = vld [vmem:[#allocation4 + $0xda4] ss:$16 sps:$4 sm:$0xff]   ;;  %v7871_v33 = vld [vmem:[#allocation4 + $0xd8c] ss:$16 sps:$4 sm:$0xff]  }
 0x1f8   : > { %v2280_v6 = vpop.f32.mrf.mxu1  ;;  %4409 = vmatprep.subr.bf16.mxu1 %v7817_v27  ;;  %v8858_v62 = vadd.f32 %v2229_v49, %v8793_v45  ;;  %v7865_v27 = vld [vmem:[#allocation4 + $0xdac] ss:$16 sps:$4 sm:$0xff]   ;;  %v7869_v55 = vld [vmem:[#allocation4 + $0xd88] ss:$16 sps:$4 sm:$0xff]   ;;  %v7874_v49 = vld [vmem:[#allocation4 + $0xd64] ss:$16 sps:$4 sm:$0xff]  }
 0x1f9   : > { %v8861_v8 = vadd.f32 %v2280_v6, %v8796_v47  ;;  %v2233_v9 = vpop.f32.mrf.mxu0  ;;  %3839 = vmatmul.mubr.bf16.gmra.mxu0 %v3468_v0  ;;  %v7877_v6 = vld [vmem:[#allocation4 + $0xd6c] ss:$16 sps:$4 sm:$0xff]  }
 0x1fa   : > { %v2284_v28 = vpop.f32.mrf.mxu1  ;;  %3890 = vmatmul.mubr.bf16.gmra.mxu1 %v3468_v0  ;;  %v8866_v41 = vadd.f32 %v2233_v9, %v8801_v14  ;;  %4359 = vmatpush1.bf16.msra.mxu0 %v7812_v23  ;;  %v7860_v23 = vld [vmem:[#allocation4 + $0xda0] ss:$16 sps:$4 sm:$0xff]   ;;  %v7880_v9 = vld [vmem:[#allocation4 + $0xd44] ss:$16 sps:$4 sm:$0xff]  }
 0x1fb   : > { %v8869_v43 = vadd.f32 %v2284_v28, %v8804_v51  ;;  %4410 = vmatpush1.bf16.msra.mxu1 %v7815_v57  ;;  %v2235_v45 = vpop.f32.mrf.mxu0  ;;  %4360 = vmatprep.subr.bf16.mxu0 %v7820_v7  ;;  %v7824_v51 = vld [vmem:[#allocation4 + $0xc60] ss:$16 sps:$4 sm:$0xff]   ;;  %v7863_v57 = vld [vmem:[#allocation4 + $0xda8] ss:$16 sps:$4 sm:$0xff]   ;;  %v7883_v28 = vld [vmem:[#allocation4 + $0xd4c] ss:$16 sps:$4 sm:$0xff]  }
 0x1fc   : > { %v2286_v47 = vpop.f32.mrf.mxu1  ;;  %4411 = vmatprep.subr.bf16.mxu1 %v7823_v37  ;;  %v8872_v12 = vadd.f32 %v2235_v45, %v8807_v58  ;;  %4386 = vmatprep.mubr.bf16.mxu0 %v4029_v42  ;;  %v7830_v58 = vld [vmem:[#allocation4 + $0xc40] ss:$16 sps:$4 sm:$0xff]   ;;  %v7875_v37 = vld [vmem:[#allocation4 + $0xd68] ss:$16 sps:$4 sm:$0xff]  }
 0x1fd   : > { %v8875_v13 = vadd.f32 %v2286_v47, %v8810_v61  ;;  %4437 = vmatprep.mubr.bf16.mxu1 %v4029_v42  ;;  %v2237_v14 = vpop.f32.mrf.mxu0  ;;  %v7838_v61 = vld [vmem:[#allocation4 + $0xc24] ss:$16 sps:$4 sm:$0xff]   ;;  %v7866_v0 = vld [vmem:[#allocation4 + $0xd80] ss:$16 sps:$4 sm:$0xff]   ;;  %v7881_v45 = vld [vmem:[#allocation4 + $0xd48] ss:$16 sps:$4 sm:$0xff]  }
 0x1fe   : > { %v2288_v15 = vpop.f32.mrf.mxu1  ;;  %4361 = vmatpush1.bf16.msra.mxu0 %v7818_v38  ;;  %v7872_v7 = vld [vmem:[#allocation4 + $0xd60] ss:$16 sps:$4 sm:$0xff]   ;;  %v6791_v38 = vcombine.low %v8817_v54, %v8819_v5  ;;  %v7889_v54 = vld [vmem:[#allocation4 + $0xd2c] ss:$16 sps:$4 sm:$0xff]  }
 0x1ff   : > { %4412 = vmatpush1.bf16.msra.mxu1 %v7821_v60  ;;  %4362 = vmatprep.subr.bf16.mxu0 %v7826_v11  ;;  %v2238_v24 = vpop.f32.mrf.mxu0  ;;  %v8879_v60 = vld [vmem:[#allocation2 + $0x28] ss:$16 sps:$4 sm:$0x1f]   ;;  %v7878_v42 = vld [vmem:[#allocation4 + $0xd40] ss:$16 sps:$4 sm:$0xff]  }
 0x200   : > { %4413 = vmatprep.subr.bf16.mxu1 %v7829_v4  ;;  %v2289_v26 = vpop.f32.mrf.mxu1  ;;  %v3997_v47 = vshrl.u32 %v6791_v38, 16  ;;  %v4000_v11 = vshll.u32 %v6791_v38, 16  ;;  %v4005_v4 = vshrl.u32 %v8879_v60, 16  ;;  %v4008_v14 = vshll.u32 %v8879_v60, 16  ;;  %v7886_v15 = vld [vmem:[#allocation4 + $0xd24] ss:$16 sps:$4 sm:$0xff]  }
 0x202   : > { %4363 = vmatpush1.bf16.msra.mxu0 %v7824_v51  ;;  %v7884_v51 = vld [vmem:[#allocation4 + $0xd20] ss:$16 sps:$4 sm:$0xff]   ;;  %v4007_v24 = vrot.slane %v4005_v4, 2  ;;  %v4010_v26 = vrot.slane %v4008_v14, 3 }
 0x203   : > { %4414 = vmatpush1.bf16.msra.mxu1 %v7827_v18  ;;  %4364 = vmatprep.subr.bf16.mxu0 %v7832_v59  ;;  %v7887_v18 = vld [vmem:[#allocation4 + $0xd28] ss:$16 sps:$4 sm:$0xff]   ;;  %v3999_v59 = vrot.slane %v3997_v47, 2 }
 0x204   : > { %4415 = vmatprep.subr.bf16.mxu1 %v7835_v22  ;;  %v4002_v22 = vrot.slane %v4000_v11, 3 }
 0x206   : > { %4365 = vmatpush1.bf16.msra.mxu0 %v7830_v58  ;;  %v7892_v58 = vld [vmem:[#allocation4 + $0xd04] ss:$16 sps:$4 sm:$0xff]  }
 0x207   : > { %4416 = vmatpush1.bf16.msra.mxu1 %v7833_v30  ;;  %4366 = vmatprep.subr.bf16.mxu0 %v7838_v61  ;;  %v7895_v30 = vld [vmem:[#allocation4 + $0xd0c] ss:$16 sps:$4 sm:$0xff]   ;;  %v7890_v61 = vld [vmem:[#allocation4 + $0xd00] ss:$16 sps:$4 sm:$0xff]  }
 0x208   : > { %4417 = vmatprep.subr.bf16.mxu1 %v7841_v31  ;;  %v7893_v31 = vld [vmem:[#allocation4 + $0xd08] ss:$16 sps:$4 sm:$0xff]  }
 0x20a   : > { %4367 = vmatpush1.bf16.msra.mxu0 %v7836_v39  ;;  %v4003_v39 = vor.u32 %v4002_v22, %v3999_v59 }
 0x20b   : > { %4418 = vmatpush1.bf16.msra.mxu1 %v7839_v56  ;;  %4368 = vmatprep.subr.bf16.mxu0 %v7844_v53  ;;  %v4011_v56 = vor.u32 %v4010_v26, %v4007_v24  ;;  %v7903_v53 = vld [vmem:[#allocation4 + $0xee4] ss:$16 sps:$4 sm:$0xff]   ;;  %v7925_v24 = vld [vmem:[#allocation4 + $0xe60] ss:$16 sps:$4 sm:$0xff]   ;;  %v7928_v26 = vld [vmem:[#allocation4 + $0xe68] ss:$16 sps:$4 sm:$0xff]  }
 0x20c   : > { %4419 = vmatprep.subr.bf16.mxu1 %v7847_v32  ;;  %v7906_v32 = vld [vmem:[#allocation4 + $0xeec] ss:$16 sps:$4 sm:$0xff]  }
 0x20e   : > { %4369 = vmatpush1.bf16.msra.mxu0 %v7842_v35  ;;  %v4012_v35 = vsel %vm3995_vm13, %v4003_v39, %v4011_v56  ;;  %v7934_v39 = vld [vmem:[#allocation4 + $0xe48] ss:$16 sps:$4 sm:$0xff]  }
 0x20f   : > { %4420 = vmatpush1.bf16.msra.mxu1 %v7845_v19  ;;  %4370 = vmatprep.subr.bf16.mxu0 %v7850_v36  ;;  %v7901_v19 = vld [vmem:[#allocation4 + $0xee0] ss:$16 sps:$4 sm:$0xff]   ;;  %v7904_v36 = vld [vmem:[#allocation4 + $0xee8] ss:$16 sps:$4 sm:$0xff]  }
 0x210   : > { %4421 = vmatprep.subr.bf16.mxu1 %v7853_v16  ;;  %v7909_v16 = vld [vmem:[#allocation4 + $0xec4] ss:$16 sps:$4 sm:$0xff]  }
 0x212   : > { %4371 = vmatpush2.bf16.msra.mxu0 %v7848_v17  ;;  %v7912_v17 = vld [vmem:[#allocation4 + $0xecc] ss:$16 sps:$4 sm:$0xff]  }
 0x213   : > { %4422 = vmatpush2.bf16.msra.mxu1 %v7851_v44  ;;  %4372 = vmatprep.subr.bf16.mxu0 %v7856_v63 }
 0x214   : > { %4423 = vmatprep.subr.bf16.mxu1 %v7859_v48  ;;  %v7999_v48 = vld [vmem:[#allocation2 + $0x4] ss:$16 sps:$4 sm:$0xf8]  }
 0x216   : > { %4373 = vmatpush2.bf16.msra.mxu0 %v7854_v40  ;;  %v8002_v40 = vld [vmem:[#allocation2 + $0x24] ss:$16 sps:$4 sm:$0x1f]  }
 0x217   : > { %4424 = vmatpush2.bf16.msra.mxu1 %v7857_v3  ;;  %4374 = vmatprep.subr.bf16.mxu0 %v7862_v1 }
 0x218   : > { %4425 = vmatprep.subr.bf16.mxu1 %v7865_v27  ;;  %v7907_v27 = vld [vmem:[#allocation4 + $0xec0] ss:$16 sps:$4 sm:$0xff]  }
 0x21a   : > { %4375 = vmatpush2.bf16.msra.mxu0 %v7860_v23  ;;  %v7910_v23 = vld [vmem:[#allocation4 + $0xec8] ss:$16 sps:$4 sm:$0xff]  }
 0x21b   : > { %4426 = vmatpush2.bf16.msra.mxu1 %v7863_v57  ;;  %4376 = vmatprep.subr.bf16.mxu0 %v7868_v25 }
 0x21c   : > { %4427 = vmatprep.subr.bf16.mxu1 %v7871_v33  ;;  %v7915_v33 = vld [vmem:[#allocation4 + $0xea4] ss:$16 sps:$4 sm:$0xff]  }
 0x21e   : > { %4377 = vmatpush2.bf16.msra.mxu0 %v7866_v0  ;;  %v7918_v0 = vld [vmem:[#allocation4 + $0xeac] ss:$16 sps:$4 sm:$0xff]  }
 0x21f   : > { %4428 = vmatpush2.bf16.msra.mxu1 %v7869_v55  ;;  %4378 = vmatprep.subr.bf16.mxu0 %v7874_v49 }
 0x220   : > { %4429 = vmatprep.subr.bf16.mxu1 %v7877_v6  ;;  %v4557_v6 = vrot.slane %v7999_v48, 3  ;;  %v7952_v48 = vld [vmem:[#allocation4 + $0xfe8] ss:$16 sps:$4 sm:$0xff]  }
 0x222   : > { %4379 = vmatpush2.bf16.msra.mxu0 %v7872_v7  ;;  %v8898_v7 = vrot.slane %v8002_v40, 3  ;;  %v7957_v40 = vld [vmem:[#allocation4 + $0xfc4] ss:$16 sps:$4 sm:$0xff]  }
 0x223   : > { %4430 = vmatpush2.bf16.msra.mxu1 %v7875_v37  ;;  %4380 = vmatprep.subr.bf16.mxu0 %v7880_v9 }
 0x224   : > { %4431 = vmatprep.subr.bf16.mxu1 %v7883_v28  ;;  %v4559_v11 = vsel %vm4553_vm14, %v4557_v6, %v8898_v7  ;;  %v7972_v6 = vld [vmem:[#allocation4 + $0xf8c] ss:$16 sps:$4 sm:$0xff]  }
 0x226   : > { %4381 = vmatpush2.bf16.msra.mxu0 %v7878_v42  ;;  %v7924_v42 = vld [vmem:[#allocation4 + $0xe8c] ss:$16 sps:$4 sm:$0xff]  }
 0x227   : > { %4432 = vmatpush2.bf16.msra.mxu1 %v7881_v45  ;;  %4382 = vmatprep.subr.bf16.mxu0 %v7886_v15  ;;  %v7922_v15 = vld [vmem:[#allocation4 + $0xe88] ss:$16 sps:$4 sm:$0xff]  }
 0x228   : > { %4433 = vmatprep.subr.bf16.mxu1 %v7889_v54 }
 0x22a   : > { %4383 = vmatpush2.bf16.msra.mxu0 %v7884_v51  ;;  %v7927_v51 = vld [vmem:[#allocation4 + $0xe64] ss:$16 sps:$4 sm:$0xff]  }
 0x22b   : > { %4434 = vmatpush2.bf16.msra.mxu1 %v7887_v18  ;;  %4384 = vmatprep.subr.bf16.mxu0 %v7892_v58  ;;  %v7930_v18 = vld [vmem:[#allocation4 + $0xe6c] ss:$16 sps:$4 sm:$0xff]   ;;  %v7933_v58 = vld [vmem:[#allocation4 + $0xe44] ss:$16 sps:$4 sm:$0xff]  }
 0x22c   : > { %4435 = vmatprep.subr.bf16.mxu1 %v7895_v30  ;;  %v7936_v30 = vld [vmem:[#allocation4 + $0xe4c] ss:$16 sps:$4 sm:$0xff]  }
 0x22e   : > { %4385 = vmatpush2.bf16.msra.mxu0 %v7890_v61 }
 0x22f   : > { %4436 = vmatpush2.bf16.msra.mxu1 %v7893_v31  ;;  %4884 = vmatprep.subr.bf16.mxu0 %v7903_v53  ;;  %v7937_v53 = vld [vmem:[#allocation4 + $0xe20] ss:$16 sps:$4 sm:$0xff]  }
 0x230   : > { %4935 = vmatprep.subr.bf16.mxu1 %v7906_v32  ;;  %v7940_v32 = vld [vmem:[#allocation4 + $0xe28] ss:$16 sps:$4 sm:$0xff]  }
 0x231   : > { %v2742_v44 = vpop.f32.mrf.mxu0  ;;  %4387 = vmatmul.mubr.bf16.vlgmr.msra.gmra.mxu0 %v4012_v35 }
 0x232   : > { %v2793_v63 = vpop.f32.mrf.mxu1  ;;  %4438 = vmatmul.mubr.bf16.vlgmr.msra.gmra.mxu1 %v4012_v35  ;;  %v8885_v3 = vadd.f32 %v2742_v44, %v8838_v20  ;;  %4885 = vmatpush1.bf16.msra.mxu0 %v7901_v19  ;;  %v7945_v35 = vld [vmem:[#allocation4 + $0xe04] ss:$16 sps:$4 sm:$0xff]   ;;  %v7948_v19 = vld [vmem:[#allocation4 + $0xe0c] ss:$16 sps:$4 sm:$0xff]  }
 0x233   : > { %v8888_v1 = vadd.f32 %v2793_v63, %v8841_v50  ;;  %4936 = vmatpush1.bf16.msra.mxu1 %v7904_v36  ;;  %v2744_v57 = vpop.f32.mrf.mxu0  ;;  %4886 = vmatprep.subr.bf16.mxu0 %v7909_v16  ;;  %v7943_v36 = vld [vmem:[#allocation4 + $0xe00] ss:$16 sps:$4 sm:$0xff]   ;;  %v7946_v16 = vld [vmem:[#allocation4 + $0xe08] ss:$16 sps:$4 sm:$0xff]   ;;  %v7954_v44 = vld [vmem:[#allocation4 + $0xfec] ss:$16 sps:$4 sm:$0xff]  }
 0x234   : > { %v2795_v25 = vpop.f32.mrf.mxu1  ;;  %4937 = vmatprep.subr.bf16.mxu1 %v7912_v17  ;;  %v8891_v55 = vadd.f32 %v2744_v57, %v8844_v29  ;;  %4396 = vmatprep.mubr.bf16.mxu0 %v8849_v2  ;;  %v7913_v29 = vld [vmem:[#allocation4 + $0xea0] ss:$16 sps:$4 sm:$0xff]   ;;  %v7951_v17 = vld [vmem:[#allocation4 + $0xfe4] ss:$16 sps:$4 sm:$0xff]   ;;  %v7958_v57 = vld [vmem:[#allocation4 + $0xfc8] ss:$16 sps:$4 sm:$0xff]  }
 0x235   : > { %v8894_v49 = vadd.f32 %v2795_v25, %v8847_v52  ;;  %4447 = vmatprep.mubr.bf16.mxu1 %v8849_v2  ;;  %v2746_v20 = vpop.f32.mrf.mxu0  ;;  %v7916_v52 = vld [vmem:[#allocation4 + $0xea8] ss:$16 sps:$4 sm:$0xff]   ;;  %v7921_v2 = vld [vmem:[#allocation4 + $0xe84] ss:$16 sps:$4 sm:$0xff]   ;;  %v7949_v63 = vld [vmem:[#allocation4 + $0xfe0] ss:$16 sps:$4 sm:$0xff]  }
 0x236   : > { %v2797_v50 = vpop.f32.mrf.mxu1  ;;  %v8901_v37 = vadd.f32 %v2746_v20, %v8852_v21  ;;  %4887 = vmatpush1.bf16.msra.mxu0 %v7907_v27  ;;  %v7960_v27 = vld [vmem:[#allocation4 + $0xfcc] ss:$16 sps:$4 sm:$0xff]   ;;  %v7963_v25 = vld [vmem:[#allocation4 + $0xfa4] ss:$16 sps:$4 sm:$0xff]   ;;  %v7964_v20 = vld [vmem:[#allocation4 + $0xfa8] ss:$16 sps:$4 sm:$0xff]  }
 0x237   : > { %v8904_v38 = vadd.f32 %v2797_v50, %v8855_v34  ;;  %4938 = vmatpush1.bf16.msra.mxu1 %v7910_v23  ;;  %v2748_v9 = vpop.f32.mrf.mxu0  ;;  %4888 = vmatprep.subr.bf16.mxu0 %v7915_v33  ;;  %v7955_v23 = vld [vmem:[#allocation4 + $0xfc0] ss:$16 sps:$4 sm:$0xff]   ;;  %v7966_v33 = vld [vmem:[#allocation4 + $0xfac] ss:$16 sps:$4 sm:$0xff]   ;;  %v7969_v50 = vld [vmem:[#allocation4 + $0xf84] ss:$16 sps:$4 sm:$0xff]  }
 0x238   : > { %v2799_v28 = vpop.f32.mrf.mxu1  ;;  %4939 = vmatprep.subr.bf16.mxu1 %v7918_v0  ;;  %v8907_v45 = vadd.f32 %v2748_v9, %v8858_v62  ;;  %v7919_v62 = vld [vmem:[#allocation4 + $0xe80] ss:$16 sps:$4 sm:$0xff]   ;;  %v7975_v9 = vld [vmem:[#allocation4 + $0xf64] ss:$16 sps:$4 sm:$0xff]  }
 0x239   : > { %v8910_v21 = vadd.f32 %v2799_v28, %v8861_v8  ;;  %v2752_v47 = vpop.f32.mrf.mxu0  ;;  %4397 = vmatmul.mubr.bf16.gmra.mxu0 %v4011_v56  ;;  %v7961_v0 = vld [vmem:[#allocation4 + $0xfa0] ss:$16 sps:$4 sm:$0xff]   ;;  %v7978_v28 = vld [vmem:[#allocation4 + $0xf6c] ss:$16 sps:$4 sm:$0xff]  }
 0x23a   : > { %v2803_v34 = vpop.f32.mrf.mxu1  ;;  %4448 = vmatmul.mubr.bf16.gmra.mxu1 %v4011_v56  ;;  %v8915_v4 = vadd.f32 %v2752_v47, %v8866_v41  ;;  %4889 = vmatpush1.bf16.msra.mxu0 %v7913_v29  ;;  %v7942_v56 = vld [vmem:[#allocation4 + $0xe2c] ss:$16 sps:$4 sm:$0xff]   ;;  %v7967_v29 = vld [vmem:[#allocation4 + $0xf80] ss:$16 sps:$4 sm:$0xff]   ;;  %v7981_v47 = vld [vmem:[#allocation4 + $0xf44] ss:$16 sps:$4 sm:$0xff]  }
 0x23b   : > { %v8918_v14 = vadd.f32 %v2803_v34, %v8869_v43  ;;  %4940 = vmatpush1.bf16.msra.mxu1 %v7916_v52  ;;  %v2754_v54 = vpop.f32.mrf.mxu0  ;;  %4890 = vmatprep.subr.bf16.mxu0 %v7921_v2  ;;  %v7970_v52 = vld [vmem:[#allocation4 + $0xf88] ss:$16 sps:$4 sm:$0xff]   ;;  %v7973_v2 = vld [vmem:[#allocation4 + $0xf60] ss:$16 sps:$4 sm:$0xff]   ;;  %v7984_v34 = vld [vmem:[#allocation4 + $0xf4c] ss:$16 sps:$4 sm:$0xff]  }
 0x23c   : > { %v2805_v8 = vpop.f32.mrf.mxu1  ;;  %4941 = vmatprep.subr.bf16.mxu1 %v7924_v42  ;;  %v8921_v59 = vadd.f32 %v2754_v54, %v8872_v12  ;;  %4916 = vmatprep.mubr.bf16.mxu0 %v4559_v11  ;;  %v7931_v12 = vld [vmem:[#allocation4 + $0xe40] ss:$16 sps:$4 sm:$0xff]   ;;  %v7976_v42 = vld [vmem:[#allocation4 + $0xf68] ss:$16 sps:$4 sm:$0xff]   ;;  %v7990_v54 = vld [vmem:[#allocation4 + $0xf2c] ss:$16 sps:$4 sm:$0xff]  }
 0x23d   : > { %v8924_v22 = vadd.f32 %v2805_v8, %v8875_v13  ;;  %4967 = vmatprep.mubr.bf16.mxu1 %v4559_v11  ;;  %v2756_v41 = vpop.f32.mrf.mxu0  ;;  %v7939_v13 = vld [vmem:[#allocation4 + $0xe24] ss:$16 sps:$4 sm:$0xff]   ;;  %v7979_v11 = vld [vmem:[#allocation4 + $0xf40] ss:$16 sps:$4 sm:$0xff]  }
 0x23e   : > { %v2807_v43 = vpop.f32.mrf.mxu1  ;;  %4891 = vmatpush1.bf16.msra.mxu0 %v7919_v62  ;;  %v7982_v62 = vld [vmem:[#allocation4 + $0xf48] ss:$16 sps:$4 sm:$0xff]   ;;  %v7985_v8 = vld [vmem:[#allocation4 + $0xf20] ss:$16 sps:$4 sm:$0xff]  }
 0x23f   : > { %4942 = vmatpush1.bf16.msra.mxu1 %v7922_v15  ;;  %4892 = vmatprep.subr.bf16.mxu0 %v7927_v51  ;;  %v2757_v61 = vpop.f32.mrf.mxu0  ;;  %v7987_v15 = vld [vmem:[#allocation4 + $0xf24] ss:$16 sps:$4 sm:$0xff]   ;;  %v7988_v51 = vld [vmem:[#allocation4 + $0xf28] ss:$16 sps:$4 sm:$0xff]  }
 0x240   : > { %4943 = vmatprep.subr.bf16.mxu1 %v7930_v18  ;;  %v2808_v31 = vpop.f32.mrf.mxu1  ;;  %v7997_v18 = vld [vmem:[#allocation2] ss:$16 sps:$4 sm:$0xf8]   ;;  %v7993_v43 = vld [vmem:[#allocation4 + $0xf04] ss:$16 sps:$4 sm:$0xff]  }
 0x241   : > { %v8000_v41 = vld [vmem:[#allocation2 + $0x20] ss:$16 sps:$4 sm:$0x1f]   ;;  %v8005_v31 = vld [vmem:[#allocation4 + $0x10e4] ss:$16 sps:$4 sm:$0xff]  }
 0x242   : > { %4893 = vmatpush1.bf16.msra.mxu0 %v7925_v24  ;;  %v7996_v24 = vld [vmem:[#allocation4 + $0xf0c] ss:$16 sps:$4 sm:$0xff]   ;;  %v4555_v61 = vrot.slane %v8000_v41, 3 }
 0x243   : > { %4944 = vmatpush1.bf16.msra.mxu1 %v7928_v26  ;;  %4894 = vmatprep.subr.bf16.mxu0 %v7933_v58  ;;  %v7991_v26 = vld [vmem:[#allocation4 + $0xf00] ss:$16 sps:$4 sm:$0xff]   ;;  %v7994_v58 = vld [vmem:[#allocation4 + $0xf08] ss:$16 sps:$4 sm:$0xff]   ;;  %v8038_v41 = vld [vmem:[#allocation4 + $0x104c] ss:$16 sps:$4 sm:$0xff]  }
 0x244   : > { %4945 = vmatprep.subr.bf16.mxu1 %v7936_v30  ;;  %v4554_v30 = vrot.slane %v7997_v18, 3  ;;  %v8035_v18 = vld [vmem:[#allocation4 + $0x1044] ss:$16 sps:$4 sm:$0xff]  }
 0x246   : > { %4895 = vmatpush1.bf16.msra.mxu0 %v7931_v12  ;;  %v8008_v12 = vld [vmem:[#allocation4 + $0x10ec] ss:$16 sps:$4 sm:$0xff]  }
 0x247   : > { %4946 = vmatpush1.bf16.msra.mxu1 %v7934_v39  ;;  %4896 = vmatprep.subr.bf16.mxu0 %v7939_v13  ;;  %v4556_v39 = vsel %vm4553_vm14, %v4554_v30, %v4555_v61  ;;  %v8003_v13 = vld [vmem:[#allocation4 + $0x10e0] ss:$16 sps:$4 sm:$0xff]  }
 0x248   : > { %4947 = vmatprep.subr.bf16.mxu1 %v7942_v56  ;;  %v8006_v56 = vld [vmem:[#allocation4 + $0x10e8] ss:$16 sps:$4 sm:$0xff]   ;;  %v8039_v30 = vld [vmem:[#allocation4 + $0x1020] ss:$16 sps:$4 sm:$0xff]  }
 0x24a   : > { %4897 = vmatpush1.bf16.msra.mxu0 %v7937_v53  ;;  %v8927_v53 = vld [vmem:[#allocation2 + $0x8] sm:$0x88] }
 0x24b   : > { %4948 = vmatpush1.bf16.msra.mxu1 %v7940_v32  ;;  %4898 = vmatprep.subr.bf16.mxu0 %v7945_v35  ;;  %v8011_v32 = vld [vmem:[#allocation4 + $0x10c4] ss:$16 sps:$4 sm:$0xff]   ;;  %v8014_v35 = vld [vmem:[#allocation4 + $0x10cc] ss:$16 sps:$4 sm:$0xff]  }
 0x24c   : > { %4949 = vmatprep.subr.bf16.mxu1 %v7948_v19 }
 0x24e   : > { %4899 = vmatpush1.bf16.msra.mxu0 %v7943_v36 }
 0x24f   : > { %4950 = vmatpush1.bf16.msra.mxu1 %v7946_v16  ;;  %4900 = vmatprep.subr.bf16.mxu0 %v7951_v17  ;;  %v6928_v16 = vcombine.high %v8927_v53, %v8819_v5 }
 0x250   : > { %4951 = vmatprep.subr.bf16.mxu1 %v7954_v44 }
 0x252   : > { %4901 = vmatpush2.bf16.msra.mxu0 %v7949_v63  ;;  %v8009_v63 = vld [vmem:[#allocation4 + $0x10c0] ss:$16 sps:$4 sm:$0xff]  }
 0x253   : > { %4952 = vmatpush2.bf16.msra.mxu1 %v7952_v48  ;;  %4902 = vmatprep.subr.bf16.mxu0 %v7957_v40  ;;  %v8012_v48 = vld [vmem:[#allocation4 + $0x10c8] ss:$16 sps:$4 sm:$0xff]  }
 0x254   : > { %4953 = vmatprep.subr.bf16.mxu1 %v7960_v27 }
 0x256   : > { %4903 = vmatpush2.bf16.msra.mxu0 %v7955_v23  ;;  %v8017_v23 = vld [vmem:[#allocation4 + $0x10a4] ss:$16 sps:$4 sm:$0xff]  }
 0x257   : > { %4954 = vmatpush2.bf16.msra.mxu1 %v7958_v57  ;;  %4904 = vmatprep.subr.bf16.mxu0 %v7963_v25  ;;  %v8020_v57 = vld [vmem:[#allocation4 + $0x10ac] ss:$16 sps:$4 sm:$0xff]  }
 0x258   : > { %4955 = vmatprep.subr.bf16.mxu1 %v7966_v33  ;;  %v5072_v33 = vrot.slane %v6928_v16, 3  ;;  %v8062_v16 = vld [vmem:[#allocation4 + $0x11cc] ss:$16 sps:$4 sm:$0xff]  }
 0x25a   : > { %4905 = vmatpush2.bf16.msra.mxu0 %v7961_v0  ;;  %v8946_v0 = vrot.slane %v8827_v10, 3 }
 0x25b   : > { %4956 = vmatpush2.bf16.msra.mxu1 %v7964_v20  ;;  %4906 = vmatprep.subr.bf16.mxu0 %v7969_v50 }
 0x25c   : > { %4957 = vmatprep.subr.bf16.mxu1 %v7972_v6 }
 0x25e   : > { %4907 = vmatpush2.bf16.msra.mxu0 %v7967_v29 }
 0x25f   : > { %4958 = vmatpush2.bf16.msra.mxu1 %v7970_v52  ;;  %4908 = vmatprep.subr.bf16.mxu0 %v7975_v9  ;;  %v8026_v52 = vld [vmem:[#allocation4 + $0x108c] ss:$16 sps:$4 sm:$0xff]  }
 0x260   : > { %4959 = vmatprep.subr.bf16.mxu1 %v7978_v28 }
 0x262   : > { %4909 = vmatpush2.bf16.msra.mxu0 %v7973_v2 }
 0x263   : > { %4960 = vmatpush2.bf16.msra.mxu1 %v7976_v42  ;;  %4910 = vmatprep.subr.bf16.mxu0 %v7981_v47  ;;  %v8024_v47 = vld [vmem:[#allocation4 + $0x1088] ss:$16 sps:$4 sm:$0xff]  }
 0x264   : > { %4961 = vmatprep.subr.bf16.mxu1 %v7984_v34 }
 0x266   : > { %4911 = vmatpush2.bf16.msra.mxu0 %v7979_v11  ;;  %v8029_v11 = vld [vmem:[#allocation4 + $0x1064] ss:$16 sps:$4 sm:$0xff]  }
 0x267   : > { %4962 = vmatpush2.bf16.msra.mxu1 %v7982_v62  ;;  %4912 = vmatprep.subr.bf16.mxu0 %v7987_v15  ;;  %v8032_v62 = vld [vmem:[#allocation4 + $0x106c] ss:$16 sps:$4 sm:$0xff]  }
 0x268   : > { %4963 = vmatprep.subr.bf16.mxu1 %v7990_v54 }
 0x26a   : > { %4913 = vmatpush2.bf16.msra.mxu0 %v7985_v8  ;;  %v8027_v8 = vld [vmem:[#allocation4 + $0x1060] ss:$16 sps:$4 sm:$0xff]  }
 0x26b   : > { %4964 = vmatpush2.bf16.msra.mxu1 %v7988_v51  ;;  %4914 = vmatprep.subr.bf16.mxu0 %v7993_v43  ;;  %v8030_v51 = vld [vmem:[#allocation4 + $0x1068] ss:$16 sps:$4 sm:$0xff]  }
 0x26c   : > { %4965 = vmatprep.subr.bf16.mxu1 %v7996_v24 }
 0x26e   : > { %4915 = vmatpush2.bf16.msra.mxu0 %v7991_v26  ;;  %v8036_v26 = vld [vmem:[#allocation4 + $0x1048] ss:$16 sps:$4 sm:$0xff]  }
 0x26f   : > { %4966 = vmatpush2.bf16.msra.mxu1 %v7994_v58  ;;  %5399 = vmatprep.subr.bf16.mxu0 %v8005_v31  ;;  %v8044_v58 = vld [vmem:[#allocation4 + $0x102c] ss:$16 sps:$4 sm:$0xff]   ;;  %v8047_v31 = vld [vmem:[#allocation4 + $0x1004] ss:$16 sps:$4 sm:$0xff]  }
 0x270   : > { %5450 = vmatprep.subr.bf16.mxu1 %v8008_v12  ;;  %v8050_v12 = vld [vmem:[#allocation4 + $0x100c] ss:$16 sps:$4 sm:$0xff]  }
 0x271   : > { %v3291_v19 = vpop.f32.mrf.mxu0  ;;  %4917 = vmatmul.mubr.bf16.vlgmr.msra.gmra.mxu0 %v4556_v39 }
 0x272   : > { %v3342_v36 = vpop.f32.mrf.mxu1  ;;  %4968 = vmatmul.mubr.bf16.vlgmr.msra.gmra.mxu1 %v4556_v39  ;;  %v8932_v17 = vadd.f32 %v3291_v19, %v8885_v3  ;;  %5400 = vmatpush1.bf16.msra.mxu0 %v8003_v13  ;;  %v8045_v39 = vld [vmem:[#allocation4 + $0x1000] ss:$16 sps:$4 sm:$0xff]   ;;  %v8048_v13 = vld [vmem:[#allocation4 + $0x1008] ss:$16 sps:$4 sm:$0xff]  }
 0x273   : > { %v8935_v44 = vadd.f32 %v3342_v36, %v8888_v1  ;;  %5451 = vmatpush1.bf16.msra.mxu1 %v8006_v56  ;;  %v3293_v40 = vpop.f32.mrf.mxu0  ;;  %5401 = vmatprep.subr.bf16.mxu0 %v8011_v32  ;;  %v8053_v56 = vld [vmem:[#allocation4 + $0x11e4] ss:$16 sps:$4 sm:$0xff]   ;;  %v8056_v32 = vld [vmem:[#allocation4 + $0x11ec] ss:$16 sps:$4 sm:$0xff]   ;;  %v8054_v19 = vld [vmem:[#allocation4 + $0x11e8] ss:$16 sps:$4 sm:$0xff]  }
 0x274   : > { %v3344_v27 = vpop.f32.mrf.mxu1  ;;  %5452 = vmatprep.subr.bf16.mxu1 %v8014_v35  ;;  %v8938_v25 = vadd.f32 %v3293_v40, %v8891_v55  ;;  %4926 = vmatprep.mubr.bf16.mxu0 %v8898_v7  ;;  %v8015_v55 = vld [vmem:[#allocation4 + $0x10a0] ss:$16 sps:$4 sm:$0xff]   ;;  %v8059_v36 = vld [vmem:[#allocation4 + $0x11c4] ss:$16 sps:$4 sm:$0xff]  }
 0x275   : > { %v8941_v5 = vadd.f32 %v3344_v27, %v8894_v49  ;;  %4977 = vmatprep.mubr.bf16.mxu1 %v8898_v7  ;;  %v3295_v3 = vpop.f32.mrf.mxu0  ;;  %v8018_v49 = vld [vmem:[#allocation4 + $0x10a8] ss:$16 sps:$4 sm:$0xff]   ;;  %v8023_v7 = vld [vmem:[#allocation4 + $0x1084] ss:$16 sps:$4 sm:$0xff]   ;;  %v8051_v35 = vld [vmem:[#allocation4 + $0x11e0] ss:$16 sps:$4 sm:$0xff]  }
 0x276   : > { %v3346_v1 = vpop.f32.mrf.mxu1  ;;  %v8949_v20 = vadd.f32 %v3295_v3, %v8901_v37  ;;  %5402 = vmatpush1.bf16.msra.mxu0 %v8009_v63  ;;  %v8057_v63 = vld [vmem:[#allocation4 + $0x11c0] ss:$16 sps:$4 sm:$0xff]   ;;  %v8065_v40 = vld [vmem:[#allocation4 + $0x11a4] ss:$16 sps:$4 sm:$0xff]   ;;  %v8068_v27 = vld [vmem:[#allocation4 + $0x11ac] ss:$16 sps:$4 sm:$0xff]  }
 0x277   : > { %v8952_v50 = vadd.f32 %v3346_v1, %v8904_v38  ;;  %5453 = vmatpush1.bf16.msra.mxu1 %v8012_v48  ;;  %v3297_v6 = vpop.f32.mrf.mxu0  ;;  %5403 = vmatprep.subr.bf16.mxu0 %v8017_v23  ;;  %v5074_v38 = vsel %vm4553_vm14, %v5072_v33, %v8946_v0  ;;  %v8060_v48 = vld [vmem:[#allocation4 + $0x11c8] ss:$16 sps:$4 sm:$0xff]   ;;  %v8063_v23 = vld [vmem:[#allocation4 + $0x11a0] ss:$16 sps:$4 sm:$0xff]   ;;  %v8071_v3 = vld [vmem:[#allocation4 + $0x1184] ss:$16 sps:$4 sm:$0xff]  }
 0x278   : > { %v3348_v29 = vpop.f32.mrf.mxu1  ;;  %5454 = vmatprep.subr.bf16.mxu1 %v8020_v57  ;;  %v8955_v9 = vadd.f32 %v3297_v6, %v8907_v45  ;;  %v8021_v45 = vld [vmem:[#allocation4 + $0x1080] ss:$16 sps:$4 sm:$0xff]   ;;  %v8066_v57 = vld [vmem:[#allocation4 + $0x11a8] ss:$16 sps:$4 sm:$0xff]   ;;  %v8074_v1 = vld [vmem:[#allocation4 + $0x118c] ss:$16 sps:$4 sm:$0xff]  }
 0x279   : > { %v8958_v10 = vadd.f32 %v3348_v29, %v8910_v21  ;;  %v3301_v37 = vpop.f32.mrf.mxu0  ;;  %4927 = vmatmul.mubr.bf16.gmra.mxu0 %v4555_v61  ;;  %v8069_v33 = vld [vmem:[#allocation4 + $0x1180] ss:$16 sps:$4 sm:$0xff]   ;;  %v8080_v6 = vld [vmem:[#allocation4 + $0x116c] ss:$16 sps:$4 sm:$0xff]  }
 0x27a   : > { %v3352_v28 = vpop.f32.mrf.mxu1  ;;  %4978 = vmatmul.mubr.bf16.gmra.mxu1 %v4555_v61  ;;  %v8963_v2 = vadd.f32 %v3301_v37, %v8915_v4  ;;  %5404 = vmatpush1.bf16.msra.mxu0 %v8015_v55  ;;  %v8042_v61 = vld [vmem:[#allocation4 + $0x1028] ss:$16 sps:$4 sm:$0xff]   ;;  %v8075_v29 = vld [vmem:[#allocation4 + $0x1160] ss:$16 sps:$4 sm:$0xff]   ;;  %v8086_v37 = vld [vmem:[#allocation4 + $0x114c] ss:$16 sps:$4 sm:$0xff]  }
 0x27b   : > { %v8966_v42 = vadd.f32 %v3352_v28, %v8918_v14  ;;  %5455 = vmatpush1.bf16.msra.mxu1 %v8018_v49  ;;  %v3303_v34 = vpop.f32.mrf.mxu0  ;;  %5405 = vmatprep.subr.bf16.mxu0 %v8023_v7  ;;  %v8072_v55 = vld [vmem:[#allocation4 + $0x1188] ss:$16 sps:$4 sm:$0xff]   ;;  %v8077_v49 = vld [vmem:[#allocation4 + $0x1164] ss:$16 sps:$4 sm:$0xff]   ;;  %v8081_v28 = vld [vmem:[#allocation4 + $0x1140] ss:$16 sps:$4 sm:$0xff]  }
 0x27c   : > { %v3354_v21 = vpop.f32.mrf.mxu1  ;;  %5456 = vmatprep.subr.bf16.mxu1 %v8026_v52  ;;  %v8969_v15 = vadd.f32 %v3303_v34, %v8921_v59  ;;  %5431 = vmatprep.mubr.bf16.mxu0 %v5074_v38  ;;  %v8033_v59 = vld [vmem:[#allocation4 + $0x1040] ss:$16 sps:$4 sm:$0xff]   ;;  %v8078_v7 = vld [vmem:[#allocation4 + $0x1168] ss:$16 sps:$4 sm:$0xff]   ;;  %v8083_v52 = vld [vmem:[#allocation4 + $0x1144] ss:$16 sps:$4 sm:$0xff]  }
 0x27d   : > { %v8972_v54 = vadd.f32 %v3354_v21, %v8924_v22  ;;  %5482 = vmatprep.mubr.bf16.mxu1 %v5074_v38  ;;  %v3305_v4 = vpop.f32.mrf.mxu0  ;;  %v8041_v22 = vld [vmem:[#allocation4 + $0x1024] ss:$16 sps:$4 sm:$0xff]   ;;  %v8084_v38 = vld [vmem:[#allocation4 + $0x1148] ss:$16 sps:$4 sm:$0xff]   ;;  %v8087_v34 = vld [vmem:[#allocation4 + $0x1120] ss:$16 sps:$4 sm:$0xff]  }
 0x27e   : > { %v3356_v14 = vpop.f32.mrf.mxu1  ;;  %5406 = vmatpush1.bf16.msra.mxu0 %v8021_v45  ;;  %v8089_v45 = vld [vmem:[#allocation4 + $0x1124] ss:$16 sps:$4 sm:$0xff]   ;;  %v8090_v21 = vld [vmem:[#allocation4 + $0x1128] ss:$16 sps:$4 sm:$0xff]  }
 0x27f   : > { %5457 = vmatpush1.bf16.msra.mxu1 %v8024_v47  ;;  %5407 = vmatprep.subr.bf16.mxu0 %v8029_v11  ;;  %v3306_v43 = vpop.f32.mrf.mxu0  ;;  %v8092_v47 = vld [vmem:[#allocation4 + $0x112c] ss:$16 sps:$4 sm:$0xff]   ;;  %v8095_v4 = vld [vmem:[#allocation4 + $0x1104] ss:$16 sps:$4 sm:$0xff]  }
 0x280   : > { %5458 = vmatprep.subr.bf16.mxu1 %v8032_v62  ;;  %v3357_v24 = vpop.f32.mrf.mxu1  ;;  %v8142_v11 = vld [vmem:[#allocation2 + $0x18] sm:$0xff] }
 0x281   : > { %v6927_v62 = vcombine.low %v8927_v53, %v8142_v11  ;;  %v8098_v14 = vld [vmem:[#allocation4 + $0x110c] ss:$16 sps:$4 sm:$0xff]  }
 0x282   : > { %5408 = vmatpush1.bf16.msra.mxu0 %v8027_v8  ;;  %v8093_v8 = vld [vmem:[#allocation4 + $0x1100] ss:$16 sps:$4 sm:$0xff]  }
 0x283   : > { %5459 = vmatpush1.bf16.msra.mxu1 %v8030_v51  ;;  %5409 = vmatprep.subr.bf16.mxu0 %v8035_v18  ;;  %v8096_v51 = vld [vmem:[#allocation4 + $0x1108] ss:$16 sps:$4 sm:$0xff]   ;;  %v5069_v18 = vrot.slane %v6927_v62, 3 }
 0x284   : > { %5460 = vmatprep.subr.bf16.mxu1 %v8038_v41  ;;  %v5070_v41 = vrot.slane %v8879_v60, 3 }
 0x286   : > { %5410 = vmatpush1.bf16.msra.mxu0 %v8033_v59  ;;  %v5071_v43 = vsel %vm4553_vm14, %v5069_v18, %v5070_v41  ;;  %v8105_v18 = vld [vmem:[#allocation9 + $0x70] sm:$0xff]  }
 0x287   : > { %5461 = vmatpush1.bf16.msra.mxu1 %v8036_v26  ;;  %5411 = vmatprep.subr.bf16.mxu0 %v8041_v22 }
 0x288   : > { %5462 = vmatprep.subr.bf16.mxu1 %v8044_v58 }
 0x28a   : > { %5412 = vmatpush1.bf16.msra.mxu0 %v8039_v30 }
 0x28b   : > { %5463 = vmatpush1.bf16.msra.mxu1 %v8042_v61  ;;  %5413 = vmatprep.subr.bf16.mxu0 %v8047_v31 }
 0x28c   : > { %5464 = vmatprep.subr.bf16.mxu1 %v8050_v12 }
 0x28e   : > { %5414 = vmatpush1.bf16.msra.mxu0 %v8045_v39 }
 0x28f   : > { %5465 = vmatpush1.bf16.msra.mxu1 %v8048_v13  ;;  %5415 = vmatprep.subr.bf16.mxu0 %v8053_v56 }
 0x290   : > { %5466 = vmatprep.subr.bf16.mxu1 %v8056_v32 }
 0x292   : > { %5416 = vmatpush2.bf16.msra.mxu0 %v8051_v35 }
 0x293   : > { %5467 = vmatpush2.bf16.msra.mxu1 %v8054_v19  ;;  %5417 = vmatprep.subr.bf16.mxu0 %v8059_v36 }
 0x294   : > { %5468 = vmatprep.subr.bf16.mxu1 %v8062_v16 }
 0x296   : > { %5418 = vmatpush2.bf16.msra.mxu0 %v8057_v63 }
 0x297   : > { %5469 = vmatpush2.bf16.msra.mxu1 %v8060_v48  ;;  %5419 = vmatprep.subr.bf16.mxu0 %v8065_v40 }
 0x298   : > { %5470 = vmatprep.subr.bf16.mxu1 %v8068_v27 }
 0x29a   : > { %5420 = vmatpush2.bf16.msra.mxu0 %v8063_v23 }
 0x29b   : > { %5471 = vmatpush2.bf16.msra.mxu1 %v8066_v57  ;;  %5421 = vmatprep.subr.bf16.mxu0 %v8071_v3 }
 0x29c   : > { %5472 = vmatprep.subr.bf16.mxu1 %v8074_v1 }
 0x29e   : > { %5422 = vmatpush2.bf16.msra.mxu0 %v8069_v33 }
 0x29f   : > { %5473 = vmatpush2.bf16.msra.mxu1 %v8072_v55  ;;  %5423 = vmatprep.subr.bf16.mxu0 %v8077_v49 }
 0x2a0   : > { %5474 = vmatprep.subr.bf16.mxu1 %v8080_v6 }
 0x2a2   : > { %5424 = vmatpush2.bf16.msra.mxu0 %v8075_v29 }
 0x2a3   : > { %5475 = vmatpush2.bf16.msra.mxu1 %v8078_v7  ;;  %5425 = vmatprep.subr.bf16.mxu0 %v8083_v52 }
 0x2a4   : > { %5476 = vmatprep.subr.bf16.mxu1 %v8086_v37 }
 0x2a6   : > { %5426 = vmatpush2.bf16.msra.mxu0 %v8081_v28 }
 0x2a7   : > { %5477 = vmatpush2.bf16.msra.mxu1 %v8084_v38  ;;  %5427 = vmatprep.subr.bf16.mxu0 %v8089_v45 }
 0x2a8   : > { %5478 = vmatprep.subr.bf16.mxu1 %v8092_v47 }
 0x2aa   : > { %5428 = vmatpush2.bf16.msra.mxu0 %v8087_v34 }
 0x2ab   : > { %5479 = vmatpush2.bf16.msra.mxu1 %v8090_v21  ;;  %5429 = vmatprep.subr.bf16.mxu0 %v8095_v4  ;;  %v8101_v4 = vld [vmem:[#allocation9 + $0x78] sm:$0xff]  }
 0x2ac   : > { %5480 = vmatprep.subr.bf16.mxu1 %v8098_v14  ;;  %v8102_v14 = vld [vmem:[#allocation9 + $0xf8] sm:$0xff]  }
 0x2ae   : > { %5430 = vmatpush2.bf16.msra.mxu0 %v8093_v8  ;;  %v8103_v8 = vld [vmem:[#allocation9 + $0x38] sm:$0xff]  }
 0x2af   : > { %5481 = vmatpush2.bf16.msra.mxu1 %v8096_v51  ;;  %v8104_v51 = vld [vmem:[#allocation9 + $0xb8] sm:$0xff]   ;;  %7036 = vmatprep.subr.bf16.mxu0 %v8101_v4 }
 0x2b0   : > { %7058 = vmatprep.subr.bf16.mxu1 %v8102_v14 }
 0x2b1   : > { %v3830_v24 = vpop.f32.mrf.mxu0  ;;  %5432 = vmatmul.mubr.bf16.vlgmr.msra.gmra.mxu0 %v5071_v43 }
 0x2b2   : > { %v3881_v59 = vpop.f32.mrf.mxu1  ;;  %5483 = vmatmul.mubr.bf16.vlgmr.msra.gmra.mxu1 %v5071_v43  ;;  %v3898_v53 = vadd.f32 %v3830_v24, %v8932_v17  ;;  %5441 = vmatprep.mubr.bf16.mxu0 %v8946_v0  ;;  %v8107_v43 = vld [vmem:[#allocation9 + $0x30] sm:$0xff]  }
 0x2b3   : > { %v3900_v26 = vadd.f32 %v3881_v59, %v8935_v44  ;;  %5492 = vmatprep.mubr.bf16.mxu1 %v8946_v0  ;;  %v3832_v22 = vpop.f32.mrf.mxu0  ;;  %7037 = vmatpush3.bf16.msra.mxu0 %v8103_v8  ;;  %v8108_v24 = vld [vmem:[#allocation9 + $0xb0] sm:$0xff]   ;;  %v8109_v59 = vld [vmem:[#allocation9 + $0x68] sm:$0xff]   ;;  %v9037_v8 = vsub.s32 0, %v8528_v46 }
 0x2b4   : > { %v3883_v60 = vpop.f32.mrf.mxu1  ;;  %v3899_v58 = vadd.f32 %v3832_v22, %v8938_v25  ;;  %7059 = vmatpush3.bf16.msra.mxu1 %v8104_v51  ;;  %7038 = vmatprep.subr.bf16.mxu0 %v8105_v18  ;;  %v8112_v22 = vld [vmem:[#allocation9 + $0xa8] sm:$0xff]   ;;  %v5513_v51 = vld [vmem:[#allocation6] sm:$0xf]  ;;  %v5521_v18 = vsub.s32 1, %v8528_v46 }
 0x2b5   : > { %v3901_v30 = vadd.f32 %v3883_v60, %v8941_v5  ;;  %v3834_v61 = vpop.f32.mrf.mxu0  ;;  %v8113_v60 = vld [vmem:[#allocation9 + $0x60] sm:$0xff]  }
 0x2b6   : > { %v3885_v31 = vpop.f32.mrf.mxu1  ;;  %v3902_v12 = vadd.f32 %v3834_v61, %v8949_v20  ;;  %v8116_v61 = vld [vmem:[#allocation9 + $0xa0] sm:$0xff]  }
 0x2b7   : > { %v3904_v39 = vadd.f32 %v3885_v31, %v8952_v50  ;;  %v3836_v13 = vpop.f32.mrf.mxu0  ;;  %7039 = vmatpush3.bf16.msra.mxu0 %v8107_v43  ;;  %v8117_v31 = vld [vmem:[#allocation9 + $0x58] sm:$0xff]  }
 0x2b8   : > { %v3887_v17 = vpop.f32.mrf.mxu1  ;;  %v3903_v44 = vadd.f32 %v3836_v13, %v8955_v9  ;;  %7040 = vmatprep.subr.bf16.mxu0 %v8109_v59  ;;  %v8120_v13 = vld [vmem:[#allocation9 + $0x98] sm:$0xff]  }
 0x2b9   : > { %v3905_v56 = vadd.f32 %v3887_v17, %v8958_v10  ;;  %v3840_v32 = vpop.f32.mrf.mxu0  ;;  %5442 = vmatmul.mubr.bf16.gmra.mxu0 %v5070_v41  ;;  %v8121_v17 = vld [vmem:[#allocation9 + $0x50] sm:$0xff]  }
 0x2ba   : > { %v3891_v0 = vpop.f32.mrf.mxu1  ;;  %5493 = vmatmul.mubr.bf16.gmra.mxu1 %v5070_v41  ;;  %v3906_v25 = vadd.f32 %v3840_v32, %v8963_v2  ;;  %v8106_v41 = vld [vmem:[#allocation9 + $0xf0] sm:$0xff]  }
 0x2bb   : > { %v3908_v5 = vadd.f32 %v3891_v0, %v8966_v42  ;;  %v3842_v35 = vpop.f32.mrf.mxu0  ;;  %7060 = vmatprep.subr.bf16.mxu1 %v8106_v41  ;;  %v8124_v32 = vld [vmem:[#allocation9 + $0x90] sm:$0xff]   ;;  %v8125_v0 = vld [vmem:[#allocation9 + $0x48] sm:$0xff]   ;;  %v5529_v41 = vsub.s32 3, %v8528_v46 }
 0x2bc   : > { %v3893_v19 = vpop.f32.mrf.mxu1  ;;  %v3907_v20 = vadd.f32 %v3842_v35, %v8969_v15  ;;  %7061 = vmatpush3.bf16.msra.mxu1 %v8108_v24  ;;  %v8128_v35 = vld [vmem:[#allocation9 + $0x88] sm:$0xff]  }
 0x2bd   : > { %v3909_v50 = vadd.f32 %v3893_v19, %v8972_v54  ;;  %v3844_v36 = vpop.f32.mrf.mxu0  ;;  %v8129_v19 = vld [vmem:[#allocation9 + $0x40] sm:$0xff]  }
 0x2be   : > { %v3895_v16 = vpop.f32.mrf.mxu1  ;;  %v8132_v36 = vld [vmem:[#allocation9 + $0x80] sm:$0xff]  }
 0x2bf   : > { %v3845_v63 = vpop.f32.mrf.mxu0 }
 0x2c0   : > { %v3896_v9 = vpop.f32.mrf.mxu1 }
 0x2f1   : > { %v4388_v48 = vpop.f32.mrf.mxu0 }
 0x2f2   : > { %v4439_v10 = vpop.f32.mrf.mxu1  ;;  %v8991_v40 = vadd.f32 %v4388_v48, %v3898_v53  ;;  %v8110_v53 = vld [vmem:[#allocation9 + $0xe8] sm:$0xff]  }
 0x2f3   : > { %v8993_v27 = vadd.f32 %v4439_v10, %v3900_v26  ;;  %v4390_v23 = vpop.f32.mrf.mxu0  ;;  %v8111_v26 = vld [vmem:[#allocation9 + $0x28] sm:$0xff]   ;;  %7062 = vmatprep.subr.bf16.mxu1 %v8110_v53  ;;  %v8362_v10 = vmov 0.0  }
 0x2f4   : > { %v4441_v2 = vpop.f32.mrf.mxu1  ;;  %v8995_v57 = vadd.f32 %v4390_v23, %v3899_v58  ;;  %7041 = vmatpush3.bf16.msra.mxu0 %v8111_v26  ;;  %7063 = vmatpush3.bf16.msra.mxu1 %v8112_v22  ;;  %v8114_v58 = vld [vmem:[#allocation9 + $0xe0] sm:$0xff]  }
 0x2f5   : > { %v8997_v42 = vadd.f32 %v4441_v2, %v3901_v30  ;;  %v4392_v3 = vpop.f32.mrf.mxu0  ;;  %v8115_v30 = vld [vmem:[#allocation9 + $0x20] sm:$0xff]   ;;  %7042 = vmatprep.subr.bf16.mxu0 %v8113_v60  ;;  %7064 = vmatprep.subr.bf16.mxu1 %v8114_v58  ;;  %v9052_v60 = vrot.slane %v5513_v51, %v5521_v18  ;;  %v9054_v58 = vrot.slane %v5513_v51, %v5529_v41 }
 0x2f6   : > { %v4443_v15 = vpop.f32.mrf.mxu1  ;;  %v8999_v1 = vadd.f32 %v4392_v3, %v3902_v12  ;;  %v8118_v12 = vld [vmem:[#allocation9 + $0xd8] sm:$0xff]  }
 0x2f7   : > { %v9001_v54 = vadd.f32 %v4443_v15, %v3904_v39  ;;  %v4394_v33 = vpop.f32.mrf.mxu0  ;;  %v8119_v39 = vld [vmem:[#allocation9 + $0x18] sm:$0xff]  }
 0x2f8   : > { %v4445_v55 = vpop.f32.mrf.mxu1  ;;  %v9003_v49 = vadd.f32 %v4394_v33, %v3903_v44  ;;  %7043 = vmatpush3.bf16.msra.mxu0 %v8115_v30  ;;  %7065 = vmatpush3.bf16.msra.mxu1 %v8116_v61  ;;  %v8122_v44 = vld [vmem:[#allocation9 + $0xd0] sm:$0xff]  }
 0x2f9   : > { %v9005_v6 = vadd.f32 %v4445_v55, %v3905_v56  ;;  %v4398_v29 = vpop.f32.mrf.mxu0  ;;  %7044 = vmatprep.subr.bf16.mxu0 %v8117_v31  ;;  %7066 = vmatprep.subr.bf16.mxu1 %v8118_v12  ;;  %v8123_v56 = vld [vmem:[#allocation9 + $0x10] sm:$0xff]  }
 0x2fa   : > { %v4449_v7 = vpop.f32.mrf.mxu1  ;;  %v9007_v52 = vadd.f32 %v4398_v29, %v3906_v25  ;;  %v8126_v25 = vld [vmem:[#allocation9 + $0xc8] sm:$0xff]  }
 0x2fb   : > { %v9009_v37 = vadd.f32 %v4449_v7, %v3908_v5  ;;  %v4400_v28 = vpop.f32.mrf.mxu0  ;;  %v8127_v5 = vld [vmem:[#allocation9 + $0x8] sm:$0xff]  }
 0x2fc   : > { %v4451_v38 = vpop.f32.mrf.mxu1  ;;  %v9011_v45 = vadd.f32 %v4400_v28, %v3907_v20  ;;  %7045 = vmatpush3.bf16.msra.mxu0 %v8119_v39  ;;  %7067 = vmatpush3.bf16.msra.mxu1 %v8120_v13  ;;  %v8130_v20 = vld [vmem:[#allocation9 + $0xc0] sm:$0xff]  }
 0x2fd   : > { %v9013_v47 = vadd.f32 %v4451_v38, %v3909_v50  ;;  %v4402_v34 = vpop.f32.mrf.mxu0  ;;  %7046 = vmatprep.subr.bf16.mxu0 %v8121_v17  ;;  %7068 = vmatprep.subr.bf16.mxu1 %v8122_v44  ;;  %v8131_v50 = vld [vmem:[#allocation9] sm:$0xff]  }
 0x2fe   : > { %v4453_v21 = vpop.f32.mrf.mxu1 }
 0x2ff   : > { %v4403_v11 = vpop.f32.mrf.mxu0 }
 0x300   : > { %v4454_v62 = vpop.f32.mrf.mxu1  ;;  %7047 = vmatpush3.bf16.msra.mxu0 %v8123_v56  ;;  %7069 = vmatpush3.bf16.msra.mxu1 %v8124_v32 }
 0x301   : > { %7048 = vmatprep.subr.bf16.mxu0 %v8125_v0  ;;  %7070 = vmatprep.subr.bf16.mxu1 %v8126_v25 }
 0x304   : > { %7049 = vmatpush3.bf16.msra.mxu0 %v8127_v5  ;;  %7071 = vmatpush3.bf16.msra.mxu1 %v8128_v35 }
 0x305   : > { %7050 = vmatprep.subr.bf16.mxu0 %v8129_v19  ;;  %7072 = vmatprep.subr.bf16.mxu1 %v8130_v20 }
 0x308   : > { %7051 = vmatpush3.bf16.msra.mxu0 %v8131_v50  ;;  %7073 = vmatpush3.bf16.msra.mxu1 %v8132_v36 }
 0x309   : > { %7089 = vmatprep.subr.bf16.mxu0 %v8362_v10 }
 0x331   : > { %v4918_v16 = vpop.f32.mrf.mxu0 }
 0x332   : > { %v4969_v63 = vpop.f32.mrf.mxu1  ;;  %v4986_v9 = vadd.f32 %v4918_v16, %v8991_v40 }
 0x333   : > { %v4988_v48 = vadd.f32 %v4969_v63, %v8993_v27  ;;  %v4920_v23 = vpop.f32.mrf.mxu0 }
 0x334   : > { %v4971_v2 = vpop.f32.mrf.mxu1  ;;  %v4987_v3 = vadd.f32 %v4920_v23, %v8995_v57 }
 0x335   : > { %v4989_v15 = vadd.f32 %v4971_v2, %v8997_v42  ;;  %v4922_v33 = vpop.f32.mrf.mxu0 }
 0x336   : > { %v4973_v55 = vpop.f32.mrf.mxu1  ;;  %v4990_v29 = vadd.f32 %v4922_v33, %v8999_v1 }
 0x337   : > { %v4992_v7 = vadd.f32 %v4973_v55, %v9001_v54  ;;  %v4924_v28 = vpop.f32.mrf.mxu0 }
 0x338   : > { %v4975_v38 = vpop.f32.mrf.mxu1  ;;  %v4991_v40 = vadd.f32 %v4924_v28, %v9003_v49 }
 0x339   : > { %v4993_v27 = vadd.f32 %v4975_v38, %v9005_v6  ;;  %v4928_v34 = vpop.f32.mrf.mxu0 }
 0x33a   : > { %v4979_v21 = vpop.f32.mrf.mxu1  ;;  %v9025_v11 = vadd.f32 %v4928_v34, %v9007_v52  ;;  %v5525_v52 = vsub.s32 2, %v8528_v46 }
 0x33b   : > { %v9028_v57 = vadd.f32 %v4979_v21, %v9009_v37  ;;  %v4930_v42 = vpop.f32.mrf.mxu0  ;;  %v5547_v37 = vld [vmem:[#allocation8] sm:$0xf] }
 0x33c   : > { %v4981_v62 = vpop.f32.mrf.mxu1  ;;  %v9031_v1 = vadd.f32 %v4930_v42, %v9011_v45  ;;  %v9043_v45 = vrot.slane %v5513_v51, %v9037_v8  ;;  %v9048_v24 = vrot.slane %v5547_v37, %v9037_v8  ;;  %v9050_v53 = vrot.slane %v5547_v37, %v5525_v52 }
 0x33d   : > { %v9034_v54 = vadd.f32 %v4981_v62, %v9013_v47  ;;  %v4932_v4 = vpop.f32.mrf.mxu0  ;;  %v9045_v47 = vrot.slane %v5513_v51, %v5525_v52  ;;  %v9056_v46 = vrot.slane %v5547_v37, %v5521_v18  ;;  %v9058_v31 = vrot.slane %v5547_v37, %v5529_v41 }
 0x33e   : > { %v4983_v49 = vpop.f32.mrf.mxu1 }
 0x33f   : > { %v4933_v14 = vpop.f32.mrf.mxu0 }
 0x340   : > { %v4984_v6 = vpop.f32.mrf.mxu1 }
 0x371   : > { %v5433_v43 = vpop.f32.mrf.mxu0 }
 0x372   : > { %v5484_v59 = vpop.f32.mrf.mxu1  ;;  %v5501_v26 = vadd.f32 %v5433_v43, %v4986_v9 }
 0x373   : > { %v5503_v22 = vadd.f32 %v5484_v59, %v4988_v48  ;;  %v5435_v30 = vpop.f32.mrf.mxu0 }
 0x374   : > { %v5486_v61 = vpop.f32.mrf.mxu1  ;;  %v5535_v12 = vmul.f32 %v9043_v45, %v5501_v26  ;;  %v5502_v13 = vadd.f32 %v5435_v30, %v4987_v3 }
 0x375   : > { %v5537_v39 = vmul.f32 %v9045_v47, %v5503_v22  ;;  %v5504_v17 = vadd.f32 %v5486_v61, %v4989_v15  ;;  %v5437_v44 = vpop.f32.mrf.mxu0 }
 0x376   : > { %v5488_v56 = vpop.f32.mrf.mxu1  ;;  %v5569_v32 = vadd.f32 %v9048_v24, %v5535_v12  ;;  %v5536_v25 = vmul.f32 %v9052_v60, %v5502_v13  ;;  %v5505_v35 = vadd.f32 %v5437_v44, %v4990_v29 }
 0x377   : > { %v5571_v0 = vadd.f32 %v9050_v53, %v5537_v39  ;;  %v5538_v5 = vmul.f32 %v9054_v58, %v5504_v17  ;;  %v5507_v19 = vadd.f32 %v5488_v56, %v4992_v7  ;;  %v5439_v20 = vpop.f32.mrf.mxu0 }
 0x378   : > { %v5490_v50 = vpop.f32.mrf.mxu1  ;;  %v5581_v36 = vmax.f32 %v5569_v32, 0.0  ;;  %v5570_v63 = vadd.f32 %v9056_v46, %v5536_v25  ;;  %v5539_v48 = vmul.f32 %v9043_v45, %v5505_v35  ;;  %v5506_v2 = vadd.f32 %v5439_v20, %v4991_v40 }
 0x379   : > { %v5583_v16 = vmax.f32 %v5571_v0, 0.0  ;;  %v5572_v9 = vadd.f32 %v9058_v31, %v5538_v5  ;;  %v5541_v23 = vmul.f32 %v9045_v47, %v5507_v19  ;;  %v5508_v3 = vadd.f32 %v5490_v50, %v4993_v27  ;;  %v9070_v15 = vpop.f32.mrf.mxu0 }
 0x37a   : > { %v9072_v33 = vpop.f32.mrf.mxu1  ;;  %v5594_v55 = vsel %vm5593_vm0, %v5581_v36, 0.0  ;;  %v5635_v29 = vrot.slane %v5581_v36, 5  ;;  %v5582_v34 = vmax.f32 %v5570_v63, 0.0  ;;  %v5573_v40 = vadd.f32 %v9048_v24, %v5539_v48 }
 0x37b   : > { %v5608_v7 = vsel %vm5593_vm0, %v5583_v16, 0.0  ;;  %v5595_v28 = vrot.slane %v5594_v55, 4  ;;  %v5584_v21 = vmax.f32 %v5572_v9, 0.0  ;;  %v9076_v42 = vpop.f32.mrf.mxu0  ;;  %v5641_v4 = vrot.slane %v5583_v16, 5 }
 0x37c   : > { %v5609_v38 = vrot.slane %v5608_v7, 4  ;;  %v9078_v62 = vpop.f32.mrf.mxu1  ;;  %v5575_v27 = vadd.f32 %v9050_v53, %v5541_v23  ;;  %v5540_v49 = vmul.f32 %v9052_v60, %v5506_v2  ;;  %v5601_v52 = vsel %vm5593_vm0, %v5582_v34, 0.0 }
 0x37d   : > { %v5596_v14 = vadd.f32 %v5595_v28, %v5594_v55  ;;  %v5542_v51 = vmul.f32 %v9054_v58, %v5508_v3  ;;  %v5447_v37 = vpop.f32.mrf.mxu0  ;;  %v5602_v41 = vrot.slane %v5601_v52, 4  ;;  %v5638_v43 = vrot.slane %v5582_v34, 5 }
 0x37e   : > { %v5610_v6 = vadd.f32 %v5609_v38, %v5608_v7  ;;  %v5498_v18 = vpop.f32.mrf.mxu1  ;;  %v5615_v59 = vsel %vm5593_vm0, %v5584_v21, 0.0  ;;  %v9086_v26 = vmax.f32 %v5573_v40, 0.0  ;;  %v9088_v12 = vmax.f32 %v5575_v27, 0.0 }
 0x37f   : > { %v5597_v22 = vrot.slane %v5596_v14, 2  ;;  %v5616_v61 = vrot.slane %v5615_v59, 4  ;;  %v5448_v39 = vpop.f32.mrf.mxu0  ;;  %v5603_v17 = vadd.f32 %v5602_v41, %v5601_v52  ;;  %v5644_v44 = vrot.slane %v5584_v21, 5 }
 0x380   : > { %v5611_v30 = vrot.slane %v5610_v6, 2  ;;  %v5499_v13 = vpop.f32.mrf.mxu1  ;;  %v5636_v56 = vrot.slane %v9086_v26, 5  ;;  %v5683_v32 = vrot.slane %v9086_v26, 2  ;;  %v5642_v35 = vrot.slane %v9088_v12, 5 }
 0x381   : > { %v5598_v0 = vadd.f32 %v5597_v22, %v5596_v14  ;;  %v5617_v5 = vadd.f32 %v5616_v61, %v5615_v59  ;;  %v5604_v19 = vrot.slane %v5603_v17, 2  ;;  %v5685_v36 = vrot.slane %v9088_v12, 2 }
 0x382   : > { %v5612_v25 = vadd.f32 %v5611_v30, %v5610_v6  ;;  %v5637_v20 = vsel %vm446_vm15, %v5635_v29, %v5636_v56  ;;  %v5691_v50 = vsel %vm5593_vm0, %v5683_v32, 0.0  ;;  %v5643_v55 = vsel %vm446_vm15, %v5641_v4, %v5642_v35 }
 0x383   : > { %v5599_v16 = vrot.slane %v5598_v0, 1  ;;  %v5618_v9 = vrot.slane %v5617_v5, 2  ;;  %v5651_v48 = vsel %vm5593_vm0, %v5637_v20, 0.0  ;;  %v5605_v23 = vadd.f32 %v5604_v19, %v5603_v17 }
 0x384   : > { %v5613_v63 = vrot.slane %v5612_v25, 1  ;;  %v5652_v2 = vrot.slane %v5651_v48, 4  ;;  %v5692_v3 = vrot.slane %v5691_v50, 4  ;;  %v5728_v38 = vrot.slane %v9086_v26, 7 }
 0x385   : > { %v9098_v7 = vadd.f32 %v5599_v16, %v5598_v0  ;;  %v5619_v28 = vadd.f32 %v5618_v9, %v5617_v5  ;;  %v5665_v29 = vsel %vm5593_vm0, %v5643_v55, 0.0  ;;  %v5606_v14 = vrot.slane %v5605_v23, 1 }
 0x386   : > { %v9102_v34 = vadd.f32 %v5613_v63, %v5612_v25  ;;  %v5653_v21 = vadd.f32 %v5652_v2, %v5651_v48  ;;  %v5693_v40 = vadd.f32 %v5692_v3, %v5691_v50  ;;  %v5666_v27 = vrot.slane %v5665_v29, 4 }
 0x387   : > { %v5620_v6 = vrot.slane %v5619_v28, 1  ;;  %v5705_v52 = vsel %vm5593_vm0, %v5685_v36, 0.0  ;;  %v5574_v37 = vadd.f32 %v9056_v46, %v5540_v49  ;;  %v5734_v22 = vrot.slane %v9088_v12, 7 }
 0x388   : > { %v5654_v18 = vrot.slane %v5653_v21, 2  ;;  %v5694_v4 = vrot.slane %v5693_v40, 2  ;;  %v5667_v41 = vadd.f32 %v5666_v27, %v5665_v29  ;;  %v5706_v59 = vrot.slane %v5705_v52, 4 }
 0x389   : > { %v9107_v30 = vmax.f32 %v5574_v37, 0.0  ;;  %v5576_v61 = vadd.f32 %v9058_v31, %v5542_v51  ;;  %v5509_v39 = vadd.f32 %v9070_v15, %v9025_v11  ;;  %v5511_v5 = vadd.f32 %v9072_v33, %v9028_v57 }
 0x38a   : > { %v9112_v13 = vadd.f32 %v5654_v18, %v5653_v21  ;;  %v5695_v17 = vadd.f32 %v5694_v4, %v5693_v40  ;;  %v5668_v56 = vrot.slane %v5667_v41, 2  ;;  %v5707_v32 = vadd.f32 %v5706_v59, %v5705_v52 }
 0x38b   : > { %v5639_v49 = vrot.slane %v9107_v30, 5  ;;  %v5684_v0 = vrot.slane %v9107_v30, 2  ;;  %v9116_v25 = vmax.f32 %v5576_v61, 0.0  ;;  %v5731_v11 = vrot.slane %v9107_v30, 7 }
 0x38c   : > { %v5696_v35 = vrot.slane %v5695_v17, 1  ;;  %v9120_v19 = vadd.f32 %v5668_v56, %v5667_v41  ;;  %v5708_v51 = vrot.slane %v5707_v32, 2  ;;  %v5656_v16 = vrot.slane %v9112_v13, 1 }
 0x38d   : > { %v5640_v15 = vsel %vm446_vm15, %v5638_v43, %v5639_v49  ;;  %v5698_v20 = vsel %vm5593_vm0, %v5684_v0, 0.0  ;;  %v5645_v50 = vrot.slane %v9116_v25, 5  ;;  %v5686_v36 = vrot.slane %v9116_v25, 2 }
 0x38e   : > { %v9128_v63 = vadd.f32 %v5696_v35, %v5695_v17  ;;  %v9130_v9 = vadd.f32 %v5708_v51, %v5707_v32  ;;  %v5658_v57 = vsel %vm5593_vm0, %v5640_v15, 0.0  ;;  %v5699_v48 = vrot.slane %v5698_v20, 4 }
 0x38f   : > { %v5659_v33 = vrot.slane %v5658_v57, 4  ;;  %v5646_v2 = vsel %vm446_vm15, %v5644_v44, %v5645_v50  ;;  %v5712_v43 = vsel %vm5593_vm0, %v5686_v36, 0.0  ;;  %v5670_v3 = vrot.slane %v9120_v19, 1 }
 0x390   : > { %v5710_v55 = vrot.slane %v9130_v9, 1  ;;  %v5672_v29 = vsel %vm5593_vm0, %v5646_v2, 0.0  ;;  %v5713_v21 = vrot.slane %v5712_v43, 4  ;;  %v5700_v40 = vadd.f32 %v5699_v48, %v5698_v20 }
 0x391   : > { %v5673_v27 = vrot.slane %v5672_v29, 4  ;;  %v5543_v52 = vmul.f32 %v9043_v45, %v5509_v39  ;;  %v5545_v37 = vmul.f32 %v9045_v47, %v5511_v5  ;;  %v5737_v4 = vrot.slane %v9116_v25, 7 }
 0x392   : > { %v5714_v18 = vadd.f32 %v5713_v21, %v5712_v43  ;;  %v5510_v44 = vadd.f32 %v9076_v42, %v9031_v1  ;;  %v5512_v41 = vadd.f32 %v9078_v62, %v9034_v54  ;;  %v5607_v61 = vadd.f32 %v5606_v14, %v5605_v23 }
 0x393   : > { %v5577_v59 = vadd.f32 %v9048_v24, %v5543_v52  ;;  %v5579_v30 = vadd.f32 %v9050_v53, %v5545_v37  ;;  %v5660_v17 = vadd.f32 %v5659_v33, %v5658_v57  ;;  %v5701_v47 = vrot.slane %v5700_v40, 2 }
 0x394   : > { %v5544_v56 = vmul.f32 %v9052_v60, %v5510_v44  ;;  %v5546_v45 = vmul.f32 %v9054_v58, %v5512_v41  ;;  %v5621_v39 = vadd.f32 %v5620_v6, %v5619_v28  ;;  %v5674_v25 = vadd.f32 %v5673_v27, %v5672_v29 }
 0x395   : > { %v5589_v32 = vmax.f32 %v5577_v59, 0.0  ;;  %v5591_v49 = vmax.f32 %v5579_v30, 0.0  ;;  %v5661_v0 = vrot.slane %v5660_v17, 2  ;;  %v5702_v42 = vadd.f32 %v5701_v47, %v5700_v40 }
 0x396   : > { %v5578_v1 = vadd.f32 %v9056_v46, %v5544_v56  ;;  %v5580_v54 = vadd.f32 %v9058_v31, %v5546_v45  ;;  %v5715_v24 = vrot.slane %v5714_v18, 2  ;;  %v5675_v14 = vrot.slane %v5674_v25, 2 }
 0x397   : > { %v5729_v62 = vrot.slane %v5589_v32, 7  ;;  %v5735_v53 = vrot.slane %v5591_v49, 7  ;;  %v5662_v23 = vadd.f32 %v5661_v0, %v5660_v17  ;;  %v5703_v35 = vrot.slane %v5702_v42, 1 }
 0x398   : > { %v5590_v5 = vmax.f32 %v5578_v1, 0.0  ;;  %v5592_v60 = vmax.f32 %v5580_v54, 0.0  ;;  %v5716_v58 = vadd.f32 %v5715_v24, %v5714_v18  ;;  %v5676_v31 = vadd.f32 %v5675_v14, %v5674_v25 }
 0x399   : > { %v5730_v28 = vsel %vm707_vm6, %v5728_v38, %v5729_v62  ;;  %v5736_v46 = vsel %vm707_vm6, %v5734_v22, %v5735_v53  ;;  %v5663_v6 = vrot.slane %v5662_v23, 1  ;;  %v5704_v48 = vadd.f32 %v5703_v35, %v5702_v42 }
 0x39a   : > { %v5744_v51 = vsel %vm5593_vm0, %v5730_v28, 0.0  ;;  %v5758_v15 = vsel %vm5593_vm0, %v5736_v46, 0.0  ;;  %v5732_v20 = vrot.slane %v5590_v5, 7  ;;  %v5738_v50 = vrot.slane %v5592_v60, 7 }
 0x39b   : > { %v5745_v36 = vrot.slane %v5744_v51, 4  ;;  %v5759_v57 = vrot.slane %v5758_v15, 4  ;;  %v5664_v33 = vadd.f32 %v5663_v6, %v5662_v23  ;;  %v5677_v2 = vrot.slane %v5676_v31, 1 }
 0x39c   : > { %v5733_v26 = vsel %vm707_vm6, %v5731_v11, %v5732_v20  ;;  %v5739_v38 = vsel %vm707_vm6, %v5737_v4, %v5738_v50  ;;  %v5717_v12 = vrot.slane %v5716_v58, 1  ;;  %v5657_v11 = vadd.f32 %v5656_v16, %v9112_v13  ;;  %v8136_v20 = vld [vmem:[#allocation12 + $0x20] sm:$0xff]   ;;  %v8137_v50 = vld [vmem:[#allocation12 + $0x18] sm:$0xff]  }
 0x39d   : > { %v5746_v43 = vadd.f32 %v5745_v36, %v5744_v51  ;;  %v5760_v22 = vadd.f32 %v5759_v57, %v5758_v15  ;;  %v5751_v29 = vsel %vm5593_vm0, %v5733_v26, 0.0  ;;  %v5765_v21 = vsel %vm5593_vm0, %v5739_v38, 0.0  ;;  %v8134_v51 = vld [vmem:[#allocation12 + $0x30] sm:$0xff]   ;;  %v8135_v15 = vld [vmem:[#allocation12 + $0x28] sm:$0xff]   ;;  %v5848_v38 = vld [vmem:[#allocation11] sm:$0x1] }
 0x39e   : > { %v5752_v40 = vrot.slane %v5751_v29, 4  ;;  %v5766_v27 = vrot.slane %v5765_v21, 4  ;;  %v5680_v52 = vadd.f32 %v5664_v33, %v5607_v61  ;;  %v5678_v37 = vadd.f32 %v5677_v2, %v5676_v31  ;;  %v8138_v36 = vld [vmem:[#allocation12 + $0x10] sm:$0xff]   ;;  %v8139_v57 = vld [vmem:[#allocation12 + $0x8] sm:$0xff]   ;;  %v8140_v33 = vld [vmem:[#allocation12] sm:$0xff]  }
 0x39f   : > { %v5747_v18 = vrot.slane %v5746_v43, 2  ;;  %v5761_v44 = vrot.slane %v5760_v22, 2  ;;  %v5718_v41 = vadd.f32 %v5717_v12, %v5716_v58  ;;  %v5679_v47 = vadd.f32 %v5657_v11, %v9098_v7 }
 0x3a0   : > { %v5720_v4 = vadd.f32 %v5704_v48, %v5680_v52  ;;  %v5753_v59 = vadd.f32 %v5752_v40, %v5751_v29  ;;  %v5682_v30 = vadd.f32 %v5678_v37, %v5621_v39  ;;  %v5767_v17 = vadd.f32 %v5766_v27, %v5765_v21 }
 0x3a1   : > { %v5748_v56 = vadd.f32 %v5747_v18, %v5746_v43  ;;  %v5762_v45 = vadd.f32 %v5761_v44, %v5760_v22  ;;  %v5671_v61 = vadd.f32 %v5670_v3, %v9120_v19  ;;  %v5711_v32 = vadd.f32 %v5710_v55, %v9130_v9  ;;  %v6138_v44 = vld [vmem:[#allocation14] sm:$0x1] }
 0x3a2   : > { %v5754_v49 = vrot.slane %v5753_v59, 2  ;;  %v5722_v0 = vadd.f32 %v5718_v41, %v5682_v30  ;;  %v5768_v25 = vrot.slane %v5767_v17, 2  ;;  %v5719_v39 = vadd.f32 %v9128_v63, %v5679_v47 }
 0x3a3   : > { %v5749_v13 = vrot.slane %v5748_v56, 1  ;;  %v5763_v16 = vrot.slane %v5762_v45, 1  ;;  %v5681_v1 = vadd.f32 %v5671_v61, %v9102_v34  ;;  %v8133_v34 = vld [vmem:[#allocation12 + $0x38] sm:$0xff]   ;;  %vm8363_vm15 = vmmov 0  }
 0x3a4   : > { %v5755_v54 = vadd.f32 %v5754_v49, %v5753_v59  ;;  %v5769_v42 = vadd.f32 %v5768_v25, %v5767_v17 }
 0x3a5   : > { %v5750_v7 = vadd.f32 %v5749_v13, %v5748_v56  ;;  %v5721_v24 = vadd.f32 %v5711_v32, %v5681_v1  ;;  %v5764_v62 = vadd.f32 %v5763_v16, %v5762_v45 }
 0x3a6   : > { %v5756_v53 = vrot.slane %v5755_v54, 1  ;;  %v5770_v19 = vrot.slane %v5769_v42, 1 }
 0x3a7   : > { %v5772_v3 = vadd.f32 %v5750_v7, %v5719_v39  ;;  %v5774_v23 = vadd.f32 %v5764_v62, %v5721_v24 }
 0x3a8   : > { %v5757_v14 = vadd.f32 %v5756_v53, %v5755_v54  ;;  %v5771_v9 = vadd.f32 %v5770_v19, %v5769_v42 }
 0x3a9   : > { %v5776_v60 = vmul.f32 0.0625, %v5772_v3  ;;  %v5778_v35 = vmul.f32 0.0625, %v5774_v23 }
 0x3aa   : > { %v5773_v55 = vadd.f32 %v5757_v14, %v5720_v4  ;;  %v5775_v5 = vadd.f32 %v5771_v9, %v5722_v0 }
 0x3ab   : > { %v5780_v6 = vpack.c.bf16 %v5776_v60, %v5776_v60  ;;  %v5782_v31 = vpack.c.bf16 %v5778_v35, %v5778_v35 }
 0x3ac   : > { %v5777_v58 = vmul.f32 0.0625, %v5773_v55  ;;  %v5779_v28 = vmul.f32 0.0625, %v5775_v5 }
 0x3ae   : > { %v5781_v63 = vpack.c.bf16 %v5777_v58, %v5777_v58  ;;  %v5783_v46 = vpack.c.bf16 %v5779_v28, %v5779_v28 }
 0x3b0   : > { %6073 = vmatprep.mubr.bf16.mxu0 %v5781_v63  ;;  %6113 = vmatprep.mubr.bf16.mxu1 %v5783_v46 }
 0x3b1   : > { %6074 = vmatmul.mubr.bf16.vlgmr.msra.gmra.mxu0 %v5780_v6  ;;  %6114 = vmatmul.mubr.bf16.vlgmr.msra.gmra.mxu1 %v5782_v31 }
 0x3b2   : > { %7090 = vmatpush3.bf16.msra.mxu0 %v8133_v34  ;;  %7105 = vmatprep.mubr.msk.bf16.mxu0 %vm8363_vm15, %v8362_v10 }
 0x3b3   : > { %7091 = vmatprep.subr.bf16.mxu0 %v8362_v10 }
 0x3b6   : > { %7092 = vmatpush3.bf16.msra.mxu0 %v8134_v51 }
 0x3b7   : > { %7093 = vmatprep.subr.bf16.mxu0 %v8362_v10 }
 0x3ba   : > { %7094 = vmatpush3.bf16.msra.mxu0 %v8135_v15 }
 0x3bb   : > { %7095 = vmatprep.subr.bf16.mxu0 %v8362_v10 }
 0x3be   : > { %7096 = vmatpush3.bf16.msra.mxu0 %v8136_v20 }
 0x3bf   : > { %7097 = vmatprep.subr.bf16.mxu0 %v8362_v10 }
 0x3c2   : > { %7098 = vmatpush3.bf16.msra.mxu0 %v8137_v50 }
 0x3c3   : > { %7099 = vmatprep.subr.bf16.mxu0 %v8362_v10 }
 0x3c6   : > { %7100 = vmatpush3.bf16.msra.mxu0 %v8138_v36 }
 0x3c7   : > { %7101 = vmatprep.subr.bf16.mxu0 %v8362_v10 }
 0x3ca   : > { %7102 = vmatpush3.bf16.msra.mxu0 %v8139_v57 }
 0x3cb   : > { %7103 = vmatprep.subr.bf16.mxu0 %v8362_v10 }
 0x3ce   : > { %7104 = vmatpush3.bf16.msra.mxu0 %v8140_v33 }
 0x471   : > { %v7052_v48 = vpop.f32.mrf.mxu0  ;;  %v7074_v26 = vpop.f32.mrf.mxu1 }
 0x473   : > { %v7053_v2 = vpop.f32.mrf.mxu0  ;;  %v7075_v12 = vpop.f32.mrf.mxu1 }
 0x474   : > { %v7054_v43 = vadd.f32 %v7053_v2, %v7052_v48  ;;  %v7076_v40 = vadd.f32 %v7075_v12, %v7074_v26 }
 0x475   : > { %v7055_v22 = vpop.f32.mrf.mxu0  ;;  %v7077_v29 = vpop.f32.mrf.mxu1 }
 0x476   : > { %v6076_v21 = vadd.f32 %v7054_v43, %v5848_v38 }
 0x477   : > { %v7056_v27 = vpop.f32.mrf.mxu0  ;;  %v7078_v52 = vpop.f32.mrf.mxu1 }
 0x478   : > { %v6116_v37 = vadd.f32 %v7076_v40, %v6076_v21 }
 0x47a   : > { %v6121_v18 = vpack.c.bf16 %v6116_v37, %v6116_v37 }
 0x47c   : > { %7106 = vmatmul.mubr.bf16.vlgmr.msra.gmra.mxu0 %v6121_v18 }
 0x53c   : > { %v6221_v41 = vpop.f32.mrf.mxu0 }
 0x53d   : > { %v6222_v10 = vadd.f32 %v6221_v41, %v6138_v44 }
 0x53e   : > { %v7107_v11 = vpop.f32.mrf.mxu0 }
 0x53f   : > { %v6230_v4 = vrot.slane %v6222_v10, %v9037_v8 }
 0x540   : > { %v6224_v59 = vpop.f32.mrf.mxu0 }
 0x541   : > { %6231 = vst [vmem:[%s397_s22] sm:$0xff] %v6230_v4 }
 0x542   : > { %v7108_v30 = vpop.f32.mrf.mxu0 }
 0x543 PF: > { %s22_s27 = sadd.s32 1, %s8347_s27  }
 0x544   : > { %p19_p10 = scmp.ge.s32.totalorder %s22_s27, 4  }
 0x546   :  { %21 = sbr.rel (!%p19_p10) target bundleno = 4 (0x4), region = 126 }
 0x54b   :  { %6251 = vsyncpa [#allocation5], 1 }
 0x54c   :  { %6253 = vsyncpa [#allocation5 + $0x1], 1 }
 0x54d   :  { %6254 = vsyncpa [#allocation7], 1 }
 0x54e   :  { %6255 = vsyncpa [#allocation10], 1 }
 0x54f   :  { %6256 = vsyncpa [#allocation13], 1 }

</bundles_post_ra>
